<compile_context>
chip_gen: v7x
topology: tpu7x:2x2x1
jax: 0.10.0
libtpu: 0.0.40
codegen_flags: <defaults>
</compile_context>

<pallas_src>
import functools
import math

import jax
import jax.numpy as jnp
from jax.experimental import pallas as pl
from jax.experimental.pallas import tpu as pltpu

MXU_DTYPE = jnp.bfloat16   # MXU operand dtype (f32 accumulation everywhere); None -> keep f32
W_DTYPE = jnp.bfloat16     # weight storage dtype (halves weight HBM<->VMEM DMA)
ACT_DTYPE = jnp.bfloat16   # inter-kernel activation dtype (halves activation DMA)

_VMEM_LIMIT = 48 * 1024 * 1024   # sized for v7x's 64 MiB physical VMEM; raise on v5e/v6e


def _round_up(x, m):
    return ((x + m - 1) // m) * m


def _pick_tm(M, tm_max=256):
    """Row-tile size: 8-aligned, <= tm_max, and >= 2 grid steps when possible (v7x: 2 TCs)."""
    Mr = _round_up(M, 8)
    tm = min(tm_max, Mr)
    if Mr // tm < 2 and Mr > 8:
        tm = _round_up((Mr + 1) // 2, 8)
    return tm


def _mxu(x):
    return x if MXU_DTYPE is None else x.astype(MXU_DTYPE)


# ----------------------------------------------------------------------------
# Pallas kernels
# ----------------------------------------------------------------------------

def _linear_kernel(x_ref, w_ref, b_ref, o_ref, *, relu):
    acc = jnp.dot(_mxu(x_ref[...]), _mxu(w_ref[...]), preferred_element_type=jnp.float32)
    acc = acc + b_ref[...].astype(jnp.float32)
    if relu:
        acc = jnp.maximum(acc, 0.0)
    o_ref[...] = acc.astype(o_ref.dtype)


def linear(x, w, b, relu=False, out_dtype=None, tm_max=256):
    """x: (M, K) @ w: (K, N) + b: (N,).  Full-K / full-N weight block (DMAed once, kept
    VMEM-resident across the M grid); no k grid axis, no accumulator scratch."""
    M, K = x.shape
    N = w.shape[1]
    out_dtype = ACT_DTYPE if out_dtype is None else out_dtype
    tm = _pick_tm(M, tm_max)
    Mp = _round_up(M, tm)
    xp = x if Mp == M else jnp.pad(x, ((0, Mp - M), (0, 0)))
    out = pl.pallas_call(
        functools.partial(_linear_kernel, relu=relu),
        grid=(Mp // tm,),
        in_specs=[pl.BlockSpec((tm, K), lambda i: (i, 0)),
                  pl.BlockSpec((K, N), lambda i: (0, 0)),
                  pl.BlockSpec((1, N), lambda i: (0, 0))],
        out_specs=pl.BlockSpec((tm, N), lambda i: (i, 0)),
        out_shape=jax.ShapeDtypeStruct((Mp, N), out_dtype),
        compiler_params=pltpu.CompilerParams(
            dimension_semantics=("parallel",),
            vmem_limit_bytes=_VMEM_LIMIT),
    )(xp, w, b.reshape(1, N))
    return out[:M] if Mp != M else out


def _ffn_kernel(x_ref, w1_ref, b1_ref, w2_ref, b2_ref, o_ref):
    h = jnp.dot(_mxu(x_ref[...]), _mxu(w1_ref[...]), preferred_element_type=jnp.float32)
    h = jnp.maximum(h + b1_ref[...].astype(jnp.float32), 0.0)
    y = jnp.dot(_mxu(h), _mxu(w2_ref[...]), preferred_element_type=jnp.float32)
    o_ref[...] = (y + b2_ref[...].astype(jnp.float32)).astype(o_ref.dtype)


def ffn(x, w1, b1, w2, b2, tm_max=256):
    """Fused lin1 + ReLU + lin2: the (tm, dff) intermediate never leaves VMEM."""
    M, D = x.shape
    dff = w1.shape[1]
    tm = _pick_tm(M, tm_max)
    Mp = _round_up(M, tm)
    xp = x if Mp == M else jnp.pad(x, ((0, Mp - M), (0, 0)))
    out = pl.pallas_call(
        _ffn_kernel,
        grid=(Mp // tm,),
        in_specs=[pl.BlockSpec((tm, D), lambda i: (i, 0)),
                  pl.BlockSpec((D, dff), lambda i: (0, 0)),
                  pl.BlockSpec((1, dff), lambda i: (0, 0)),
                  pl.BlockSpec((dff, D), lambda i: (0, 0)),
                  pl.BlockSpec((1, D), lambda i: (0, 0))],
        out_specs=pl.BlockSpec((tm, D), lambda i: (i, 0)),
        out_shape=jax.ShapeDtypeStruct((Mp, D), x.dtype),
        compiler_params=pltpu.CompilerParams(
            dimension_semantics=("parallel",),
            vmem_limit_bytes=_VMEM_LIMIT),
    )(xp, w1, b1.reshape(1, dff), w2, b2.reshape(1, D))
    return out[:M] if Mp != M else out


def _add_ln_kernel(a_ref, b_ref, g_ref, beta_ref, o_ref, *, eps):
    x = a_ref[...].astype(jnp.float32) + b_ref[...].astype(jnp.float32)
    mu = jnp.mean(x, axis=-1, keepdims=True)
    var = jnp.mean(jnp.square(x - mu), axis=-1, keepdims=True)
    y = (x - mu) * jax.lax.rsqrt(var + eps)
    o_ref[...] = (y * g_ref[...] + beta_ref[...]).astype(o_ref.dtype)


def add_layernorm(a, b, g, beta, eps=1e-5, tm_max=512):
    """LayerNorm(a + b) over last dim (residual fused, f32 math).  a, b: (M, D)."""
    M, D = a.shape
    tm = _pick_tm(M, tm_max)
    Mp = _round_up(M, tm)
    ap = a if Mp == M else jnp.pad(a, ((0, Mp - M), (0, 0)))
    bp = b if Mp == M else jnp.pad(b, ((0, Mp - M), (0, 0)))
    out = pl.pallas_call(
        functools.partial(_add_ln_kernel, eps=eps),
        grid=(Mp // tm,),
        in_specs=[pl.BlockSpec((tm, D), lambda i: (i, 0)),
                  pl.BlockSpec((tm, D), lambda i: (i, 0)),
                  pl.BlockSpec((1, D), lambda i: (0, 0)),
                  pl.BlockSpec((1, D), lambda i: (0, 0))],
        out_specs=pl.BlockSpec((tm, D), lambda i: (i, 0)),
        out_shape=jax.ShapeDtypeStruct((Mp, D), a.dtype),
        compiler_params=pltpu.CompilerParams(
            dimension_semantics=("parallel",),
            vmem_limit_bytes=_VMEM_LIMIT),
    )(ap, bp, g.reshape(1, D), beta.reshape(1, D))
    return out[:M] if Mp != M else out


def _mha_kernel(q_ref, k_ref, v_ref, o_ref, m_sc, l_sc, acc_sc,
                *, nhead, scale, lk_valid, lk_tile):
    kv = pl.program_id(2)

    @pl.when(kv == 0)
    def _():
        m_sc[...] = jnp.full_like(m_sc, -jnp.inf)
        l_sc[...] = jnp.zeros_like(l_sc)
        acc_sc[...] = jnp.zeros_like(acc_sc)

    tq, D = q_ref.shape[1], q_ref.shape[2]
    tk = k_ref.shape[1]
    Dh = D // nhead

    # One head-major VMEM relayout per step (replaces 3*nhead sub-128-lane slices).
    q = (q_ref[0].astype(jnp.float32) * scale).reshape(tq, nhead, Dh).transpose(1, 0, 2)
    k = k_ref[0].reshape(tk, nhead, Dh).transpose(1, 0, 2)
    v = v_ref[0].reshape(tk, nhead, Dh).transpose(1, 0, 2)

    s = jax.lax.dot_general(_mxu(q), _mxu(k), (((2,), (2,)), ((0,), (0,))),
                            preferred_element_type=jnp.float32)          # (H, tq, tk)
    if lk_valid % lk_tile != 0:            # mask padded key columns (static check)
        col = kv * lk_tile + jax.lax.broadcasted_iota(jnp.int32, s.shape, 2)
        s = jnp.where(col < lk_valid, s, -1e30)

    m_new = jnp.maximum(m_sc[...], jnp.max(s, axis=-1, keepdims=True))   # (H, tq, 1)
    alpha = jnp.exp(m_sc[...] - m_new)
    p = jnp.exp(s - m_new)
    l_sc[...] = alpha * l_sc[...] + jnp.sum(p, axis=-1, keepdims=True)
    acc_sc[...] = alpha * acc_sc[...] + jax.lax.dot_general(
        _mxu(p), _mxu(v), (((2,), (1,)), ((0,), (0,))),
        preferred_element_type=jnp.float32)                              # (H, tq, Dh)
    m_sc[...] = m_new

    @pl.when(kv == pl.num_programs(2) - 1)
    def _():
        o = acc_sc[...] * pl.reciprocal(l_sc[...], approx=True)          # EUP divide
        # Single lane-dense full-width store (no per-head masked stores).
        o_ref[0] = o.transpose(1, 0, 2).reshape(tq, D).astype(o_ref.dtype)


def attention(q, k, v, nhead, tq_max=256, tkv_max=512):
    """Flash-style MHA: grid (B, Lq tiles, Lk tiles), online softmax in VMEM scratch."""
    B, Lq, D = q.shape
    Lk = k.shape[1]
    Dh = D // nhead
    scale = 1.0 / math.sqrt(Dh)
    tq = min(tq_max, _round_up(Lq, 8))
    tkv = min(tkv_max, _round_up(Lk, 8))
    Lqp, Lkp = _round_up(Lq, tq), _round_up(Lk, tkv)
    qp = q if Lqp == Lq else jnp.pad(q, ((0, 0), (0, Lqp - Lq), (0, 0)))
    kp = k if Lkp == Lk else jnp.pad(k, ((0, 0), (0, Lkp - Lk), (0, 0)))
    vp = v if Lkp == Lk else jnp.pad(v, ((0, 0), (0, Lkp - Lk), (0, 0)))
    out = pl.pallas_call(
        functools.partial(_mha_kernel, nhead=nhead, scale=scale,
                          lk_valid=Lk, lk_tile=tkv),
        grid=(B, Lqp // tq, Lkp // tkv),
        in_specs=[pl.BlockSpec((1, tq, D), lambda b, i, j: (b, i, 0)),
                  pl.BlockSpec((1, tkv, D), lambda b, i, j: (b, j, 0)),
                  pl.BlockSpec((1, tkv, D), lambda b, i, j: (b, j, 0))],
        out_specs=pl.BlockSpec((1, tq, D), lambda b, i, j: (b, i, 0)),
        out_shape=jax.ShapeDtypeStruct((B, Lqp, D), q.dtype),
        scratch_shapes=[pltpu.VMEM((nhead, tq, 1), jnp.float32),
                        pltpu.VMEM((nhead, tq, 1), jnp.float32),
                        pltpu.VMEM((nhead, tq, Dh), jnp.float32)],
        compiler_params=pltpu.CompilerParams(
            dimension_semantics=("parallel", "parallel", "arbitrary"),
            vmem_limit_bytes=_VMEM_LIMIT),
    )(qp, kp, vp)
    return out[:, :Lq, :] if Lqp != Lq else out


def _bmm_nt_kernel(a_ref, b_ref, o_ref):
    o_ref[0] = jax.lax.dot_general(_mxu(a_ref[0]), _mxu(b_ref[0]),
                                   (((1,), (1,)), ((), ())),
                                   preferred_element_type=jnp.float32).astype(o_ref.dtype)


def bmm_nt(a, b, out_dtype=jnp.float32):
    """a: (B, M, D), b: (B, N, D) -> (B, M, N) = a @ b^T per batch (no HBM transpose)."""
    B, M, D = a.shape
    N = b.shape[1]
    return pl.pallas_call(
        _bmm_nt_kernel,
        grid=(B,),
        in_specs=[pl.BlockSpec((1, M, D), lambda i: (i, 0, 0)),
                  pl.BlockSpec((1, N, D), lambda i: (i, 0, 0))],
        out_specs=pl.BlockSpec((1, M, N), lambda i: (i, 0, 0)),
        out_shape=jax.ShapeDtypeStruct((B, M, N), out_dtype),
        compiler_params=pltpu.CompilerParams(
            dimension_semantics=("parallel",),
            vmem_limit_bytes=_VMEM_LIMIT),
    )(a, b)


# ----------------------------------------------------------------------------
# Model pieces built from the kernels (glue is plain JAX; activations batch-first)
# ----------------------------------------------------------------------------

def mha(query, kv, p, nhead, self_attention):
    """nn.MultiheadAttention equivalent, batch-first.  query: (B,Lq,D), kv: (B,Lk,D)."""
    B, Lq, D = query.shape
    Lk = kv.shape[1]
    if self_attention:
        qkv = linear(query.reshape(B * Lq, D), p['qkv_w'], p['qkv_b'])   # fused Q/K/V matmul
        q = qkv[:, :D].reshape(B, Lq, D)
        k = qkv[:, D:2 * D].reshape(B, Lq, D)
        v = qkv[:, 2 * D:].reshape(B, Lq, D)
    else:
        q = linear(query.reshape(B * Lq, D), p['q_w'], p['q_b']).reshape(B, Lq, D)
        kv2 = linear(kv.reshape(B * Lk, D), p['kv_w'], p['kv_b'])        # fused K/V matmul
        k = kv2[:, :D].reshape(B, Lk, D)
        v = kv2[:, D:].reshape(B, Lk, D)
    o = attention(q, k, v, nhead)                                        # (B, Lq, D)
    o = linear(o.reshape(B * Lq, D), p['out_w'], p['out_b'])
    return o.reshape(B, Lq, D)


def encoder_block(src, p, nhead):
    B, L, D = src.shape
    sa = mha(src, src, p['self_attn'], nhead, self_attention=True)
    x = add_layernorm(src.reshape(B * L, D), sa.reshape(B * L, D),
                      p['norm1_g'], p['norm1_b'])
    ff = ffn(x, p['lin1_w'], p['lin1_b'], p['lin2_w'], p['lin2_b'])
    x = add_layernorm(x, ff, p['norm2_g'], p['norm2_b'])
    return x.reshape(B, L, D)


def decoder_block(tgt, memory, p, nhead):
    B, L, D = tgt.shape
    sa = mha(tgt, tgt, p['self_attn'], nhead, self_attention=True)
    x = add_layernorm(tgt.reshape(B * L, D), sa.reshape(B * L, D),
                      p['norm1_g'], p['norm1_b']).reshape(B, L, D)
    ca = mha(x, memory, p['cross_attn'], nhead, self_attention=False)
    x = add_layernorm(x.reshape(B * L, D), ca.reshape(B * L, D),
                      p['norm2_g'], p['norm2_b'])
    ff = ffn(x, p['lin1_w'], p['lin1_b'], p['lin2_w'], p['lin2_b'])
    x = add_layernorm(x, ff, p['norm3_g'], p['norm3_b'])
    return x.reshape(B, L, D)


def sinusoidal_pe(max_len, d):
    pos = jnp.arange(max_len, dtype=jnp.float32)[:, None]
    div = jnp.exp(jnp.arange(0, d, 2, dtype=jnp.float32) * (-math.log(10000.0) / d))
    pe = jnp.zeros((max_len, d), dtype=jnp.float32)
    pe = pe.at[:, 0::2].set(jnp.sin(pos * div))
    pe = pe.at[:, 1::2].set(jnp.cos(pos * div))
    return pe


def detr_forward(feat, params, cfg):
    """feat: backbone feature map, NCHW (B, C_backbone, Hf, Wf)."""
    B, Cb, Hf, Wf = feat.shape
    D = cfg['hidden_dim']
    Nq = cfg['num_queries']
    S = Hf * Wf

    # Single NCHW -> channels-last relayout, shared by the 1x1 conv and the mask head.
    feat_2d = feat.reshape(B, Cb, S).transpose(0, 2, 1).reshape(B * S, Cb)

    # x = self.conv(features[-1]); x = x.flatten(2).permute(2, 0, 1)  (here: batch-first)
    x = linear(feat_2d, params['conv_w'], params['conv_b']).reshape(B, S, D)

    # pos = self.pos_encoder(x)  (sinusoidal PE: x + pe, dropout off)
    assert S <= params['pe'].shape[0], "positional-encoding table too short"
    pos = (x.astype(jnp.float32) + params['pe'][None, :S, :]).astype(ACT_DTYPE)

    # encoder (shared weights across layers, as in the reference ModuleList)
    memory = x
    for _ in range(cfg['num_encoder_layers']):
        memory = encoder_block(memory + pos, params['encoder'], cfg['nhead'])

    # decoder: tgt = zeros_like(query_embed)
    query_embed = jnp.broadcast_to(params['query_embed'][None, :, :], (B, Nq, D))
    hs = jnp.zeros_like(query_embed)
    for _ in range(cfg['num_decoder_layers']):
        hs = decoder_block(hs + query_embed, memory, params['decoder'], cfg['nhead'])

    # classification head -> (B, Nq, C+1)
    logits = linear(hs.reshape(B * Nq, D), params['class_w'], params['class_b'],
                    out_dtype=jnp.float32).reshape(B, Nq, -1)

    # mask head: project features (1x1), then query . feature dot product -> (B, Nq, Hf, Wf)
    feat_proj = linear(feat_2d, params['mask_proj_w'], params['mask_proj_b']).reshape(B, S, D)
    masks = bmm_nt(hs, feat_proj).reshape(B, Nq, Hf, Wf)

    return {'pred_logits': logits, 'pred_masks': masks}


# ----------------------------------------------------------------------------
# Deterministic parameter init (weights stored pre-transposed (K, N) and in bf16)
# ----------------------------------------------------------------------------

def _mha_params(key, d, cross=False):
    k1, k2 = jax.random.split(key)
    w_in = 0.02 * jax.random.normal(k1, (d, 3 * d), jnp.float32)     # (K, 3D) layout
    b_in = jnp.zeros((3 * d,), jnp.float32)
    p = {'out_w': (0.02 * jax.random.normal(k2, (d, d), jnp.float32)).astype(W_DTYPE),
         'out_b': jnp.zeros((d,), jnp.float32)}
    if cross:
        p.update({'q_w': w_in[:, :d].astype(W_DTYPE), 'q_b': b_in[:d],
                  'kv_w': w_in[:, d:].astype(W_DTYPE), 'kv_b': b_in[d:]})
    else:
        p.update({'qkv_w': w_in.astype(W_DTYPE), 'qkv_b': b_in})
    return p


def init_params(key, cfg, backbone_out_channels):
    D, dff = cfg['hidden_dim'], cfg['dim_feedforward']
    nC = cfg['num_classes'] + 1
    ks = jax.random.split(key, 12)
    enc = {
        'self_attn': _mha_params(ks[0], D),
        'lin1_w': (0.02 * jax.random.normal(ks[1], (D, dff), jnp.float32)).astype(W_DTYPE),
        'lin1_b': jnp.zeros((dff,), jnp.float32),
        'lin2_w': (0.02 * jax.random.normal(ks[2], (dff, D), jnp.float32)).astype(W_DTYPE),
        'lin2_b': jnp.zeros((D,), jnp.float32),
        'norm1_g': jnp.ones((D,), jnp.float32), 'norm1_b': jnp.zeros((D,), jnp.float32),
        'norm2_g': jnp.ones((D,), jnp.float32), 'norm2_b': jnp.zeros((D,), jnp.float32),
    }
    dec = {
        'self_attn': _mha_params(ks[3], D),
        'cross_attn': _mha_params(ks[4], D, cross=True),
        'lin1_w': (0.02 * jax.random.normal(ks[5], (D, dff), jnp.float32)).astype(W_DTYPE),
        'lin1_b': jnp.zeros((dff,), jnp.float32),
        'lin2_w': (0.02 * jax.random.normal(ks[6], (dff, D), jnp.float32)).astype(W_DTYPE),
        'lin2_b': jnp.zeros((D,), jnp.float32),
        'norm1_g': jnp.ones((D,), jnp.float32), 'norm1_b': jnp.zeros((D,), jnp.float32),
        'norm2_g': jnp.ones((D,), jnp.float32), 'norm2_b': jnp.zeros((D,), jnp.float32),
        'norm3_g': jnp.ones((D,), jnp.float32), 'norm3_b': jnp.zeros((D,), jnp.float32),
    }
    return {
        'conv_w': (0.02 * jax.random.normal(ks[7], (backbone_out_channels, D),
                                            jnp.float32)).astype(W_DTYPE),
        'conv_b': jnp.zeros((D,), jnp.float32),
        'pe': sinusoidal_pe(4096, D),
        'encoder': enc,
        'decoder': dec,
        'query_embed': (0.02 * jax.random.normal(ks[8], (cfg['num_queries'], D),
                                                 jnp.float32)).astype(ACT_DTYPE),
        'class_w': (0.02 * jax.random.normal(ks[9], (D, nC), jnp.float32)).astype(W_DTYPE),
        'class_b': jnp.zeros((nC,), jnp.float32),
        'mask_proj_w': (0.02 * jax.random.normal(ks[10], (backbone_out_channels, D),
                                                 jnp.float32)).astype(W_DTYPE),
        'mask_proj_b': jnp.zeros((D,), jnp.float32),
    }


# ----------------------------------------------------------------------------
# Main
# ----------------------------------------------------------------------------

if __name__ == "__main__":
    # NOTE: toy shapes for a fast correctness run; tiling was designed for the real
    #       DETR dims (D=256, dff=2048, S~850, Nq=100).
    cfg = dict(num_classes=5, num_queries=8, hidden_dim=64, nhead=4,
               num_encoder_layers=2, num_decoder_layers=2, dim_feedforward=128)
    backbone_out_channels = 16     # stand-in for ResNet50's 2048 at small scale
    B, Hf, Wf = 2, 8, 8            # backbone feature spatial dims

    key = jax.random.PRNGKey(0)
    kx, kp = jax.random.split(key)
    feat = jax.random.normal(kx, (B, backbone_out_channels, Hf, Wf), jnp.float32)
    params = init_params(kp, cfg, backbone_out_channels)

    fwd = jax.jit(lambda f, p: detr_forward(f, p, cfg))
    out = jax.block_until_ready(fwd(feat, params))

    assert out['pred_logits'].shape == (B, cfg['num_queries'], cfg['num_classes'] + 1)
    assert out['pred_masks'].shape == (B, cfg['num_queries'], Hf, Wf)
    assert bool(jnp.all(jnp.isfinite(out['pred_logits'])))
    assert bool(jnp.all(jnp.isfinite(out['pred_masks'])))
    print("KERNEL_OK")
</pallas_src>

<mosaic_0001>
module attributes {stable_mosaic.version = 11 : i64} {
  func.func @_linear_kernel(%arg0: i32, %arg1: memref<64x16xf32, #tpu.memory_space<vmem>>, %arg2: memref<16x64xbf16, #tpu.memory_space<vmem>>, %arg3: memref<1x64xf32, #tpu.memory_space<vmem>>, %arg4: memref<64x64xbf16, #tpu.memory_space<vmem>>) attributes {dimension_semantics = [#tpu.dimension_semantics<parallel>], iteration_bounds = array<i64: 2>, scalar_prefetch = 0 : i64, scratch_operands = 0 : i64, tpu.core_type = #tpu.core_type<tc>, window_params = [{transform_indices = @transform_0, window_bounds = array<i64: 64, 16>}, {pipeline_mode = #tpu.pipeline_mode<synchronous>, transform_indices = @transform_1, window_bounds = array<i64: 16, 64>}, {pipeline_mode = #tpu.pipeline_mode<synchronous>, transform_indices = @transform_2, window_bounds = array<i64: 1, 64>}, {transform_indices = @transform_3, window_bounds = array<i64: 64, 64>}]} {
    %c0 = arith.constant 0 : index
    %c0_0 = arith.constant 0 : index
    %0 = vector.load %arg1[%c0, %c0_0] : memref<64x16xf32, #tpu.memory_space<vmem>>, vector<64x16xf32>
    %1 = arith.truncf %0 : vector<64x16xf32> to vector<64x16xbf16>
    %c0_1 = arith.constant 0 : index
    %c0_2 = arith.constant 0 : index
    %2 = vector.load %arg2[%c0_1, %c0_2] : memref<16x64xbf16, #tpu.memory_space<vmem>>, vector<16x64xbf16>
    %cst = arith.constant dense<0.000000e+00> : vector<64x64xf32>
    %3 = tpu.matmul %1, %2, %cst {dimension_numbers = #tpu.dot_dimension_numbers<[1], [0], [0], [1], [0, 0, 1, 1], [], []>} : vector<64x16xbf16>, vector<16x64xbf16>, vector<64x64xf32> -> vector<64x64xf32>
    %c0_3 = arith.constant 0 : index
    %c0_4 = arith.constant 0 : index
    %4 = vector.load %arg3[%c0_3, %c0_4] : memref<1x64xf32, #tpu.memory_space<vmem>>, vector<1x64xf32>
    %5 = vector.broadcast %4 : vector<1x64xf32> to vector<64x64xf32>
    %6 = arith.addf %3, %5 : vector<64x64xf32>
    %7 = arith.truncf %6 : vector<64x64xf32> to vector<64x64xbf16>
    %c0_5 = arith.constant 0 : index
    %c0_6 = arith.constant 0 : index
    %8 = vector.load %arg4[%c0_5, %c0_6] : memref<64x64xbf16, #tpu.memory_space<vmem>>, vector<64x64xbf16>
    tpu.vector_store %arg4[%c0_5, %c0_6], %7 {strides = array<i32>} : memref<64x64xbf16, #tpu.memory_space<vmem>>, vector<64x64xbf16>,
    return
  }
  func.func @transform_0(%arg0: i32) -> (i32, i32) {
    %c0_i32 = arith.constant 0 : i32
    %c0_i32_0 = arith.constant 0 : i32
    return %arg0, %c0_i32 : i32, i32
  }
  func.func @transform_1(%arg0: i32) -> (i32, i32) {
    %c0_i32 = arith.constant 0 : i32
    %c0_i32_0 = arith.constant 0 : i32
    %c0_i32_1 = arith.constant 0 : i32
    return %c0_i32, %c0_i32_0 : i32, i32
  }
  func.func @transform_2(%arg0: i32) -> (i32, i32) {
    %c0_i32 = arith.constant 0 : i32
    %c0_i32_0 = arith.constant 0 : i32
    %c0_i32_1 = arith.constant 0 : i32
    return %c0_i32, %c0_i32_0 : i32, i32
  }
  func.func @transform_3(%arg0: i32) -> (i32, i32) {
    %c0_i32 = arith.constant 0 : i32
    %c0_i32_0 = arith.constant 0 : i32
    return %arg0, %c0_i32 : i32, i32
  }
}

module attributes {stable_mosaic.version = 11 : i64} {
  func.func @_linear_kernel(%arg0: i32, %arg1: memref<64x64xbf16, #tpu.memory_space<vmem>>, %arg2: memref<64x192xbf16, #tpu.memory_space<vmem>>, %arg3: memref<1x192xf32, #tpu.memory_space<vmem>>, %arg4: memref<64x192xbf16, #tpu.memory_space<vmem>>) attributes {dimension_semantics = [#tpu.dimension_semantics<parallel>], iteration_bounds = array<i64: 2>, scalar_prefetch = 0 : i64, scratch_operands = 0 : i64, tpu.core_type = #tpu.core_type<tc>, window_params = [{transform_indices = @transform_0, window_bounds = array<i64: 64, 64>}, {pipeline_mode = #tpu.pipeline_mode<synchronous>, transform_indices = @transform_1, window_bounds = array<i64: 64, 192>}, {pipeline_mode = #tpu.pipeline_mode<synchronous>, transform_indices = @transform_2, window_bounds = array<i64: 1, 192>}, {transform_indices = @transform_3, window_bounds = array<i64: 64, 192>}]} {
    %c0 = arith.constant 0 : index
    %c0_0 = arith.constant 0 : index
    %0 = vector.load %arg1[%c0, %c0_0] : memref<64x64xbf16, #tpu.memory_space<vmem>>, vector<64x64xbf16>
    %c0_1 = arith.constant 0 : index
    %c0_2 = arith.constant 0 : index
    %1 = vector.load %arg2[%c0_1, %c0_2] : memref<64x192xbf16, #tpu.memory_space<vmem>>, vector<64x192xbf16>
    %cst = arith.constant dense<0.000000e+00> : vector<64x192xf32>
    %2 = tpu.matmul %0, %1, %cst {dimension_numbers = #tpu.dot_dimension_numbers<[1], [0], [0], [1], [0, 0, 1, 1], [], []>} : vector<64x64xbf16>, vector<64x192xbf16>, vector<64x192xf32> -> vector<64x192xf32>
    %c0_3 = arith.constant 0 : index
    %c0_4 = arith.constant 0 : index
    %3 = vector.load %arg3[%c0_3, %c0_4] : memref<1x192xf32, #tpu.memory_space<vmem>>, vector<1x192xf32>
    %4 = vector.broadcast %3 : vector<1x192xf32> to vector<64x192xf32>
    %5 = arith.addf %2, %4 : vector<64x192xf32>
    %6 = arith.truncf %5 : vector<64x192xf32> to vector<64x192xbf16>
    %c0_5 = arith.constant 0 : index
    %c0_6 = arith.constant 0 : index
    %7 = vector.load %arg4[%c0_5, %c0_6] : memref<64x192xbf16, #tpu.memory_space<vmem>>, vector<64x192xbf16>
    tpu.vector_store %arg4[%c0_5, %c0_6], %6 {strides = array<i32>} : memref<64x192xbf16, #tpu.memory_space<vmem>>, vector<64x192xbf16>,
    return
  }
  func.func @transform_0(%arg0: i32) -> (i32, i32) {
    %c0_i32 = arith.constant 0 : i32
    %c0_i32_0 = arith.constant 0 : i32
    return %arg0, %c0_i32 : i32, i32
  }
  func.func @transform_1(%arg0: i32) -> (i32, i32) {
    %c0_i32 = arith.constant 0 : i32
    %c0_i32_0 = arith.constant 0 : i32
    %c0_i32_1 = arith.constant 0 : i32
    return %c0_i32, %c0_i32_0 : i32, i32
  }
  func.func @transform_2(%arg0: i32) -> (i32, i32) {
    %c0_i32 = arith.constant 0 : i32
    %c0_i32_0 = arith.constant 0 : i32
    %c0_i32_1 = arith.constant 0 : i32
    return %c0_i32, %c0_i32_0 : i32, i32
  }
  func.func @transform_3(%arg0: i32) -> (i32, i32) {
    %c0_i32 = arith.constant 0 : i32
    %c0_i32_0 = arith.constant 0 : i32
    return %arg0, %c0_i32 : i32, i32
  }
}

module attributes {stable_mosaic.version = 11 : i64} {
  func.func @_mha_kernel(%arg0: i32, %arg1: i32, %arg2: i32, %arg3: memref<1x64x64xbf16, #tpu.memory_space<vmem>>, %arg4: memref<1x64x64xbf16, #tpu.memory_space<vmem>>, %arg5: memref<1x64x64xbf16, #tpu.memory_space<vmem>>, %arg6: memref<1x64x64xbf16, #tpu.memory_space<vmem>>, %arg7: memref<4x64x1xf32, #tpu.memory_space<vmem>>, %arg8: memref<4x64x1xf32, #tpu.memory_space<vmem>>, %arg9: memref<4x64x16xf32, #tpu.memory_space<vmem>>) attributes {dimension_semantics = [#tpu.dimension_semantics<parallel>, #tpu.dimension_semantics<parallel>, #tpu.dimension_semantics<arbitrary>], iteration_bounds = array<i64: 2, 1, 1>, scalar_prefetch = 0 : i64, scratch_operands = 3 : i64, tpu.core_type = #tpu.core_type<tc>, window_params = [{transform_indices = @transform_0, window_bounds = array<i64: 1, 64, 64>}, {transform_indices = @transform_1, window_bounds = array<i64: 1, 64, 64>}, {transform_indices = @transform_2, window_bounds = array<i64: 1, 64, 64>}, {transform_indices = @transform_3, window_bounds = array<i64: 1, 64, 64>}]} {
    %c0_i32 = arith.constant 0 : i32
    %0 = arith.cmpi eq, %arg2, %c0_i32 : i32
    %1 = arith.extui %0 : i1 to i32
    %c0_i32_0 = arith.constant 0 : i32
    %2 = arith.cmpi ne, %1, %c0_i32_0 : i32
    scf.if %2 {
      %cst_36 = arith.constant 0xFF800000 : f32
      %47 = vector.broadcast %cst_36 : f32 to vector<4x64x1xf32>
      %c0_37 = arith.constant 0 : index
      %c0_38 = arith.constant 0 : index
      %c0_39 = arith.constant 0 : index
      %48 = vector.load %arg7[%c0_37, %c0_38, %c0_39] : memref<4x64x1xf32, #tpu.memory_space<vmem>>, vector<4x64x1xf32>
      tpu.vector_store %arg7[%c0_37, %c0_38, %c0_39], %47 {strides = array<i32>} : memref<4x64x1xf32, #tpu.memory_space<vmem>>, vector<4x64x1xf32>,
      %cst_40 = arith.constant 0.000000e+00 : f32
      %49 = vector.broadcast %cst_40 : f32 to vector<4x64x1xf32>
      %c0_41 = arith.constant 0 : index
      %c0_42 = arith.constant 0 : index
      %c0_43 = arith.constant 0 : index
      %50 = vector.load %arg8[%c0_41, %c0_42, %c0_43] : memref<4x64x1xf32, #tpu.memory_space<vmem>>, vector<4x64x1xf32>
      tpu.vector_store %arg8[%c0_41, %c0_42, %c0_43], %49 {strides = array<i32>} : memref<4x64x1xf32, #tpu.memory_space<vmem>>, vector<4x64x1xf32>,
      %cst_44 = arith.constant 0.000000e+00 : f32
      %51 = vector.broadcast %cst_44 : f32 to vector<4x64x16xf32>
      %c0_45 = arith.constant 0 : index
      %c0_46 = arith.constant 0 : index
      %c0_47 = arith.constant 0 : index
      %52 = vector.load %arg9[%c0_45, %c0_46, %c0_47] : memref<4x64x16xf32, #tpu.memory_space<vmem>>, vector<4x64x16xf32>
      tpu.vector_store %arg9[%c0_45, %c0_46, %c0_47], %51 {strides = array<i32>} : memref<4x64x16xf32, #tpu.memory_space<vmem>>, vector<4x64x16xf32>,
    } else {
    }
    %c0 = arith.constant 0 : index
    %c0_1 = arith.constant 0 : index
    %c0_2 = arith.constant 0 : index
    %3 = vector.load %arg3[%c0, %c0_1, %c0_2] : memref<1x64x64xbf16, #tpu.memory_space<vmem>>, vector<1x64x64xbf16>
    %4 = vector.shape_cast %3 : vector<1x64x64xbf16> to vector<64x64xbf16>
    %5 = arith.extf %4 : vector<64x64xbf16> to vector<64x64xf32>
    %cst = arith.constant 2.500000e-01 : f32
    %6 = vector.broadcast %cst : f32 to vector<64x64xf32>
    %7 = arith.mulf %5, %6 : vector<64x64xf32>
    %8 = vector.shape_cast %7 : vector<64x64xf32> to vector<64x4x16xf32>
    %9 = tpu.transpose %8, [1, 0, 2] : vector<64x4x16xf32> -> vector<4x64x16xf32>
    %c0_3 = arith.constant 0 : index
    %c0_4 = arith.constant 0 : index
    %c0_5 = arith.constant 0 : index
    %10 = vector.load %arg4[%c0_3, %c0_4, %c0_5] : memref<1x64x64xbf16, #tpu.memory_space<vmem>>, vector<1x64x64xbf16>
    %11 = vector.shape_cast %10 : vector<1x64x64xbf16> to vector<64x64xbf16>
    %12 = vector.shape_cast %11 : vector<64x64xbf16> to vector<64x4x16xbf16>
    %13 = tpu.transpose %12, [1, 0, 2] : vector<64x4x16xbf16> -> vector<4x64x16xbf16>
    %c0_6 = arith.constant 0 : index
    %c0_7 = arith.constant 0 : index
    %c0_8 = arith.constant 0 : index
    %14 = vector.load %arg5[%c0_6, %c0_7, %c0_8] : memref<1x64x64xbf16, #tpu.memory_space<vmem>>, vector<1x64x64xbf16>
    %15 = vector.shape_cast %14 : vector<1x64x64xbf16> to vector<64x64xbf16>
    %16 = vector.shape_cast %15 : vector<64x64xbf16> to vector<64x4x16xbf16>
    %17 = tpu.transpose %16, [1, 0, 2] : vector<64x4x16xbf16> -> vector<4x64x16xbf16>
    %18 = arith.truncf %9 : vector<4x64x16xf32> to vector<4x64x16xbf16>
    %cst_9 = arith.constant dense<0.000000e+00> : vector<4x64x64xf32>
    %19 = tpu.matmul %18, %13, %cst_9 {dimension_numbers = #tpu.dot_dimension_numbers<[2], [2], [1], [1], [0, 0, 0, 1, 1, 1], [0], [0]>} : vector<4x64x16xbf16>, vector<4x64x16xbf16>, vector<4x64x64xf32> -> vector<4x64x64xf32>
    %c0_10 = arith.constant 0 : index
    %c0_11 = arith.constant 0 : index
    %c0_12 = arith.constant 0 : index
    %20 = vector.load %arg7[%c0_10, %c0_11, %c0_12] : memref<4x64x1xf32, #tpu.memory_space<vmem>>, vector<4x64x1xf32>
    %cst_13 = arith.constant dense<0xFF800000> : vector<4x64xf32>
    %21 = vector.multi_reduction <maximumf>, %19, %cst_13 [2] : vector<4x64x64xf32> to vector<4x64xf32>
    %22 = vector.shape_cast %21 : vector<4x64xf32> to vector<4x64x1xf32>
    %23 = arith.maximumf %20, %22 : vector<4x64x1xf32>
    %c0_14 = arith.constant 0 : index
    %c0_15 = arith.constant 0 : index
    %c0_16 = arith.constant 0 : index
    %24 = vector.load %arg7[%c0_14, %c0_15, %c0_16] : memref<4x64x1xf32, #tpu.memory_space<vmem>>, vector<4x64x1xf32>
    %25 = arith.subf %24, %23 : vector<4x64x1xf32>
    %26 = math.exp %25 : vector<4x64x1xf32>
    %27 = vector.broadcast %23 : vector<4x64x1xf32> to vector<4x64x64xf32>
    %28 = arith.subf %19, %27 : vector<4x64x64xf32>
    %29 = math.exp %28 : vector<4x64x64xf32>
    %c0_17 = arith.constant 0 : index
    %c0_18 = arith.constant 0 : index
    %c0_19 = arith.constant 0 : index
    %30 = vector.load %arg8[%c0_17, %c0_18, %c0_19] : memref<4x64x1xf32, #tpu.memory_space<vmem>>, vector<4x64x1xf32>
    %31 = arith.mulf %26, %30 : vector<4x64x1xf32>
    %cst_20 = arith.constant dense<0.000000e+00> : vector<4x64xf32>
    %32 = vector.multi_reduction <add>, %29, %cst_20 [2] : vector<4x64x64xf32> to vector<4x64xf32>
    %33 = vector.shape_cast %32 : vector<4x64xf32> to vector<4x64x1xf32>
    %34 = arith.addf %31, %33 : vector<4x64x1xf32>
    %c0_21 = arith.constant 0 : index
    %c0_22 = arith.constant 0 : index
    %c0_23 = arith.constant 0 : index
    %35 = vector.load %arg8[%c0_21, %c0_22, %c0_23] : memref<4x64x1xf32, #tpu.memory_space<vmem>>, vector<4x64x1xf32>
    tpu.vector_store %arg8[%c0_21, %c0_22, %c0_23], %34 {strides = array<i32>} : memref<4x64x1xf32, #tpu.memory_space<vmem>>, vector<4x64x1xf32>,
    %c0_24 = arith.constant 0 : index
    %c0_25 = arith.constant 0 : index
    %c0_26 = arith.constant 0 : index
    %36 = vector.load %arg9[%c0_24, %c0_25, %c0_26] : memref<4x64x16xf32, #tpu.memory_space<vmem>>, vector<4x64x16xf32>
    %37 = vector.broadcast %26 : vector<4x64x1xf32> to vector<4x64x16xf32>
    %38 = arith.mulf %37, %36 : vector<4x64x16xf32>
    %39 = arith.truncf %29 : vector<4x64x64xf32> to vector<4x64x64xbf16>
    %cst_27 = arith.constant dense<0.000000e+00> : vector<4x64x16xf32>
    %40 = tpu.matmul %39, %17, %cst_27 {dimension_numbers = #tpu.dot_dimension_numbers<[2], [1], [1], [2], [0, 0, 0, 1, 1, 2], [0], [0]>} : vector<4x64x64xbf16>, vector<4x64x16xbf16>, vector<4x64x16xf32> -> vector<4x64x16xf32>
    %41 = arith.addf %38, %40 : vector<4x64x16xf32>
    %c0_28 = arith.constant 0 : index
    %c0_29 = arith.constant 0 : index
    %c0_30 = arith.constant 0 : index
    %42 = vector.load %arg9[%c0_28, %c0_29, %c0_30] : memref<4x64x16xf32, #tpu.memory_space<vmem>>, vector<4x64x16xf32>
    tpu.vector_store %arg9[%c0_28, %c0_29, %c0_30], %41 {strides = array<i32>} : memref<4x64x16xf32, #tpu.memory_space<vmem>>, vector<4x64x16xf32>,
    %c0_31 = arith.constant 0 : index
    %c0_32 = arith.constant 0 : index
    %c0_33 = arith.constant 0 : index
    %43 = vector.load %arg7[%c0_31, %c0_32, %c0_33] : memref<4x64x1xf32, #tpu.memory_space<vmem>>, vector<4x64x1xf32>
    tpu.vector_store %arg7[%c0_31, %c0_32, %c0_33], %23 {strides = array<i32>} : memref<4x64x1xf32, #tpu.memory_space<vmem>>, vector<4x64x1xf32>,
    %c0_i32_34 = arith.constant 0 : i32
    %44 = arith.cmpi eq, %arg2, %c0_i32_34 : i32
    %45 = arith.extui %44 : i1 to i32
    %c0_i32_35 = arith.constant 0 : i32
    %46 = arith.cmpi ne, %45, %c0_i32_35 : i32
    scf.if %46 {
      %c0_36 = arith.constant 0 : index
      %c0_37 = arith.constant 0 : index
      %c0_38 = arith.constant 0 : index
      %47 = vector.load %arg9[%c0_36, %c0_37, %c0_38] : memref<4x64x16xf32, #tpu.memory_space<vmem>>, vector<4x64x16xf32>
      %c0_39 = arith.constant 0 : index
      %c0_40 = arith.constant 0 : index
      %c0_41 = arith.constant 0 : index
      %48 = vector.load %arg8[%c0_39, %c0_40, %c0_41] : memref<4x64x1xf32, #tpu.memory_space<vmem>>, vector<4x64x1xf32>
      %49 = tpu.reciprocal %48 {approx = true} : vector<4x64x1xf32> -> vector<4x64x1xf32>
      %50 = vector.broadcast %49 : vector<4x64x1xf32> to vector<4x64x16xf32>
      %51 = arith.mulf %47, %50 : vector<4x64x16xf32>
      %52 = tpu.transpose %51, [1, 0, 2] : vector<4x64x16xf32> -> vector<64x4x16xf32>
      %53 = vector.shape_cast %52 : vector<64x4x16xf32> to vector<64x64xf32>
      %54 = arith.truncf %53 : vector<64x64xf32> to vector<64x64xbf16>
      %c0_42 = arith.constant 0 : index
      %c0_43 = arith.constant 0 : index
      %c0_44 = arith.constant 0 : index
      %55 = vector.load %arg6[%c0_42, %c0_43, %c0_44] : memref<1x64x64xbf16, #tpu.memory_space<vmem>>, vector<1x64x64xbf16>
      %56 = vector.shape_cast %55 : vector<1x64x64xbf16> to vector<64x64xbf16>
      %57 = vector.shape_cast %54 : vector<64x64xbf16> to vector<1x64x64xbf16>
      tpu.vector_store %arg6[%c0_42, %c0_43, %c0_44], %57 {strides = array<i32>} : memref<1x64x64xbf16, #tpu.memory_space<vmem>>, vector<1x64x64xbf16>,
    } else {
    }
    return
  }
  func.func @transform_0(%arg0: i32, %arg1: i32, %arg2: i32) -> (i32, i32, i32) {
    %c0_i32 = arith.constant 0 : i32
    %c0_i32_0 = arith.constant 0 : i32
    return %arg0, %arg1, %c0_i32 : i32, i32, i32
  }
  func.func @transform_1(%arg0: i32, %arg1: i32, %arg2: i32) -> (i32, i32, i32) {
    %c0_i32 = arith.constant 0 : i32
    %c0_i32_0 = arith.constant 0 : i32
    return %arg0, %arg2, %c0_i32 : i32, i32, i32
  }
  func.func @transform_2(%arg0: i32, %arg1: i32, %arg2: i32) -> (i32, i32, i32) {
    %c0_i32 = arith.constant 0 : i32
    %c0_i32_0 = arith.constant 0 : i32
    return %arg0, %arg2, %c0_i32 : i32, i32, i32
  }
  func.func @transform_3(%arg0: i32, %arg1: i32, %arg2: i32) -> (i32, i32, i32) {
    %c0_i32 = arith.constant 0 : i32
    %c0_i32_0 = arith.constant 0 : i32
    return %arg0, %arg1, %c0_i32 : i32, i32, i32
  }
}

module attributes {stable_mosaic.version = 11 : i64} {
  func.func @_linear_kernel(%arg0: i32, %arg1: memref<64x64xbf16, #tpu.memory_space<vmem>>, %arg2: memref<64x64xbf16, #tpu.memory_space<vmem>>, %arg3: memref<1x64xf32, #tpu.memory_space<vmem>>, %arg4: memref<64x64xbf16, #tpu.memory_space<vmem>>) attributes {dimension_semantics = [#tpu.dimension_semantics<parallel>], iteration_bounds = array<i64: 2>, scalar_prefetch = 0 : i64, scratch_operands = 0 : i64, tpu.core_type = #tpu.core_type<tc>, window_params = [{transform_indices = @transform_0, window_bounds = array<i64: 64, 64>}, {pipeline_mode = #tpu.pipeline_mode<synchronous>, transform_indices = @transform_1, window_bounds = array<i64: 64, 64>}, {pipeline_mode = #tpu.pipeline_mode<synchronous>, transform_indices = @transform_2, window_bounds = array<i64: 1, 64>}, {transform_indices = @transform_3, window_bounds = array<i64: 64, 64>}]} {
    %c0 = arith.constant 0 : index
    %c0_0 = arith.constant 0 : index
    %0 = vector.load %arg1[%c0, %c0_0] : memref<64x64xbf16, #tpu.memory_space<vmem>>, vector<64x64xbf16>
    %c0_1 = arith.constant 0 : index
    %c0_2 = arith.constant 0 : index
    %1 = vector.load %arg2[%c0_1, %c0_2] : memref<64x64xbf16, #tpu.memory_space<vmem>>, vector<64x64xbf16>
    %cst = arith.constant dense<0.000000e+00> : vector<64x64xf32>
    %2 = tpu.matmul %0, %1, %cst {dimension_numbers = #tpu.dot_dimension_numbers<[1], [0], [0], [1], [0, 0, 1, 1], [], []>} : vector<64x64xbf16>, vector<64x64xbf16>, vector<64x64xf32> -> vector<64x64xf32>
    %c0_3 = arith.constant 0 : index
    %c0_4 = arith.constant 0 : index
    %3 = vector.load %arg3[%c0_3, %c0_4] : memref<1x64xf32, #tpu.memory_space<vmem>>, vector<1x64xf32>
    %4 = vector.broadcast %3 : vector<1x64xf32> to vector<64x64xf32>
    %5 = arith.addf %2, %4 : vector<64x64xf32>
    %6 = arith.truncf %5 : vector<64x64xf32> to vector<64x64xbf16>
    %c0_5 = arith.constant 0 : index
    %c0_6 = arith.constant 0 : index
    %7 = vector.load %arg4[%c0_5, %c0_6] : memref<64x64xbf16, #tpu.memory_space<vmem>>, vector<64x64xbf16>
    tpu.vector_store %arg4[%c0_5, %c0_6], %6 {strides = array<i32>} : memref<64x64xbf16, #tpu.memory_space<vmem>>, vector<64x64xbf16>,
    return
  }
  func.func @transform_0(%arg0: i32) -> (i32, i32) {
    %c0_i32 = arith.constant 0 : i32
    %c0_i32_0 = arith.constant 0 : i32
    return %arg0, %c0_i32 : i32, i32
  }
  func.func @transform_1(%arg0: i32) -> (i32, i32) {
    %c0_i32 = arith.constant 0 : i32
    %c0_i32_0 = arith.constant 0 : i32
    %c0_i32_1 = arith.constant 0 : i32
    return %c0_i32, %c0_i32_0 : i32, i32
  }
  func.func @transform_2(%arg0: i32) -> (i32, i32) {
    %c0_i32 = arith.constant 0 : i32
    %c0_i32_0 = arith.constant 0 : i32
    %c0_i32_1 = arith.constant 0 : i32
    return %c0_i32, %c0_i32_0 : i32, i32
  }
  func.func @transform_3(%arg0: i32) -> (i32, i32) {
    %c0_i32 = arith.constant 0 : i32
    %c0_i32_0 = arith.constant 0 : i32
    return %arg0, %c0_i32 : i32, i32
  }
}

module attributes {stable_mosaic.version = 11 : i64} {
  func.func @_add_ln_kernel(%arg0: i32, %arg1: memref<64x64xbf16, #tpu.memory_space<vmem>>, %arg2: memref<64x64xbf16, #tpu.memory_space<vmem>>, %arg3: memref<1x64xf32, #tpu.memory_space<vmem>>, %arg4: memref<1x64xf32, #tpu.memory_space<vmem>>, %arg5: memref<64x64xbf16, #tpu.memory_space<vmem>>) attributes {dimension_semantics = [#tpu.dimension_semantics<parallel>], iteration_bounds = array<i64: 2>, scalar_prefetch = 0 : i64, scratch_operands = 0 : i64, tpu.core_type = #tpu.core_type<tc>, window_params = [{transform_indices = @transform_0, window_bounds = array<i64: 64, 64>}, {transform_indices = @transform_1, window_bounds = array<i64: 64, 64>}, {pipeline_mode = #tpu.pipeline_mode<synchronous>, transform_indices = @transform_2, window_bounds = array<i64: 1, 64>}, {pipeline_mode = #tpu.pipeline_mode<synchronous>, transform_indices = @transform_3, window_bounds = array<i64: 1, 64>}, {transform_indices = @transform_4, window_bounds = array<i64: 64, 64>}]} {
    %c0 = arith.constant 0 : index
    %c0_0 = arith.constant 0 : index
    %0 = vector.load %arg1[%c0, %c0_0] : memref<64x64xbf16, #tpu.memory_space<vmem>>, vector<64x64xbf16>
    %1 = arith.extf %0 : vector<64x64xbf16> to vector<64x64xf32>
    %c0_1 = arith.constant 0 : index
    %c0_2 = arith.constant 0 : index
    %2 = vector.load %arg2[%c0_1, %c0_2] : memref<64x64xbf16, #tpu.memory_space<vmem>>, vector<64x64xbf16>
    %3 = arith.extf %2 : vector<64x64xbf16> to vector<64x64xf32>
    %4 = arith.addf %1, %3 : vector<64x64xf32>
    %cst = arith.constant dense<0.000000e+00> : vector<64xf32>
    %5 = vector.multi_reduction <add>, %4, %cst [1] : vector<64x64xf32> to vector<64xf32>
    %6 = vector.shape_cast %5 : vector<64xf32> to vector<64x1xf32>
    %cst_3 = arith.constant 6.400000e+01 : f32
    %7 = vector.broadcast %cst_3 : f32 to vector<64x1xf32>
    %8 = arith.divf %6, %7 : vector<64x1xf32>
    %9 = vector.broadcast %8 : vector<64x1xf32> to vector<64x64xf32>
    %10 = arith.subf %4, %9 : vector<64x64xf32>
    %11 = arith.mulf %10, %10 : vector<64x64xf32>
    %cst_4 = arith.constant dense<0.000000e+00> : vector<64xf32>
    %12 = vector.multi_reduction <add>, %11, %cst_4 [1] : vector<64x64xf32> to vector<64xf32>
    %13 = vector.shape_cast %12 : vector<64xf32> to vector<64x1xf32>
    %cst_5 = arith.constant 6.400000e+01 : f32
    %14 = vector.broadcast %cst_5 : f32 to vector<64x1xf32>
    %15 = arith.divf %13, %14 : vector<64x1xf32>
    %16 = vector.broadcast %8 : vector<64x1xf32> to vector<64x64xf32>
    %17 = arith.subf %4, %16 : vector<64x64xf32>
    %cst_6 = arith.constant 9.99999974E-6 : f32
    %18 = vector.broadcast %cst_6 : f32 to vector<64x1xf32>
    %19 = arith.addf %15, %18 : vector<64x1xf32>
    %20 = math.rsqrt %19 : vector<64x1xf32>
    %21 = vector.broadcast %20 : vector<64x1xf32> to vector<64x64xf32>
    %22 = arith.mulf %17, %21 : vector<64x64xf32>
    %c0_7 = arith.constant 0 : index
    %c0_8 = arith.constant 0 : index
    %23 = vector.load %arg3[%c0_7, %c0_8] : memref<1x64xf32, #tpu.memory_space<vmem>>, vector<1x64xf32>
    %24 = vector.broadcast %23 : vector<1x64xf32> to vector<64x64xf32>
    %25 = arith.mulf %22, %24 : vector<64x64xf32>
    %c0_9 = arith.constant 0 : index
    %c0_10 = arith.constant 0 : index
    %26 = vector.load %arg4[%c0_9, %c0_10] : memref<1x64xf32, #tpu.memory_space<vmem>>, vector<1x64xf32>
    %27 = vector.broadcast %26 : vector<1x64xf32> to vector<64x64xf32>
    %28 = arith.addf %25, %27 : vector<64x64xf32>
    %29 = arith.truncf %28 : vector<64x64xf32> to vector<64x64xbf16>
    %c0_11 = arith.constant 0 : index
    %c0_12 = arith.constant 0 : index
    %30 = vector.load %arg5[%c0_11, %c0_12] : memref<64x64xbf16, #tpu.memory_space<vmem>>, vector<64x64xbf16>
    tpu.vector_store %arg5[%c0_11, %c0_12], %29 {strides = array<i32>} : memref<64x64xbf16, #tpu.memory_space<vmem>>, vector<64x64xbf16>,
    return
  }
  func.func @transform_0(%arg0: i32) -> (i32, i32) {
    %c0_i32 = arith.constant 0 : i32
    %c0_i32_0 = arith.constant 0 : i32
    return %arg0, %c0_i32 : i32, i32
  }
  func.func @transform_1(%arg0: i32) -> (i32, i32) {
    %c0_i32 = arith.constant 0 : i32
    %c0_i32_0 = arith.constant 0 : i32
    return %arg0, %c0_i32 : i32, i32
  }
  func.func @transform_2(%arg0: i32) -> (i32, i32) {
    %c0_i32 = arith.constant 0 : i32
    %c0_i32_0 = arith.constant 0 : i32
    %c0_i32_1 = arith.constant 0 : i32
    return %c0_i32, %c0_i32_0 : i32, i32
  }
  func.func @transform_3(%arg0: i32) -> (i32, i32) {
    %c0_i32 = arith.constant 0 : i32
    %c0_i32_0 = arith.constant 0 : i32
    %c0_i32_1 = arith.constant 0 : i32
    return %c0_i32, %c0_i32_0 : i32, i32
  }
  func.func @transform_4(%arg0: i32) -> (i32, i32) {
    %c0_i32 = arith.constant 0 : i32
    %c0_i32_0 = arith.constant 0 : i32
    return %arg0, %c0_i32 : i32, i32
  }
}

module attributes {stable_mosaic.version = 11 : i64} {
  func.func @_ffn_kernel(%arg0: i32, %arg1: memref<64x64xbf16, #tpu.memory_space<vmem>>, %arg2: memref<64x128xbf16, #tpu.memory_space<vmem>>, %arg3: memref<1x128xf32, #tpu.memory_space<vmem>>, %arg4: memref<128x64xbf16, #tpu.memory_space<vmem>>, %arg5: memref<1x64xf32, #tpu.memory_space<vmem>>, %arg6: memref<64x64xbf16, #tpu.memory_space<vmem>>) attributes {dimension_semantics = [#tpu.dimension_semantics<parallel>], iteration_bounds = array<i64: 2>, scalar_prefetch = 0 : i64, scratch_operands = 0 : i64, tpu.core_type = #tpu.core_type<tc>, window_params = [{transform_indices = @transform_0, window_bounds = array<i64: 64, 64>}, {pipeline_mode = #tpu.pipeline_mode<synchronous>, transform_indices = @transform_1, window_bounds = array<i64: 64, 128>}, {pipeline_mode = #tpu.pipeline_mode<synchronous>, transform_indices = @transform_2, window_bounds = array<i64: 1, 128>}, {pipeline_mode = #tpu.pipeline_mode<synchronous>, transform_indices = @transform_3, window_bounds = array<i64: 128, 64>}, {pipeline_mode = #tpu.pipeline_mode<synchronous>, transform_indices = @transform_4, window_bounds = array<i64: 1, 64>}, {transform_indices = @transform_5, window_bounds = array<i64: 64, 64>}]} {
    %c0 = arith.constant 0 : index
    %c0_0 = arith.constant 0 : index
    %0 = vector.load %arg1[%c0, %c0_0] : memref<64x64xbf16, #tpu.memory_space<vmem>>, vector<64x64xbf16>
    %c0_1 = arith.constant 0 : index
    %c0_2 = arith.constant 0 : index
    %1 = vector.load %arg2[%c0_1, %c0_2] : memref<64x128xbf16, #tpu.memory_space<vmem>>, vector<64x128xbf16>
    %cst = arith.constant dense<0.000000e+00> : vector<64x128xf32>
    %2 = tpu.matmul %0, %1, %cst {dimension_numbers = #tpu.dot_dimension_numbers<[1], [0], [0], [1], [0, 0, 1, 1], [], []>} : vector<64x64xbf16>, vector<64x128xbf16>, vector<64x128xf32> -> vector<64x128xf32>
    %c0_3 = arith.constant 0 : index
    %c0_4 = arith.constant 0 : index
    %3 = vector.load %arg3[%c0_3, %c0_4] : memref<1x128xf32, #tpu.memory_space<vmem>>, vector<1x128xf32>
    %4 = vector.broadcast %3 : vector<1x128xf32> to vector<64x128xf32>
    %5 = arith.addf %2, %4 : vector<64x128xf32>
    %cst_5 = arith.constant 0.000000e+00 : f32
    %6 = vector.broadcast %cst_5 : f32 to vector<64x128xf32>
    %7 = arith.maximumf %5, %6 : vector<64x128xf32>
    %8 = arith.truncf %7 : vector<64x128xf32> to vector<64x128xbf16>
    %c0_6 = arith.constant 0 : index
    %c0_7 = arith.constant 0 : index
    %9 = vector.load %arg4[%c0_6, %c0_7] : memref<128x64xbf16, #tpu.memory_space<vmem>>, vector<128x64xbf16>
    %cst_8 = arith.constant dense<0.000000e+00> : vector<64x64xf32>
    %10 = tpu.matmul %8, %9, %cst_8 {dimension_numbers = #tpu.dot_dimension_numbers<[1], [0], [0], [1], [0, 0, 1, 1], [], []>} : vector<64x128xbf16>, vector<128x64xbf16>, vector<64x64xf32> -> vector<64x64xf32>
    %c0_9 = arith.constant 0 : index
    %c0_10 = arith.constant 0 : index
    %11 = vector.load %arg5[%c0_9, %c0_10] : memref<1x64xf32, #tpu.memory_space<vmem>>, vector<1x64xf32>
    %12 = vector.broadcast %11 : vector<1x64xf32> to vector<64x64xf32>
    %13 = arith.addf %10, %12 : vector<64x64xf32>
    %14 = arith.truncf %13 : vector<64x64xf32> to vector<64x64xbf16>
    %c0_11 = arith.constant 0 : index
    %c0_12 = arith.constant 0 : index
    %15 = vector.load %arg6[%c0_11, %c0_12] : memref<64x64xbf16, #tpu.memory_space<vmem>>, vector<64x64xbf16>
    tpu.vector_store %arg6[%c0_11, %c0_12], %14 {strides = array<i32>} : memref<64x64xbf16, #tpu.memory_space<vmem>>, vector<64x64xbf16>,
    return
  }
  func.func @transform_0(%arg0: i32) -> (i32, i32) {
    %c0_i32 = arith.constant 0 : i32
    %c0_i32_0 = arith.constant 0 : i32
    return %arg0, %c0_i32 : i32, i32
  }
  func.func @transform_1(%arg0: i32) -> (i32, i32) {
    %c0_i32 = arith.constant 0 : i32
    %c0_i32_0 = arith.constant 0 : i32
    %c0_i32_1 = arith.constant 0 : i32
    return %c0_i32, %c0_i32_0 : i32, i32
  }
  func.func @transform_2(%arg0: i32) -> (i32, i32) {
    %c0_i32 = arith.constant 0 : i32
    %c0_i32_0 = arith.constant 0 : i32
    %c0_i32_1 = arith.constant 0 : i32
    return %c0_i32, %c0_i32_0 : i32, i32
  }
  func.func @transform_3(%arg0: i32) -> (i32, i32) {
    %c0_i32 = arith.constant 0 : i32
    %c0_i32_0 = arith.constant 0 : i32
    %c0_i32_1 = arith.constant 0 : i32
    return %c0_i32, %c0_i32_0 : i32, i32
  }
  func.func @transform_4(%arg0: i32) -> (i32, i32) {
    %c0_i32 = arith.constant 0 : i32
    %c0_i32_0 = arith.constant 0 : i32
    %c0_i32_1 = arith.constant 0 : i32
    return %c0_i32, %c0_i32_0 : i32, i32
  }
  func.func @transform_5(%arg0: i32) -> (i32, i32) {
    %c0_i32 = arith.constant 0 : i32
    %c0_i32_0 = arith.constant 0 : i32
    return %arg0, %c0_i32 : i32, i32
  }
}

module attributes {stable_mosaic.version = 11 : i64} {
  func.func @_linear_kernel(%arg0: i32, %arg1: memref<64x64xbf16, #tpu.memory_space<vmem>>, %arg2: memref<64x128xbf16, #tpu.memory_space<vmem>>, %arg3: memref<1x128xf32, #tpu.memory_space<vmem>>, %arg4: memref<64x128xbf16, #tpu.memory_space<vmem>>) attributes {dimension_semantics = [#tpu.dimension_semantics<parallel>], iteration_bounds = array<i64: 2>, scalar_prefetch = 0 : i64, scratch_operands = 0 : i64, tpu.core_type = #tpu.core_type<tc>, window_params = [{transform_indices = @transform_0, window_bounds = array<i64: 64, 64>}, {pipeline_mode = #tpu.pipeline_mode<synchronous>, transform_indices = @transform_1, window_bounds = array<i64: 64, 128>}, {pipeline_mode = #tpu.pipeline_mode<synchronous>, transform_indices = @transform_2, window_bounds = array<i64: 1, 128>}, {transform_indices = @transform_3, window_bounds = array<i64: 64, 128>}]} {
    %c0 = arith.constant 0 : index
    %c0_0 = arith.constant 0 : index
    %0 = vector.load %arg1[%c0, %c0_0] : memref<64x64xbf16, #tpu.memory_space<vmem>>, vector<64x64xbf16>
    %c0_1 = arith.constant 0 : index
    %c0_2 = arith.constant 0 : index
    %1 = vector.load %arg2[%c0_1, %c0_2] : memref<64x128xbf16, #tpu.memory_space<vmem>>, vector<64x128xbf16>
    %cst = arith.constant dense<0.000000e+00> : vector<64x128xf32>
    %2 = tpu.matmul %0, %1, %cst {dimension_numbers = #tpu.dot_dimension_numbers<[1], [0], [0], [1], [0, 0, 1, 1], [], []>} : vector<64x64xbf16>, vector<64x128xbf16>, vector<64x128xf32> -> vector<64x128xf32>
    %c0_3 = arith.constant 0 : index
    %c0_4 = arith.constant 0 : index
    %3 = vector.load %arg3[%c0_3, %c0_4] : memref<1x128xf32, #tpu.memory_space<vmem>>, vector<1x128xf32>
    %4 = vector.broadcast %3 : vector<1x128xf32> to vector<64x128xf32>
    %5 = arith.addf %2, %4 : vector<64x128xf32>
    %6 = arith.truncf %5 : vector<64x128xf32> to vector<64x128xbf16>
    %c0_5 = arith.constant 0 : index
    %c0_6 = arith.constant 0 : index
    %7 = vector.load %arg4[%c0_5, %c0_6] : memref<64x128xbf16, #tpu.memory_space<vmem>>, vector<64x128xbf16>
    tpu.vector_store %arg4[%c0_5, %c0_6], %6 {strides = array<i32>} : memref<64x128xbf16, #tpu.memory_space<vmem>>, vector<64x128xbf16>,
    return
  }
  func.func @transform_0(%arg0: i32) -> (i32, i32) {
    %c0_i32 = arith.constant 0 : i32
    %c0_i32_0 = arith.constant 0 : i32
    return %arg0, %c0_i32 : i32, i32
  }
  func.func @transform_1(%arg0: i32) -> (i32, i32) {
    %c0_i32 = arith.constant 0 : i32
    %c0_i32_0 = arith.constant 0 : i32
    %c0_i32_1 = arith.constant 0 : i32
    return %c0_i32, %c0_i32_0 : i32, i32
  }
  func.func @transform_2(%arg0: i32) -> (i32, i32) {
    %c0_i32 = arith.constant 0 : i32
    %c0_i32_0 = arith.constant 0 : i32
    %c0_i32_1 = arith.constant 0 : i32
    return %c0_i32, %c0_i32_0 : i32, i32
  }
  func.func @transform_3(%arg0: i32) -> (i32, i32) {
    %c0_i32 = arith.constant 0 : i32
    %c0_i32_0 = arith.constant 0 : i32
    return %arg0, %c0_i32 : i32, i32
  }
}

module attributes {stable_mosaic.version = 11 : i64} {
  func.func @_linear_kernel(%arg0: i32, %arg1: memref<8x64xbf16, #tpu.memory_space<vmem>>, %arg2: memref<64x192xbf16, #tpu.memory_space<vmem>>, %arg3: memref<1x192xf32, #tpu.memory_space<vmem>>, %arg4: memref<8x192xbf16, #tpu.memory_space<vmem>>) attributes {dimension_semantics = [#tpu.dimension_semantics<parallel>], iteration_bounds = array<i64: 2>, scalar_prefetch = 0 : i64, scratch_operands = 0 : i64, tpu.core_type = #tpu.core_type<tc>, window_params = [{transform_indices = @transform_0, window_bounds = array<i64: 8, 64>}, {pipeline_mode = #tpu.pipeline_mode<synchronous>, transform_indices = @transform_1, window_bounds = array<i64: 64, 192>}, {pipeline_mode = #tpu.pipeline_mode<synchronous>, transform_indices = @transform_2, window_bounds = array<i64: 1, 192>}, {transform_indices = @transform_3, window_bounds = array<i64: 8, 192>}]} {
    %c0 = arith.constant 0 : index
    %c0_0 = arith.constant 0 : index
    %0 = vector.load %arg1[%c0, %c0_0] : memref<8x64xbf16, #tpu.memory_space<vmem>>, vector<8x64xbf16>
    %c0_1 = arith.constant 0 : index
    %c0_2 = arith.constant 0 : index
    %1 = vector.load %arg2[%c0_1, %c0_2] : memref<64x192xbf16, #tpu.memory_space<vmem>>, vector<64x192xbf16>
    %cst = arith.constant dense<0.000000e+00> : vector<8x192xf32>
    %2 = tpu.matmul %0, %1, %cst {dimension_numbers = #tpu.dot_dimension_numbers<[1], [0], [0], [1], [0, 0, 1, 1], [], []>} : vector<8x64xbf16>, vector<64x192xbf16>, vector<8x192xf32> -> vector<8x192xf32>
    %c0_3 = arith.constant 0 : index
    %c0_4 = arith.constant 0 : index
    %3 = vector.load %arg3[%c0_3, %c0_4] : memref<1x192xf32, #tpu.memory_space<vmem>>, vector<1x192xf32>
    %4 = vector.broadcast %3 : vector<1x192xf32> to vector<8x192xf32>
    %5 = arith.addf %2, %4 : vector<8x192xf32>
    %6 = arith.truncf %5 : vector<8x192xf32> to vector<8x192xbf16>
    %c0_5 = arith.constant 0 : index
    %c0_6 = arith.constant 0 : index
    %7 = vector.load %arg4[%c0_5, %c0_6] : memref<8x192xbf16, #tpu.memory_space<vmem>>, vector<8x192xbf16>
    tpu.vector_store %arg4[%c0_5, %c0_6], %6 {strides = array<i32>} : memref<8x192xbf16, #tpu.memory_space<vmem>>, vector<8x192xbf16>,
    return
  }
  func.func @transform_0(%arg0: i32) -> (i32, i32) {
    %c0_i32 = arith.constant 0 : i32
    %c0_i32_0 = arith.constant 0 : i32
    return %arg0, %c0_i32 : i32, i32
  }
  func.func @transform_1(%arg0: i32) -> (i32, i32) {
    %c0_i32 = arith.constant 0 : i32
    %c0_i32_0 = arith.constant 0 : i32
    %c0_i32_1 = arith.constant 0 : i32
    return %c0_i32, %c0_i32_0 : i32, i32
  }
  func.func @transform_2(%arg0: i32) -> (i32, i32) {
    %c0_i32 = arith.constant 0 : i32
    %c0_i32_0 = arith.constant 0 : i32
    %c0_i32_1 = arith.constant 0 : i32
    return %c0_i32, %c0_i32_0 : i32, i32
  }
  func.func @transform_3(%arg0: i32) -> (i32, i32) {
    %c0_i32 = arith.constant 0 : i32
    %c0_i32_0 = arith.constant 0 : i32
    return %arg0, %c0_i32 : i32, i32
  }
}

module attributes {stable_mosaic.version = 11 : i64} {
  func.func @_mha_kernel(%arg0: i32, %arg1: i32, %arg2: i32, %arg3: memref<1x8x64xbf16, #tpu.memory_space<vmem>>, %arg4: memref<1x8x64xbf16, #tpu.memory_space<vmem>>, %arg5: memref<1x8x64xbf16, #tpu.memory_space<vmem>>, %arg6: memref<1x8x64xbf16, #tpu.memory_space<vmem>>, %arg7: memref<4x8x1xf32, #tpu.memory_space<vmem>>, %arg8: memref<4x8x1xf32, #tpu.memory_space<vmem>>, %arg9: memref<4x8x16xf32, #tpu.memory_space<vmem>>) attributes {dimension_semantics = [#tpu.dimension_semantics<parallel>, #tpu.dimension_semantics<parallel>, #tpu.dimension_semantics<arbitrary>], iteration_bounds = array<i64: 2, 1, 1>, scalar_prefetch = 0 : i64, scratch_operands = 3 : i64, tpu.core_type = #tpu.core_type<tc>, window_params = [{transform_indices = @transform_0, window_bounds = array<i64: 1, 8, 64>}, {transform_indices = @transform_1, window_bounds = array<i64: 1, 8, 64>}, {transform_indices = @transform_2, window_bounds = array<i64: 1, 8, 64>}, {transform_indices = @transform_3, window_bounds = array<i64: 1, 8, 64>}]} {
    %c0_i32 = arith.constant 0 : i32
    %0 = arith.cmpi eq, %arg2, %c0_i32 : i32
    %1 = arith.extui %0 : i1 to i32
    %c0_i32_0 = arith.constant 0 : i32
    %2 = arith.cmpi ne, %1, %c0_i32_0 : i32
    scf.if %2 {
      %cst_36 = arith.constant 0xFF800000 : f32
      %47 = vector.broadcast %cst_36 : f32 to vector<4x8x1xf32>
      %c0_37 = arith.constant 0 : index
      %c0_38 = arith.constant 0 : index
      %c0_39 = arith.constant 0 : index
      %48 = vector.load %arg7[%c0_37, %c0_38, %c0_39] : memref<4x8x1xf32, #tpu.memory_space<vmem>>, vector<4x8x1xf32>
      tpu.vector_store %arg7[%c0_37, %c0_38, %c0_39], %47 {strides = array<i32>} : memref<4x8x1xf32, #tpu.memory_space<vmem>>, vector<4x8x1xf32>,
      %cst_40 = arith.constant 0.000000e+00 : f32
      %49 = vector.broadcast %cst_40 : f32 to vector<4x8x1xf32>
      %c0_41 = arith.constant 0 : index
      %c0_42 = arith.constant 0 : index
      %c0_43 = arith.constant 0 : index
      %50 = vector.load %arg8[%c0_41, %c0_42, %c0_43] : memref<4x8x1xf32, #tpu.memory_space<vmem>>, vector<4x8x1xf32>
      tpu.vector_store %arg8[%c0_41, %c0_42, %c0_43], %49 {strides = array<i32>} : memref<4x8x1xf32, #tpu.memory_space<vmem>>, vector<4x8x1xf32>,
      %cst_44 = arith.constant 0.000000e+00 : f32
      %51 = vector.broadcast %cst_44 : f32 to vector<4x8x16xf32>
      %c0_45 = arith.constant 0 : index
      %c0_46 = arith.constant 0 : index
      %c0_47 = arith.constant 0 : index
      %52 = vector.load %arg9[%c0_45, %c0_46, %c0_47] : memref<4x8x16xf32, #tpu.memory_space<vmem>>, vector<4x8x16xf32>
      tpu.vector_store %arg9[%c0_45, %c0_46, %c0_47], %51 {strides = array<i32>} : memref<4x8x16xf32, #tpu.memory_space<vmem>>, vector<4x8x16xf32>,
    } else {
    }
    %c0 = arith.constant 0 : index
    %c0_1 = arith.constant 0 : index
    %c0_2 = arith.constant 0 : index
    %3 = vector.load %arg3[%c0, %c0_1, %c0_2] : memref<1x8x64xbf16, #tpu.memory_space<vmem>>, vector<1x8x64xbf16>
    %4 = vector.shape_cast %3 : vector<1x8x64xbf16> to vector<8x64xbf16>
    %5 = arith.extf %4 : vector<8x64xbf16> to vector<8x64xf32>
    %cst = arith.constant 2.500000e-01 : f32
    %6 = vector.broadcast %cst : f32 to vector<8x64xf32>
    %7 = arith.mulf %5, %6 : vector<8x64xf32>
    %8 = vector.shape_cast %7 : vector<8x64xf32> to vector<8x4x16xf32>
    %9 = tpu.transpose %8, [1, 0, 2] : vector<8x4x16xf32> -> vector<4x8x16xf32>
    %c0_3 = arith.constant 0 : index
    %c0_4 = arith.constant 0 : index
    %c0_5 = arith.constant 0 : index
    %10 = vector.load %arg4[%c0_3, %c0_4, %c0_5] : memref<1x8x64xbf16, #tpu.memory_space<vmem>>, vector<1x8x64xbf16>
    %11 = vector.shape_cast %10 : vector<1x8x64xbf16> to vector<8x64xbf16>
    %12 = vector.shape_cast %11 : vector<8x64xbf16> to vector<8x4x16xbf16>
    %13 = tpu.transpose %12, [1, 0, 2] : vector<8x4x16xbf16> -> vector<4x8x16xbf16>
    %c0_6 = arith.constant 0 : index
    %c0_7 = arith.constant 0 : index
    %c0_8 = arith.constant 0 : index
    %14 = vector.load %arg5[%c0_6, %c0_7, %c0_8] : memref<1x8x64xbf16, #tpu.memory_space<vmem>>, vector<1x8x64xbf16>
    %15 = vector.shape_cast %14 : vector<1x8x64xbf16> to vector<8x64xbf16>
    %16 = vector.shape_cast %15 : vector<8x64xbf16> to vector<8x4x16xbf16>
    %17 = tpu.transpose %16, [1, 0, 2] : vector<8x4x16xbf16> -> vector<4x8x16xbf16>
    %18 = arith.truncf %9 : vector<4x8x16xf32> to vector<4x8x16xbf16>
    %cst_9 = arith.constant dense<0.000000e+00> : vector<4x8x8xf32>
    %19 = tpu.matmul %18, %13, %cst_9 {dimension_numbers = #tpu.dot_dimension_numbers<[2], [2], [1], [1], [0, 0, 0, 1, 1, 1], [0], [0]>} : vector<4x8x16xbf16>, vector<4x8x16xbf16>, vector<4x8x8xf32> -> vector<4x8x8xf32>
    %c0_10 = arith.constant 0 : index
    %c0_11 = arith.constant 0 : index
    %c0_12 = arith.constant 0 : index
    %20 = vector.load %arg7[%c0_10, %c0_11, %c0_12] : memref<4x8x1xf32, #tpu.memory_space<vmem>>, vector<4x8x1xf32>
    %cst_13 = arith.constant dense<0xFF800000> : vector<4x8xf32>
    %21 = vector.multi_reduction <maximumf>, %19, %cst_13 [2] : vector<4x8x8xf32> to vector<4x8xf32>
    %22 = vector.shape_cast %21 : vector<4x8xf32> to vector<4x8x1xf32>
    %23 = arith.maximumf %20, %22 : vector<4x8x1xf32>
    %c0_14 = arith.constant 0 : index
    %c0_15 = arith.constant 0 : index
    %c0_16 = arith.constant 0 : index
    %24 = vector.load %arg7[%c0_14, %c0_15, %c0_16] : memref<4x8x1xf32, #tpu.memory_space<vmem>>, vector<4x8x1xf32>
    %25 = arith.subf %24, %23 : vector<4x8x1xf32>
    %26 = math.exp %25 : vector<4x8x1xf32>
    %27 = vector.broadcast %23 : vector<4x8x1xf32> to vector<4x8x8xf32>
    %28 = arith.subf %19, %27 : vector<4x8x8xf32>
    %29 = math.exp %28 : vector<4x8x8xf32>
    %c0_17 = arith.constant 0 : index
    %c0_18 = arith.constant 0 : index
    %c0_19 = arith.constant 0 : index
    %30 = vector.load %arg8[%c0_17, %c0_18, %c0_19] : memref<4x8x1xf32, #tpu.memory_space<vmem>>, vector<4x8x1xf32>
    %31 = arith.mulf %26, %30 : vector<4x8x1xf32>
    %cst_20 = arith.constant dense<0.000000e+00> : vector<4x8xf32>
    %32 = vector.multi_reduction <add>, %29, %cst_20 [2] : vector<4x8x8xf32> to vector<4x8xf32>
    %33 = vector.shape_cast %32 : vector<4x8xf32> to vector<4x8x1xf32>
    %34 = arith.addf %31, %33 : vector<4x8x1xf32>
    %c0_21 = arith.constant 0 : index
    %c0_22 = arith.constant 0 : index
    %c0_23 = arith.constant 0 : index
    %35 = vector.load %arg8[%c0_21, %c0_22, %c0_23] : memref<4x8x1xf32, #tpu.memory_space<vmem>>, vector<4x8x1xf32>
    tpu.vector_store %arg8[%c0_21, %c0_22, %c0_23], %34 {strides = array<i32>} : memref<4x8x1xf32, #tpu.memory_space<vmem>>, vector<4x8x1xf32>,
    %c0_24 = arith.constant 0 : index
    %c0_25 = arith.constant 0 : index
    %c0_26 = arith.constant 0 : index
    %36 = vector.load %arg9[%c0_24, %c0_25, %c0_26] : memref<4x8x16xf32, #tpu.memory_space<vmem>>, vector<4x8x16xf32>
    %37 = vector.broadcast %26 : vector<4x8x1xf32> to vector<4x8x16xf32>
    %38 = arith.mulf %37, %36 : vector<4x8x16xf32>
    %39 = arith.truncf %29 : vector<4x8x8xf32> to vector<4x8x8xbf16>
    %cst_27 = arith.constant dense<0.000000e+00> : vector<4x8x16xf32>
    %40 = tpu.matmul %39, %17, %cst_27 {dimension_numbers = #tpu.dot_dimension_numbers<[2], [1], [1], [2], [0, 0, 0, 1, 1, 2], [0], [0]>} : vector<4x8x8xbf16>, vector<4x8x16xbf16>, vector<4x8x16xf32> -> vector<4x8x16xf32>
    %41 = arith.addf %38, %40 : vector<4x8x16xf32>
    %c0_28 = arith.constant 0 : index
    %c0_29 = arith.constant 0 : index
    %c0_30 = arith.constant 0 : index
    %42 = vector.load %arg9[%c0_28, %c0_29, %c0_30] : memref<4x8x16xf32, #tpu.memory_space<vmem>>, vector<4x8x16xf32>
    tpu.vector_store %arg9[%c0_28, %c0_29, %c0_30], %41 {strides = array<i32>} : memref<4x8x16xf32, #tpu.memory_space<vmem>>, vector<4x8x16xf32>,
    %c0_31 = arith.constant 0 : index
    %c0_32 = arith.constant 0 : index
    %c0_33 = arith.constant 0 : index
    %43 = vector.load %arg7[%c0_31, %c0_32, %c0_33] : memref<4x8x1xf32, #tpu.memory_space<vmem>>, vector<4x8x1xf32>
    tpu.vector_store %arg7[%c0_31, %c0_32, %c0_33], %23 {strides = array<i32>} : memref<4x8x1xf32, #tpu.memory_space<vmem>>, vector<4x8x1xf32>,
    %c0_i32_34 = arith.constant 0 : i32
    %44 = arith.cmpi eq, %arg2, %c0_i32_34 : i32
    %45 = arith.extui %44 : i1 to i32
    %c0_i32_35 = arith.constant 0 : i32
    %46 = arith.cmpi ne, %45, %c0_i32_35 : i32
    scf.if %46 {
      %c0_36 = arith.constant 0 : index
      %c0_37 = arith.constant 0 : index
      %c0_38 = arith.constant 0 : index
      %47 = vector.load %arg9[%c0_36, %c0_37, %c0_38] : memref<4x8x16xf32, #tpu.memory_space<vmem>>, vector<4x8x16xf32>
      %c0_39 = arith.constant 0 : index
      %c0_40 = arith.constant 0 : index
      %c0_41 = arith.constant 0 : index
      %48 = vector.load %arg8[%c0_39, %c0_40, %c0_41] : memref<4x8x1xf32, #tpu.memory_space<vmem>>, vector<4x8x1xf32>
      %49 = tpu.reciprocal %48 {approx = true} : vector<4x8x1xf32> -> vector<4x8x1xf32>
      %50 = vector.broadcast %49 : vector<4x8x1xf32> to vector<4x8x16xf32>
      %51 = arith.mulf %47, %50 : vector<4x8x16xf32>
      %52 = tpu.transpose %51, [1, 0, 2] : vector<4x8x16xf32> -> vector<8x4x16xf32>
      %53 = vector.shape_cast %52 : vector<8x4x16xf32> to vector<8x64xf32>
      %54 = arith.truncf %53 : vector<8x64xf32> to vector<8x64xbf16>
      %c0_42 = arith.constant 0 : index
      %c0_43 = arith.constant 0 : index
      %c0_44 = arith.constant 0 : index
      %55 = vector.load %arg6[%c0_42, %c0_43, %c0_44] : memref<1x8x64xbf16, #tpu.memory_space<vmem>>, vector<1x8x64xbf16>
      %56 = vector.shape_cast %55 : vector<1x8x64xbf16> to vector<8x64xbf16>
      %57 = vector.shape_cast %54 : vector<8x64xbf16> to vector<1x8x64xbf16>
      tpu.vector_store %arg6[%c0_42, %c0_43, %c0_44], %57 {strides = array<i32>} : memref<1x8x64xbf16, #tpu.memory_space<vmem>>, vector<1x8x64xbf16>,
    } else {
    }
    return
  }
  func.func @transform_0(%arg0: i32, %arg1: i32, %arg2: i32) -> (i32, i32, i32) {
    %c0_i32 = arith.constant 0 : i32
    %c0_i32_0 = arith.constant 0 : i32
    return %arg0, %arg1, %c0_i32 : i32, i32, i32
  }
  func.func @transform_1(%arg0: i32, %arg1: i32, %arg2: i32) -> (i32, i32, i32) {
    %c0_i32 = arith.constant 0 : i32
    %c0_i32_0 = arith.constant 0 : i32
    return %arg0, %arg2, %c0_i32 : i32, i32, i32
  }
  func.func @transform_2(%arg0: i32, %arg1: i32, %arg2: i32) -> (i32, i32, i32) {
    %c0_i32 = arith.constant 0 : i32
    %c0_i32_0 = arith.constant 0 : i32
    return %arg0, %arg2, %c0_i32 : i32, i32, i32
  }
  func.func @transform_3(%arg0: i32, %arg1: i32, %arg2: i32) -> (i32, i32, i32) {
    %c0_i32 = arith.constant 0 : i32
    %c0_i32_0 = arith.constant 0 : i32
    return %arg0, %arg1, %c0_i32 : i32, i32, i32
  }
}

module attributes {stable_mosaic.version = 11 : i64} {
  func.func @_linear_kernel(%arg0: i32, %arg1: memref<8x64xbf16, #tpu.memory_space<vmem>>, %arg2: memref<64x64xbf16, #tpu.memory_space<vmem>>, %arg3: memref<1x64xf32, #tpu.memory_space<vmem>>, %arg4: memref<8x64xbf16, #tpu.memory_space<vmem>>) attributes {dimension_semantics = [#tpu.dimension_semantics<parallel>], iteration_bounds = array<i64: 2>, scalar_prefetch = 0 : i64, scratch_operands = 0 : i64, tpu.core_type = #tpu.core_type<tc>, window_params = [{transform_indices = @transform_0, window_bounds = array<i64: 8, 64>}, {pipeline_mode = #tpu.pipeline_mode<synchronous>, transform_indices = @transform_1, window_bounds = array<i64: 64, 64>}, {pipeline_mode = #tpu.pipeline_mode<synchronous>, transform_indices = @transform_2, window_bounds = array<i64: 1, 64>}, {transform_indices = @transform_3, window_bounds = array<i64: 8, 64>}]} {
    %c0 = arith.constant 0 : index
    %c0_0 = arith.constant 0 : index
    %0 = vector.load %arg1[%c0, %c0_0] : memref<8x64xbf16, #tpu.memory_space<vmem>>, vector<8x64xbf16>
    %c0_1 = arith.constant 0 : index
    %c0_2 = arith.constant 0 : index
    %1 = vector.load %arg2[%c0_1, %c0_2] : memref<64x64xbf16, #tpu.memory_space<vmem>>, vector<64x64xbf16>
    %cst = arith.constant dense<0.000000e+00> : vector<8x64xf32>
    %2 = tpu.matmul %0, %1, %cst {dimension_numbers = #tpu.dot_dimension_numbers<[1], [0], [0], [1], [0, 0, 1, 1], [], []>} : vector<8x64xbf16>, vector<64x64xbf16>, vector<8x64xf32> -> vector<8x64xf32>
    %c0_3 = arith.constant 0 : index
    %c0_4 = arith.constant 0 : index
    %3 = vector.load %arg3[%c0_3, %c0_4] : memref<1x64xf32, #tpu.memory_space<vmem>>, vector<1x64xf32>
    %4 = vector.broadcast %3 : vector<1x64xf32> to vector<8x64xf32>
    %5 = arith.addf %2, %4 : vector<8x64xf32>
    %6 = arith.truncf %5 : vector<8x64xf32> to vector<8x64xbf16>
    %c0_5 = arith.constant 0 : index
    %c0_6 = arith.constant 0 : index
    %7 = vector.load %arg4[%c0_5, %c0_6] : memref<8x64xbf16, #tpu.memory_space<vmem>>, vector<8x64xbf16>
    tpu.vector_store %arg4[%c0_5, %c0_6], %6 {strides = array<i32>} : memref<8x64xbf16, #tpu.memory_space<vmem>>, vector<8x64xbf16>,
    return
  }
  func.func @transform_0(%arg0: i32) -> (i32, i32) {
    %c0_i32 = arith.constant 0 : i32
    %c0_i32_0 = arith.constant 0 : i32
    return %arg0, %c0_i32 : i32, i32
  }
  func.func @transform_1(%arg0: i32) -> (i32, i32) {
    %c0_i32 = arith.constant 0 : i32
    %c0_i32_0 = arith.constant 0 : i32
    %c0_i32_1 = arith.constant 0 : i32
    return %c0_i32, %c0_i32_0 : i32, i32
  }
  func.func @transform_2(%arg0: i32) -> (i32, i32) {
    %c0_i32 = arith.constant 0 : i32
    %c0_i32_0 = arith.constant 0 : i32
    %c0_i32_1 = arith.constant 0 : i32
    return %c0_i32, %c0_i32_0 : i32, i32
  }
  func.func @transform_3(%arg0: i32) -> (i32, i32) {
    %c0_i32 = arith.constant 0 : i32
    %c0_i32_0 = arith.constant 0 : i32
    return %arg0, %c0_i32 : i32, i32
  }
}

module attributes {stable_mosaic.version = 11 : i64} {
  func.func @_add_ln_kernel(%arg0: i32, %arg1: memref<8x64xbf16, #tpu.memory_space<vmem>>, %arg2: memref<8x64xbf16, #tpu.memory_space<vmem>>, %arg3: memref<1x64xf32, #tpu.memory_space<vmem>>, %arg4: memref<1x64xf32, #tpu.memory_space<vmem>>, %arg5: memref<8x64xbf16, #tpu.memory_space<vmem>>) attributes {dimension_semantics = [#tpu.dimension_semantics<parallel>], iteration_bounds = array<i64: 2>, scalar_prefetch = 0 : i64, scratch_operands = 0 : i64, tpu.core_type = #tpu.core_type<tc>, window_params = [{transform_indices = @transform_0, window_bounds = array<i64: 8, 64>}, {transform_indices = @transform_1, window_bounds = array<i64: 8, 64>}, {pipeline_mode = #tpu.pipeline_mode<synchronous>, transform_indices = @transform_2, window_bounds = array<i64: 1, 64>}, {pipeline_mode = #tpu.pipeline_mode<synchronous>, transform_indices = @transform_3, window_bounds = array<i64: 1, 64>}, {transform_indices = @transform_4, window_bounds = array<i64: 8, 64>}]} {
    %c0 = arith.constant 0 : index
    %c0_0 = arith.constant 0 : index
    %0 = vector.load %arg1[%c0, %c0_0] : memref<8x64xbf16, #tpu.memory_space<vmem>>, vector<8x64xbf16>
    %1 = arith.extf %0 : vector<8x64xbf16> to vector<8x64xf32>
    %c0_1 = arith.constant 0 : index
    %c0_2 = arith.constant 0 : index
    %2 = vector.load %arg2[%c0_1, %c0_2] : memref<8x64xbf16, #tpu.memory_space<vmem>>, vector<8x64xbf16>
    %3 = arith.extf %2 : vector<8x64xbf16> to vector<8x64xf32>
    %4 = arith.addf %1, %3 : vector<8x64xf32>
    %cst = arith.constant dense<0.000000e+00> : vector<8xf32>
    %5 = vector.multi_reduction <add>, %4, %cst [1] : vector<8x64xf32> to vector<8xf32>
    %6 = vector.shape_cast %5 : vector<8xf32> to vector<8x1xf32>
    %cst_3 = arith.constant 6.400000e+01 : f32
    %7 = vector.broadcast %cst_3 : f32 to vector<8x1xf32>
    %8 = arith.divf %6, %7 : vector<8x1xf32>
    %9 = vector.broadcast %8 : vector<8x1xf32> to vector<8x64xf32>
    %10 = arith.subf %4, %9 : vector<8x64xf32>
    %11 = arith.mulf %10, %10 : vector<8x64xf32>
    %cst_4 = arith.constant dense<0.000000e+00> : vector<8xf32>
    %12 = vector.multi_reduction <add>, %11, %cst_4 [1] : vector<8x64xf32> to vector<8xf32>
    %13 = vector.shape_cast %12 : vector<8xf32> to vector<8x1xf32>
    %cst_5 = arith.constant 6.400000e+01 : f32
    %14 = vector.broadcast %cst_5 : f32 to vector<8x1xf32>
    %15 = arith.divf %13, %14 : vector<8x1xf32>
    %16 = vector.broadcast %8 : vector<8x1xf32> to vector<8x64xf32>
    %17 = arith.subf %4, %16 : vector<8x64xf32>
    %cst_6 = arith.constant 9.99999974E-6 : f32
    %18 = vector.broadcast %cst_6 : f32 to vector<8x1xf32>
    %19 = arith.addf %15, %18 : vector<8x1xf32>
    %20 = math.rsqrt %19 : vector<8x1xf32>
    %21 = vector.broadcast %20 : vector<8x1xf32> to vector<8x64xf32>
    %22 = arith.mulf %17, %21 : vector<8x64xf32>
    %c0_7 = arith.constant 0 : index
    %c0_8 = arith.constant 0 : index
    %23 = vector.load %arg3[%c0_7, %c0_8] : memref<1x64xf32, #tpu.memory_space<vmem>>, vector<1x64xf32>
    %24 = vector.broadcast %23 : vector<1x64xf32> to vector<8x64xf32>
    %25 = arith.mulf %22, %24 : vector<8x64xf32>
    %c0_9 = arith.constant 0 : index
    %c0_10 = arith.constant 0 : index
    %26 = vector.load %arg4[%c0_9, %c0_10] : memref<1x64xf32, #tpu.memory_space<vmem>>, vector<1x64xf32>
    %27 = vector.broadcast %26 : vector<1x64xf32> to vector<8x64xf32>
    %28 = arith.addf %25, %27 : vector<8x64xf32>
    %29 = arith.truncf %28 : vector<8x64xf32> to vector<8x64xbf16>
    %c0_11 = arith.constant 0 : index
    %c0_12 = arith.constant 0 : index
    %30 = vector.load %arg5[%c0_11, %c0_12] : memref<8x64xbf16, #tpu.memory_space<vmem>>, vector<8x64xbf16>
    tpu.vector_store %arg5[%c0_11, %c0_12], %29 {strides = array<i32>} : memref<8x64xbf16, #tpu.memory_space<vmem>>, vector<8x64xbf16>,
    return
  }
  func.func @transform_0(%arg0: i32) -> (i32, i32) {
    %c0_i32 = arith.constant 0 : i32
    %c0_i32_0 = arith.constant 0 : i32
    return %arg0, %c0_i32 : i32, i32
  }
  func.func @transform_1(%arg0: i32) -> (i32, i32) {
    %c0_i32 = arith.constant 0 : i32
    %c0_i32_0 = arith.constant 0 : i32
    return %arg0, %c0_i32 : i32, i32
  }
  func.func @transform_2(%arg0: i32) -> (i32, i32) {
    %c0_i32 = arith.constant 0 : i32
    %c0_i32_0 = arith.constant 0 : i32
    %c0_i32_1 = arith.constant 0 : i32
    return %c0_i32, %c0_i32_0 : i32, i32
  }
  func.func @transform_3(%arg0: i32) -> (i32, i32) {
    %c0_i32 = arith.constant 0 : i32
    %c0_i32_0 = arith.constant 0 : i32
    %c0_i32_1 = arith.constant 0 : i32
    return %c0_i32, %c0_i32_0 : i32, i32
  }
  func.func @transform_4(%arg0: i32) -> (i32, i32) {
    %c0_i32 = arith.constant 0 : i32
    %c0_i32_0 = arith.constant 0 : i32
    return %arg0, %c0_i32 : i32, i32
  }
}

module attributes {stable_mosaic.version = 11 : i64} {
  func.func @_ffn_kernel(%arg0: i32, %arg1: memref<8x64xbf16, #tpu.memory_space<vmem>>, %arg2: memref<64x128xbf16, #tpu.memory_space<vmem>>, %arg3: memref<1x128xf32, #tpu.memory_space<vmem>>, %arg4: memref<128x64xbf16, #tpu.memory_space<vmem>>, %arg5: memref<1x64xf32, #tpu.memory_space<vmem>>, %arg6: memref<8x64xbf16, #tpu.memory_space<vmem>>) attributes {dimension_semantics = [#tpu.dimension_semantics<parallel>], iteration_bounds = array<i64: 2>, scalar_prefetch = 0 : i64, scratch_operands = 0 : i64, tpu.core_type = #tpu.core_type<tc>, window_params = [{transform_indices = @transform_0, window_bounds = array<i64: 8, 64>}, {pipeline_mode = #tpu.pipeline_mode<synchronous>, transform_indices = @transform_1, window_bounds = array<i64: 64, 128>}, {pipeline_mode = #tpu.pipeline_mode<synchronous>, transform_indices = @transform_2, window_bounds = array<i64: 1, 128>}, {pipeline_mode = #tpu.pipeline_mode<synchronous>, transform_indices = @transform_3, window_bounds = array<i64: 128, 64>}, {pipeline_mode = #tpu.pipeline_mode<synchronous>, transform_indices = @transform_4, window_bounds = array<i64: 1, 64>}, {transform_indices = @transform_5, window_bounds = array<i64: 8, 64>}]} {
    %c0 = arith.constant 0 : index
    %c0_0 = arith.constant 0 : index
    %0 = vector.load %arg1[%c0, %c0_0] : memref<8x64xbf16, #tpu.memory_space<vmem>>, vector<8x64xbf16>
    %c0_1 = arith.constant 0 : index
    %c0_2 = arith.constant 0 : index
    %1 = vector.load %arg2[%c0_1, %c0_2] : memref<64x128xbf16, #tpu.memory_space<vmem>>, vector<64x128xbf16>
    %cst = arith.constant dense<0.000000e+00> : vector<8x128xf32>
    %2 = tpu.matmul %0, %1, %cst {dimension_numbers = #tpu.dot_dimension_numbers<[1], [0], [0], [1], [0, 0, 1, 1], [], []>} : vector<8x64xbf16>, vector<64x128xbf16>, vector<8x128xf32> -> vector<8x128xf32>
    %c0_3 = arith.constant 0 : index
    %c0_4 = arith.constant 0 : index
    %3 = vector.load %arg3[%c0_3, %c0_4] : memref<1x128xf32, #tpu.memory_space<vmem>>, vector<1x128xf32>
    %4 = vector.broadcast %3 : vector<1x128xf32> to vector<8x128xf32>
    %5 = arith.addf %2, %4 : vector<8x128xf32>
    %cst_5 = arith.constant 0.000000e+00 : f32
    %6 = vector.broadcast %cst_5 : f32 to vector<8x128xf32>
    %7 = arith.maximumf %5, %6 : vector<8x128xf32>
    %8 = arith.truncf %7 : vector<8x128xf32> to vector<8x128xbf16>
    %c0_6 = arith.constant 0 : index
    %c0_7 = arith.constant 0 : index
    %9 = vector.load %arg4[%c0_6, %c0_7] : memref<128x64xbf16, #tpu.memory_space<vmem>>, vector<128x64xbf16>
    %cst_8 = arith.constant dense<0.000000e+00> : vector<8x64xf32>
    %10 = tpu.matmul %8, %9, %cst_8 {dimension_numbers = #tpu.dot_dimension_numbers<[1], [0], [0], [1], [0, 0, 1, 1], [], []>} : vector<8x128xbf16>, vector<128x64xbf16>, vector<8x64xf32> -> vector<8x64xf32>
    %c0_9 = arith.constant 0 : index
    %c0_10 = arith.constant 0 : index
    %11 = vector.load %arg5[%c0_9, %c0_10] : memref<1x64xf32, #tpu.memory_space<vmem>>, vector<1x64xf32>
    %12 = vector.broadcast %11 : vector<1x64xf32> to vector<8x64xf32>
    %13 = arith.addf %10, %12 : vector<8x64xf32>
    %14 = arith.truncf %13 : vector<8x64xf32> to vector<8x64xbf16>
    %c0_11 = arith.constant 0 : index
    %c0_12 = arith.constant 0 : index
    %15 = vector.load %arg6[%c0_11, %c0_12] : memref<8x64xbf16, #tpu.memory_space<vmem>>, vector<8x64xbf16>
    tpu.vector_store %arg6[%c0_11, %c0_12], %14 {strides = array<i32>} : memref<8x64xbf16, #tpu.memory_space<vmem>>, vector<8x64xbf16>,
    return
  }
  func.func @transform_0(%arg0: i32) -> (i32, i32) {
    %c0_i32 = arith.constant 0 : i32
    %c0_i32_0 = arith.constant 0 : i32
    return %arg0, %c0_i32 : i32, i32
  }
  func.func @transform_1(%arg0: i32) -> (i32, i32) {
    %c0_i32 = arith.constant 0 : i32
    %c0_i32_0 = arith.constant 0 : i32
    %c0_i32_1 = arith.constant 0 : i32
    return %c0_i32, %c0_i32_0 : i32, i32
  }
  func.func @transform_2(%arg0: i32) -> (i32, i32) {
    %c0_i32 = arith.constant 0 : i32
    %c0_i32_0 = arith.constant 0 : i32
    %c0_i32_1 = arith.constant 0 : i32
    return %c0_i32, %c0_i32_0 : i32, i32
  }
  func.func @transform_3(%arg0: i32) -> (i32, i32) {
    %c0_i32 = arith.constant 0 : i32
    %c0_i32_0 = arith.constant 0 : i32
    %c0_i32_1 = arith.constant 0 : i32
    return %c0_i32, %c0_i32_0 : i32, i32
  }
  func.func @transform_4(%arg0: i32) -> (i32, i32) {
    %c0_i32 = arith.constant 0 : i32
    %c0_i32_0 = arith.constant 0 : i32
    %c0_i32_1 = arith.constant 0 : i32
    return %c0_i32, %c0_i32_0 : i32, i32
  }
  func.func @transform_5(%arg0: i32) -> (i32, i32) {
    %c0_i32 = arith.constant 0 : i32
    %c0_i32_0 = arith.constant 0 : i32
    return %arg0, %c0_i32 : i32, i32
  }
}

module attributes {stable_mosaic.version = 11 : i64} {
  func.func @_mha_kernel(%arg0: i32, %arg1: i32, %arg2: i32, %arg3: memref<1x8x64xbf16, #tpu.memory_space<vmem>>, %arg4: memref<1x64x64xbf16, #tpu.memory_space<vmem>>, %arg5: memref<1x64x64xbf16, #tpu.memory_space<vmem>>, %arg6: memref<1x8x64xbf16, #tpu.memory_space<vmem>>, %arg7: memref<4x8x1xf32, #tpu.memory_space<vmem>>, %arg8: memref<4x8x1xf32, #tpu.memory_space<vmem>>, %arg9: memref<4x8x16xf32, #tpu.memory_space<vmem>>) attributes {dimension_semantics = [#tpu.dimension_semantics<parallel>, #tpu.dimension_semantics<parallel>, #tpu.dimension_semantics<arbitrary>], iteration_bounds = array<i64: 2, 1, 1>, scalar_prefetch = 0 : i64, scratch_operands = 3 : i64, tpu.core_type = #tpu.core_type<tc>, window_params = [{transform_indices = @transform_0, window_bounds = array<i64: 1, 8, 64>}, {transform_indices = @transform_1, window_bounds = array<i64: 1, 64, 64>}, {transform_indices = @transform_2, window_bounds = array<i64: 1, 64, 64>}, {transform_indices = @transform_3, window_bounds = array<i64: 1, 8, 64>}]} {
    %c0_i32 = arith.constant 0 : i32
    %0 = arith.cmpi eq, %arg2, %c0_i32 : i32
    %1 = arith.extui %0 : i1 to i32
    %c0_i32_0 = arith.constant 0 : i32
    %2 = arith.cmpi ne, %1, %c0_i32_0 : i32
    scf.if %2 {
      %cst_36 = arith.constant 0xFF800000 : f32
      %47 = vector.broadcast %cst_36 : f32 to vector<4x8x1xf32>
      %c0_37 = arith.constant 0 : index
      %c0_38 = arith.constant 0 : index
      %c0_39 = arith.constant 0 : index
      %48 = vector.load %arg7[%c0_37, %c0_38, %c0_39] : memref<4x8x1xf32, #tpu.memory_space<vmem>>, vector<4x8x1xf32>
      tpu.vector_store %arg7[%c0_37, %c0_38, %c0_39], %47 {strides = array<i32>} : memref<4x8x1xf32, #tpu.memory_space<vmem>>, vector<4x8x1xf32>,
      %cst_40 = arith.constant 0.000000e+00 : f32
      %49 = vector.broadcast %cst_40 : f32 to vector<4x8x1xf32>
      %c0_41 = arith.constant 0 : index
      %c0_42 = arith.constant 0 : index
      %c0_43 = arith.constant 0 : index
      %50 = vector.load %arg8[%c0_41, %c0_42, %c0_43] : memref<4x8x1xf32, #tpu.memory_space<vmem>>, vector<4x8x1xf32>
      tpu.vector_store %arg8[%c0_41, %c0_42, %c0_43], %49 {strides = array<i32>} : memref<4x8x1xf32, #tpu.memory_space<vmem>>, vector<4x8x1xf32>,
      %cst_44 = arith.constant 0.000000e+00 : f32
      %51 = vector.broadcast %cst_44 : f32 to vector<4x8x16xf32>
      %c0_45 = arith.constant 0 : index
      %c0_46 = arith.constant 0 : index
      %c0_47 = arith.constant 0 : index
      %52 = vector.load %arg9[%c0_45, %c0_46, %c0_47] : memref<4x8x16xf32, #tpu.memory_space<vmem>>, vector<4x8x16xf32>
      tpu.vector_store %arg9[%c0_45, %c0_46, %c0_47], %51 {strides = array<i32>} : memref<4x8x16xf32, #tpu.memory_space<vmem>>, vector<4x8x16xf32>,
    } else {
    }
    %c0 = arith.constant 0 : index
    %c0_1 = arith.constant 0 : index
    %c0_2 = arith.constant 0 : index
    %3 = vector.load %arg3[%c0, %c0_1, %c0_2] : memref<1x8x64xbf16, #tpu.memory_space<vmem>>, vector<1x8x64xbf16>
    %4 = vector.shape_cast %3 : vector<1x8x64xbf16> to vector<8x64xbf16>
    %5 = arith.extf %4 : vector<8x64xbf16> to vector<8x64xf32>
    %cst = arith.constant 2.500000e-01 : f32
    %6 = vector.broadcast %cst : f32 to vector<8x64xf32>
    %7 = arith.mulf %5, %6 : vector<8x64xf32>
    %8 = vector.shape_cast %7 : vector<8x64xf32> to vector<8x4x16xf32>
    %9 = tpu.transpose %8, [1, 0, 2] : vector<8x4x16xf32> -> vector<4x8x16xf32>
    %c0_3 = arith.constant 0 : index
    %c0_4 = arith.constant 0 : index
    %c0_5 = arith.constant 0 : index
    %10 = vector.load %arg4[%c0_3, %c0_4, %c0_5] : memref<1x64x64xbf16, #tpu.memory_space<vmem>>, vector<1x64x64xbf16>
    %11 = vector.shape_cast %10 : vector<1x64x64xbf16> to vector<64x64xbf16>
    %12 = vector.shape_cast %11 : vector<64x64xbf16> to vector<64x4x16xbf16>
    %13 = tpu.transpose %12, [1, 0, 2] : vector<64x4x16xbf16> -> vector<4x64x16xbf16>
    %c0_6 = arith.constant 0 : index
    %c0_7 = arith.constant 0 : index
    %c0_8 = arith.constant 0 : index
    %14 = vector.load %arg5[%c0_6, %c0_7, %c0_8] : memref<1x64x64xbf16, #tpu.memory_space<vmem>>, vector<1x64x64xbf16>
    %15 = vector.shape_cast %14 : vector<1x64x64xbf16> to vector<64x64xbf16>
    %16 = vector.shape_cast %15 : vector<64x64xbf16> to vector<64x4x16xbf16>
    %17 = tpu.transpose %16, [1, 0, 2] : vector<64x4x16xbf16> -> vector<4x64x16xbf16>
    %18 = arith.truncf %9 : vector<4x8x16xf32> to vector<4x8x16xbf16>
    %cst_9 = arith.constant dense<0.000000e+00> : vector<4x8x64xf32>
    %19 = tpu.matmul %18, %13, %cst_9 {dimension_numbers = #tpu.dot_dimension_numbers<[2], [2], [1], [1], [0, 0, 0, 1, 1, 1], [0], [0]>} : vector<4x8x16xbf16>, vector<4x64x16xbf16>, vector<4x8x64xf32> -> vector<4x8x64xf32>
    %c0_10 = arith.constant 0 : index
    %c0_11 = arith.constant 0 : index
    %c0_12 = arith.constant 0 : index
    %20 = vector.load %arg7[%c0_10, %c0_11, %c0_12] : memref<4x8x1xf32, #tpu.memory_space<vmem>>, vector<4x8x1xf32>
    %cst_13 = arith.constant dense<0xFF800000> : vector<4x8xf32>
    %21 = vector.multi_reduction <maximumf>, %19, %cst_13 [2] : vector<4x8x64xf32> to vector<4x8xf32>
    %22 = vector.shape_cast %21 : vector<4x8xf32> to vector<4x8x1xf32>
    %23 = arith.maximumf %20, %22 : vector<4x8x1xf32>
    %c0_14 = arith.constant 0 : index
    %c0_15 = arith.constant 0 : index
    %c0_16 = arith.constant 0 : index
    %24 = vector.load %arg7[%c0_14, %c0_15, %c0_16] : memref<4x8x1xf32, #tpu.memory_space<vmem>>, vector<4x8x1xf32>
    %25 = arith.subf %24, %23 : vector<4x8x1xf32>
    %26 = math.exp %25 : vector<4x8x1xf32>
    %27 = vector.broadcast %23 : vector<4x8x1xf32> to vector<4x8x64xf32>
    %28 = arith.subf %19, %27 : vector<4x8x64xf32>
    %29 = math.exp %28 : vector<4x8x64xf32>
    %c0_17 = arith.constant 0 : index
    %c0_18 = arith.constant 0 : index
    %c0_19 = arith.constant 0 : index
    %30 = vector.load %arg8[%c0_17, %c0_18, %c0_19] : memref<4x8x1xf32, #tpu.memory_space<vmem>>, vector<4x8x1xf32>
    %31 = arith.mulf %26, %30 : vector<4x8x1xf32>
    %cst_20 = arith.constant dense<0.000000e+00> : vector<4x8xf32>
    %32 = vector.multi_reduction <add>, %29, %cst_20 [2] : vector<4x8x64xf32> to vector<4x8xf32>
    %33 = vector.shape_cast %32 : vector<4x8xf32> to vector<4x8x1xf32>
    %34 = arith.addf %31, %33 : vector<4x8x1xf32>
    %c0_21 = arith.constant 0 : index
    %c0_22 = arith.constant 0 : index
    %c0_23 = arith.constant 0 : index
    %35 = vector.load %arg8[%c0_21, %c0_22, %c0_23] : memref<4x8x1xf32, #tpu.memory_space<vmem>>, vector<4x8x1xf32>
    tpu.vector_store %arg8[%c0_21, %c0_22, %c0_23], %34 {strides = array<i32>} : memref<4x8x1xf32, #tpu.memory_space<vmem>>, vector<4x8x1xf32>,
    %c0_24 = arith.constant 0 : index
    %c0_25 = arith.constant 0 : index
    %c0_26 = arith.constant 0 : index
    %36 = vector.load %arg9[%c0_24, %c0_25, %c0_26] : memref<4x8x16xf32, #tpu.memory_space<vmem>>, vector<4x8x16xf32>
    %37 = vector.broadcast %26 : vector<4x8x1xf32> to vector<4x8x16xf32>
    %38 = arith.mulf %37, %36 : vector<4x8x16xf32>
    %39 = arith.truncf %29 : vector<4x8x64xf32> to vector<4x8x64xbf16>
    %cst_27 = arith.constant dense<0.000000e+00> : vector<4x8x16xf32>
    %40 = tpu.matmul %39, %17, %cst_27 {dimension_numbers = #tpu.dot_dimension_numbers<[2], [1], [1], [2], [0, 0, 0, 1, 1, 2], [0], [0]>} : vector<4x8x64xbf16>, vector<4x64x16xbf16>, vector<4x8x16xf32> -> vector<4x8x16xf32>
    %41 = arith.addf %38, %40 : vector<4x8x16xf32>
    %c0_28 = arith.constant 0 : index
    %c0_29 = arith.constant 0 : index
    %c0_30 = arith.constant 0 : index
    %42 = vector.load %arg9[%c0_28, %c0_29, %c0_30] : memref<4x8x16xf32, #tpu.memory_space<vmem>>, vector<4x8x16xf32>
    tpu.vector_store %arg9[%c0_28, %c0_29, %c0_30], %41 {strides = array<i32>} : memref<4x8x16xf32, #tpu.memory_space<vmem>>, vector<4x8x16xf32>,
    %c0_31 = arith.constant 0 : index
    %c0_32 = arith.constant 0 : index
    %c0_33 = arith.constant 0 : index
    %43 = vector.load %arg7[%c0_31, %c0_32, %c0_33] : memref<4x8x1xf32, #tpu.memory_space<vmem>>, vector<4x8x1xf32>
    tpu.vector_store %arg7[%c0_31, %c0_32, %c0_33], %23 {strides = array<i32>} : memref<4x8x1xf32, #tpu.memory_space<vmem>>, vector<4x8x1xf32>,
    %c0_i32_34 = arith.constant 0 : i32
    %44 = arith.cmpi eq, %arg2, %c0_i32_34 : i32
    %45 = arith.extui %44 : i1 to i32
    %c0_i32_35 = arith.constant 0 : i32
    %46 = arith.cmpi ne, %45, %c0_i32_35 : i32
    scf.if %46 {
      %c0_36 = arith.constant 0 : index
      %c0_37 = arith.constant 0 : index
      %c0_38 = arith.constant 0 : index
      %47 = vector.load %arg9[%c0_36, %c0_37, %c0_38] : memref<4x8x16xf32, #tpu.memory_space<vmem>>, vector<4x8x16xf32>
      %c0_39 = arith.constant 0 : index
      %c0_40 = arith.constant 0 : index
      %c0_41 = arith.constant 0 : index
      %48 = vector.load %arg8[%c0_39, %c0_40, %c0_41] : memref<4x8x1xf32, #tpu.memory_space<vmem>>, vector<4x8x1xf32>
      %49 = tpu.reciprocal %48 {approx = true} : vector<4x8x1xf32> -> vector<4x8x1xf32>
      %50 = vector.broadcast %49 : vector<4x8x1xf32> to vector<4x8x16xf32>
      %51 = arith.mulf %47, %50 : vector<4x8x16xf32>
      %52 = tpu.transpose %51, [1, 0, 2] : vector<4x8x16xf32> -> vector<8x4x16xf32>
      %53 = vector.shape_cast %52 : vector<8x4x16xf32> to vector<8x64xf32>
      %54 = arith.truncf %53 : vector<8x64xf32> to vector<8x64xbf16>
      %c0_42 = arith.constant 0 : index
      %c0_43 = arith.constant 0 : index
      %c0_44 = arith.constant 0 : index
      %55 = vector.load %arg6[%c0_42, %c0_43, %c0_44] : memref<1x8x64xbf16, #tpu.memory_space<vmem>>, vector<1x8x64xbf16>
      %56 = vector.shape_cast %55 : vector<1x8x64xbf16> to vector<8x64xbf16>
      %57 = vector.shape_cast %54 : vector<8x64xbf16> to vector<1x8x64xbf16>
      tpu.vector_store %arg6[%c0_42, %c0_43, %c0_44], %57 {strides = array<i32>} : memref<1x8x64xbf16, #tpu.memory_space<vmem>>, vector<1x8x64xbf16>,
    } else {
    }
    return
  }
  func.func @transform_0(%arg0: i32, %arg1: i32, %arg2: i32) -> (i32, i32, i32) {
    %c0_i32 = arith.constant 0 : i32
    %c0_i32_0 = arith.constant 0 : i32
    return %arg0, %arg1, %c0_i32 : i32, i32, i32
  }
  func.func @transform_1(%arg0: i32, %arg1: i32, %arg2: i32) -> (i32, i32, i32) {
    %c0_i32 = arith.constant 0 : i32
    %c0_i32_0 = arith.constant 0 : i32
    return %arg0, %arg2, %c0_i32 : i32, i32, i32
  }
  func.func @transform_2(%arg0: i32, %arg1: i32, %arg2: i32) -> (i32, i32, i32) {
    %c0_i32 = arith.constant 0 : i32
    %c0_i32_0 = arith.constant 0 : i32
    return %arg0, %arg2, %c0_i32 : i32, i32, i32
  }
  func.func @transform_3(%arg0: i32, %arg1: i32, %arg2: i32) -> (i32, i32, i32) {
    %c0_i32 = arith.constant 0 : i32
    %c0_i32_0 = arith.constant 0 : i32
    return %arg0, %arg1, %c0_i32 : i32, i32, i32
  }
}

module attributes {stable_mosaic.version = 11 : i64} {
  func.func @_bmm_nt_kernel(%arg0: i32, %arg1: memref<1x8x64xbf16, #tpu.memory_space<vmem>>, %arg2: memref<1x64x64xbf16, #tpu.memory_space<vmem>>, %arg3: memref<1x8x64xf32, #tpu.memory_space<vmem>>) attributes {dimension_semantics = [#tpu.dimension_semantics<parallel>], iteration_bounds = array<i64: 2>, scalar_prefetch = 0 : i64, scratch_operands = 0 : i64, tpu.core_type = #tpu.core_type<tc>, window_params = [{transform_indices = @transform_0, window_bounds = array<i64: 1, 8, 64>}, {transform_indices = @transform_1, window_bounds = array<i64: 1, 64, 64>}, {transform_indices = @transform_2, window_bounds = array<i64: 1, 8, 64>}]} {
    %c0 = arith.constant 0 : index
    %c0_0 = arith.constant 0 : index
    %c0_1 = arith.constant 0 : index
    %0 = vector.load %arg1[%c0, %c0_0, %c0_1] : memref<1x8x64xbf16, #tpu.memory_space<vmem>>, vector<1x8x64xbf16>
    %1 = vector.shape_cast %0 : vector<1x8x64xbf16> to vector<8x64xbf16>
    %c0_2 = arith.constant 0 : index
    %c0_3 = arith.constant 0 : index
    %c0_4 = arith.constant 0 : index
    %2 = vector.load %arg2[%c0_2, %c0_3, %c0_4] : memref<1x64x64xbf16, #tpu.memory_space<vmem>>, vector<1x64x64xbf16>
    %3 = vector.shape_cast %2 : vector<1x64x64xbf16> to vector<64x64xbf16>
    %cst = arith.constant dense<0.000000e+00> : vector<8x64xf32>
    %4 = tpu.matmul %1, %3, %cst {dimension_numbers = #tpu.dot_dimension_numbers<[1], [1], [0], [0], [0, 0, 1, 0], [], []>} : vector<8x64xbf16>, vector<64x64xbf16>, vector<8x64xf32> -> vector<8x64xf32>
    %c0_5 = arith.constant 0 : index
    %c0_6 = arith.constant 0 : index
    %c0_7 = arith.constant 0 : index
    %5 = vector.load %arg3[%c0_5, %c0_6, %c0_7] : memref<1x8x64xf32, #tpu.memory_space<vmem>>, vector<1x8x64xf32>
    %6 = vector.shape_cast %5 : vector<1x8x64xf32> to vector<8x64xf32>
    %7 = vector.shape_cast %4 : vector<8x64xf32> to vector<1x8x64xf32>
    tpu.vector_store %arg3[%c0_5, %c0_6, %c0_7], %7 {strides = array<i32>} : memref<1x8x64xf32, #tpu.memory_space<vmem>>, vector<1x8x64xf32>,
    return
  }
  func.func @transform_0(%arg0: i32) -> (i32, i32, i32) {
    %c0_i32 = arith.constant 0 : i32
    %c0_i32_0 = arith.constant 0 : i32
    %c0_i32_1 = arith.constant 0 : i32
    return %arg0, %c0_i32, %c0_i32_0 : i32, i32, i32
  }
  func.func @transform_1(%arg0: i32) -> (i32, i32, i32) {
    %c0_i32 = arith.constant 0 : i32
    %c0_i32_0 = arith.constant 0 : i32
    %c0_i32_1 = arith.constant 0 : i32
    return %arg0, %c0_i32, %c0_i32_0 : i32, i32, i32
  }
  func.func @transform_2(%arg0: i32) -> (i32, i32, i32) {
    %c0_i32 = arith.constant 0 : i32
    %c0_i32_0 = arith.constant 0 : i32
    %c0_i32_1 = arith.constant 0 : i32
    return %arg0, %c0_i32, %c0_i32_0 : i32, i32, i32
  }
}

module attributes {stable_mosaic.version = 11 : i64} {
  func.func @_linear_kernel(%arg0: i32, %arg1: memref<8x64xbf16, #tpu.memory_space<vmem>>, %arg2: memref<64x6xbf16, #tpu.memory_space<vmem>>, %arg3: memref<1x6xf32, #tpu.memory_space<vmem>>, %arg4: memref<8x6xf32, #tpu.memory_space<vmem>>) attributes {dimension_semantics = [#tpu.dimension_semantics<parallel>], iteration_bounds = array<i64: 2>, scalar_prefetch = 0 : i64, scratch_operands = 0 : i64, tpu.core_type = #tpu.core_type<tc>, window_params = [{transform_indices = @transform_0, window_bounds = array<i64: 8, 64>}, {pipeline_mode = #tpu.pipeline_mode<synchronous>, transform_indices = @transform_1, window_bounds = array<i64: 64, 6>}, {pipeline_mode = #tpu.pipeline_mode<synchronous>, transform_indices = @transform_2, window_bounds = array<i64: 1, 6>}, {transform_indices = @transform_3, window_bounds = array<i64: 8, 6>}]} {
    %c0 = arith.constant 0 : index
    %c0_0 = arith.constant 0 : index
    %0 = vector.load %arg1[%c0, %c0_0] : memref<8x64xbf16, #tpu.memory_space<vmem>>, vector<8x64xbf16>
    %c0_1 = arith.constant 0 : index
    %c0_2 = arith.constant 0 : index
    %1 = vector.load %arg2[%c0_1, %c0_2] : memref<64x6xbf16, #tpu.memory_space<vmem>>, vector<64x6xbf16>
    %cst = arith.constant dense<0.000000e+00> : vector<8x6xf32>
    %2 = tpu.matmul %0, %1, %cst {dimension_numbers = #tpu.dot_dimension_numbers<[1], [0], [0], [1], [0, 0, 1, 1], [], []>} : vector<8x64xbf16>, vector<64x6xbf16>, vector<8x6xf32> -> vector<8x6xf32>
    %c0_3 = arith.constant 0 : index
    %c0_4 = arith.constant 0 : index
    %3 = vector.load %arg3[%c0_3, %c0_4] : memref<1x6xf32, #tpu.memory_space<vmem>>, vector<1x6xf32>
    %4 = vector.broadcast %3 : vector<1x6xf32> to vector<8x6xf32>
    %5 = arith.addf %2, %4 : vector<8x6xf32>
    %c0_5 = arith.constant 0 : index
    %c0_6 = arith.constant 0 : index
    %6 = vector.load %arg4[%c0_5, %c0_6] : memref<8x6xf32, #tpu.memory_space<vmem>>, vector<8x6xf32>
    tpu.vector_store %arg4[%c0_5, %c0_6], %5 {strides = array<i32>} : memref<8x6xf32, #tpu.memory_space<vmem>>, vector<8x6xf32>,
    return
  }
  func.func @transform_0(%arg0: i32) -> (i32, i32) {
    %c0_i32 = arith.constant 0 : i32
    %c0_i32_0 = arith.constant 0 : i32
    return %arg0, %c0_i32 : i32, i32
  }
  func.func @transform_1(%arg0: i32) -> (i32, i32) {
    %c0_i32 = arith.constant 0 : i32
    %c0_i32_0 = arith.constant 0 : i32
    %c0_i32_1 = arith.constant 0 : i32
    return %c0_i32, %c0_i32_0 : i32, i32
  }
  func.func @transform_2(%arg0: i32) -> (i32, i32) {
    %c0_i32 = arith.constant 0 : i32
    %c0_i32_0 = arith.constant 0 : i32
    %c0_i32_1 = arith.constant 0 : i32
    return %c0_i32, %c0_i32_0 : i32, i32
  }
  func.func @transform_3(%arg0: i32) -> (i32, i32) {
    %c0_i32 = arith.constant 0 : i32
    %c0_i32_0 = arith.constant 0 : i32
    return %arg0, %c0_i32 : i32, i32
  }
}

</mosaic_0001>

<bundles_post_ra>
// kernel: _lambda_.38
= control target key start
LH: loop header
LB: loop body
LE: loop exit
PB: predicated region body
PF: predicated region fallthrough
CT: control target
= control target key end

     0   :  { %s464_s12 = smov 0   ;;  %s495_s0 = inlined_call_operand.vmem [shape: f32[128,16], index: 0, kind: input, shape index: {}]   ;;  %s496_s1 = inlined_call_operand.vmem [shape: bf16[16,64], index: 1, kind: input, shape index: {}]   ;;  %s497_s2 = inlined_call_operand.vmem [shape: f32[1,64], index: 2, kind: input, shape index: {}]   ;;  %s498_s3 = inlined_call_operand.vmem [shape: bf16[128,64], index: 3, kind: output, shape index: {}]  }
   0x1 LB: > { %s377_s13 = sadd.s32 4294967295, %s442_s12   ;;  %p381_p0 = scmp.ge.s32.totalorder %s442_s12, 1  ;;  %s442_s12 = sphi %s464_s12, %s13_s12  }
   0x2   : > { %p138_p1 = scmp.lt.s32.totalorder %s442_s12, 3 }
   0x4   : > { %p139_p2 = pnand %p381_p0, %p138_p1 }
   0x5   : > { %v435_v0 = vld [vmem:[%s496_s1] sm:$0xff] (!%p139_p2)   ;;  %s382_s16 = sshll.u32 (!%p139_p2), %s377_s13, 3  ;;  %vm202_vm0 = vcmask (!%p139_p2), 130048   ;;  %vm312_vm1 = vcmask (!%p139_p2), 519168  }
   0x6   : > { %142 = sbr.rel (%p139_p2) target bundleno = 241 (0xf1), region = 32  ;;  %p163_p3 = scmp.lt.s32.totalorder (!%p139_p2), %s382_s16, 15  ;;  %415 = vmatprep.subr.bf16.mxu0 (!%p139_p2), %v435_v0  ;;  %425 = vmatprep.subr.bf16.mxu1 (!%p139_p2), %v435_v0  ;;  %v386_v13 = vld [vmem:[%s497_s2] ss:$0 sm:$0xff] (!%p139_p2) }
   0x7   : > { %416 = vmatpush3.bf16.msra.mxu0 (!%p139_p2), %v435_v0  ;;  %426 = vmatpush3.bf16.msra.mxu1 (!%p139_p2), %v435_v0 }
   0xd   : > { %s500_s16 = smov (!%p163_p3, %s382_s16), 15 }
   0xe   : > { %s383_s17 = sshll.u32 %s500_s16, 3  ;;  %s385_s23 = sshll.u32 %s500_s16, 2 }
   0xf   : > { %s166_s20 = scalar_lea.vmem %s495_s0, %s383_s17  ;;  %s172_s26 = scalar_lea.vmem %s498_s3, %s385_s23 }
  0x10   : > { %v175_v1 = vld [vmem:[%s166_s20] sm:$0xff]  ;;  %v176_v2 = vld [vmem:[%s166_s20 + $0x8] sm:$0xff]  ;;  %v177_v6 = vld [vmem:[%s166_s20 + $0x10] sm:$0xff] }
  0x11   : > { %v179_v3 = vld [vmem:[%s166_s20 + $0x20] sm:$0xff]  ;;  %v183_v4 = vpack.c.bf16 %v176_v2, %v175_v1  ;;  %v180_v5 = vld [vmem:[%s166_s20 + $0x28] sm:$0xff]  ;;  %v178_v7 = vld [vmem:[%s166_s20 + $0x18] sm:$0xff] }
  0x12   : > { %v185_v8 = vpack.c.bf16 %v180_v5, %v179_v3  ;;  %v184_v9 = vpack.c.bf16 %v178_v7, %v177_v6  ;;  %v181_v10 = vld [vmem:[%s166_s20 + $0x30] sm:$0xff]  ;;  %v182_v11 = vld [vmem:[%s166_s20 + $0x38] sm:$0xff] }
  0x13   : > { %417 = vmatprep.mubr.msk.bf16.mxu0 %vm202_vm0, %v183_v4  ;;  %v186_v12 = vpack.c.bf16 %v182_v11, %v181_v10 }
  0x14   : > { %421 = vmatprep.mubr.msk.bf16.mxu1 %vm202_vm0, %v185_v8  ;;  %418 = vmatmul.mubr.msk.bf16.vlgmr.msra.gmra.mrb[0].mxu0 %vm202_vm0, %v184_v9 }
  0x15   : > { %422 = vmatmul.mubr.msk.bf16.vlgmr.msra.gmra.mrb[0].mxu1 %vm202_vm0, %v186_v12 }
  0xe7   : > { %v419_v14 = vpop.f32.mrb[0].mxu0 }
  0xe8   : > { %v258_v15 = vadd.f32 %v419_v14, %v386_v13  ;;  %v423_v16 = vpop.f32.mrb[0].mxu1  ;;  %v249_v17 = vpop.f32.mrb[1].mxu0 }
  0xe9   : > { %v274_v18 = vadd.f32 %v423_v16, %v386_v13  ;;  %v250_v19 = vadd.f32 %v386_v13, %v249_v17  ;;  %v265_v20 = vpop.f32.mrb[1].mxu1  ;;  %v420_v21 = vpop.f32.mrb[2].mxu0 }
  0xea   : > { %v404_v22 = vpack.c.bf16 %v258_v15, %v258_v15  ;;  %v266_v23 = vadd.f32 %v386_v13, %v265_v20  ;;  %v261_v24 = vadd.f32 %v420_v21, %v386_v13  ;;  %v424_v25 = vpop.f32.mrb[2].mxu1  ;;  %v252_v26 = vpop.f32.mrb[3].mxu0 }
  0xeb   : > { %v408_v27 = vpack.c.bf16 %v274_v18, %v274_v18  ;;  %v402_v28 = vpack.c.bf16 %v250_v19, %v250_v19  ;;  %v277_v29 = vadd.f32 %v424_v25, %v386_v13  ;;  %v253_v30 = vadd.f32 %v386_v13, %v252_v26  ;;  %v268_v31 = vpop.f32.mrb[3].mxu1 }
  0xec   : > { %315 = vst.msk [vmem:[%s172_s26 + $0x8] sm:$0xf] %vm312_vm1, %v404_v22  ;;  %v406_v32 = vpack.c.bf16 %v266_v23, %v266_v23  ;;  %v405_v33 = vpack.c.bf16 %v261_v24, %v261_v24  ;;  %v269_v34 = vadd.f32 %v386_v13, %v268_v31 }
  0xed   : > { %319 = vst.msk [vmem:[%s172_s26 + $0x18] sm:$0xf] %vm312_vm1, %v408_v27  ;;  %313 = vst.msk [vmem:[%s172_s26] sm:$0xf] %vm312_vm1, %v402_v28  ;;  %v409_v35 = vpack.c.bf16 %v277_v29, %v277_v29  ;;  %v403_v36 = vpack.c.bf16 %v253_v30, %v253_v30 }
  0xee   : > { %317 = vst.msk [vmem:[%s172_s26 + $0x10] sm:$0xf] %vm312_vm1, %v406_v32  ;;  %316 = vst.msk [vmem:[%s172_s26 + $0xc] sm:$0xf] %vm312_vm1, %v405_v33  ;;  %v407_v37 = vpack.c.bf16 %v269_v34, %v269_v34 }
  0xef   : > { %320 = vst.msk [vmem:[%s172_s26 + $0x1c] sm:$0xf] %vm312_vm1, %v409_v35  ;;  %314 = vst.msk [vmem:[%s172_s26 + $0x4] sm:$0xf] %vm312_vm1, %v403_v36 }
  0xf0   : > { %318 = vst.msk [vmem:[%s172_s26 + $0x14] sm:$0xf] %vm312_vm1, %v407_v37 }
  0xf1 PF: > { %s13_s12 = sadd.s32 1, %s442_s12  }
  0xf2   : > { %p10_p4 = scmp.ge.s32.totalorder %s13_s12, 4  }
  0xf4   :  { %12 = sbr.rel (!%p10_p4) target bundleno = 1 (0x1), region = 62 }

// kernel: _lambda_.39
= control target key start
LH: loop header
LB: loop body
LE: loop exit
PB: predicated region body
PF: predicated region fallthrough
CT: control target
= control target key end

     0   :  { %s575_s12 = smov 0   ;;  %s653_s0 = inlined_call_operand.vmem [shape: bf16[128,64], index: 0, kind: input, shape index: {}]   ;;  %s654_s1 = inlined_call_operand.vmem [shape: bf16[64,192], index: 1, kind: input, shape index: {}]   ;;  %s655_s2 = inlined_call_operand.vmem [shape: f32[1,192], index: 2, kind: input, shape index: {}]   ;;  %s656_s3 = inlined_call_operand.vmem [shape: bf16[128,192], index: 3, kind: output, shape index: {}]  }
   0x1 LB: > { %s468_s13 = sadd.s32 4294967295, %s552_s12   ;;  %p472_p0 = scmp.ge.s32.totalorder %s552_s12, 1  ;;  %s552_s12 = sphi %s575_s12, %s13_s12  }
   0x2   : > { %p138_p1 = scmp.lt.s32.totalorder %s552_s12, 3 }
   0x4   : > { %p139_p2 = pnand %p472_p0, %p138_p1 }
   0x5   : > { %v530_v0 = vld [vmem:[%s654_s1 + $0x4] ss:$8 sps:$4 sm:$0xff] (!%p139_p2)   ;;  %s473_s16 = sshll.u32 (!%p139_p2), %s468_s13, 3  ;;  %v532_v1 = vld [vmem:[%s654_s1] ss:$8 sps:$4 sm:$0xff] (!%p139_p2)   ;;  %v554_v2 = vmov (!%p139_p2), 0   ;;  %v195_v13 = vlaneseq (!%p139_p2) }
   0x6   : > { %142 = sbr.rel (%p139_p2) target bundleno = 251 (0xfb), region = 32  ;;  %310 = vmatprep.mubr.bf16.mxu0 (!%p139_p2), %v554_v2  ;;  %330 = vmatprep.mubr.bf16.mxu1 (!%p139_p2), %v554_v2  ;;  %p164_p3 = scmp.lt.s32.totalorder (!%p139_p2), %s473_s16, 15  ;;  %v533_v3 = vld [vmem:[%s654_s1 + $0x14] ss:$8 sps:$4 sm:$0xff] (!%p139_p2)   ;;  %v535_v4 = vld [vmem:[%s654_s1 + $0x10] ss:$8 sps:$4 sm:$0xff] (!%p139_p2)  }
   0x7   : > { %278 = vmatprep.subr.bf16.mxu0 (!%p139_p2), %v530_v0  ;;  %513 = vmatprep.subr.bf16.mxu1 (!%p139_p2), %v530_v0  ;;  %v536_v5 = vld [vmem:[%s654_s1 + $0x24] ss:$8 sps:$4 sm:$0xff] (!%p139_p2)   ;;  %v538_v6 = vld [vmem:[%s654_s1 + $0x20] ss:$8 sps:$4 sm:$0xff] (!%p139_p2)   ;;  %v539_v7 = vld [vmem:[%s654_s1 + $0x34] ss:$8 sps:$4 sm:$0xff] (!%p139_p2)  }
   0x8   : > { %279 = vmatpush1.bf16.msra.mxu0 (!%p139_p2), %v532_v1  ;;  %517 = vmatpush1.bf16.msra.mxu1 (!%p139_p2), %v532_v1  ;;  %v541_v8 = vld [vmem:[%s654_s1 + $0x30] ss:$8 sps:$4 sm:$0xff] (!%p139_p2)   ;;  %vm265_vm0 = vcmask (!%p139_p2), 523264   ;;  %v196_v14 = vshrl.u32 (!%p139_p2), %v195_v13, 7  ;;  %v193_v16 = vld [vmem:[%s655_s2] sm:$0x3] (!%p139_p2) }
   0x9   : > { %280 = vmatprep.subr.bf16.mxu0 (!%p139_p2), %v533_v3  ;;  %514 = vmatprep.subr.bf16.mxu1 (!%p139_p2), %v533_v3  ;;  %vm399_vm1 = vcmask (!%p139_p2), 1043456   ;;  %vm400_vm2 = vcmask (!%p139_p2), 523268  }
   0xa   : > { %v197_v15 = vsub.s32 (!%p139_p2), 0, %v196_v14  ;;  %v201_v17 = vsub.s32 (!%p139_p2), 1, %v196_v14  ;;  %vm622_vm3 = vmor (!%p139_p2), %vm400_vm2, %vm399_vm1 }
   0xc   : > { %281 = vmatpush1.bf16.msra.mxu0 (!%p139_p2), %v535_v4  ;;  %518 = vmatpush1.bf16.msra.mxu1 (!%p139_p2), %v535_v4  ;;  %v198_v18 = vrot.slane (!%p139_p2), %v193_v16, %v197_v15  ;;  %v202_v19 = vrot.slane (!%p139_p2), %v193_v16, %v201_v17 }
   0xd   : > { %s660_s16 = smov (!%p164_p3, %s473_s16), 15  ;;  %282 = vmatprep.subr.bf16.mxu0 %v536_v5  ;;  %515 = vmatprep.subr.bf16.mxu1 %v536_v5 }
   0xe   : > { %s474_s25 = sshll.u32 %s660_s16, 2  ;;  %s504_s10 = sshll.u32 %s660_s16, 3 }
   0xf   : > { %s167_s28 = scalar_lea.vmem %s653_s0, %s474_s25  ;;  %s620_s14 = scalar_lea.vmem %s656_s3, %s504_s10 }
  0x10   : > { %283 = vmatpush1.bf16.msra.mxu0 %v538_v6  ;;  %519 = vmatpush1.bf16.msra.mxu1 %v538_v6  ;;  %v542_v9 = vld [vmem:[%s167_s28] sm:$0xff]   ;;  %v543_v10 = vld [vmem:[%s167_s28 + $0x10] sm:$0xff]   ;;  %v544_v11 = vld [vmem:[%s167_s28 + $0x8] sm:$0xff]  }
  0x11   : > { %284 = vmatprep.subr.bf16.mxu0 %v539_v7  ;;  %516 = vmatprep.subr.bf16.mxu1 %v539_v7  ;;  %v545_v12 = vld [vmem:[%s167_s28 + $0x18] sm:$0xff]  }
  0x14   : > { %285 = vmatpush1.bf16.msra.mxu0 %v541_v8  ;;  %520 = vmatpush1.bf16.msra.mxu1 %v541_v8 }
  0x17   : > { %490 = vmatmul.mubr.msk.bf16.vlgmr.msra.gmra.mrb[0].mxu0 %vm265_vm0, %v542_v9  ;;  %492 = vmatmul.mubr.msk.bf16.vlgmr.msra.gmra.mrb[0].mxu1 %vm265_vm0, %v543_v10 }
  0x18   : > { %320 = vmatprep.mubr.bf16.mxu0 %v554_v2  ;;  %340 = vmatprep.mubr.bf16.mxu1 %v554_v2 }
  0x1f   : > { %491 = vmatmul.mubr.msk.bf16.gmra.mrb[4].mxu0 %vm265_vm0, %v544_v11  ;;  %493 = vmatmul.mubr.msk.bf16.gmra.mrb[4].mxu1 %vm265_vm0, %v545_v12 }
  0xea   : > { %v312_v20 = vpop.f32.mrb[0].mxu0  ;;  %v332_v21 = vpop.f32.mrb[0].mxu1 }
  0xeb   : > { %v313_v22 = vadd.f32 %v312_v20, %v198_v18  ;;  %v333_v23 = vadd.f32 %v332_v21, %v198_v18  ;;  %v314_v24 = vpop.f32.mrb[1].mxu0  ;;  %v334_v25 = vpop.f32.mrb[1].mxu1 }
  0xec   : > { %v315_v26 = vadd.f32 %v314_v24, %v202_v19  ;;  %v335_v27 = vadd.f32 %v334_v25, %v202_v19  ;;  %v316_v28 = vpop.f32.mrb[2].mxu0  ;;  %v336_v29 = vpop.f32.mrb[2].mxu1 }
  0xed   : > { %v317_v31 = vadd.f32 %v316_v28, %v198_v18  ;;  %v337_v32 = vadd.f32 %v336_v29, %v198_v18  ;;  %v318_v33 = vpop.f32.mrb[3].mxu0  ;;  %v338_v34 = vpop.f32.mrb[3].mxu1 }
  0xee   : > { %v505_v35 = vpack.c.bf16 %v315_v26, %v313_v22  ;;  %v509_v36 = vpack.c.bf16 %v335_v27, %v333_v23  ;;  %v319_v37 = vadd.f32 %v318_v33, %v202_v19  ;;  %v339_v38 = vadd.f32 %v338_v34, %v202_v19 }
  0xf0   : > { %402 = vst.msk [vmem:[%s620_s14] sm:$0xff] %vm622_vm3, %v505_v35  ;;  %406 = vst.msk [vmem:[%s620_s14 + $0x20] sm:$0xff] %vm622_vm3, %v509_v36  ;;  %v506_v39 = vpack.c.bf16 %v319_v37, %v317_v31  ;;  %v510_v40 = vpack.c.bf16 %v339_v38, %v337_v32 }
  0xf2   : > { %403 = vst.msk [vmem:[%s620_s14 + $0x8] sm:$0xff] %vm622_vm3, %v506_v39  ;;  %407 = vst.msk [vmem:[%s620_s14 + $0x28] sm:$0xff] %vm622_vm3, %v510_v40  ;;  %v322_v41 = vpop.f32.mrb[4].mxu0  ;;  %v342_v42 = vpop.f32.mrb[4].mxu1 }
  0xf3   : > { %v323_v43 = vadd.f32 %v322_v41, %v198_v18  ;;  %v343_v44 = vadd.f32 %v342_v42, %v198_v18  ;;  %v324_v45 = vpop.f32.mrb[5].mxu0  ;;  %v344_v46 = vpop.f32.mrb[5].mxu1 }
  0xf4   : > { %v325_v47 = vadd.f32 %v324_v45, %v202_v19  ;;  %v345_v48 = vadd.f32 %v344_v46, %v202_v19  ;;  %v326_v49 = vpop.f32.mrb[6].mxu0  ;;  %v346_v50 = vpop.f32.mrb[6].mxu1 }
  0xf5   : > { %v327_v51 = vadd.f32 %v326_v49, %v198_v18  ;;  %v347_v52 = vadd.f32 %v346_v50, %v198_v18  ;;  %v328_v53 = vpop.f32.mrb[7].mxu0  ;;  %v348_v54 = vpop.f32.mrb[7].mxu1 }
  0xf6   : > { %v507_v55 = vpack.c.bf16 %v325_v47, %v323_v43  ;;  %v511_v56 = vpack.c.bf16 %v345_v48, %v343_v44  ;;  %v329_v57 = vadd.f32 %v328_v53, %v202_v19  ;;  %v349_v58 = vadd.f32 %v348_v54, %v202_v19 }
  0xf8   : > { %404 = vst.msk [vmem:[%s620_s14 + $0x10] sm:$0xff] %vm622_vm3, %v507_v55  ;;  %408 = vst.msk [vmem:[%s620_s14 + $0x30] sm:$0xff] %vm622_vm3, %v511_v56  ;;  %v508_v59 = vpack.c.bf16 %v329_v57, %v327_v51  ;;  %v512_v60 = vpack.c.bf16 %v349_v58, %v347_v52 }
  0xfa   : > { %405 = vst.msk [vmem:[%s620_s14 + $0x18] sm:$0xff] %vm622_vm3, %v508_v59  ;;  %409 = vst.msk [vmem:[%s620_s14 + $0x38] sm:$0xff] %vm622_vm3, %v512_v60 }
  0xfb PF: > { %s13_s12 = sadd.s32 1, %s552_s12  }
  0xfc   : > { %p10_p4 = scmp.ge.s32.totalorder %s13_s12, 4  }
  0xfe   :  { %12 = sbr.rel (!%p10_p4) target bundleno = 1 (0x1), region = 62 }

// kernel: _lambda_.41
= control target key start
LH: loop header
LB: loop body
LE: loop exit
PB: predicated region body
PF: predicated region fallthrough
CT: control target
= control target key end

     0   :  { %s533_s12 = smov 0   ;;  %s584_s0 = inlined_call_operand.vmem [shape: bf16[128,64], index: 0, kind: input, shape index: {}]   ;;  %s585_s1 = inlined_call_operand.vmem [shape: bf16[64,64], index: 1, kind: input, shape index: {}]   ;;  %s586_s2 = inlined_call_operand.vmem [shape: f32[1,64], index: 2, kind: input, shape index: {}]   ;;  %s587_s3 = inlined_call_operand.vmem [shape: bf16[128,64], index: 3, kind: output, shape index: {}]  }
   0x1 LB: > { %s417_s13 = sadd.s32 4294967295, %s511_s12   ;;  %p421_p0 = scmp.ge.s32.totalorder %s511_s12, 1  ;;  %s511_s12 = sphi %s533_s12, %s13_s12  }
   0x2   : > { %p138_p1 = scmp.lt.s32.totalorder %s511_s12, 3 }
   0x4   : > { %p139_p2 = pnand %p421_p0, %p138_p1 }
   0x5   : > { %v497_v0 = vld [vmem:[%s585_s1] sm:$0xff] (!%p139_p2)   ;;  %s422_s16 = sshll.u32 (!%p139_p2), %s417_s13, 3  ;;  %v498_v1 = vld [vmem:[%s585_s1 + $0x8] sm:$0xff] (!%p139_p2)   ;;  %v499_v2 = vld [vmem:[%s585_s1 + $0x10] sm:$0xff] (!%p139_p2)   ;;  %vm242_vm0 = vcmask (!%p139_p2), 523264   ;;  %vm352_vm1 = vcmask (!%p139_p2), 519168  }
   0x6   : > { %142 = sbr.rel (%p139_p2) target bundleno = 242 (0xf2), region = 32  ;;  %p163_p3 = scmp.lt.s32.totalorder (!%p139_p2), %s422_s16, 15  ;;  %465 = vmatprep.subr.bf16.mxu0 (!%p139_p2), %v497_v0  ;;  %481 = vmatprep.subr.bf16.mxu1 (!%p139_p2), %v497_v0  ;;  %v500_v3 = vld [vmem:[%s585_s1 + $0x18] sm:$0xff] (!%p139_p2)   ;;  %v426_v8 = vld [vmem:[%s586_s2] ss:$0 sm:$0xff] (!%p139_p2) }
   0x7   : > { %466 = vmatpush3.bf16.msra.mxu0 (!%p139_p2), %v497_v0  ;;  %485 = vmatpush3.bf16.msra.mxu1 (!%p139_p2), %v497_v0 }
   0x8   : > { %467 = vmatprep.subr.bf16.mxu0 (!%p139_p2), %v498_v1  ;;  %482 = vmatprep.subr.bf16.mxu1 (!%p139_p2), %v498_v1 }
   0xb   : > { %468 = vmatpush3.bf16.msra.mxu0 (!%p139_p2), %v498_v1  ;;  %486 = vmatpush3.bf16.msra.mxu1 (!%p139_p2), %v498_v1 }
   0xc   : > { %469 = vmatprep.subr.bf16.mxu0 (!%p139_p2), %v499_v2  ;;  %483 = vmatprep.subr.bf16.mxu1 (!%p139_p2), %v499_v2 }
   0xd   : > { %s589_s16 = smov (!%p163_p3, %s422_s16), 15 }
   0xe   : > { %s423_s21 = sshll.u32 %s589_s16, 2 }
   0xf   : > { %s166_s26 = scalar_lea.vmem %s584_s0, %s423_s21  ;;  %470 = vmatpush3.bf16.msra.mxu0 %v499_v2  ;;  %487 = vmatpush3.bf16.msra.mxu1 %v499_v2  ;;  %s172_s4 = scalar_lea.vmem %s587_s3, %s423_s21 }
  0x10   : > { %v501_v4 = vld [vmem:[%s166_s26] sm:$0xff]   ;;  %v502_v5 = vld [vmem:[%s166_s26 + $0x10] sm:$0xff]   ;;  %471 = vmatprep.subr.bf16.mxu0 %v500_v3  ;;  %484 = vmatprep.subr.bf16.mxu1 %v500_v3  ;;  %v503_v6 = vld [vmem:[%s166_s26 + $0x8] sm:$0xff]  }
  0x11   : > { %473 = vmatprep.mubr.msk.bf16.mxu0 %vm242_vm0, %v501_v4  ;;  %477 = vmatprep.mubr.msk.bf16.mxu1 %vm242_vm0, %v502_v5  ;;  %v504_v7 = vld [vmem:[%s166_s26 + $0x18] sm:$0xff]  }
  0x13   : > { %472 = vmatpush3.bf16.msra.mxu0 %v500_v3  ;;  %488 = vmatpush3.bf16.msra.mxu1 %v500_v3 }
  0x16   : > { %474 = vmatmul.mubr.msk.bf16.vlgmr.msra.gmra.mrb[0].mxu0 %vm242_vm0, %v503_v6  ;;  %478 = vmatmul.mubr.msk.bf16.vlgmr.msra.gmra.mrb[0].mxu1 %vm242_vm0, %v504_v7 }
  0xe9   : > { %v475_v9 = vpop.f32.mrb[0].mxu0  ;;  %v479_v10 = vpop.f32.mrb[0].mxu1 }
  0xea   : > { %v298_v11 = vadd.f32 %v475_v9, %v426_v8  ;;  %v314_v12 = vadd.f32 %v479_v10, %v426_v8  ;;  %v289_v13 = vpop.f32.mrb[1].mxu0  ;;  %v305_v14 = vpop.f32.mrb[1].mxu1 }
  0xeb   : > { %v290_v15 = vadd.f32 %v426_v8, %v289_v13  ;;  %v306_v16 = vadd.f32 %v426_v8, %v305_v14  ;;  %v476_v17 = vpop.f32.mrb[2].mxu0  ;;  %v480_v18 = vpop.f32.mrb[2].mxu1 }
  0xec   : > { %v451_v19 = vpack.c.bf16 %v298_v11, %v298_v11  ;;  %v455_v20 = vpack.c.bf16 %v314_v12, %v314_v12  ;;  %v301_v21 = vadd.f32 %v476_v17, %v426_v8  ;;  %v317_v22 = vadd.f32 %v480_v18, %v426_v8  ;;  %v292_v23 = vpop.f32.mrb[3].mxu0  ;;  %v308_v24 = vpop.f32.mrb[3].mxu1 }
  0xed   : > { %v449_v25 = vpack.c.bf16 %v290_v15, %v290_v15  ;;  %v453_v26 = vpack.c.bf16 %v306_v16, %v306_v16  ;;  %v293_v27 = vadd.f32 %v426_v8, %v292_v23  ;;  %v309_v28 = vadd.f32 %v426_v8, %v308_v24 }
  0xee   : > { %355 = vst.msk [vmem:[%s172_s4 + $0x8] sm:$0xf] %vm352_vm1, %v451_v19  ;;  %359 = vst.msk [vmem:[%s172_s4 + $0x18] sm:$0xf] %vm352_vm1, %v455_v20  ;;  %v452_v29 = vpack.c.bf16 %v301_v21, %v301_v21  ;;  %v456_v30 = vpack.c.bf16 %v317_v22, %v317_v22 }
  0xef   : > { %353 = vst.msk [vmem:[%s172_s4] sm:$0xf] %vm352_vm1, %v449_v25  ;;  %357 = vst.msk [vmem:[%s172_s4 + $0x10] sm:$0xf] %vm352_vm1, %v453_v26  ;;  %v450_v31 = vpack.c.bf16 %v293_v27, %v293_v27  ;;  %v454_v32 = vpack.c.bf16 %v309_v28, %v309_v28 }
  0xf0   : > { %356 = vst.msk [vmem:[%s172_s4 + $0xc] sm:$0xf] %vm352_vm1, %v452_v29  ;;  %360 = vst.msk [vmem:[%s172_s4 + $0x1c] sm:$0xf] %vm352_vm1, %v456_v30 }
  0xf1   : > { %354 = vst.msk [vmem:[%s172_s4 + $0x4] sm:$0xf] %vm352_vm1, %v450_v31  ;;  %358 = vst.msk [vmem:[%s172_s4 + $0x14] sm:$0xf] %vm352_vm1, %v454_v32 }
  0xf2 PF: > { %s13_s12 = sadd.s32 1, %s511_s12  }
  0xf3   : > { %p10_p4 = scmp.ge.s32.totalorder %s13_s12, 4  }
  0xf5   :  { %12 = sbr.rel (!%p10_p4) target bundleno = 1 (0x1), region = 62 }

// kernel: _lambda_.42
= control target key start
LH: loop header
LB: loop body
LE: loop exit
PB: predicated region body
PF: predicated region fallthrough
CT: control target
= control target key end

     0   :  { %s634_s15 = smov 0   ;;  %s739_s0 = inlined_call_operand.vmem [shape: bf16[128,64], index: 0, kind: input, shape index: {}]   ;;  %s740_s1 = inlined_call_operand.vmem [shape: bf16[128,64], index: 1, kind: input, shape index: {}]   ;;  %s741_s2 = inlined_call_operand.vmem [shape: f32[1,64], index: 2, kind: input, shape index: {}]   ;;  %s742_s3 = inlined_call_operand.vmem [shape: f32[1,64], index: 3, kind: input, shape index: {}]   ;;  %s743_s4 = inlined_call_operand.vmem [shape: bf16[128,64], index: 4, kind: output, shape index: {}]  }
   0x1 LB: > { %s508_s16 = sadd.s32 4294967295, %s607_s15   ;;  %p512_p0 = scmp.ge.s32.totalorder %s607_s15, 1  ;;  %s607_s15 = sphi %s634_s15, %s14_s15  }
   0x2   : > { %p174_p1 = scmp.lt.s32.totalorder %s607_s15, 3 }
   0x4   : > { %p175_p2 = pnand %p512_p0, %p174_p1 }
   0x5   : > { %s513_s17 = sshll.u32 (!%p175_p2), %s508_s16, 3  ;;  %vm263_vm0 = vcmask (!%p175_p2), 523264   ;;  %vm431_vm1 = vcmask (!%p175_p2), 519168  }
   0x6   : > { %178 = sbr.rel (%p175_p2) target bundleno = 354 (0x162), region = 36  ;;  %p206_p3 = scmp.lt.s32.totalorder (!%p175_p2), %s513_s17, 15 }
   0xd   : > { %s745_s17 = smov (!%p206_p3, %s513_s17), 15 }
   0xe   : > { %s642_s18 = sshll.u32 %s745_s17, 2 }
   0xf   : > { %s209_s21 = scalar_lea.vmem %s739_s0, %s642_s18  ;;  %s215_s24 = scalar_lea.vmem %s740_s1, %s642_s18 }
  0x10   : > { %v540_v0 = vld [vmem:[%s209_s21] sm:$0xff]   ;;  %v571_v2 = vld [vmem:[%s209_s21 + $0x8] sm:$0xff]   ;;  %v572_v8 = vld [vmem:[%s209_s21 + $0x10] sm:$0xff]   ;;  %s712_s5 = scalar_lea.vmem %s743_s4, %s642_s18 }
  0x11   : > { %v556_v1 = vld [vmem:[%s215_s24] sm:$0xff]   ;;  %v541_v3 = vunpack.c.l.bf16 %v540_v0  ;;  %v545_v5 = vunpack.c.l.bf16 %v571_v2  ;;  %v574_v6 = vld [vmem:[%s215_s24 + $0x8] sm:$0xff]   ;;  %v542_v7 = vunpack.c.h.bf16 %v540_v0  ;;  %v575_v9 = vld [vmem:[%s215_s24 + $0x10] sm:$0xff]   ;;  %v546_v12 = vunpack.c.h.bf16 %v571_v2 }
  0x12   : > { %v557_v4 = vunpack.c.l.bf16 %v556_v1  ;;  %v561_v10 = vunpack.c.l.bf16 %v574_v6  ;;  %v558_v11 = vunpack.c.h.bf16 %v556_v1  ;;  %v562_v13 = vunpack.c.h.bf16 %v574_v6  ;;  %v573_v22 = vld [vmem:[%s209_s21 + $0x18] sm:$0xff]  }
  0x13   : > { %v549_v15 = vunpack.c.l.bf16 %v572_v8  ;;  %v565_v16 = vunpack.c.l.bf16 %v575_v9  ;;  %v550_v17 = vunpack.c.h.bf16 %v572_v8  ;;  %v566_v21 = vunpack.c.h.bf16 %v575_v9  ;;  %v576_v23 = vld [vmem:[%s215_s24 + $0x18] sm:$0xff]  }
  0x14   : > { %v255_v14 = vadd.f32 %v557_v4, %v541_v3  ;;  %v257_v18 = vadd.f32 %v561_v10, %v545_v5  ;;  %v256_v19 = vadd.f32 %v558_v11, %v542_v7  ;;  %v258_v20 = vadd.f32 %v562_v13, %v546_v12 }
  0x15   : > { %v259_v27 = vadd.f32 %v565_v16, %v549_v15  ;;  %v553_v28 = vunpack.c.l.bf16 %v573_v22  ;;  %v569_v29 = vunpack.c.l.bf16 %v576_v23  ;;  %v260_v31 = vadd.f32 %v566_v21, %v550_v17 }
  0x16   : > { %v264_v24 = vsel %vm263_vm0, %v255_v14, 0.0  ;;  %v270_v25 = vsel %vm263_vm0, %v257_v18, 0.0  ;;  %v267_v26 = vsel %vm263_vm0, %v256_v19, 0.0  ;;  %v273_v30 = vsel %vm263_vm0, %v258_v20, 0.0 }
  0x17   : > { %265 = vadd.xlane.f32.xlu0 %v264_v24  ;;  %271 = vadd.xlane.f32.xlu1 %v270_v25  ;;  %v554_v32 = vunpack.c.h.bf16 %v573_v22  ;;  %v570_v33 = vunpack.c.h.bf16 %v576_v23  ;;  %v276_v34 = vsel %vm263_vm0, %v259_v27, 0.0  ;;  %v261_v35 = vadd.f32 %v569_v29, %v553_v28 }
  0x18   : > { %v279_v36 = vsel %vm263_vm0, %v260_v31, 0.0 }
  0x19   : > { %v262_v37 = vadd.f32 %v570_v33, %v554_v32  ;;  %v282_v38 = vsel %vm263_vm0, %v261_v35, 0.0 }
  0x1b   : > { %268 = vadd.xlane.f32.xlu0 %v267_v26  ;;  %274 = vadd.xlane.f32.xlu1 %v273_v30  ;;  %v285_v39 = vsel %vm263_vm0, %v262_v37, 0.0 }
  0x1f   : > { %277 = vadd.xlane.f32.xlu0 %v276_v34  ;;  %280 = vadd.xlane.f32.xlu1 %v279_v36  ;;  %v519_v36 = vld [vmem:[%s741_s2] ss:$0 sm:$0xff] }
  0x23   : > { %283 = vadd.xlane.f32.xlu0 %v282_v38  ;;  %286 = vadd.xlane.f32.xlu1 %v285_v39 }
  0xa4   : > { %v266_v40 = vpop.xlane.xlu0 %265  ;;  %v272_v42 = vpop.xlane.xlu1 %271 }
  0xa5   : > { %v289_v41 = vmul.f32 0.015625, %v266_v40  ;;  %v291_v43 = vmul.f32 0.015625, %v272_v42 }
  0xa7   : > { %v660_v44 = vsub.f32 %v255_v14, %v289_v41  ;;  %v662_v45 = vsub.f32 %v257_v18, %v291_v43  ;;  %v520_v41 = vld [vmem:[%s742_s3] ss:$0 sm:$0xff] }
  0xa8   : > { %v269_v46 = vpop.xlane.xlu0 %268  ;;  %v275_v48 = vpop.xlane.xlu1 %274 }
  0xa9   : > { %v290_v47 = vmul.f32 0.015625, %v269_v46  ;;  %v305_v49 = vmul.f32 %v660_v44, %v660_v44  ;;  %v292_v50 = vmul.f32 0.015625, %v275_v48  ;;  %v307_v51 = vmul.f32 %v662_v45, %v662_v45 }
  0xab   : > { %v668_v52 = vsub.f32 %v256_v19, %v290_v47  ;;  %v313_v53 = vsel %vm263_vm0, %v305_v49, 0.0  ;;  %v671_v54 = vsub.f32 %v258_v20, %v292_v50  ;;  %v319_v58 = vsel %vm263_vm0, %v307_v51, 0.0 }
  0xac   : > { %314 = vadd.xlane.f32.xlu0 %v313_v53  ;;  %v278_v55 = vpop.xlane.xlu0 %277  ;;  %v281_v57 = vpop.xlane.xlu1 %280 }
  0xad   : > { %v293_v56 = vmul.f32 0.015625, %v278_v55  ;;  %v306_v59 = vmul.f32 %v668_v52, %v668_v52  ;;  %v294_v60 = vmul.f32 0.015625, %v281_v57  ;;  %v308_v61 = vmul.f32 %v671_v54, %v671_v54 }
  0xaf   : > { %v678_v62 = vsub.f32 %v259_v27, %v293_v56  ;;  %v316_v63 = vsel %vm263_vm0, %v306_v59, 0.0  ;;  %v681_v0 = vsub.f32 %v260_v31, %v294_v60  ;;  %v322_v4 = vsel %vm263_vm0, %v308_v61, 0.0 }
  0xb0   : > { %320 = vadd.xlane.f32.xlu0 %v319_v58  ;;  %317 = vadd.xlane.f32.xlu1 %v316_v63  ;;  %v284_v1 = vpop.xlane.xlu0 %283  ;;  %v287_v3 = vpop.xlane.xlu1 %286 }
  0xb1   : > { %v295_v2 = vmul.f32 0.015625, %v284_v1  ;;  %v309_v5 = vmul.f32 %v678_v62, %v678_v62  ;;  %v296_v6 = vmul.f32 0.015625, %v287_v3  ;;  %v310_v7 = vmul.f32 %v681_v0, %v681_v0 }
  0xb3   : > { %v688_v8 = vsub.f32 %v261_v35, %v295_v2  ;;  %v325_v9 = vsel %vm263_vm0, %v309_v5, 0.0  ;;  %v691_v10 = vsub.f32 %v262_v37, %v296_v6  ;;  %v328_v11 = vsel %vm263_vm0, %v310_v7, 0.0 }
  0xb4   : > { %323 = vadd.xlane.f32.xlu1 %v322_v4  ;;  %326 = vadd.xlane.f32.xlu0 %v325_v9 }
  0xb5   : > { %v311_v12 = vmul.f32 %v688_v8, %v688_v8  ;;  %v312_v13 = vmul.f32 %v691_v10, %v691_v10 }
  0xb7   : > { %v331_v14 = vsel %vm263_vm0, %v311_v12, 0.0  ;;  %v334_v15 = vsel %vm263_vm0, %v312_v13, 0.0 }
  0xb8   : > { %329 = vadd.xlane.f32.xlu1 %v328_v11  ;;  %332 = vadd.xlane.f32.xlu0 %v331_v14 }
  0xbc   : > { %335 = vadd.xlane.f32.xlu1 %v334_v15 }
 0x139   : > { %v315_v16 = vpop.xlane.xlu0 %314 }
 0x13a   : > { %v337_v17 = vmul.f32 0.015625, %v315_v16 }
 0x13c   : > { %v345_v18 = vadd.f32 1e-05, %v337_v17 }
 0x13d   : > { %v318_v19 = vpop.xlane.xlu1 %317  ;;  %v321_v20 = vpop.xlane.xlu0 %320 }
 0x13e   : > { %585 = vrsqrt.f32 %v345_v18  ;;  %v338_v21 = vmul.f32 0.015625, %v318_v19  ;;  %v339_v22 = vmul.f32 0.015625, %v321_v20 }
 0x140   : > { %v346_v23 = vadd.f32 1e-05, %v338_v21  ;;  %v347_v24 = vadd.f32 1e-05, %v339_v22 }
 0x141   : > { %v324_v25 = vpop.xlane.xlu1 %323  ;;  %v327_v26 = vpop.xlane.xlu0 %326 }
 0x142   : > { %587 = vrsqrt.f32 %v346_v23  ;;  %v340_v27 = vmul.f32 0.015625, %v324_v25  ;;  %v341_v28 = vmul.f32 0.015625, %v327_v26 }
 0x143   : > { %589 = vrsqrt.f32 %v347_v24 }
 0x144   : > { %v348_v29 = vadd.f32 1e-05, %v340_v27  ;;  %v349_v30 = vadd.f32 1e-05, %v341_v28 }
 0x145   : > { %v330_v31 = vpop.xlane.xlu1 %329  ;;  %v333_v32 = vpop.xlane.xlu0 %332 }
 0x146   : > { %591 = vrsqrt.f32 %v348_v29  ;;  %v342_v33 = vmul.f32 0.015625, %v330_v31  ;;  %v343_v34 = vmul.f32 0.015625, %v333_v32 }
 0x147   : > { %593 = vrsqrt.f32 %v349_v30 }
 0x148   : > { %v586_v35 = vpop.eup %585  ;;  %v350_v37 = vadd.f32 1e-05, %v342_v33  ;;  %v351_v38 = vadd.f32 1e-05, %v343_v34 }
 0x149   : > { %v361_v39 = vmul.f32 %v586_v35, %v660_v44  ;;  %v336_v40 = vpop.xlane.xlu1 %335 }
 0x14a   : > { %595 = vrsqrt.f32 %v350_v37  ;;  %v344_v42 = vmul.f32 0.015625, %v336_v40 }
 0x14b   : > { %v376_v43 = vmul.f32 %v519_v36, %v361_v39  ;;  %597 = vrsqrt.f32 %v351_v38 }
 0x14c   : > { %v588_v46 = vpop.eup %587  ;;  %v352_v47 = vadd.f32 1e-05, %v344_v42 }
 0x14d   : > { %v590_v48 = vpop.eup %589  ;;  %v391_v49 = vadd.f32 %v520_v41, %v376_v43  ;;  %v362_v50 = vmul.f32 %v588_v46, %v668_v52 }
 0x14e   : > { %v363_v44 = vmul.f32 %v590_v48, %v662_v45  ;;  %599 = vrsqrt.f32 %v352_v47 }
 0x14f   : > { %v531_v51 = vpack.c.bf16 %v391_v49, %v391_v49  ;;  %v377_v53 = vmul.f32 %v519_v36, %v362_v50 }
 0x150   : > { %v592_v55 = vpop.eup %591  ;;  %v378_v56 = vmul.f32 %v519_v36, %v363_v44 }
 0x151   : > { %v594_v57 = vpop.eup %593  ;;  %432 = vst.msk [vmem:[%s712_s5] sm:$0xf] %vm431_vm1, %v531_v51  ;;  %v392_v52 = vadd.f32 %v520_v41, %v377_v53  ;;  %v364_v58 = vmul.f32 %v592_v55, %v671_v54 }
 0x152   : > { %v393_v59 = vadd.f32 %v520_v41, %v378_v56  ;;  %v365_v60 = vmul.f32 %v594_v57, %v678_v62 }
 0x153   : > { %v532_v61 = vpack.c.bf16 %v392_v52, %v392_v52  ;;  %v379_v63 = vmul.f32 %v519_v36, %v364_v58 }
 0x154   : > { %v596_v45 = vpop.eup %595  ;;  %v533_v1 = vpack.c.bf16 %v393_v59, %v393_v59  ;;  %v380_v2 = vmul.f32 %v519_v36, %v365_v60 }
 0x155   : > { %v598_v3 = vpop.eup %597  ;;  %433 = vst.msk [vmem:[%s712_s5 + $0x4] sm:$0xf] %vm431_vm1, %v532_v61  ;;  %v394_v4 = vadd.f32 %v520_v41, %v379_v63  ;;  %v366_v5 = vmul.f32 %v596_v45, %v681_v0 }
 0x156   : > { %434 = vst.msk [vmem:[%s712_s5 + $0x8] sm:$0xf] %vm431_vm1, %v533_v1  ;;  %v395_v54 = vadd.f32 %v520_v41, %v380_v2  ;;  %v367_v6 = vmul.f32 %v598_v3, %v688_v8 }
 0x157   : > { %v534_v62 = vpack.c.bf16 %v394_v4, %v394_v4  ;;  %v381_v7 = vmul.f32 %v519_v36, %v366_v5 }
 0x158   : > { %v600_v9 = vpop.eup %599  ;;  %v535_v11 = vpack.c.bf16 %v395_v54, %v395_v54  ;;  %v382_v12 = vmul.f32 %v519_v36, %v367_v6 }
 0x159   : > { %435 = vst.msk [vmem:[%s712_s5 + $0xc] sm:$0xf] %vm431_vm1, %v534_v62  ;;  %v396_v13 = vadd.f32 %v520_v41, %v381_v7  ;;  %v368_v14 = vmul.f32 %v600_v9, %v691_v10 }
 0x15a   : > { %436 = vst.msk [vmem:[%s712_s5 + $0x10] sm:$0xf] %vm431_vm1, %v535_v11  ;;  %v397_v0 = vadd.f32 %v520_v41, %v382_v12 }
 0x15b   : > { %v536_v15 = vpack.c.bf16 %v396_v13, %v396_v13  ;;  %v383_v16 = vmul.f32 %v519_v36, %v368_v14 }
 0x15c   : > { %v537_v17 = vpack.c.bf16 %v397_v0, %v397_v0 }
 0x15d   : > { %437 = vst.msk [vmem:[%s712_s5 + $0x14] sm:$0xf] %vm431_vm1, %v536_v15  ;;  %v398_v8 = vadd.f32 %v520_v41, %v383_v16 }
 0x15e   : > { %438 = vst.msk [vmem:[%s712_s5 + $0x18] sm:$0xf] %vm431_vm1, %v537_v17 }
 0x15f   : > { %v538_v18 = vpack.c.bf16 %v398_v8, %v398_v8 }
 0x161   : > { %439 = vst.msk [vmem:[%s712_s5 + $0x1c] sm:$0xf] %vm431_vm1, %v538_v18 }
 0x162 PF: > { %s14_s15 = sadd.s32 1, %s607_s15  }
 0x163   : > { %p11_p4 = scmp.ge.s32.totalorder %s14_s15, 4  }
 0x165   :  { %13 = sbr.rel (!%p11_p4) target bundleno = 1 (0x1), region = 69 }

// kernel: _lambda_.43
= control target key start
LH: loop header
LB: loop body
LE: loop exit
PB: predicated region body
PF: predicated region fallthrough
CT: control target
= control target key end

     0   :  { %s790_s18 = smov 0   ;;  %s868_s0 = inlined_call_operand.vmem [shape: bf16[128,64], index: 0, kind: input, shape index: {}]   ;;  %s869_s1 = inlined_call_operand.vmem [shape: bf16[64,128], index: 1, kind: input, shape index: {}]   ;;  %s870_s2 = inlined_call_operand.vmem [shape: f32[1,128], index: 2, kind: input, shape index: {}]   ;;  %s871_s3 = inlined_call_operand.vmem [shape: bf16[128,64], index: 3, kind: input, shape index: {}]   ;;  %s872_s4 = inlined_call_operand.vmem [shape: f32[1,64], index: 4, kind: input, shape index: {}]   ;;  %s873_s5 = inlined_call_operand.vmem [shape: bf16[128,64], index: 5, kind: output, shape index: {}]  }
   0x1 LB: > { %s619_s19 = sadd.s32 4294967295, %s758_s18   ;;  %p623_p0 = scmp.ge.s32.totalorder %s758_s18, 1  ;;  %s758_s18 = sphi %s790_s18, %s15_s18  }
   0x2   : > { %p188_p1 = scmp.lt.s32.totalorder %s758_s18, 3 }
   0x4   : > { %p189_p2 = pnand %p623_p0, %p188_p1 }
   0x5   : > { %v736_v0 = vld [vmem:[%s869_s1] sm:$0xff] (!%p189_p2)   ;;  %s624_s22 = sshll.u32 (!%p189_p2), %s619_s19, 3  ;;  %v737_v1 = vld [vmem:[%s869_s1 + $0x8] sm:$0xff] (!%p189_p2)   ;;  %v738_v2 = vld [vmem:[%s869_s1 + $0x10] sm:$0xff] (!%p189_p2)   ;;  %vm296_vm0 = vcmask (!%p189_p2), 523264   ;;  %vm554_vm1 = vcmask (!%p189_p2), 519168  }
   0x6   : > { %192 = sbr.rel (%p189_p2) target bundleno = 472 (0x1d8), region = 40  ;;  %p217_p3 = scmp.lt.s32.totalorder (!%p189_p2), %s624_s22, 15  ;;  %688 = vmatprep.subr.bf16.mxu0 (!%p189_p2), %v736_v0  ;;  %v744_v3 = vld [vmem:[%s871_s3] sm:$0xff] (!%p189_p2)   ;;  %v745_v4 = vld [vmem:[%s871_s3 + $0x8] sm:$0xff] (!%p189_p2)   ;;  %v739_v5 = vld [vmem:[%s869_s1 + $0x18] sm:$0xff] (!%p189_p2)  }
   0x7   : > { %689 = vmatpush3.bf16.msra.mxu0 (!%p189_p2), %v736_v0  ;;  %704 = vmatprep.subr.bf16.mxu1 (!%p189_p2), %v744_v3  ;;  %v746_v7 = vld [vmem:[%s871_s3 + $0x10] sm:$0xff] (!%p189_p2)   ;;  %v747_v8 = vld [vmem:[%s871_s3 + $0x18] sm:$0xff] (!%p189_p2)   ;;  %v748_v11 = vld [vmem:[%s871_s3 + $0x20] sm:$0xff] (!%p189_p2)  }
   0x8   : > { %690 = vmatprep.subr.bf16.mxu0 (!%p189_p2), %v737_v1  ;;  %705 = vmatpush3.bf16.msra.mxu1 (!%p189_p2), %v744_v3  ;;  %v749_v12 = vld [vmem:[%s871_s3 + $0x28] sm:$0xff] (!%p189_p2)   ;;  %v750_v14 = vld [vmem:[%s871_s3 + $0x30] sm:$0xff] (!%p189_p2)   ;;  %v751_v15 = vld [vmem:[%s871_s3 + $0x38] sm:$0xff] (!%p189_p2)  }
   0x9   : > { %706 = vmatprep.subr.bf16.mxu1 (!%p189_p2), %v745_v4  ;;  %v628_v16 = vld [vmem:[%s870_s2] ss:$0 sm:$0xff] (!%p189_p2) }
   0xa   : > { %v641_v45 = vld [vmem:[%s872_s4] ss:$0 sm:$0xff] (!%p189_p2) }
   0xb   : > { %691 = vmatpush3.bf16.msra.mxu0 (!%p189_p2), %v737_v1 }
   0xc   : > { %692 = vmatprep.subr.bf16.mxu0 (!%p189_p2), %v738_v2  ;;  %707 = vmatpush3.bf16.msra.mxu1 (!%p189_p2), %v745_v4 }
   0xd   : > { %s875_s22 = smov (!%p217_p3, %s624_s22), 15  ;;  %708 = vmatprep.subr.bf16.mxu1 %v746_v7 }
   0xe   : > { %s625_s29 = sshll.u32 %s875_s22, 2 }
   0xf   : > { %s220_s11 = scalar_lea.vmem %s868_s0, %s625_s29  ;;  %693 = vmatpush3.bf16.msra.mxu0 %v738_v2  ;;  %s226_s8 = scalar_lea.vmem %s873_s5, %s625_s29 }
  0x10   : > { %v740_v6 = vld [vmem:[%s220_s11] sm:$0xff]   ;;  %694 = vmatprep.subr.bf16.mxu0 %v739_v5  ;;  %v741_v9 = vld [vmem:[%s220_s11 + $0x8] sm:$0xff]   ;;  %v742_v10 = vld [vmem:[%s220_s11 + $0x10] sm:$0xff]   ;;  %709 = vmatpush3.bf16.msra.mxu1 %v746_v7 }
  0x11   : > { %696 = vmatprep.mubr.msk.bf16.mxu0 %vm296_vm0, %v740_v6  ;;  %710 = vmatprep.subr.bf16.mxu1 %v747_v8  ;;  %v743_v13 = vld [vmem:[%s220_s11 + $0x18] sm:$0xff]  }
  0x13   : > { %695 = vmatpush3.bf16.msra.mxu0 %v739_v5 }
  0x14   : > { %711 = vmatpush3.bf16.msra.mxu1 %v747_v8 }
  0x15   : > { %712 = vmatprep.subr.bf16.mxu1 %v748_v11 }
  0x16   : > { %697 = vmatmul.mubr.msk.bf16.vlgmr.msra.gmra.mrb[0].mxu0 %vm296_vm0, %v741_v9 }
  0x17   : > { %700 = vmatprep.mubr.msk.bf16.mxu0 %vm296_vm0, %v742_v10 }
  0x18   : > { %713 = vmatpush3.bf16.msra.mxu1 %v748_v11 }
  0x19   : > { %714 = vmatprep.subr.bf16.mxu1 %v749_v12 }
  0x1c   : > { %715 = vmatpush3.bf16.msra.mxu1 %v749_v12 }
  0x1d   : > { %716 = vmatprep.subr.bf16.mxu1 %v750_v14 }
  0x1e   : > { %701 = vmatmul.mubr.msk.bf16.gmra.mrb[4].mxu0 %vm296_vm0, %v743_v13 }
  0x20   : > { %717 = vmatpush3.bf16.msra.mxu1 %v750_v14 }
  0x21   : > { %718 = vmatprep.subr.bf16.mxu1 %v751_v15 }
  0x24   : > { %719 = vmatpush3.bf16.msra.mxu1 %v751_v15 }
  0xe9   : > { %v698_v17 = vpop.f32.mrb[0].mxu0 }
  0xea   : > { %v352_v18 = vadd.f32 %v698_v17, %v628_v16  ;;  %v343_v19 = vpop.f32.mrb[1].mxu0 }
  0xeb   : > { %v344_v20 = vadd.f32 %v628_v16, %v343_v19  ;;  %v699_v21 = vpop.f32.mrb[2].mxu0 }
  0xec   : > { %v355_v22 = vadd.f32 %v699_v21, %v628_v16  ;;  %v346_v23 = vpop.f32.mrb[3].mxu0  ;;  %v376_v25 = vmax.f32 %v352_v18, 0.0 }
  0xed   : > { %v347_v24 = vadd.f32 %v628_v16, %v346_v23  ;;  %v374_v27 = vmax.f32 %v344_v20, 0.0 }
  0xee   : > { %v377_v26 = vmax.f32 %v355_v22, 0.0 }
  0xef   : > { %v375_v28 = vmax.f32 %v347_v24, 0.0 }
  0xf0   : > { %v383_v29 = vpack.c.bf16 %v377_v26, %v376_v25 }
  0xf1   : > { %v702_v30 = vpop.f32.mrb[4].mxu0  ;;  %v382_v31 = vpack.c.bf16 %v375_v28, %v374_v27 }
  0xf2   : > { %v368_v32 = vadd.f32 %v702_v30, %v628_v16  ;;  %v359_v33 = vpop.f32.mrb[5].mxu0 }
  0xf3   : > { %v360_v34 = vadd.f32 %v628_v16, %v359_v33  ;;  %v703_v35 = vpop.f32.mrb[6].mxu0  ;;  %720 = vmatprep.mubr.bf16.mxu1 %v382_v31 }
  0xf4   : > { %v371_v36 = vadd.f32 %v703_v35, %v628_v16  ;;  %v362_v37 = vpop.f32.mrb[7].mxu0  ;;  %721 = vmatmul.mubr.bf16.vlgmr.msra.gmra.mrb[0].mxu1 %v383_v29  ;;  %v380_v39 = vmax.f32 %v368_v32, 0.0 }
  0xf5   : > { %v363_v38 = vadd.f32 %v628_v16, %v362_v37  ;;  %v378_v41 = vmax.f32 %v360_v34, 0.0 }
  0xf6   : > { %v381_v40 = vmax.f32 %v371_v36, 0.0 }
  0xf7   : > { %v379_v42 = vmax.f32 %v363_v38, 0.0 }
  0xf8   : > { %v385_v43 = vpack.c.bf16 %v381_v40, %v380_v39 }
  0xf9   : > { %v384_v44 = vpack.c.bf16 %v379_v42, %v378_v41 }
  0xfb   : > { %724 = vmatprep.mubr.bf16.mxu1 %v384_v44 }
  0xfc   : > { %725 = vmatmul.mubr.bf16.gmra.mrb[4].mxu1 %v385_v43 }
 0x1c7   : > { %v722_v46 = vpop.f32.mrb[0].mxu1 }
 0x1c8   : > { %v500_v47 = vadd.f32 %v722_v46, %v641_v45  ;;  %v491_v48 = vpop.f32.mrb[1].mxu1 }
 0x1c9   : > { %v492_v49 = vadd.f32 %v641_v45, %v491_v48  ;;  %v723_v50 = vpop.f32.mrb[2].mxu1 }
 0x1ca   : > { %v662_v51 = vpack.c.bf16 %v500_v47, %v500_v47  ;;  %v503_v52 = vadd.f32 %v723_v50, %v641_v45  ;;  %v494_v53 = vpop.f32.mrb[3].mxu1 }
 0x1cb   : > { %v660_v54 = vpack.c.bf16 %v492_v49, %v492_v49  ;;  %v495_v55 = vadd.f32 %v641_v45, %v494_v53 }
 0x1cc   : > { %557 = vst.msk [vmem:[%s226_s8 + $0x8] sm:$0xf] %vm554_vm1, %v662_v51  ;;  %v663_v56 = vpack.c.bf16 %v503_v52, %v503_v52 }
 0x1cd   : > { %555 = vst.msk [vmem:[%s226_s8] sm:$0xf] %vm554_vm1, %v660_v54  ;;  %v661_v57 = vpack.c.bf16 %v495_v55, %v495_v55 }
 0x1ce   : > { %558 = vst.msk [vmem:[%s226_s8 + $0xc] sm:$0xf] %vm554_vm1, %v663_v56 }
 0x1cf   : > { %556 = vst.msk [vmem:[%s226_s8 + $0x4] sm:$0xf] %vm554_vm1, %v661_v57  ;;  %v726_v58 = vpop.f32.mrb[4].mxu1 }
 0x1d0   : > { %v516_v59 = vadd.f32 %v726_v58, %v641_v45  ;;  %v507_v60 = vpop.f32.mrb[5].mxu1 }
 0x1d1   : > { %v508_v61 = vadd.f32 %v641_v45, %v507_v60  ;;  %v727_v62 = vpop.f32.mrb[6].mxu1 }
 0x1d2   : > { %v666_v63 = vpack.c.bf16 %v516_v59, %v516_v59  ;;  %v519_v0 = vadd.f32 %v727_v62, %v641_v45  ;;  %v510_v1 = vpop.f32.mrb[7].mxu1 }
 0x1d3   : > { %v664_v2 = vpack.c.bf16 %v508_v61, %v508_v61  ;;  %v511_v3 = vadd.f32 %v641_v45, %v510_v1 }
 0x1d4   : > { %561 = vst.msk [vmem:[%s226_s8 + $0x18] sm:$0xf] %vm554_vm1, %v666_v63  ;;  %v667_v4 = vpack.c.bf16 %v519_v0, %v519_v0 }
 0x1d5   : > { %559 = vst.msk [vmem:[%s226_s8 + $0x10] sm:$0xf] %vm554_vm1, %v664_v2  ;;  %v665_v5 = vpack.c.bf16 %v511_v3, %v511_v3 }
 0x1d6   : > { %562 = vst.msk [vmem:[%s226_s8 + $0x1c] sm:$0xf] %vm554_vm1, %v667_v4 }
 0x1d7   : > { %560 = vst.msk [vmem:[%s226_s8 + $0x14] sm:$0xf] %vm554_vm1, %v665_v5 }
 0x1d8 PF: > { %s15_s18 = sadd.s32 1, %s758_s18  }
 0x1d9   : > { %p12_p4 = scmp.ge.s32.totalorder %s15_s18, 4  }
 0x1db   :  { %14 = sbr.rel (!%p12_p4) target bundleno = 1 (0x1), region = 70 }

// kernel: _lambda_.51
= control target key start
LH: loop header
LB: loop body
LE: loop exit
PB: predicated region body
PF: predicated region fallthrough
CT: control target
= control target key end

     0   :  { %s414_s12 = smov 0   ;;  %s462_s0 = inlined_call_operand.vmem [shape: bf16[16,64], index: 0, kind: input, shape index: {}]   ;;  %s463_s1 = inlined_call_operand.vmem [shape: bf16[64,192], index: 1, kind: input, shape index: {}]   ;;  %s464_s2 = inlined_call_operand.vmem [shape: f32[1,192], index: 2, kind: input, shape index: {}]   ;;  %s465_s3 = inlined_call_operand.vmem [shape: bf16[16,192], index: 3, kind: output, shape index: {}]  }
   0x1 LB: > { %s342_s13 = sadd.s32 4294967295, %s391_s12   ;;  %p346_p0 = scmp.ge.s32.totalorder %s391_s12, 1  ;;  %s391_s12 = sphi %s414_s12, %s13_s12  }
   0x2   : > { %p136_p1 = scmp.lt.s32.totalorder %s391_s12, 3 }
   0x4   : > { %p137_p2 = pnand %p346_p0, %p136_p1 }
   0x5   : > { %v373_v0 = vld [vmem:[%s463_s1 + $0x4] ss:$8 sps:$4 sm:$0xff] (!%p137_p2)   ;;  %v375_v1 = vld [vmem:[%s463_s1] ss:$8 sps:$4 sm:$0xff] (!%p137_p2)   ;;  %v393_v2 = vmov (!%p137_p2), 0   ;;  %p159_p3 = scmp.lt.s32.totalorder (!%p137_p2), %s342_s13, 1  ;;  %v180_v10 = vlaneseq (!%p137_p2) }
   0x6   : > { %140 = sbr.rel (%p137_p2) target bundleno = 240 (0xf0), region = 32  ;;  %266 = vmatprep.mubr.bf16.mxu0 (!%p137_p2), %v393_v2  ;;  %234 = vmatprep.subr.bf16.mxu0 (!%p137_p2), %v373_v0  ;;  %v376_v3 = vld [vmem:[%s463_s1 + $0x14] ss:$8 sps:$4 sm:$0xff] (!%p137_p2)   ;;  %v378_v4 = vld [vmem:[%s463_s1 + $0x10] ss:$8 sps:$4 sm:$0xff] (!%p137_p2)   ;;  %vm230_vm0 = vcmask (!%p137_p2), 523264  }
   0x7   : > { %235 = vmatpush1.bf16.msra.mxu0 (!%p137_p2), %v375_v1  ;;  %v379_v5 = vld [vmem:[%s463_s1 + $0x24] ss:$8 sps:$4 sm:$0xff] (!%p137_p2)   ;;  %v381_v6 = vld [vmem:[%s463_s1 + $0x20] ss:$8 sps:$4 sm:$0xff] (!%p137_p2)   ;;  %v382_v7 = vld [vmem:[%s463_s1 + $0x34] ss:$8 sps:$4 sm:$0xff] (!%p137_p2)  }
   0x8   : > { %236 = vmatprep.subr.bf16.mxu0 (!%p137_p2), %v376_v3  ;;  %v384_v8 = vld [vmem:[%s463_s1 + $0x30] ss:$8 sps:$4 sm:$0xff] (!%p137_p2)   ;;  %v181_v11 = vshrl.u32 (!%p137_p2), %v180_v10, 7  ;;  %v178_v13 = vld [vmem:[%s464_s2] sm:$0x3] (!%p137_p2)  ;;  %vm283_vm1 = vcmask (!%p137_p2), 1043456  }
   0x9   : > { %vm284_vm2 = vcmask (!%p137_p2), 523268  }
   0xa   : > { %v182_v12 = vsub.s32 (!%p137_p2), 0, %v181_v11  ;;  %v186_v14 = vsub.s32 (!%p137_p2), 1, %v181_v11  ;;  %vm285_vm3 = vmor (!%p137_p2), %vm284_vm2, %vm283_vm1 }
   0xb   : > { %237 = vmatpush1.bf16.msra.mxu0 (!%p137_p2), %v378_v4 }
   0xc   : > { %238 = vmatprep.subr.bf16.mxu0 (!%p137_p2), %v379_v5  ;;  %v183_v15 = vrot.slane (!%p137_p2), %v178_v13, %v182_v12  ;;  %v187_v16 = vrot.slane (!%p137_p2), %v178_v13, %v186_v14 }
   0xd   : > { %s467_s13 = smov (!%p159_p3, %s342_s13), 1 }
   0xe   : > { %s347_s28 = sshll.u32 %s467_s13, 2  ;;  %s362_s9 = sshll.u32 %s467_s13, 3 }
   0xf   : > { %239 = vmatpush1.bf16.msra.mxu0 %v381_v6  ;;  %s162_s6 = scalar_lea.vmem %s462_s0, %s347_s28  ;;  %s167_s14 = scalar_lea.vmem %s465_s3, %s362_s9 }
  0x10   : > { %240 = vmatprep.subr.bf16.mxu0 %v382_v7  ;;  %v169_v9 = vld [vmem:[%s162_s6] sm:$0xf] }
  0x13   : > { %241 = vmatpush1.bf16.msra.mxu0 %v384_v8 }
  0x16   : > { %358 = vmatmul.mubr.msk.bf16.vlgmr.msra.gmra.mrb[0].mxu0 %vm230_vm0, %v169_v9 }
  0xe9   : > { %v268_v17 = vpop.f32.mrb[0].mxu0 }
  0xea   : > { %v269_v18 = vadd.f32 %v268_v17, %v183_v15  ;;  %v270_v19 = vpop.f32.mrb[1].mxu0 }
  0xeb   : > { %v271_v20 = vadd.f32 %v270_v19, %v187_v16  ;;  %v272_v21 = vpop.f32.mrb[2].mxu0 }
  0xec   : > { %v273_v22 = vpop.f32.mrb[3].mxu0 }
  0xed   : > { %v363_v23 = vpack.c.bf16 %v271_v20, %v269_v18 }
  0xef   : > { %286 = vst.msk [vmem:[%s167_s14] sm:$0xff] %vm285_vm3, %v363_v23 }
  0xf0 PF: > { %s13_s12 = sadd.s32 1, %s391_s12  }
  0xf1   : > { %p10_p4 = scmp.ge.s32.totalorder %s13_s12, 4  }
  0xf3   :  { %12 = sbr.rel (!%p10_p4) target bundleno = 1 (0x1), region = 62 }

// kernel: _lambda_.56
= control target key start
LH: loop header
LB: loop body
LE: loop exit
PB: predicated region body
PF: predicated region fallthrough
CT: control target
= control target key end

     0   :  { %s555_s12 = smov 0   ;;  %s598_s0 = inlined_call_operand.vmem [shape: bf16[128,64], index: 0, kind: input, shape index: {}]   ;;  %s599_s1 = inlined_call_operand.vmem [shape: bf16[64,128], index: 1, kind: input, shape index: {}]   ;;  %s600_s2 = inlined_call_operand.vmem [shape: f32[1,128], index: 2, kind: input, shape index: {}]   ;;  %s601_s3 = inlined_call_operand.vmem [shape: bf16[128,128], index: 3, kind: output, shape index: {}]  }
   0x1 LB: > { %s416_s13 = sadd.s32 4294967295, %s533_s12   ;;  %p420_p0 = scmp.ge.s32.totalorder %s533_s12, 1  ;;  %s533_s12 = sphi %s555_s12, %s13_s12  }
   0x2   : > { %p138_p1 = scmp.lt.s32.totalorder %s533_s12, 3 }
   0x4   : > { %p139_p2 = pnand %p420_p0, %p138_p1 }
   0x5   : > { %v519_v0 = vld [vmem:[%s599_s1] sm:$0xff] (!%p139_p2)   ;;  %s421_s16 = sshll.u32 (!%p139_p2), %s416_s13, 3  ;;  %v520_v1 = vld [vmem:[%s599_s1 + $0x8] sm:$0xff] (!%p139_p2)   ;;  %v521_v2 = vld [vmem:[%s599_s1 + $0x10] sm:$0xff] (!%p139_p2)   ;;  %vm242_vm0 = vcmask (!%p139_p2), 523264  }
   0x6   : > { %142 = sbr.rel (%p139_p2) target bundleno = 242 (0xf2), region = 32  ;;  %p163_p3 = scmp.lt.s32.totalorder (!%p139_p2), %s421_s16, 15  ;;  %487 = vmatprep.subr.bf16.mxu0 (!%p139_p2), %v519_v0  ;;  %503 = vmatprep.subr.bf16.mxu1 (!%p139_p2), %v519_v0  ;;  %v522_v3 = vld [vmem:[%s599_s1 + $0x18] sm:$0xff] (!%p139_p2)   ;;  %v425_v9 = vld [vmem:[%s600_s2] ss:$0 sm:$0xff] (!%p139_p2) }
   0x7   : > { %488 = vmatpush3.bf16.msra.mxu0 (!%p139_p2), %v519_v0  ;;  %507 = vmatpush3.bf16.msra.mxu1 (!%p139_p2), %v519_v0 }
   0x8   : > { %489 = vmatprep.subr.bf16.mxu0 (!%p139_p2), %v520_v1  ;;  %504 = vmatprep.subr.bf16.mxu1 (!%p139_p2), %v520_v1 }
   0xb   : > { %490 = vmatpush3.bf16.msra.mxu0 (!%p139_p2), %v520_v1  ;;  %508 = vmatpush3.bf16.msra.mxu1 (!%p139_p2), %v520_v1 }
   0xc   : > { %491 = vmatprep.subr.bf16.mxu0 (!%p139_p2), %v521_v2  ;;  %505 = vmatprep.subr.bf16.mxu1 (!%p139_p2), %v521_v2 }
   0xd   : > { %s603_s16 = smov (!%p163_p3, %s421_s16), 15 }
   0xe   : > { %s422_s21 = sshll.u32 %s603_s16, 2 }
   0xf   : > { %s166_s26 = scalar_lea.vmem %s598_s0, %s422_s21  ;;  %492 = vmatpush3.bf16.msra.mxu0 %v521_v2  ;;  %509 = vmatpush3.bf16.msra.mxu1 %v521_v2  ;;  %s172_s4 = scalar_lea.vmem %s601_s3, %s422_s21 }
  0x10   : > { %v523_v4 = vld [vmem:[%s166_s26] sm:$0xff]   ;;  %v524_v5 = vld [vmem:[%s166_s26 + $0x10] sm:$0xff]   ;;  %493 = vmatprep.subr.bf16.mxu0 %v522_v3  ;;  %506 = vmatprep.subr.bf16.mxu1 %v522_v3  ;;  %v525_v6 = vld [vmem:[%s166_s26 + $0x8] sm:$0xff]  }
  0x11   : > { %495 = vmatprep.mubr.msk.bf16.mxu0 %vm242_vm0, %v523_v4  ;;  %499 = vmatprep.mubr.msk.bf16.mxu1 %vm242_vm0, %v524_v5  ;;  %v526_v7 = vld [vmem:[%s166_s26 + $0x18] sm:$0xff]  }
  0x13   : > { %494 = vmatpush3.bf16.msra.mxu0 %v522_v3  ;;  %510 = vmatpush3.bf16.msra.mxu1 %v522_v3 }
  0x16   : > { %496 = vmatmul.mubr.msk.bf16.vlgmr.msra.gmra.mrb[0].mxu0 %vm242_vm0, %v525_v6  ;;  %500 = vmatmul.mubr.msk.bf16.vlgmr.msra.gmra.mrb[0].mxu1 %vm242_vm0, %v526_v7 }
  0xe9   : > { %v497_v8 = vpop.f32.mrb[0].mxu0  ;;  %v501_v10 = vpop.f32.mrb[0].mxu1 }
  0xea   : > { %v289_v11 = vpop.f32.mrb[1].mxu0  ;;  %v305_v12 = vpop.f32.mrb[1].mxu1  ;;  %v298_v15 = vadd.f32 %v497_v8, %v425_v9  ;;  %v314_v16 = vadd.f32 %v501_v10, %v425_v9 }
  0xeb   : > { %v498_v13 = vpop.f32.mrb[2].mxu0  ;;  %v502_v14 = vpop.f32.mrb[2].mxu1  ;;  %v290_v21 = vadd.f32 %v425_v9, %v289_v11  ;;  %v306_v22 = vadd.f32 %v425_v9, %v305_v12 }
  0xec   : > { %v301_v17 = vadd.f32 %v498_v13, %v425_v9  ;;  %v317_v18 = vadd.f32 %v502_v14, %v425_v9  ;;  %v292_v19 = vpop.f32.mrb[3].mxu0  ;;  %v308_v20 = vpop.f32.mrb[3].mxu1 }
  0xed   : > { %v293_v23 = vadd.f32 %v425_v9, %v292_v19  ;;  %v309_v24 = vadd.f32 %v425_v9, %v308_v20 }
  0xee   : > { %v464_v25 = vpack.c.bf16 %v301_v17, %v298_v15  ;;  %v474_v26 = vpack.c.bf16 %v317_v18, %v314_v16 }
  0xef   : > { %v459_v27 = vpack.c.bf16 %v293_v23, %v290_v21  ;;  %v469_v28 = vpack.c.bf16 %v309_v24, %v306_v22 }
  0xf0   : > { %476 = vst [vmem:[%s172_s4 + $0x8] sm:$0xff] %v464_v25   ;;  %478 = vst [vmem:[%s172_s4 + $0x18] sm:$0xff] %v474_v26  }
  0xf1   : > { %460 = vst [vmem:[%s172_s4] sm:$0xff] %v459_v27   ;;  %477 = vst [vmem:[%s172_s4 + $0x10] sm:$0xff] %v469_v28  }
  0xf2 PF: > { %s13_s12 = sadd.s32 1, %s533_s12  }
  0xf3   : > { %p10_p4 = scmp.ge.s32.totalorder %s13_s12, 4  }
  0xf5   :  { %12 = sbr.rel (!%p10_p4) target bundleno = 1 (0x1), region = 62 }

// kernel: _lambda_.52
= control target key start
LH: loop header
LB: loop body
LE: loop exit
PB: predicated region body
PF: predicated region fallthrough
CT: control target
= control target key end

     0   :  { %s1751_s12 = smov 0   ;;  %s1753_s13 = smov 0   ;;  %s2020_s0 = inlined_call_operand.vmem [shape: bf16[2,8,64], index: 0, kind: input, shape index: {}]   ;;  %s2021_s1 = inlined_call_operand.vmem [shape: bf16[2,8,64], index: 1, kind: input, shape index: {}]   ;;  %s2022_s2 = inlined_call_operand.vmem [shape: bf16[2,8,64], index: 2, kind: input, shape index: {}]   ;;  %s2023_s3 = inlined_call_operand.vmem [shape: bf16[2,8,64], index: 3, kind: output, shape index: {}]  }
   0x1   :  { %s1755_s14 = smov 0  }
   0x2 LB: > { %s32_s15 = sadd.s32 1, %s1713_s13  ;;  %p1546_p0 = scmp.ge.s32.totalorder %s1717_s14, 1  ;;  %s1717_s14 = sphi %s1755_s14, %s13_s14   ;;  %s1713_s13 = sphi %s1753_s13, %s2025_s13   ;;  %s1709_s12 = sphi %s1751_s12, %s2024_s12  }
   0x3   : > { %p34_p1 = scmp.ge.s32.totalorder %s32_s15, 2  ;;  %p190_p2 = scmp.lt.s32.totalorder %s1717_s14, 3 }
   0x5   : > { %s2027_s15 = smov (%p34_p1, %s32_s15), 0  ;;  %p191_p3 = pnand %p1546_p0, %p190_p2 }
   0x6   : > { %p232_p4 = scmp.lt.s32.totalorder (!%p191_p3), %s1709_s12, 1  ;;  %s1719_s23 = smov (!%p191_p3), 112   ;;  %vm274_vm0 = vcmask (!%p191_p3), 130048   ;;  %v1722_v4 = vmov (!%p191_p3), 0.0   ;;  %v1723_v5 = vmov (!%p191_p3), 0   ;;  %vm1724_vm1 = vmmov (!%p191_p3), 0  }
   0x7   : > { %194 = sbr.rel (%p191_p3) target bundleno = 1112 (0x458), region = 32  ;;  %s1720_s24 = smov (!%p191_p3), 80   ;;  %1585 = vmatprep.subr.bf16.mxu0 (!%p191_p3), %v1722_v4  ;;  %275 = vst.msk [vmem:[#allocation4] sm:$0xff] (!%p191_p3), %vm274_vm0, %v1722_v4  ;;  %276 = vst.msk [vmem:[#allocation4 + $0x8] sm:$0xff] (!%p191_p3), %vm274_vm0, %v1722_v4  ;;  %1591 = vmatprep.subr.bf16.mxu1 (!%p191_p3), %v1722_v4  ;;  %v1725_v6 = vmov (!%p191_p3), 1983009808   ;;  %v297_v8 = vlaneseq (!%p191_p3) }
   0x8   : > { %s1721_s25 = smov (!%p191_p3), 96   ;;  %277 = vst.msk [vmem:[#allocation4 + $0x10] sm:$0xff] (!%p191_p3), %vm274_vm0, %v1722_v4  ;;  %278 = vst.msk [vmem:[#allocation4 + $0x18] sm:$0xff] (!%p191_p3), %vm274_vm0, %v1722_v4  ;;  %1669 = vset.pattern.permute.xlu1 (!%p191_p3), %v1723_v5  ;;  %1670 = vset.pattern.permute.xlu0 (!%p191_p3), %v1723_v5  ;;  %v295_v7 = vunpack.c.l.s4 (!%p191_p3), %v1725_v6  ;;  %v1726_v11 = vmov (!%p191_p3), 1934713408   ;;  %vm265_vm2 = vcmask (!%p191_p3), 7168  }
   0x9   : > { %1587 = vmatprep.mubr.msk.bf16.mxu0 (!%p191_p3), %vm1724_vm1, %v1722_v4  ;;  %1593 = vmatprep.mubr.msk.bf16.mxu1 (!%p191_p3), %vm1724_vm1, %v1722_v4  ;;  %v298_v10 = vshrl.u32 (!%p191_p3), %v297_v8, 7  ;;  %v327_v12 = vunpack.c.l.s4 (!%p191_p3), %v1726_v11  ;;  %270 = vst.msk [vmem:[#allocation3] sm:$0xff] (!%p191_p3), %vm265_vm2, %v1722_v4  ;;  %271 = vst.msk [vmem:[#allocation3 + $0x8] sm:$0xff] (!%p191_p3), %vm265_vm2, %v1722_v4  ;;  %vm921_vm3 = vcmask (!%p191_p3), 64512   ;;  %vm1046_vm4 = vcmask (!%p191_p3), 1043456   ;;  %s1728_s29 = smov (!%p191_p3), 32  }
   0xa   : > { %v296_v9 = vunpack.c.0.s8 (!%p191_p3), %v295_v7  ;;  %272 = vst.msk [vmem:[#allocation3 + $0x10] sm:$0xff] (!%p191_p3), %vm265_vm2, %v1722_v4  ;;  %273 = vst.msk [vmem:[#allocation3 + $0x18] sm:$0xff] (!%p191_p3), %vm265_vm2, %v1722_v4  ;;  %s1729_s30 = smov (!%p191_p3), 16   ;;  %s1730_s4 = smov (!%p191_p3), 48   ;;  %vm1428_vm5 = vcmask (!%p191_p3), 261120   ;;  %vm1430_vm6 = vcmask (!%p191_p3), 392192  }
   0xb   : > { %v328_v20 = vunpack.c.0.s8 (!%p191_p3), %v327_v12  ;;  %vm1433_vm7 = vcmask (!%p191_p3), 519168  }
   0xc   : > { %v1801_v17 = vsub.s32 (!%p191_p3), %v296_v9, %v298_v10 }
   0xd   : > { %v1804_v27 = vsub.s32 (!%p191_p3), %v328_v20, %v298_v10 }
   0xe   : > { %s2029_s12 = smov (!%p232_p4, %s1709_s12), 1 }
   0xf   : > { %s1769_s16 = sshll.u32 %s2029_s12, 2 }
  0x10   : > { %s245_s19 = scalar_lea.vmem %s2021_s1, %s1769_s16  ;;  %s238_s22 = scalar_lea.vmem %s2020_s0, %s1769_s16 }
  0x11   : > { %v428_v0 = vld [vmem:[%s245_s19] sm:$0xf]  ;;  %s252_s28 = scalar_lea.vmem %s2022_s2, %s1769_s16  ;;  %s259_s7 = scalar_lea.vmem %s2023_s3, %s1769_s16 }
  0x12   : > { %v279_v1 = vld [vmem:[%s238_s22] sm:$0xf]  ;;  %430 = vrot.lane.b32.xlu0 %v428_v0, %s1719_s23  ;;  %434 = vrot.lane.b32.xlu1 %v428_v0, %s1720_s24  ;;  %v439_v14 = vshrl.u32 %v428_v0, 16 }
  0x13   : > { %v280_v2 = vunpack.c.l.bf16 %v279_v1 }
  0x15   : > { %v281_v3 = vmul.f32 0.25, %v280_v2 }
  0x16   : > { %432 = vrot.lane.b32.xlu0 %v428_v0, %s1721_s25 }
  0x17   : > { %283 = vrot.lane.b32.xlu1 %v281_v3, %s1719_s23 }
  0x1a   : > { %286 = vrot.lane.b32.xlu0 %v281_v3, %s1721_s25 }
  0x1b   : > { %289 = vrot.lane.b32.xlu1 %v281_v3, %s1720_s24 }
  0x84   : > { %v431_v13 = vpop.permute.xlu0 %430  ;;  %v435_v15 = vpop.permute.xlu1 %434 }
  0x85   : > { %v440_v16 = vshrl.u32 %v431_v13, 16  ;;  %v438_v18 = vpack.i.b16 %v431_v13, %v428_v0  ;;  %v446_v19 = vshrl.u32 %v435_v15, 16 }
  0x87   : > { %v441_v21 = vpack.i.b16 %v440_v16, %v439_v14  ;;  %v455_v26 = vrot.slane %v438_v18, %v1801_v17 }
  0x88   : > { %v433_v22 = vpop.permute.xlu0 %432 }
  0x89   : > { %v284_v23 = vpop.permute.xlu1 %283  ;;  %v444_v24 = vpack.i.b16 %v435_v15, %v433_v22  ;;  %v445_v25 = vshrl.u32 %v433_v22, 16  ;;  %v489_v30 = vrot.slane %v441_v21, %v1801_v17 }
  0x8b   : > { %v447_v28 = vpack.i.b16 %v446_v19, %v445_v25  ;;  %v463_v29 = vrot.slane %v444_v24, %v1801_v17 }
  0x8c   : > { %v287_v31 = vpop.permute.xlu0 %286 }
  0x8d   : > { %v290_v32 = vpop.permute.xlu1 %289  ;;  %v464_v33 = vcombine.low %v455_v26, %v463_v29  ;;  %v465_v34 = vcombine.high %v455_v26, %v463_v29  ;;  %v497_v35 = vrot.slane %v447_v28, %v1801_v17  ;;  %v292_v36 = vcombine.low %v281_v3, %v287_v31 }
  0x8e   : > { %v293_v37 = vcombine.high %v281_v3, %v287_v31  ;;  %v308_v38 = vcombine.low %v284_v23, %v290_v32  ;;  %v309_v39 = vcombine.high %v284_v23, %v290_v32 }
  0x8f   : > { %v472_v40 = vrot.slane %v464_v33, %v1804_v27  ;;  %v479_v41 = vrot.slane %v465_v34, %v1804_v27  ;;  %v498_v42 = vcombine.low %v489_v30, %v497_v35  ;;  %v499_v43 = vcombine.high %v489_v30, %v497_v35 }
  0x90   : > { %v300_v44 = vrot.slane %v292_v36, %v1801_v17  ;;  %v307_v45 = vrot.slane %v293_v37, %v1801_v17  ;;  %v316_v46 = vrot.slane %v308_v38, %v1801_v17  ;;  %v323_v47 = vrot.slane %v309_v39, %v1801_v17 }
  0x91   : > { %v506_v48 = vrot.slane %v498_v42, %v1804_v27  ;;  %v513_v49 = vrot.slane %v499_v43, %v1804_v27  ;;  %v516_v50 = vcombine.low %v472_v40, %v479_v41  ;;  %v1553_v51 = vcombine.high %v472_v40, %v479_v41 }
  0x92   : > { %v324_v52 = vcombine.low %v300_v44, %v316_v46  ;;  %v325_v53 = vcombine.high %v300_v44, %v316_v46  ;;  %v340_v54 = vcombine.low %v307_v45, %v323_v47  ;;  %v341_v55 = vcombine.high %v307_v45, %v323_v47 }
  0x93   : > { %v541_v56 = vcombine.low %v506_v48, %v513_v49  ;;  %v1554_v57 = vcombine.high %v506_v48, %v513_v49  ;;  %v523_v58 = vrot.slane %v516_v50, %v1801_v17  ;;  %v531_v59 = vrot.slane %v1553_v51, %v1801_v17 }
  0x94   : > { %v332_v60 = vrot.slane %v324_v52, %v1804_v27  ;;  %v339_v61 = vrot.slane %v325_v53, %v1804_v27  ;;  %v348_v62 = vrot.slane %v340_v54, %v1804_v27  ;;  %v355_v63 = vrot.slane %v341_v55, %v1804_v27 }
  0x95   : > { %v532_v0 = vcombine.low %v523_v58, %v531_v59  ;;  %v548_v1 = vrot.slane %v541_v56, %v1801_v17  ;;  %v556_v2 = vrot.slane %v1554_v57, %v1801_v17  ;;  %v1727_v48 = vmov -inf  }
  0x96   : > { %v360_v3 = vcombine.low %v332_v60, %v339_v61  ;;  %v1551_v6 = vcombine.high %v332_v60, %v339_v61  ;;  %v376_v7 = vcombine.low %v348_v62, %v355_v63  ;;  %v1552_v8 = vcombine.high %v348_v62, %v355_v63  ;;  %266 = vst.msk [vmem:[#allocation2] sm:$0xff] %vm265_vm2, %v1727_v48 }
  0x97   : > { %v539_v9 = vrot.slane %v532_v0, %v1804_v27  ;;  %v557_v10 = vcombine.low %v548_v1, %v556_v2  ;;  %267 = vst.msk [vmem:[#allocation2 + $0x8] sm:$0xff] %vm265_vm2, %v1727_v48  ;;  %268 = vst.msk [vmem:[#allocation2 + $0x10] sm:$0xff] %vm265_vm2, %v1727_v48 }
  0x98   : > { %v367_v11 = vrot.slane %v360_v3, %v1801_v17  ;;  %v375_v12 = vrot.slane %v1551_v6, %v1801_v17  ;;  %v383_v13 = vrot.slane %v376_v7, %v1801_v17  ;;  %v391_v14 = vrot.slane %v1552_v8, %v1801_v17  ;;  %269 = vst.msk [vmem:[#allocation2 + $0x18] sm:$0xff] %vm265_vm2, %v1727_v48  ;;  %v578_v7 = vld [vmem:[%s252_s28] sm:$0xf] }
  0x99   : > { %v564_v15 = vrot.slane %v557_v10, %v1804_v27  ;;  %v569_v20 = vshrl.u32 %v539_v9, 16  ;;  %v540_v28 = vcombine.high %v539_v9, %v1723_v5 }
  0x9a   : > { %v392_v16 = vcombine.low %v367_v11, %v375_v12  ;;  %v408_v18 = vcombine.low %v383_v13, %v391_v14  ;;  %v393_v29 = vcombine.high %v367_v11, %v375_v12  ;;  %v409_v30 = vcombine.high %v383_v13, %v391_v14 }
  0x9b   : > { %v568_v19 = vpack.i.b16 %v564_v15, %v539_v9  ;;  %v570_v21 = vshrl.u32 %v564_v15, 16  ;;  %v565_v22 = vcombine.high %v564_v15, %v1723_v5  ;;  %v575_v36 = vshrl.u32 %v540_v28, 16 }
  0x9c   : > { %v400_v23 = vrot.slane %v392_v16, %v1804_v27  ;;  %v416_v24 = vrot.slane %v408_v18, %v1804_v27  ;;  %v407_v39 = vrot.slane %v393_v29, %v1804_v27  ;;  %v423_v40 = vrot.slane %v409_v30, %v1804_v27 }
  0x9d   : > { %v737_v25 = vsel %vm274_vm0, %v568_v19, 0  ;;  %v571_v26 = vpack.i.b16 %v570_v21, %v569_v20  ;;  %v576_v33 = vshrl.u32 %v565_v22, 16  ;;  %v574_v34 = vpack.i.b16 %v565_v22, %v540_v28  ;;  %v1892_v8 = vld [vmem:[#allocation2] sm:$0xff] }
  0x9e   : > { %1586 = vmatpush3.bf16.xpose.msra.mxu0 %v737_v25  ;;  %v424_v32 = vcombine.low %v400_v23, %v416_v24  ;;  %v425_v35 = vcombine.high %v400_v23, %v416_v24  ;;  %v426_v44 = vcombine.low %v407_v39, %v423_v40  ;;  %v427_v45 = vcombine.high %v407_v39, %v423_v40  ;;  %v1894_v10 = vld [vmem:[#allocation2 + $0x8] sm:$0xff]  ;;  %v1912_v16 = vld [vmem:[#allocation2 + $0x10] sm:$0xff] }
  0x9f   : > { %v783_v31 = vsel %vm274_vm0, %v571_v26, 0  ;;  %1597 = vmatprep.subr.bf16.mxu0 %v1722_v4  ;;  %v577_v38 = vpack.i.b16 %v576_v33, %v575_v36  ;;  %v829_v41 = vsel %vm274_vm0, %v574_v34, 0  ;;  %v1917_v21 = vld [vmem:[#allocation2 + $0x18] sm:$0xff]  ;;  %v589_v23 = vshrl.u32 %v578_v7, 16 }
  0xa0   : > { %1592 = vmatpush3.bf16.xpose.msra.mxu1 %v783_v31  ;;  %v728_v37 = vpack.c.bf16 %v424_v32, %v424_v32  ;;  %v729_v42 = vpack.c.bf16 %v425_v35, %v425_v35  ;;  %v730_v46 = vpack.c.bf16 %v426_v44, %v426_v44  ;;  %v731_v47 = vpack.c.bf16 %v427_v45, %v427_v45 }
  0xa1   : > { %1603 = vmatprep.subr.bf16.mxu1 %v1722_v4  ;;  %v875_v43 = vsel %vm274_vm0, %v577_v38, 0 }
  0xa5   : > { %1588 = vmatmul.mubr.msk.bf16.vlgmr.msra.gmra.mrb[0].mxu0 %vm274_vm0, %v728_v37 }
  0xa6   : > { %1598 = vmatpush3.bf16.xpose.msra.mxu0 %v829_v41  ;;  %1599 = vmatprep.mubr.msk.bf16.mxu0 %vm1724_vm1, %v1722_v4 }
  0xa7   : > { %1594 = vmatmul.mubr.msk.bf16.vlgmr.msra.gmra.mrb[0].mxu1 %vm274_vm0, %v729_v42  ;;  %1609 = vmatprep.subr.bf16.mxu0 %v1722_v4 }
  0xa8   : > { %1604 = vmatpush3.bf16.xpose.msra.mxu1 %v875_v43  ;;  %1605 = vmatprep.mubr.msk.bf16.mxu1 %vm1724_vm1, %v1722_v4 }
  0xa9   : > { %1615 = vmatprep.subr.bf16.mxu1 %v1722_v4 }
  0xad   : > { %1600 = vmatmul.mubr.msk.bf16.vlgmr.msra.gmra.mrb[4].mxu0 %vm274_vm0, %v730_v46 }
  0xae   : > { %1611 = vmatprep.mubr.msk.bf16.mxu0 %vm1724_vm1, %v1722_v4 }
  0xaf   : > { %1606 = vmatmul.mubr.msk.bf16.vlgmr.msra.gmra.mrb[4].mxu1 %vm274_vm0, %v731_v47 }
  0xb0   : > { %1617 = vmatprep.mubr.msk.bf16.mxu1 %vm1724_vm1, %v1722_v4 }
 0x178   : > { %v1869_v49 = vpop.f32.mrb[0].mxu0 }
 0x179   : > { %v1589_v50 = vpop.f32.mrb[1].mxu0  ;;  %v922_v51 = vsel %vm921_vm3, %v1869_v49, -inf }
 0x17a   : > { %v1873_v52 = vpop.f32.mrb[0].mxu1  ;;  %923 = vmax.xlane.f32.xlu0 %v922_v51  ;;  %v776_v53 = vpop.f32.mrb[2].mxu0 }
 0x17b   : > { %v1590_v54 = vpop.f32.mrb[3].mxu0  ;;  %v1595_v55 = vpop.f32.mrb[1].mxu1  ;;  %v925_v56 = vsel %vm921_vm3, %v1873_v52, -inf }
 0x17c   : > { %926 = vmax.xlane.f32.xlu1 %v925_v56  ;;  %v822_v57 = vpop.f32.mrb[2].mxu1 }
 0x17d   : > { %v1596_v58 = vpop.f32.mrb[3].mxu1 }
 0x180   : > { %v1877_v59 = vpop.f32.mrb[4].mxu0 }
 0x181   : > { %v1601_v60 = vpop.f32.mrb[5].mxu0  ;;  %v928_v61 = vsel %vm921_vm3, %v1877_v59, -inf }
 0x182   : > { %v1881_v62 = vpop.f32.mrb[4].mxu1  ;;  %929 = vmax.xlane.f32.xlu0 %v928_v61  ;;  %v868_v63 = vpop.f32.mrb[6].mxu0 }
 0x183   : > { %v1602_v0 = vpop.f32.mrb[7].mxu0  ;;  %v1607_v1 = vpop.f32.mrb[5].mxu1  ;;  %v931_v6 = vsel %vm921_vm3, %v1881_v62, -inf }
 0x184   : > { %v914_v2 = vpop.f32.mrb[6].mxu1 }
 0x185   : > { %v1608_v3 = vpop.f32.mrb[7].mxu1 }
 0x186   : > { %932 = vmax.xlane.f32.xlu0 %v931_v6 }
 0x18d   : > { %580 = vrot.lane.b32.xlu1 %v578_v7, %s1719_s23 }
 0x191   : > { %584 = vrot.lane.b32.xlu1 %v578_v7, %s1720_s24 }
 0x19c   : > { %582 = vrot.lane.b32.xlu0 %v578_v7, %s1721_s25 }
 0x207   : > { %v924_v9 = vpop.xlane.xlu0 %923 }
 0x208   : > { %v1897_v11 = vmax.f32 %v1892_v8, %v924_v9 }
 0x209   : > { %v927_v12 = vpop.xlane.xlu1 %926 }
 0x20a   : > { %v938_v13 = vsub.f32 %v1892_v8, %v1897_v11  ;;  %1236 = vst.msk [vmem:[#allocation2] sm:$0xff] %vm265_vm2, %v1897_v11  ;;  %v1904_v14 = vmax.f32 %v1894_v10, %v927_v12  ;;  %952 = vperm.xlu1 %1669, %v1897_v11  }
 0x20c   : > { %v939_v15 = vsub.f32 %v1894_v10, %v1904_v14  ;;  %1237 = vst.msk [vmem:[#allocation2 + $0x8] sm:$0xff] %vm265_vm2, %v1904_v14  ;;  %957 = vperm.xlu0 %1670, %v1904_v14   ;;  %v984_v10 = vld [vmem:[#allocation3 + $0x10] sm:$0xff] }
 0x20d   : > { %v581_v18 = vpop.permute.xlu1 %580 }
 0x20e   : > { %v590_v24 = vshrl.u32 %v581_v18, 16  ;;  %v588_v29 = vpack.i.b16 %v581_v18, %v578_v7 }
 0x20f   : > { %v930_v19 = vpop.xlane.xlu0 %929 }
 0x210   : > { %v1915_v20 = vmax.f32 %v1912_v16, %v930_v19  ;;  %v591_v31 = vpack.i.b16 %v590_v24, %v589_v23  ;;  %v605_v34 = vrot.slane %v588_v29, %v1801_v17 }
 0x211   : > { %v585_v26 = vpop.permute.xlu1 %584 }
 0x212   : > { %v940_v22 = vsub.f32 %v1912_v16, %v1915_v20  ;;  %1238 = vst.msk [vmem:[#allocation2 + $0x10] sm:$0xff] %vm265_vm2, %v1915_v20  ;;  %962 = vperm.xlu1 %1669, %v1915_v20   ;;  %v596_v32 = vshrl.u32 %v585_v26, 16  ;;  %v639_v37 = vrot.slane %v591_v31, %v1801_v17  ;;  %v944_v16 = vmul.f32 1.442695, %v939_v15 }
 0x213   : > { %v933_v25 = vpop.xlane.xlu0 %932 }
 0x214   : > { %v1925_v28 = vmax.f32 %v1917_v21, %v933_v25 }
 0x216   : > { %v941_v30 = vsub.f32 %v1917_v21, %v1925_v28  ;;  %1239 = vst.msk [vmem:[#allocation2 + $0x18] sm:$0xff] %vm265_vm2, %v1925_v28  ;;  %967 = vperm.xlu1 %1669, %v1925_v28   ;;  %v983_v21 = vld [vmem:[#allocation3 + $0x8] sm:$0xff] }
 0x217   : > { %v583_v33 = vpop.permute.xlu0 %582 }
 0x218   : > { %v594_v35 = vpack.i.b16 %v585_v26, %v583_v33  ;;  %v595_v36 = vshrl.u32 %v583_v33, 16 }
 0x21a   : > { %v597_v38 = vpack.i.b16 %v596_v32, %v595_v36  ;;  %v613_v39 = vrot.slane %v594_v35, %v1801_v17 }
 0x21c   : > { %v614_v40 = vcombine.low %v605_v34, %v613_v39  ;;  %v615_v41 = vcombine.high %v605_v34, %v613_v39  ;;  %v647_v42 = vrot.slane %v597_v38, %v1801_v17 }
 0x21e   : > { %v622_v43 = vrot.slane %v614_v40, %v1804_v27  ;;  %v629_v44 = vrot.slane %v615_v41, %v1804_v27  ;;  %v648_v45 = vcombine.low %v639_v37, %v647_v42  ;;  %v649_v46 = vcombine.high %v639_v37, %v647_v42 }
 0x220   : > { %v656_v47 = vrot.slane %v648_v45, %v1804_v27  ;;  %v663_v48 = vrot.slane %v649_v46, %v1804_v27  ;;  %v666_v50 = vcombine.low %v622_v43, %v629_v44  ;;  %v1555_v51 = vcombine.high %v622_v43, %v629_v44 }
 0x222   : > { %v673_v53 = vrot.slane %v666_v50, %v1801_v17  ;;  %v681_v54 = vrot.slane %v1555_v51, %v1801_v17  ;;  %v691_v55 = vcombine.low %v656_v47, %v663_v48  ;;  %v1556_v56 = vcombine.high %v656_v47, %v663_v48 }
 0x223   : > { %v946_v48 = vmul.f32 1.442695, %v940_v22 }
 0x224   : > { %v698_v57 = vrot.slane %v691_v55, %v1801_v17  ;;  %v706_v58 = vrot.slane %v1556_v56, %v1801_v17  ;;  %v682_v60 = vcombine.low %v673_v53, %v681_v54  ;;  %v982_v53 = vld [vmem:[#allocation3] sm:$0xff] }
 0x226   : > { %v689_v61 = vrot.slane %v682_v60, %v1804_v27  ;;  %v707_v63 = vcombine.low %v698_v57, %v706_v58  ;;  %v985_v58 = vld [vmem:[#allocation3 + $0x18] sm:$0xff] }
 0x228   : > { %v714_v0 = vrot.slane %v707_v63, %v1804_v27  ;;  %v719_v1 = vshrl.u32 %v689_v61, 16  ;;  %v690_v2 = vcombine.high %v689_v61, %v1723_v5 }
 0x22a   : > { %v718_v3 = vpack.i.b16 %v714_v0, %v689_v61  ;;  %v720_v6 = vshrl.u32 %v714_v0, 16  ;;  %v715_v7 = vcombine.high %v714_v0, %v1723_v5  ;;  %v725_v9 = vshrl.u32 %v690_v2, 16 }
 0x22c   : > { %v1048_v12 = vsel %vm1046_vm4, %v718_v3, 0  ;;  %v721_v18 = vpack.i.b16 %v720_v6, %v719_v1  ;;  %v724_v19 = vpack.i.b16 %v715_v7, %v690_v2  ;;  %v726_v23 = vshrl.u32 %v715_v7, 16 }
 0x22d   : > { %1610 = vmatpush3.bf16.msra.mxu0 %v1048_v12 }
 0x22e   : > { %v1094_v24 = vsel %vm1046_vm4, %v721_v18, 0  ;;  %1621 = vmatprep.subr.bf16.mxu0 %v1722_v4  ;;  %v1140_v25 = vsel %vm1046_vm4, %v724_v19, 0  ;;  %v727_v26 = vpack.i.b16 %v726_v23, %v725_v9  ;;  %v1011_v23 = vld [vmem:[#allocation4] sm:$0xff] }
 0x22f   : > { %1616 = vmatpush3.bf16.msra.mxu1 %v1094_v24  ;;  %v1012_v24 = vld [vmem:[#allocation4 + $0x8] sm:$0xff] }
 0x230   : > { %1627 = vmatprep.subr.bf16.mxu1 %v1722_v4  ;;  %v1186_v29 = vsel %vm1046_vm4, %v727_v26, 0 }
 0x289   : > { %v953_v5 = vpop.permute.xlu1 %952 }
 0x28a   : > { %v970_v31 = vsub.f32 %v1869_v49, %v953_v5 }
 0x28b   : > { %v958_v32 = vpop.permute.xlu0 %957 }
 0x28c   : > { %v974_v33 = vmul.f32 1.442695, %v970_v31  ;;  %v971_v34 = vsub.f32 %v1873_v52, %v958_v32 }
 0x28e   : > { %1671 = vpow2.f32 %v974_v33  ;;  %v976_v35 = vmul.f32 1.442695, %v971_v34 }
 0x290   : > { %1673 = vpow2.f32 %v976_v35 }
 0x291   : > { %v963_v36 = vpop.permute.xlu1 %962 }
 0x292   : > { %v972_v37 = vsub.f32 %v1877_v59, %v963_v36  ;;  %v942_v59 = vmul.f32 1.442695, %v938_v13 }
 0x294   : > { %v978_v38 = vmul.f32 1.442695, %v972_v37 }
 0x295   : > { %v968_v39 = vpop.permute.xlu1 %967 }
 0x296   : > { %1675 = vpow2.f32 %v978_v38  ;;  %v973_v40 = vsub.f32 %v1881_v62, %v968_v39  ;;  %v1013_v39 = vld [vmem:[#allocation4 + $0x10] sm:$0xff] }
 0x298   : > { %v1672_v41 = vpop.eup %1671  ;;  %v980_v42 = vmul.f32 1.442695, %v973_v40 }
 0x299   : > { %v990_v43 = vsel %vm921_vm3, %v1672_v41, 0.0  ;;  %v1039_v49 = vpack.c.bf16 %v1672_v41, %v1672_v41 }
 0x29a   : > { %v1674_v44 = vpop.eup %1673  ;;  %1677 = vpow2.f32 %v980_v42  ;;  %991 = vadd.xlane.f32.xlu0 %v990_v43  ;;  %v1014_v43 = vld [vmem:[#allocation4 + $0x18] sm:$0xff] }
 0x29b   : > { %1612 = vmatmul.mubr.msk.bf16.vlgmr.msra.gmra.mrb[8].mxu0 %vm921_vm3, %v1039_v49  ;;  %v993_v52 = vsel %vm921_vm3, %v1674_v44, 0.0  ;;  %v1040_v45 = vpack.c.bf16 %v1674_v44, %v1674_v44  ;;  %1679 = vpow2.f32 %v942_v59 }
 0x29c   : > { %1622 = vmatpush3.bf16.msra.mxu0 %v1140_v25  ;;  %994 = vadd.xlane.f32.xlu1 %v993_v52  ;;  %1681 = vpow2.f32 %v946_v48 }
 0x29d   : > { %1618 = vmatmul.mubr.msk.bf16.vlgmr.msra.gmra.mrb[8].mxu1 %vm921_vm3, %v1040_v45  ;;  %1623 = vmatprep.mubr.msk.bf16.mxu0 %vm1724_vm1, %v1722_v4 }
 0x29e   : > { %1628 = vmatpush3.bf16.msra.mxu1 %v1186_v29  ;;  %1629 = vmatprep.mubr.msk.bf16.mxu1 %vm1724_vm1, %v1722_v4  ;;  %v948_v4 = vmul.f32 1.442695, %v941_v30 }
 0x2a0   : > { %v1676_v62 = vpop.eup %1675  ;;  %1683 = vpow2.f32 %v948_v4 }
 0x2a1   : > { %v996_v46 = vsel %vm921_vm3, %v1676_v62, 0.0  ;;  %v1041_v47 = vpack.c.bf16 %v1676_v62, %v1676_v62  ;;  %1685 = vpow2.f32 %v944_v16 }
 0x2a2   : > { %997 = vadd.xlane.f32.xlu0 %v996_v46 }
 0x2a3   : > { %1624 = vmatmul.mubr.msk.bf16.vlgmr.msra.gmra.mrb[12].mxu0 %vm921_vm3, %v1041_v47 }
 0x2a4   : > { %v1678_v50 = vpop.eup %1677 }
 0x2a5   : > { %v999_v8 = vsel %vm921_vm3, %v1678_v50, 0.0  ;;  %v1042_v11 = vpack.c.bf16 %v1678_v50, %v1678_v50  ;;  %v1680_v13 = vpop.eup %1679 }
 0x2a6   : > { %1000 = vadd.xlane.f32.xlu0 %v999_v8  ;;  %v1682_v20 = vpop.eup %1681  ;;  %v986_v28 = vmul.f32 %v1680_v13, %v982_v53 }
 0x2a7   : > { %1630 = vmatmul.mubr.msk.bf16.vlgmr.msra.gmra.mrb[12].mxu1 %vm921_vm3, %v1042_v11  ;;  %v988_v14 = vmul.f32 %v1682_v20, %v984_v10 }
 0x2aa   : > { %v1684_v22 = vpop.eup %1683 }
 0x2ab   : > { %v1686_v51 = vpop.eup %1685  ;;  %v989_v63 = vmul.f32 %v1684_v22, %v985_v58 }
 0x2ac   : > { %v987_v55 = vmul.f32 %v1686_v51, %v983_v21 }
 0x2ad   : > { %1017 = vperm.xlu1 %1669, %v1680_v13  }
 0x2b1   : > { %1027 = vperm.xlu1 %1669, %v1682_v20  }
 0x2b5   : > { %1032 = vperm.xlu1 %1669, %v1684_v22  }
 0x2bc   : > { %1022 = vperm.xlu0 %1670, %v1686_v51  }
 0x327   : > { %v992_v30 = vpop.xlane.xlu0 %991 }
 0x328   : > { %v1002_v54 = vadd.f32 %v992_v30, %v986_v28 }
 0x329   : > { %v995_v56 = vpop.xlane.xlu1 %994 }
 0x32a   : > { %1007 = vst.msk [vmem:[#allocation3] sm:$0xff] %vm265_vm2, %v1002_v54  ;;  %v1003_v57 = vadd.f32 %v995_v56, %v987_v55 }
 0x32c   : > { %1008 = vst.msk [vmem:[#allocation3 + $0x8] sm:$0xff] %vm265_vm2, %v1003_v57 }
 0x32d   : > { %v1018_v19 = vpop.permute.xlu1 %1017 }
 0x32e   : > { %v1035_v26 = vmul.f32 %v1018_v19, %v1011_v23 }
 0x32f   : > { %v998_v15 = vpop.xlane.xlu0 %997 }
 0x330   : > { %v1004_v60 = vadd.f32 %v998_v15, %v988_v14 }
 0x331   : > { %v1247_v61 = vld [vmem:[#allocation3] sm:$0xff]  ;;  %v1028_v5 = vpop.permute.xlu1 %1027 }
 0x332   : > { %1009 = vst.msk [vmem:[#allocation3 + $0x10] sm:$0xff] %vm265_vm2, %v1004_v60  ;;  %1687 = vrcp.f32 %v1247_v61  ;;  %v1037_v42 = vmul.f32 %v1028_v5, %v1013_v39 }
 0x333   : > { %v1001_v0 = vpop.xlane.xlu0 %1000  ;;  %v1248_v1 = vld [vmem:[#allocation3 + $0x8] sm:$0xff] }
 0x334   : > { %v1005_v2 = vadd.f32 %v1001_v0, %v989_v63  ;;  %1689 = vrcp.f32 %v1248_v1 }
 0x335   : > { %v1033_v49 = vpop.permute.xlu1 %1032 }
 0x336   : > { %1010 = vst.msk [vmem:[#allocation3 + $0x18] sm:$0xff] %vm265_vm2, %v1005_v2  ;;  %v1038_v62 = vmul.f32 %v1033_v49, %v1014_v43 }
 0x339   : > { %v1249_v3 = vld [vmem:[#allocation3 + $0x10] sm:$0xff] }
 0x33a   : > { %1691 = vrcp.f32 %v1249_v3 }
 0x33b   : > { %v1023_v25 = vpop.permute.xlu0 %1022 }
 0x33c   : > { %v1688_v6 = vpop.eup %1687  ;;  %v1036_v31 = vmul.f32 %v1023_v25, %v1012_v24 }
 0x33d   : > { %1257 = vperm.xlu0 %1670, %v1688_v6   ;;  %v1250_v7 = vld [vmem:[#allocation3 + $0x18] sm:$0xff] }
 0x33e   : > { %v1690_v9 = vpop.eup %1689  ;;  %1693 = vrcp.f32 %v1250_v7 }
 0x33f   : > { %1262 = vperm.xlu1 %1669, %v1690_v9  }
 0x344   : > { %v1692_v12 = vpop.eup %1691 }
 0x345   : > { %1267 = vperm.xlu0 %1670, %v1692_v12  }
 0x348   : > { %v1694_v18 = vpop.eup %1693 }
 0x349   : > { %1272 = vperm.xlu1 %1669, %v1694_v18  }
 0x36e   : > { %v1084_v29 = vpop.f32.mrb[8].mxu0 }
 0x36f   : > { %v1228_v32 = vadd.f32 %v1084_v29, %v1035_v26  ;;  %v1613_v33 = vpop.f32.mrb[9].mxu0 }
 0x370   : > { %v1087_v34 = vpop.f32.mrb[10].mxu0  ;;  %v1130_v35 = vpop.f32.mrb[8].mxu1 }
 0x371   : > { %1232 = vst.msk [vmem:[#allocation4] sm:$0xff] %vm274_vm0, %v1228_v32  ;;  %v1229_v36 = vadd.f32 %v1130_v35, %v1036_v31  ;;  %v1614_v37 = vpop.f32.mrb[11].mxu0  ;;  %v1619_v38 = vpop.f32.mrb[9].mxu1 }
 0x372   : > { %v1133_v40 = vpop.f32.mrb[10].mxu1 }
 0x373   : > { %1233 = vst.msk [vmem:[#allocation4 + $0x8] sm:$0xff] %vm274_vm0, %v1229_v36  ;;  %v1620_v41 = vpop.f32.mrb[11].mxu1 }
 0x376   : > { %v1176_v44 = vpop.f32.mrb[12].mxu0 }
 0x377   : > { %v1230_v52 = vadd.f32 %v1176_v44, %v1037_v42  ;;  %v1625_v45 = vpop.f32.mrb[13].mxu0 }
 0x378   : > { %v1179_v59 = vpop.f32.mrb[14].mxu0  ;;  %v1243_v51 = vld [vmem:[#allocation4] sm:$0xff] }
 0x379   : > { %1234 = vst.msk [vmem:[#allocation4 + $0x10] sm:$0xff] %vm274_vm0, %v1230_v52  ;;  %v1626_v46 = vpop.f32.mrb[15].mxu0 }
 0x37a   : > { %v1222_v47 = vpop.f32.mrb[12].mxu1  ;;  %v1244_v21 = vld [vmem:[#allocation4 + $0x8] sm:$0xff] }
 0x37b   : > { %v1231_v48 = vadd.f32 %v1222_v47, %v1038_v62  ;;  %v1631_v50 = vpop.f32.mrb[13].mxu1 }
 0x37c   : > { %v1225_v8 = vpop.f32.mrb[14].mxu1 }
 0x37d   : > { %1235 = vst.msk [vmem:[#allocation4 + $0x18] sm:$0xff] %vm274_vm0, %v1231_v48  ;;  %v1632_v11 = vpop.f32.mrb[15].mxu1 }
 0x380   : > { %v1245_v20 = vld [vmem:[#allocation4 + $0x10] sm:$0xff] }
 0x384   : > { %v1246_v28 = vld [vmem:[#allocation4 + $0x18] sm:$0xff] }
 0x3bc   : > { %v1258_v4 = vpop.permute.xlu0 %1257 }
 0x3bd   : > { %v1275_v53 = vmul.f32 %v1258_v4, %v1243_v51 }
 0x3be   : > { %v1263_v13 = vpop.permute.xlu1 %1262 }
 0x3bf   : > { %v1276_v54 = vmul.f32 %v1263_v13, %v1244_v21 }
 0x3c4   : > { %v1268_v16 = vpop.permute.xlu0 %1267 }
 0x3c5   : > { %v1277_v22 = vmul.f32 %v1268_v16, %v1245_v20 }
 0x3c7   : > { %v1279_v55 = vcombine.low %v1275_v53, %v1277_v22  ;;  %v1280_v56 = vcombine.high %v1275_v53, %v1277_v22 }
 0x3c8   : > { %v1273_v30 = vpop.permute.xlu1 %1272 }
 0x3c9   : > { %v1278_v57 = vmul.f32 %v1273_v30, %v1246_v28  ;;  %v1287_v15 = vrot.slane %v1279_v55, %v1801_v17  ;;  %v1294_v58 = vrot.slane %v1280_v56, %v1801_v17 }
 0x3cb   : > { %v1295_v10 = vcombine.low %v1276_v54, %v1278_v57  ;;  %v1296_v14 = vcombine.high %v1276_v54, %v1278_v57 }
 0x3cd   : > { %v1303_v60 = vrot.slane %v1295_v10, %v1801_v17  ;;  %v1310_v61 = vrot.slane %v1296_v14, %v1801_v17 }
 0x3cf   : > { %v1311_v63 = vcombine.low %v1287_v15, %v1303_v60  ;;  %v1312_v0 = vcombine.high %v1287_v15, %v1303_v60  ;;  %v1327_v1 = vcombine.low %v1294_v58, %v1310_v61  ;;  %v1328_v2 = vcombine.high %v1294_v58, %v1310_v61 }
 0x3d1   : > { %v1319_v3 = vrot.slane %v1311_v63, %v1804_v27  ;;  %v1326_v6 = vrot.slane %v1312_v0, %v1804_v27  ;;  %v1335_v7 = vrot.slane %v1327_v1, %v1804_v27  ;;  %v1342_v9 = vrot.slane %v1328_v2, %v1804_v27 }
 0x3d3   : > { %v1347_v12 = vcombine.low %v1319_v3, %v1326_v6  ;;  %v1565_v18 = vcombine.high %v1319_v3, %v1326_v6  ;;  %v1363_v19 = vcombine.low %v1335_v7, %v1342_v9  ;;  %v1566_v23 = vcombine.high %v1335_v7, %v1342_v9 }
 0x3d5   : > { %v1354_v24 = vrot.slane %v1347_v12, %v1801_v17  ;;  %v1362_v25 = vrot.slane %v1565_v18, %v1801_v17  ;;  %v1370_v26 = vrot.slane %v1363_v19, %v1801_v17  ;;  %v1378_v29 = vrot.slane %v1566_v23, %v1801_v17 }
 0x3d7   : > { %v1380_v5 = vcombine.high %v1354_v24, %v1362_v25  ;;  %v1396_v31 = vcombine.high %v1370_v26, %v1378_v29  ;;  %v1379_v32 = vcombine.low %v1354_v24, %v1362_v25  ;;  %v1395_v33 = vcombine.low %v1370_v26, %v1378_v29 }
 0x3d9   : > { %v1394_v34 = vrot.slane %v1380_v5, %v1804_v27  ;;  %v1410_v35 = vrot.slane %v1396_v31, %v1804_v27  ;;  %v1387_v36 = vrot.slane %v1379_v32, %v1804_v27  ;;  %v1403_v37 = vrot.slane %v1395_v33, %v1804_v27 }
 0x3db   : > { %v1413_v38 = vcombine.low %v1394_v34, %v1410_v35  ;;  %v1412_v39 = vcombine.high %v1387_v36, %v1403_v37  ;;  %v1411_v40 = vcombine.low %v1387_v36, %v1403_v37  ;;  %v1414_v17 = vcombine.high %v1394_v34, %v1410_v35 }
 0x3dd   : > { %1420 = vrot.lane.b32.xlu1 %v1413_v38, %s1728_s29  ;;  %1416 = vrot.lane.b32.xlu0 %v1412_v39, %s1729_s30 }
 0x3e1   : > { %1424 = vrot.lane.b32.xlu0 %v1414_v17, %s1730_s4 }
 0x44f   : > { %v1417_v41 = vpop.permute.xlu0 %1416  ;;  %v1421_v42 = vpop.permute.xlu1 %1420 }
 0x450   : > { %v1427_v43 = vsel %vm274_vm0, %v1411_v40, %v1417_v41 }
 0x451   : > { %v1429_v44 = vsel %vm1428_vm5, %v1427_v43, %v1421_v42 }
 0x453   : > { %v1425_v49 = vpop.permute.xlu0 %1424 }
 0x454   : > { %v1431_v27 = vsel %vm1430_vm6, %v1429_v44, %v1425_v49 }
 0x455   : > { %v1432_v52 = vpack.c.bf16 %v1431_v27, %v1431_v27 }
 0x457   : > { %1434 = vst.msk [vmem:[%s259_s7] sm:$0xf] %vm1433_vm7, %v1432_v52 }
 0x458 PF: > { %s13_s14 = sadd.s32 1, %s1717_s14   ;;  %s2024_s12 = smov %s1713_s13 }
 0x459   : > { %p10_p5 = scmp.ge.s32.totalorder %s13_s14, 4   ;;  %s2025_s13 = smov %s2027_s15 }
 0x45b   :  { %12 = sbr.rel (!%p10_p5) target bundleno = 2 (0x2), region = 76 }

// kernel: _lambda_.53
= control target key start
LH: loop header
LB: loop body
LE: loop exit
PB: predicated region body
PF: predicated region fallthrough
CT: control target
= control target key end

     0   :  { %s383_s12 = smov 0   ;;  %s415_s0 = inlined_call_operand.vmem [shape: bf16[16,64], index: 0, kind: input, shape index: {}]   ;;  %s416_s1 = inlined_call_operand.vmem [shape: bf16[64,64], index: 1, kind: input, shape index: {}]   ;;  %s417_s2 = inlined_call_operand.vmem [shape: f32[1,64], index: 2, kind: input, shape index: {}]   ;;  %s418_s3 = inlined_call_operand.vmem [shape: bf16[16,64], index: 3, kind: output, shape index: {}]  }
   0x1 LB: > { %s307_s13 = sadd.s32 4294967295, %s359_s12   ;;  %p311_p0 = scmp.ge.s32.totalorder %s359_s12, 1  ;;  %s359_s12 = sphi %s383_s12, %s13_s12  }
   0x2   : > { %p136_p1 = scmp.lt.s32.totalorder %s359_s12, 3 }
   0x4   : > { %p137_p2 = pnand %p311_p0, %p136_p1 }
   0x5   : > { %v349_v0 = vld [vmem:[%s416_s1] sm:$0xff] (!%p137_p2)   ;;  %v361_v1 = vmov (!%p137_p2), 0.0   ;;  %v350_v2 = vld [vmem:[%s416_s1 + $0x8] sm:$0xff] (!%p137_p2)   ;;  %vm362_vm0 = vmmov (!%p137_p2), 0   ;;  %p158_p3 = scmp.lt.s32.totalorder (!%p137_p2), %s307_s13, 1  ;;  %v351_v3 = vld [vmem:[%s416_s1 + $0x10] sm:$0xff] (!%p137_p2)  }
   0x6   : > { %140 = sbr.rel (%p137_p2) target bundleno = 239 (0xef), region = 32  ;;  %327 = vmatprep.subr.bf16.mxu0 (!%p137_p2), %v361_v1  ;;  %335 = vmatprep.mubr.msk.bf16.mxu0 (!%p137_p2), %vm362_vm0, %v361_v1  ;;  %v352_v4 = vld [vmem:[%s416_s1 + $0x18] sm:$0xff] (!%p137_p2)   ;;  %vm207_vm1 = vcmask (!%p137_p2), 523264   ;;  %v314_v6 = vld [vmem:[%s417_s2] ss:$0 sm:$0xff] (!%p137_p2)  ;;  %vm252_vm2 = vcmask (!%p137_p2), 519168  }
   0x7   : > { %328 = vmatpush3.bf16.msra.mxu0 (!%p137_p2), %v349_v0 }
   0x8   : > { %329 = vmatprep.subr.bf16.mxu0 (!%p137_p2), %v361_v1 }
   0xb   : > { %330 = vmatpush3.bf16.msra.mxu0 (!%p137_p2), %v350_v2 }
   0xc   : > { %331 = vmatprep.subr.bf16.mxu0 (!%p137_p2), %v361_v1 }
   0xd   : > { %s420_s13 = smov (!%p158_p3, %s307_s13), 1 }
   0xe   : > { %s312_s20 = sshll.u32 %s420_s13, 2 }
   0xf   : > { %332 = vmatpush3.bf16.msra.mxu0 %v351_v3  ;;  %s161_s25 = scalar_lea.vmem %s415_s0, %s312_s20  ;;  %s165_s30 = scalar_lea.vmem %s418_s3, %s312_s20 }
  0x10   : > { %333 = vmatprep.subr.bf16.mxu0 %v361_v1  ;;  %v167_v5 = vld [vmem:[%s161_s25] sm:$0xf] }
  0x13   : > { %334 = vmatpush3.bf16.msra.mxu0 %v352_v4 }
  0x16   : > { %336 = vmatmul.mubr.msk.bf16.vlgmr.msra.gmra.mrb[0].mxu0 %vm207_vm1, %v167_v5 }
  0xe9   : > { %v245_v7 = vpop.f32.mrb[0].mxu0 }
  0xea   : > { %v246_v8 = vadd.f32 %v314_v6, %v245_v7  ;;  %v337_v9 = vpop.f32.mrb[1].mxu0 }
  0xeb   : > { %v248_v10 = vpop.f32.mrb[2].mxu0 }
  0xec   : > { %v251_v11 = vpack.c.bf16 %v246_v8, %v246_v8  ;;  %v338_v12 = vpop.f32.mrb[3].mxu0 }
  0xee   : > { %253 = vst.msk [vmem:[%s165_s30] sm:$0xf] %vm252_vm2, %v251_v11 }
  0xef PF: > { %s13_s12 = sadd.s32 1, %s359_s12  }
  0xf0   : > { %p10_p4 = scmp.ge.s32.totalorder %s13_s12, 4  }
  0xf2   :  { %12 = sbr.rel (!%p10_p4) target bundleno = 1 (0x1), region = 62 }

// kernel: _lambda_.54
= control target key start
LH: loop header
LB: loop body
LE: loop exit
PB: predicated region body
PF: predicated region fallthrough
CT: control target
= control target key end

     0   :  { %s369_s15 = smov 0   ;;  %s400_s0 = inlined_call_operand.vmem [shape: bf16[16,64], index: 0, kind: input, shape index: {}]   ;;  %s401_s1 = inlined_call_operand.vmem [shape: bf16[16,64], index: 1, kind: input, shape index: {}]   ;;  %s402_s2 = inlined_call_operand.vmem [shape: f32[1,64], index: 2, kind: input, shape index: {}]   ;;  %s403_s3 = inlined_call_operand.vmem [shape: f32[1,64], index: 3, kind: input, shape index: {}]   ;;  %s404_s4 = inlined_call_operand.vmem [shape: bf16[16,64], index: 4, kind: output, shape index: {}]  }
   0x1 LB: > { %s314_s16 = sadd.s32 4294967295, %s342_s15   ;;  %p318_p0 = scmp.ge.s32.totalorder %s342_s15, 1  ;;  %s342_s15 = sphi %s369_s15, %s14_s15  }
   0x2   : > { %p170_p1 = scmp.lt.s32.totalorder %s342_s15, 3 }
   0x4   : > { %p171_p2 = pnand %p318_p0, %p170_p1 }
   0x5   : > { %p198_p3 = scmp.lt.s32.totalorder (!%p171_p2), %s314_s16, 1  ;;  %vm215_vm0 = vcmask (!%p171_p2), 523264   ;;  %v322_v15 = vld [vmem:[%s402_s2] ss:$0 sm:$0xff] (!%p171_p2)  ;;  %vm247_vm1 = vcmask (!%p171_p2), 519168  }
   0x6   : > { %174 = sbr.rel (%p171_p2) target bundleno = 338 (0x152), region = 36  ;;  %v323_v17 = vld [vmem:[%s403_s3] ss:$0 sm:$0xff] (!%p171_p2) }
   0xd   : > { %s406_s16 = smov (!%p198_p3, %s314_s16), 1 }
   0xe   : > { %s377_s17 = sshll.u32 %s406_s16, 2 }
   0xf   : > { %s201_s20 = scalar_lea.vmem %s400_s0, %s377_s17  ;;  %s205_s23 = scalar_lea.vmem %s401_s1, %s377_s17 }
  0x10   : > { %v210_v0 = vld [vmem:[%s201_s20] sm:$0xf]  ;;  %s209_s30 = scalar_lea.vmem %s404_s4, %s377_s17 }
  0x11   : > { %v212_v1 = vld [vmem:[%s205_s23] sm:$0xf]  ;;  %v211_v2 = vunpack.c.l.bf16 %v210_v0 }
  0x12   : > { %v213_v3 = vunpack.c.l.bf16 %v212_v1 }
  0x14   : > { %v214_v4 = vadd.f32 %v213_v3, %v211_v2 }
  0x16   : > { %v216_v5 = vsel %vm215_vm0, %v214_v4, 0.0 }
  0x17   : > { %217 = vadd.xlane.f32.xlu0 %v216_v5 }
  0xa4   : > { %v218_v6 = vpop.xlane.xlu0 %217 }
  0xa5   : > { %v220_v7 = vmul.f32 0.015625, %v218_v6 }
  0xa7   : > { %v221_v8 = vsub.f32 %v214_v4, %v220_v7 }
  0xa9   : > { %v222_v9 = vmul.f32 %v221_v8, %v221_v8 }
  0xab   : > { %v223_v10 = vsel %vm215_vm0, %v222_v9, 0.0 }
  0xac   : > { %224 = vadd.xlane.f32.xlu0 %v223_v10 }
 0x139   : > { %v225_v11 = vpop.xlane.xlu0 %224 }
 0x13a   : > { %v226_v12 = vmul.f32 0.015625, %v225_v11 }
 0x13c   : > { %v227_v13 = vadd.f32 1e-05, %v226_v12 }
 0x13e   : > { %334 = vrsqrt.f32 %v227_v13 }
 0x148   : > { %v335_v14 = vpop.eup %334 }
 0x149   : > { %v229_v16 = vmul.f32 %v335_v14, %v221_v8 }
 0x14b   : > { %v237_v18 = vmul.f32 %v322_v15, %v229_v16 }
 0x14d   : > { %v245_v19 = vadd.f32 %v323_v17, %v237_v18 }
 0x14f   : > { %v246_v20 = vpack.c.bf16 %v245_v19, %v245_v19 }
 0x151   : > { %248 = vst.msk [vmem:[%s209_s30] sm:$0xf] %vm247_vm1, %v246_v20 }
 0x152 PF: > { %s14_s15 = sadd.s32 1, %s342_s15  }
 0x153   : > { %p11_p4 = scmp.ge.s32.totalorder %s14_s15, 4  }
 0x155   :  { %13 = sbr.rel (!%p11_p4) target bundleno = 1 (0x1), region = 69 }

// kernel: _lambda_.40
= control target key start
LH: loop header
LB: loop body
LE: loop exit
PB: predicated region body
PF: predicated region fallthrough
CT: control target
= control target key end

     0   :  { %s8261_s12 = smov 0   ;;  %s8263_s13 = smov 0   ;;  %s11310_s0 = inlined_call_operand.vmem [shape: bf16[2,64,64], index: 0, kind: input, shape index: {}]   ;;  %s11311_s1 = inlined_call_operand.vmem [shape: bf16[2,64,64], index: 1, kind: input, shape index: {}]   ;;  %s11312_s2 = inlined_call_operand.vmem [shape: bf16[2,64,64], index: 2, kind: input, shape index: {}]   ;;  %s11313_s3 = inlined_call_operand.vmem [shape: bf16[2,64,64], index: 3, kind: output, shape index: {}]  }
   0x1   :  { %s8265_s14 = smov 0  }
   0x2 LB: > { %s32_s15 = sadd.s32 1, %s8224_s13  ;;  %p7523_p0 = scmp.ge.s32.totalorder %s8228_s14, 1  ;;  %s8228_s14 = sphi %s8265_s14, %s13_s14   ;;  %s8224_s13 = sphi %s8263_s13, %s11499_s13   ;;  %s8220_s12 = sphi %s8261_s12, %s11498_s12  }
   0x3   : > { %p34_p1 = scmp.ge.s32.totalorder %s32_s15, 2  ;;  %p199_p2 = scmp.lt.s32.totalorder %s8228_s14, 3 }
   0x5   : > { %s11501_s15 = smov (%p34_p1, %s32_s15), 0  ;;  %p200_p3 = pnand %p7523_p0, %p199_p2 }
   0x7   : > { %203 = sbr.rel (%p200_p3) target bundleno = 1344 (0x540), region = 32 }
   0xe   : > { %p250_p4 = scmp.lt.s32.totalorder %s8220_s12, 1  ;;  %s8230_s20 = smov 96   ;;  %v11314_v14 = vmov 0   ;;  %v8234_v29 = vmov 1983009808   ;;  %v501_v31 = vlaneseq  ;;  %vm359_vm0 = vcmask 130048  }
   0xf   : > { %s8231_s21 = smov 112   ;;  %s8232_s22 = smov 80   ;;  %7945 = vset.pattern.permute.xlu0 %v11314_v14  ;;  %7944 = vset.pattern.permute.xlu1 %v11314_v14  ;;  %v499_v30 = vunpack.c.l.s4 %v8234_v29  ;;  %v8235_v32 = vmov 1934713408   ;;  %vm294_vm1 = vcmask 7168   ;;  %vm4437_vm2 = vcmask 523264  }
  0x10   : > { %s11503_s12 = smov (!%p250_p4, %s8220_s12), 1  ;;  %v531_v33 = vunpack.c.l.s4 %v8235_v32  ;;  %v502_v37 = vshrl.u32 %v501_v31, 7  ;;  %s8238_s29 = smov 16   ;;  %vm7334_vm3 = vcmask 261120   ;;  %vm7343_vm4 = vcmask 392192  }
  0x11   : > { %s8279_s16 = sshll.u32 %s11503_s12, 5  ;;  %v500_v36 = vunpack.c.0.s8 %v499_v30  ;;  %s8239_s30 = smov 32   ;;  %vm7384_vm5 = vcmask 519168  }
  0x12   : > { %s267_s19 = scalar_lea.vmem %s11311_s1, %s8279_s16  ;;  %s8341_s25 = scalar_lea.vmem %s11310_s0, %s8279_s16  ;;  %v532_v38 = vunpack.c.0.s8 %v531_v33 }
  0x13   : > { %v8285_v0 = vld [vmem:[%s267_s19] sm:$0xf]  ;;  %v8291_v1 = vld [vmem:[%s267_s19 + $0x4] sm:$0xf]  ;;  %v8301_v2 = vld [vmem:[%s267_s19 + $0xc] sm:$0xf]  ;;  %v8427_v45 = vsub.s32 %v500_v36, %v502_v37  ;;  %s8674_s28 = scalar_lea.vmem %s11312_s2, %s8279_s16  ;;  %s11251_s7 = scalar_lea.vmem %s11313_s3, %s8279_s16 }
  0x14   : > { %1616 = vrot.lane.b32.xlu1 %v8285_v0, %s8230_s20  ;;  %1600 = vrot.lane.b32.xlu0 %v8285_v0, %s8231_s21  ;;  %v8303_v3 = vld [vmem:[%s267_s19 + $0x8] sm:$0xf]  ;;  %v8317_v4 = vld [vmem:[%s267_s19 + $0x14] sm:$0xf]  ;;  %v1651_v39 = vshrl.u32 %v8285_v0, 16  ;;  %v1663_v42 = vshrl.u32 %v8291_v1, 16  ;;  %v8431_v48 = vsub.s32 %v532_v38, %v502_v37 }
  0x15   : > { %v8319_v5 = vld [vmem:[%s267_s19 + $0x10] sm:$0xf]  ;;  %v8333_v6 = vld [vmem:[%s267_s19 + $0x1c] sm:$0xf]  ;;  %v8335_v7 = vld [vmem:[%s267_s19 + $0x18] sm:$0xf] }
  0x16   : > { %v7683_v8 = vld [vmem:[%s8341_s25] sm:$0xff]   ;;  %v7698_v13 = vld [vmem:[%s8341_s25 + $0x8] sm:$0xff]   ;;  %v7699_v19 = vld [vmem:[%s8341_s25 + $0x10] sm:$0xff]   ;;  %11367 = vst [vmem:[#allocation5_spill] sm:$0xff] %v8427_v45  ;;  %v1687_v49 = vshrl.u32 %v8301_v2, 16  ;;  %v1675_v54 = vshrl.u32 %v8303_v3, 16 }
  0x17   : > { %v7685_v9 = vunpack.c.h.bf16 %v7683_v8  ;;  %v7684_v10 = vunpack.c.l.bf16 %v7683_v8  ;;  %v7689_v15 = vunpack.c.h.bf16 %v7698_v13  ;;  %v7688_v16 = vunpack.c.l.bf16 %v7698_v13  ;;  %v7700_v24 = vld [vmem:[%s8341_s25 + $0x18] sm:$0xff]   ;;  %11368 = vst [vmem:[#allocation6_spill] sm:$0xff] %v8431_v48  ;;  %s8240_s4 = smov 48  }
  0x18   : > { %1618 = vrot.lane.b32.xlu1 %v8291_v1, %s8230_s20  ;;  %1602 = vrot.lane.b32.xlu0 %v8291_v1, %s8231_s21  ;;  %v7693_v20 = vunpack.c.h.bf16 %v7699_v19  ;;  %v7692_v21 = vunpack.c.l.bf16 %v7699_v19  ;;  %v7697_v25 = vunpack.c.h.bf16 %v7700_v24  ;;  %v7696_v26 = vunpack.c.l.bf16 %v7700_v24 }
  0x19   : > { %v8356_v11 = vmul.f32 0.25, %v7685_v9  ;;  %v8358_v12 = vmul.f32 0.25, %v7684_v10  ;;  %v8375_v17 = vmul.f32 0.25, %v7689_v15  ;;  %v8377_v18 = vmul.f32 0.25, %v7688_v16 }
  0x1a   : > { %v8392_v22 = vmul.f32 0.25, %v7693_v20  ;;  %v8394_v23 = vmul.f32 0.25, %v7692_v21  ;;  %v8409_v27 = vmul.f32 0.25, %v7697_v25  ;;  %v8411_v28 = vmul.f32 0.25, %v7696_v26 }
  0x1b   : > { %v1711_v55 = vshrl.u32 %v8317_v4, 16  ;;  %v1699_v63 = vshrl.u32 %v8319_v5, 16  ;;  %v1735_v20 = vshrl.u32 %v8333_v6, 16 }
  0x1c   : > { %1634 = vrot.lane.b32.xlu1 %v8291_v1, %s8232_s22  ;;  %1632 = vrot.lane.b32.xlu0 %v8285_v0, %s8232_s22 }
  0x20   : > { %1606 = vrot.lane.b32.xlu1 %v8301_v2, %s8231_s21  ;;  %1604 = vrot.lane.b32.xlu0 %v8303_v3, %s8231_s21 }
  0x24   : > { %1622 = vrot.lane.b32.xlu1 %v8301_v2, %s8230_s20  ;;  %1620 = vrot.lane.b32.xlu0 %v8303_v3, %s8230_s20 }
  0x28   : > { %1638 = vrot.lane.b32.xlu1 %v8301_v2, %s8232_s22  ;;  %1636 = vrot.lane.b32.xlu0 %v8303_v3, %s8232_s22 }
  0x2c   : > { %1610 = vrot.lane.b32.xlu1 %v8317_v4, %s8231_s21  ;;  %1608 = vrot.lane.b32.xlu0 %v8319_v5, %s8231_s21 }
  0x30   : > { %1626 = vrot.lane.b32.xlu1 %v8317_v4, %s8230_s20  ;;  %1624 = vrot.lane.b32.xlu0 %v8319_v5, %s8230_s20 }
  0x34   : > { %1642 = vrot.lane.b32.xlu1 %v8317_v4, %s8232_s22  ;;  %1640 = vrot.lane.b32.xlu0 %v8319_v5, %s8232_s22 }
  0x38   : > { %1614 = vrot.lane.b32.xlu1 %v8333_v6, %s8231_s21  ;;  %1612 = vrot.lane.b32.xlu0 %v8335_v7, %s8231_s21 }
  0x3c   : > { %1630 = vrot.lane.b32.xlu1 %v8333_v6, %s8230_s20  ;;  %1628 = vrot.lane.b32.xlu0 %v8335_v7, %s8230_s20 }
  0x40   : > { %1646 = vrot.lane.b32.xlu1 %v8333_v6, %s8232_s22  ;;  %1644 = vrot.lane.b32.xlu0 %v8335_v7, %s8232_s22 }
  0x44   : > { %426 = vrot.lane.b32.xlu1 %v8356_v11, %s8231_s21  ;;  %424 = vrot.lane.b32.xlu0 %v8358_v12, %s8231_s21 }
  0x48   : > { %450 = vrot.lane.b32.xlu1 %v8356_v11, %s8230_s20  ;;  %448 = vrot.lane.b32.xlu0 %v8358_v12, %s8230_s20 }
  0x4c   : > { %474 = vrot.lane.b32.xlu1 %v8356_v11, %s8232_s22  ;;  %472 = vrot.lane.b32.xlu0 %v8358_v12, %s8232_s22 }
  0x50   : > { %430 = vrot.lane.b32.xlu1 %v8375_v17, %s8231_s21  ;;  %428 = vrot.lane.b32.xlu0 %v8377_v18, %s8231_s21 }
  0x54   : > { %454 = vrot.lane.b32.xlu1 %v8375_v17, %s8230_s20  ;;  %452 = vrot.lane.b32.xlu0 %v8377_v18, %s8230_s20 }
  0x58   : > { %478 = vrot.lane.b32.xlu1 %v8375_v17, %s8232_s22  ;;  %476 = vrot.lane.b32.xlu0 %v8377_v18, %s8232_s22 }
  0x5c   : > { %434 = vrot.lane.b32.xlu1 %v8392_v22, %s8231_s21  ;;  %432 = vrot.lane.b32.xlu0 %v8394_v23, %s8231_s21 }
  0x60   : > { %458 = vrot.lane.b32.xlu1 %v8392_v22, %s8230_s20  ;;  %456 = vrot.lane.b32.xlu0 %v8394_v23, %s8230_s20 }
  0x64   : > { %482 = vrot.lane.b32.xlu1 %v8392_v22, %s8232_s22  ;;  %480 = vrot.lane.b32.xlu0 %v8394_v23, %s8232_s22 }
  0x68   : > { %438 = vrot.lane.b32.xlu1 %v8409_v27, %s8231_s21  ;;  %436 = vrot.lane.b32.xlu0 %v8411_v28, %s8231_s21 }
  0x6c   : > { %462 = vrot.lane.b32.xlu1 %v8409_v27, %s8230_s20  ;;  %460 = vrot.lane.b32.xlu0 %v8411_v28, %s8230_s20 }
  0x70   : > { %486 = vrot.lane.b32.xlu1 %v8409_v27, %s8232_s22  ;;  %484 = vrot.lane.b32.xlu0 %v8411_v28, %s8232_s22 }
  0x86   : > { %v1617_v34 = vpop.permute.xlu1 %1616  ;;  %v1601_v35 = vpop.permute.xlu0 %1600 }
  0x87   : > { %v1652_v40 = vshrl.u32 %v1601_v35, 16  ;;  %v1650_v46 = vpack.i.b16 %v1601_v35, %v8285_v0  ;;  %v1657_v60 = vshrl.u32 %v1617_v34, 16 }
  0x89   : > { %v1653_v50 = vpack.i.b16 %v1652_v40, %v1651_v39  ;;  %v1751_v61 = vrot.slane %v1650_v46, %v8427_v45  ;;  %v1723_v46 = vshrl.u32 %v8335_v7, 16 }
  0x8a   : > { %v1619_v41 = vpop.permute.xlu1 %1618  ;;  %v1603_v43 = vpop.permute.xlu0 %1602 }
  0x8b   : > { %v1664_v44 = vshrl.u32 %v1603_v43, 16  ;;  %v1662_v47 = vpack.i.b16 %v1603_v43, %v8291_v1  ;;  %v1669_v56 = vshrl.u32 %v1619_v41, 16  ;;  %v1785_v10 = vrot.slane %v1653_v50, %v8427_v45 }
  0x8d   : > { %v1665_v51 = vpack.i.b16 %v1664_v44, %v1663_v42  ;;  %v1819_v0 = vrot.slane %v1662_v47, %v8427_v45 }
  0x8e   : > { %v1635_v52 = vpop.permute.xlu1 %1634  ;;  %v1633_v53 = vpop.permute.xlu0 %1632 }
  0x8f   : > { %v1668_v57 = vpack.i.b16 %v1635_v52, %v1619_v41  ;;  %v1670_v58 = vshrl.u32 %v1635_v52, 16  ;;  %v1656_v59 = vpack.i.b16 %v1633_v53, %v1617_v34  ;;  %v1658_v62 = vshrl.u32 %v1633_v53, 16 }
  0x90   : > { %v1853_v13 = vrot.slane %v1665_v51, %v8427_v45 }
  0x91   : > { %v1671_v1 = vpack.i.b16 %v1670_v58, %v1669_v56  ;;  %v1827_v8 = vrot.slane %v1668_v57, %v8427_v45  ;;  %v1759_v9 = vrot.slane %v1656_v59, %v8427_v45  ;;  %v1659_v15 = vpack.i.b16 %v1658_v62, %v1657_v60 }
  0x92   : > { %v1607_v16 = vpop.permute.xlu1 %1606  ;;  %v1605_v19 = vpop.permute.xlu0 %1604 }
  0x93   : > { %v1828_v21 = vcombine.low %v1819_v0, %v1827_v8  ;;  %v1829_v24 = vcombine.high %v1819_v0, %v1827_v8  ;;  %v1861_v25 = vrot.slane %v1671_v1, %v8427_v45  ;;  %v1760_v26 = vcombine.low %v1751_v61, %v1759_v9 }
  0x94   : > { %v1761_v29 = vcombine.high %v1751_v61, %v1759_v9  ;;  %v1793_v30 = vrot.slane %v1659_v15, %v8427_v45  ;;  %v1686_v31 = vpack.i.b16 %v1607_v16, %v8301_v2  ;;  %v1688_v32 = vshrl.u32 %v1607_v16, 16 }
  0x95   : > { %v8448_v33 = vrot.slane %v1828_v21, %v8431_v48  ;;  %v8451_v34 = vrot.slane %v1829_v24, %v8431_v48  ;;  %v1862_v35 = vcombine.low %v1853_v13, %v1861_v25  ;;  %v1863_v36 = vcombine.high %v1853_v13, %v1861_v25 }
  0x96   : > { %v1768_v37 = vrot.slane %v1760_v26, %v8431_v48  ;;  %v1775_v38 = vrot.slane %v1761_v29, %v8431_v48  ;;  %v1794_v39 = vcombine.low %v1785_v10, %v1793_v30  ;;  %v1795_v40 = vcombine.high %v1785_v10, %v1793_v30  ;;  %v1623_v41 = vpop.permute.xlu1 %1622  ;;  %v1621_v42 = vpop.permute.xlu0 %1620 }
  0x97   : > { %v8456_v43 = vrot.slane %v1862_v35, %v8431_v48  ;;  %v8459_v2 = vrot.slane %v1863_v36, %v8431_v48  ;;  %v2338_v44 = vcombine.low %v8448_v33, %v8451_v34  ;;  %v7550_v47 = vcombine.high %v8448_v33, %v8451_v34 }
  0x98   : > { %v8467_v50 = vrot.slane %v1794_v39, %v8431_v48  ;;  %v8470_v51 = vrot.slane %v1795_v40, %v8431_v48  ;;  %v2288_v52 = vcombine.low %v1768_v37, %v1775_v38  ;;  %v7548_v57 = vcombine.high %v1768_v37, %v1775_v38 }
  0x99   : > { %v2363_v53 = vcombine.low %v8456_v43, %v8459_v2  ;;  %v7551_v56 = vcombine.high %v8456_v43, %v8459_v2  ;;  %v1689_v58 = vpack.i.b16 %v1688_v32, %v1687_v49  ;;  %v1955_v60 = vrot.slane %v1686_v31, %v8427_v45 }
  0x9a   : > { %v2313_v59 = vcombine.low %v8467_v50, %v8470_v51  ;;  %v1674_v61 = vpack.i.b16 %v1605_v19, %v8303_v3  ;;  %v1676_v62 = vshrl.u32 %v1605_v19, 16  ;;  %v1639_v0 = vpop.permute.xlu1 %1638  ;;  %v1637_v1 = vpop.permute.xlu0 %1636  ;;  %v7549_v8 = vcombine.high %v8467_v50, %v8470_v51 }
  0x9b   : > { %v1989_v9 = vrot.slane %v1689_v58, %v8427_v45  ;;  %v1693_v10 = vshrl.u32 %v1623_v41, 16  ;;  %v1692_v13 = vpack.i.b16 %v1639_v0, %v1623_v41  ;;  %v1681_v16 = vshrl.u32 %v1621_v42, 16 }
  0x9c   : > { %v1677_v15 = vpack.i.b16 %v1676_v62, %v1675_v54  ;;  %v1694_v49 = vshrl.u32 %v1639_v0, 16  ;;  %v1680_v21 = vpack.i.b16 %v1637_v1, %v1621_v42  ;;  %v1887_v24 = vrot.slane %v1674_v61, %v8427_v45 }
  0x9d   : > { %v1963_v25 = vrot.slane %v1692_v13, %v8427_v45  ;;  %v1682_v26 = vshrl.u32 %v1637_v1, 16  ;;  %v8486_v3 = vrot.slane %v2288_v52, %v8427_v45  ;;  %v2303_v54 = vrot.slane %v7548_v57, %v8427_v45 }
  0x9e   : > { %v1921_v19 = vrot.slane %v1677_v15, %v8427_v45  ;;  %v1695_v29 = vpack.i.b16 %v1694_v49, %v1693_v10  ;;  %v1895_v30 = vrot.slane %v1680_v21, %v8427_v45  ;;  %v1611_v31 = vpop.permute.xlu1 %1610  ;;  %v1609_v32 = vpop.permute.xlu0 %1608  ;;  %v8492_v38 = vrot.slane %v2313_v59, %v8427_v45 }
  0x9f   : > { %v1964_v35 = vcombine.low %v1955_v60, %v1963_v25  ;;  %v1965_v36 = vcombine.high %v1955_v60, %v1963_v25  ;;  %v1683_v37 = vpack.i.b16 %v1682_v26, %v1681_v16  ;;  %v1710_v42 = vpack.i.b16 %v1611_v31, %v8317_v4 }
  0xa0   : > { %v1997_v39 = vrot.slane %v1695_v29, %v8427_v45  ;;  %v1896_v40 = vcombine.low %v1887_v24, %v1895_v30  ;;  %v1897_v41 = vcombine.high %v1887_v24, %v1895_v30  ;;  %v1712_v62 = vshrl.u32 %v1611_v31, 16 }
  0xa1   : > { %v1972_v52 = vrot.slane %v1964_v35, %v8431_v48  ;;  %v1979_v58 = vrot.slane %v1965_v36, %v8431_v48  ;;  %v1929_v61 = vrot.slane %v1683_v37, %v8427_v45 }
  0xa2   : > { %v1998_v57 = vcombine.low %v1989_v9, %v1997_v39  ;;  %v1999_v0 = vcombine.high %v1989_v9, %v1997_v39  ;;  %v1904_v60 = vrot.slane %v1896_v40, %v8431_v48  ;;  %v1911_v59 = vrot.slane %v1897_v41, %v8431_v48  ;;  %v1627_v1 = vpop.permute.xlu1 %1626  ;;  %v8501_v10 = vpop.permute.xlu0 %1624 }
  0xa3   : > { %v2438_v13 = vcombine.low %v1972_v52, %v1979_v58  ;;  %v7554_v15 = vcombine.high %v1972_v52, %v1979_v58  ;;  %v1930_v16 = vcombine.low %v1921_v19, %v1929_v61  ;;  %v1931_v49 = vcombine.high %v1921_v19, %v1929_v61 }
  0xa4   : > { %v2006_v21 = vrot.slane %v1998_v57, %v8431_v48  ;;  %v2013_v24 = vrot.slane %v1999_v0, %v8431_v48  ;;  %v2388_v25 = vcombine.low %v1904_v60, %v1911_v59  ;;  %v7552_v26 = vcombine.high %v1904_v60, %v1911_v59 }
  0xa5   : > { %v8506_v29 = vrot.slane %v2438_v13, %v8427_v45  ;;  %v8509_v9 = vrot.slane %v7554_v15, %v8427_v45  ;;  %v8512_v30 = vrot.slane %v1930_v16, %v8431_v48  ;;  %v8515_v31 = vrot.slane %v1931_v49, %v8431_v48 }
  0xa6   : > { %v2463_v35 = vcombine.low %v2006_v21, %v2013_v24  ;;  %v7555_v19 = vcombine.high %v2006_v21, %v2013_v24  ;;  %v8518_v36 = vrot.slane %v2388_v25, %v8427_v45  ;;  %v8521_v37 = vrot.slane %v7552_v26, %v8427_v45  ;;  %v1643_v39 = vpop.permute.xlu1 %1642  ;;  %v1641_v40 = vpop.permute.xlu0 %1640 }
  0xa7   : > { %v2454_v41 = vcombine.low %v8506_v29, %v8509_v9  ;;  %v2413_v52 = vcombine.low %v8512_v30, %v8515_v31  ;;  %v1713_v58 = vpack.i.b16 %v1712_v62, %v1711_v55  ;;  %v2091_v61 = vrot.slane %v1710_v42, %v8427_v45  ;;  %v8708_v29 = vld [vmem:[%s8674_s28 + $0xc] sm:$0xf] }
  0xa8   : > { %v8531_v57 = vrot.slane %v2463_v35, %v8427_v45  ;;  %v8534_v0 = vrot.slane %v7555_v19, %v8427_v45  ;;  %v7553_v60 = vcombine.high %v8512_v30, %v8515_v31  ;;  %v1698_v59 = vpack.i.b16 %v1609_v32, %v8319_v5 }
  0xa9   : > { %v2404_v13 = vcombine.low %v8518_v36, %v8521_v37  ;;  %v8542_v15 = vrot.slane %v2413_v52, %v8427_v45  ;;  %v2125_v4 = vrot.slane %v1713_v58, %v8427_v45  ;;  %v1700_v55 = vshrl.u32 %v1609_v32, 16  ;;  %v8682_v37 = vld [vmem:[%s8674_s28 + $0x4] sm:$0xf] }
  0xaa   : > { %v2023_v42 = vrot.slane %v1698_v59, %v8427_v45  ;;  %v1717_v62 = vshrl.u32 %v1627_v1, 16  ;;  %v1705_v16 = vshrl.u32 %v8501_v10, 16  ;;  %v2304_v49 = vcombine.low %v8486_v3, %v2303_v54  ;;  %v8562_v3 = vpop.permute.xlu1 %1614  ;;  %v8575_v51 = vpop.permute.xlu0 %1612  ;;  %2802 = vrot.lane.b32.xlu1 %v8682_v37, %s8231_s21 }
  0xab   : > { %v1701_v21 = vpack.i.b16 %v1700_v55, %v1699_v63  ;;  %v2328_v24 = vrot.slane %v7549_v8, %v8427_v45  ;;  %v2345_v32 = vrot.slane %v2338_v44, %v8427_v45  ;;  %v2353_v25 = vrot.slane %v7550_v47, %v8427_v45 }
  0xac   : > { %v8565_v5 = vrot.slane %v2304_v49, %v8431_v48  ;;  %v2370_v63 = vrot.slane %v2363_v53, %v8427_v45  ;;  %v2378_v44 = vrot.slane %v7551_v56, %v8427_v45  ;;  %v1716_v50 = vpack.i.b16 %v1643_v39, %v1627_v1 }
  0xad   : > { %v2057_v33 = vrot.slane %v1701_v21, %v8427_v45  ;;  %v2329_v34 = vcombine.low %v8492_v38, %v2328_v24  ;;  %v2354_v47 = vcombine.low %v2345_v32, %v2353_v25  ;;  %v1718_v8 = vshrl.u32 %v1643_v39, 16 }
  0xae   : > { %v2379_v54 = vcombine.low %v2370_v63, %v2378_v44  ;;  %v2099_v26 = vrot.slane %v1716_v50, %v8427_v45  ;;  %v1704_v35 = vpack.i.b16 %v1641_v40, %v8501_v10  ;;  %v1706_v53 = vshrl.u32 %v1641_v40, 16  ;;  %v8596_v55 = vpop.permute.xlu1 %1630  ;;  %2806 = vrot.lane.b32.xlu1 %v8708_v29, %s8231_s21 }
  0xaf   : > { %v8582_v19 = vrot.slane %v2329_v34, %v8431_v48  ;;  %v8585_v43 = vrot.slane %v2354_v47, %v8431_v48  ;;  %v1719_v2 = vpack.i.b16 %v1718_v8, %v1717_v62  ;;  %v2691_v56 = vshrl.u32 %v8565_v5, 16 }
  0xb0   : > { %v8589_v1 = vrot.slane %v2379_v54, %v8431_v48  ;;  %v2100_v38 = vcombine.low %v2091_v61, %v2099_v26  ;;  %v2101_v39 = vcombine.high %v2091_v61, %v2099_v26  ;;  %v1707_v52 = vpack.i.b16 %v1706_v53, %v1705_v16  ;;  %v8603_v16 = vpop.permute.xlu0 %1628 }
  0xb1   : > { %v2690_v58 = vpack.i.b16 %v8582_v19, %v8565_v5  ;;  %v2133_v10 = vrot.slane %v1719_v2, %v8427_v45  ;;  %v2031_v40 = vrot.slane %v1704_v35, %v8427_v45  ;;  %v2692_v59 = vshrl.u32 %v8582_v19, 16 }
  0xb2   : > { %v2702_v62 = vpack.i.b16 %v8589_v1, %v8585_v43  ;;  %v2108_v49 = vrot.slane %v2100_v38, %v8431_v48  ;;  %v2115_v21 = vrot.slane %v2101_v39, %v8431_v48  ;;  %v2065_v61 = vrot.slane %v1707_v52, %v8427_v45 }
  0xb3   : > { %v2134_v24 = vcombine.low %v2125_v4, %v2133_v10  ;;  %v2135_v32 = vcombine.high %v2125_v4, %v2133_v10  ;;  %v2032_v25 = vcombine.low %v2023_v42, %v2031_v40  ;;  %v2033_v63 = vcombine.high %v2023_v42, %v2031_v40  ;;  %v1647_v10 = vpop.permute.xlu1 %1646 }
  0xb4   : > { %v7580_v44 = vcombine.low %v2690_v58, %v2702_v62  ;;  %v2538_v50 = vcombine.low %v2108_v49, %v2115_v21  ;;  %v7558_v34 = vcombine.high %v2108_v49, %v2115_v21  ;;  %v2066_v47 = vcombine.low %v2057_v33, %v2065_v61 }
  0xb5   : > { %v2142_v8 = vrot.slane %v2134_v24, %v8431_v48  ;;  %v2149_v54 = vrot.slane %v2135_v32, %v8431_v48  ;;  %v2040_v26 = vrot.slane %v2032_v25, %v8431_v48  ;;  %v2047_v35 = vrot.slane %v2033_v63, %v8431_v48 }
  0xb6   : > { %7893 = vmatprep.subr.msk.bf16.mxu0 %vm359_vm0, %v7580_v44  ;;  %v8611_v53 = vrot.slane %v2538_v50, %v8427_v45  ;;  %v8614_v4 = vrot.slane %v7558_v34, %v8427_v45  ;;  %v2067_v42 = vcombine.high %v2057_v33, %v2065_v61  ;;  %v2074_v2 = vrot.slane %v2066_v47, %v8431_v48  ;;  %v1645_v33 = vpop.permute.xlu0 %1644 }
  0xb7   : > { %v2563_v38 = vcombine.low %v2142_v8, %v2149_v54  ;;  %v7559_v39 = vcombine.high %v2142_v8, %v2149_v54  ;;  %v2488_v52 = vcombine.low %v2040_v26, %v2047_v35  ;;  %v7556_v58 = vcombine.high %v2040_v26, %v2047_v35 }
  0xb8   : > { %v2428_v40 = vrot.slane %v7553_v60, %v8427_v45  ;;  %v2554_v62 = vcombine.low %v8611_v53, %v8614_v4  ;;  %v2081_v49 = vrot.slane %v2067_v42, %v8431_v48  ;;  %v4026_v21 = vsel %vm359_vm0, %v7580_v44, 0 }
  0xb9   : > { %v8626_v61 = vrot.slane %v2563_v38, %v8427_v45  ;;  %v8629_v24 = vrot.slane %v2488_v52, %v8427_v45  ;;  %v8632_v32 = vrot.slane %v7556_v58, %v8427_v45  ;;  %7766 = vmatpush3.bf16.xpose.msra.mxu0 %v4026_v21  ;;  %v2693_v30 = vpack.i.b16 %v2692_v59, %v2691_v56 }
  0xba   : > { %v2513_v31 = vcombine.low %v2074_v2, %v2081_v49  ;;  %v7557_v60 = vcombine.high %v2074_v2, %v2081_v49  ;;  %v2703_v25 = vshrl.u32 %v8585_v43, 16  ;;  %v2704_v63 = vshrl.u32 %v8589_v1, 16  ;;  %v8657_v2 = vpop.permute.xlu1 %426 }
  0xbb   : > { %v8637_v44 = vrot.slane %v7559_v39, %v8427_v45  ;;  %v1734_v50 = vpack.i.b16 %v8562_v3, %v8333_v6  ;;  %v1736_v34 = vshrl.u32 %v8562_v3, 16  ;;  %v1722_v47 = vpack.i.b16 %v8575_v51, %v8335_v7  ;;  %v8668_v6 = vpop.permute.xlu0 %424 }
  0xbc   : > { %v2504_v56 = vcombine.low %v8629_v24, %v8632_v32  ;;  %v8647_v59 = vrot.slane %v2513_v31, %v8427_v45  ;;  %v2705_v8 = vpack.i.b16 %v2704_v63, %v2703_v25  ;;  %v1724_v54 = vshrl.u32 %v8575_v51, 16  ;;  %v8714_v31 = vld [vmem:[%s8674_s28 + $0x8] sm:$0xf] }
  0xbd   : > { %v8651_v26 = vrot.slane %v7557_v60, %v8427_v45  ;;  %v1737_v35 = vpack.i.b16 %v1736_v34, %v1735_v20  ;;  %v2227_v3 = vrot.slane %v1734_v50, %v8427_v45  ;;  %v2159_v42 = vrot.slane %v1722_v47, %v8427_v45 }
  0xbe   : > { %v7588_v38 = vcombine.low %v2693_v30, %v2705_v8  ;;  %v1725_v39 = vpack.i.b16 %v1724_v54, %v1723_v46  ;;  %v1741_v52 = vshrl.u32 %v8596_v55, 16  ;;  %v8666_v51 = vrot.slane %v2404_v13, %v8431_v48  ;;  %v8685_v13 = vld [vmem:[%s8674_s28] sm:$0xf]  ;;  %v8721_v63 = vpop.permute.xlu1 %450 }
  0xbf   : > { %v2261_v7 = vrot.slane %v1737_v35, %v8427_v45  ;;  %v1729_v20 = vshrl.u32 %v8603_v16, 16  ;;  %v2429_v46 = vcombine.low %v8542_v15, %v2428_v40  ;;  %v2479_v36 = vcombine.low %v8531_v57, %v8534_v0  ;;  %2800 = vrot.lane.b32.xlu0 %v8685_v13, %s8231_s21  ;;  %v8725_v54 = vpop.permute.xlu0 %448 }
  0xc0   : > { %7897 = vmatprep.subr.msk.bf16.mxu1 %vm359_vm0, %v7588_v38  ;;  %v4127_v58 = vsel %vm359_vm0, %v7588_v38, 0  ;;  %v8693_v49 = vrot.slane %v2454_v41, %v8431_v48  ;;  %v1740_v15 = vpack.i.b16 %v1647_v10, %v8596_v55  ;;  %v1742_v40 = vshrl.u32 %v1647_v10, 16 }
  0xc1   : > { %7782 = vmatpush3.bf16.xpose.msra.mxu1 %v4127_v58  ;;  %v8699_v57 = vrot.slane %v2429_v46, %v8431_v48  ;;  %v8702_v0 = vrot.slane %v2479_v36, %v8431_v48  ;;  %v1728_v21 = vpack.i.b16 %v1645_v33, %v8603_v16  ;;  %v1730_v30 = vshrl.u32 %v1645_v33, 16 }
  0xc2   : > { %v2193_v9 = vrot.slane %v1725_v39, %v8427_v45  ;;  %v1743_v41 = vpack.i.b16 %v1742_v40, %v1741_v52  ;;  %v2235_v55 = vrot.slane %v1740_v15, %v8427_v45  ;;  %v2715_v10 = vshrl.u32 %v8666_v51, 16  ;;  %v8738_v15 = vld [vmem:[%s8674_s28 + $0x10] sm:$0xf] }
  0xc3   : > { %v2714_v60 = vpack.i.b16 %v8699_v57, %v8666_v51  ;;  %v2726_v16 = vpack.i.b16 %v8702_v0, %v8693_v49  ;;  %v1731_v33 = vpack.i.b16 %v1730_v30, %v1729_v20  ;;  %v2167_v25 = vrot.slane %v1728_v21, %v8427_v45  ;;  %2804 = vrot.lane.b32.xlu0 %v8714_v31, %s8231_s21  ;;  %v8733_v20 = vld [vmem:[%s8674_s28 + $0x14] sm:$0xf] }
  0xc4   : > { %v2236_v50 = vcombine.low %v2227_v3, %v2235_v55  ;;  %v2237_v34 = vcombine.high %v2227_v3, %v2235_v55  ;;  %v2269_v47 = vrot.slane %v1743_v41, %v8427_v45  ;;  %v2716_v8 = vshrl.u32 %v8699_v57, 16  ;;  %2810 = vrot.lane.b32.xlu1 %v8733_v20, %s8231_s21 }
  0xc5   : > { %v7581_v35 = vcombine.low %v2714_v60, %v2726_v16  ;;  %v2168_v38 = vcombine.low %v2159_v42, %v2167_v25  ;;  %v2169_v39 = vcombine.high %v2159_v42, %v2167_v25  ;;  %v2201_v52 = vrot.slane %v1731_v33, %v8427_v45 }
  0xc6   : > { %v2244_v3 = vrot.slane %v2236_v50, %v8431_v48  ;;  %v2251_v46 = vrot.slane %v2237_v34, %v8431_v48  ;;  %v2270_v36 = vcombine.low %v2261_v7, %v2269_v47  ;;  %v2271_v58 = vcombine.high %v2261_v7, %v2269_v47  ;;  %v475_v34 = vpop.permute.xlu1 %474 }
  0xc7   : > { %7894 = vmatprep.subr.msk.bf16.mxu0 %vm359_vm0, %v7581_v35  ;;  %v2176_v42 = vrot.slane %v2168_v38, %v8431_v48  ;;  %v2183_v40 = vrot.slane %v2169_v39, %v8431_v48  ;;  %v2202_v21 = vcombine.low %v2193_v9, %v2201_v52  ;;  %v2203_v30 = vcombine.high %v2193_v9, %v2201_v52  ;;  %v8752_v9 = vld [vmem:[%s8674_s28 + $0x1c] sm:$0xf] }
  0xc8   : > { %v2278_v41 = vrot.slane %v2270_v36, %v8431_v48  ;;  %v2285_v55 = vrot.slane %v2271_v58, %v8431_v48  ;;  %v2638_v60 = vcombine.low %v2244_v3, %v2251_v46  ;;  %v7562_v16 = vcombine.high %v2244_v3, %v2251_v46  ;;  %2808 = vrot.lane.b32.xlu0 %v8738_v15, %s8231_s21  ;;  %v473_v3 = vpop.permute.xlu0 %472 }
  0xc9   : > { %v2210_v7 = vrot.slane %v2202_v21, %v8431_v48  ;;  %v2217_v33 = vrot.slane %v2203_v30, %v8431_v48  ;;  %v2588_v25 = vcombine.low %v2176_v42, %v2183_v40  ;;  %v7560_v50 = vcombine.high %v2176_v42, %v2183_v40  ;;  %v8767_v40 = vld [vmem:[%s8674_s28 + $0x18] sm:$0xf]  ;;  %2814 = vrot.lane.b32.xlu1 %v8752_v9, %s8231_s21 }
  0xca   : > { %v8755_v47 = vrot.slane %v2638_v60, %v8427_v45  ;;  %v8758_v38 = vrot.slane %v7562_v16, %v8427_v45  ;;  %v2663_v39 = vcombine.low %v2278_v41, %v2285_v55  ;;  %v7563_v52 = vcombine.high %v2278_v41, %v2285_v55 }
  0xcb   : > { %v8761_v46 = vrot.slane %v2588_v25, %v8427_v45  ;;  %v8764_v36 = vrot.slane %v7560_v50, %v8427_v45  ;;  %v2613_v58 = vcombine.low %v2210_v7, %v2217_v33  ;;  %v7561_v42 = vcombine.high %v2210_v7, %v2217_v33 }
  0xcc   : > { %v2654_v21 = vcombine.low %v8755_v47, %v8758_v38  ;;  %v8772_v30 = vrot.slane %v2663_v39, %v8427_v45  ;;  %v4029_v60 = vsel %vm359_vm0, %v7581_v35, 0  ;;  %v2727_v41 = vshrl.u32 %v8693_v49, 16  ;;  %2812 = vrot.lane.b32.xlu0 %v8767_v40, %s8231_s21 }
  0xcd   : > { %v8779_v55 = vrot.slane %v7563_v52, %v8427_v45  ;;  %v2604_v16 = vcombine.low %v8761_v46, %v8764_v36  ;;  %v8784_v7 = vrot.slane %v2613_v58, %v8427_v45  ;;  %7768 = vmatpush3.bf16.xpose.msra.mxu0 %v4029_v60  ;;  %v2717_v33 = vpack.i.b16 %v2716_v8, %v2715_v10 }
  0xce   : > { %v2728_v25 = vshrl.u32 %v8702_v0, 16  ;;  %v564_v35 = vcombine.low %v8356_v11, %v8721_v63  ;;  %v565_v50 = vcombine.high %v8356_v11, %v8721_v63  ;;  %v496_v39 = vcombine.low %v8358_v12, %v8725_v54  ;;  %v8808_v63 = vpop.permute.xlu1 %430  ;;  %2818 = vrot.lane.b32.xlu1 %v8682_v37, %s8230_s20 }
  0xcf   : > { %v8796_v52 = vrot.slane %v7561_v42, %v8427_v45  ;;  %v497_v10 = vcombine.high %v8358_v12, %v8725_v54  ;;  %v8804_v8 = vrot.slane %v2504_v56, %v8431_v48  ;;  %v2529_v11 = vcombine.low %v8647_v59, %v8651_v26  ;;  %v8818_v54 = vpop.permute.xlu0 %428 }
  0xd0   : > { %v2729_v58 = vpack.i.b16 %v2728_v25, %v2727_v41  ;;  %v572_v60 = vrot.slane %v564_v35, %v8427_v45  ;;  %v579_v42 = vrot.slane %v565_v50, %v8427_v45  ;;  %v8816_v12 = vrot.slane %v2554_v62, %v8431_v48  ;;  %2816 = vrot.lane.b32.xlu0 %v8685_v13, %s8230_s20 }
  0xd1   : > { %v504_v24 = vrot.slane %v496_v39, %v8427_v45  ;;  %v8824_v32 = vrot.slane %v2529_v11, %v8431_v48  ;;  %v2579_v56 = vcombine.low %v8626_v61, %v8637_v44  ;;  %v580_v59 = vcombine.low %v8657_v2, %v475_v34 }
  0xd2   : > { %v7589_v26 = vcombine.low %v2717_v33, %v2729_v58  ;;  %v581_v53 = vcombine.high %v8657_v2, %v475_v34  ;;  %v512_v4 = vcombine.low %v8668_v6, %v473_v3  ;;  %v513_v62 = vcombine.high %v8668_v6, %v473_v3  ;;  %2822 = vrot.lane.b32.xlu1 %v8708_v29, %s8230_s20 }
  0xd3   : > { %v8835_v41 = vrot.slane %v497_v10, %v8427_v45  ;;  %v8838_v25 = vrot.slane %v2579_v56, %v8431_v48  ;;  %v2738_v61 = vpack.i.b16 %v8824_v32, %v8804_v8  ;;  %v588_v44 = vrot.slane %v580_v59, %v8427_v45  ;;  %v455_v10 = vpop.permute.xlu1 %454 }
  0xd4   : > { %7898 = vmatprep.subr.msk.bf16.mxu1 %vm359_vm0, %v7589_v26  ;;  %v4130_v2 = vsel %vm359_vm0, %v7589_v26, 0  ;;  %v595_v6 = vrot.slane %v581_v53, %v8427_v45  ;;  %v520_v34 = vrot.slane %v512_v4, %v8427_v45  ;;  %v8848_v3 = vrot.slane %v513_v62, %v8427_v45  ;;  %v453_v26 = vpop.permute.xlu0 %452  ;;  %2820 = vrot.lane.b32.xlu0 %v8714_v31, %s8230_s20 }
  0xd5   : > { %7784 = vmatpush3.bf16.xpose.msra.mxu1 %v4130_v2  ;;  %v2750_v33 = vpack.i.b16 %v8838_v25, %v8816_v12  ;;  %v596_v35 = vcombine.low %v572_v60, %v588_v44  ;;  %v597_v50 = vcombine.high %v572_v60, %v588_v44  ;;  %v2740_v39 = vshrl.u32 %v8824_v32, 16 }
  0xd6   : > { %v612_v11 = vcombine.low %v579_v42, %v595_v6  ;;  %v613_v58 = vcombine.high %v579_v42, %v595_v6  ;;  %v528_v56 = vcombine.low %v504_v24, %v520_v34  ;;  %v529_v59 = vcombine.high %v504_v24, %v520_v34  ;;  %2826 = vrot.lane.b32.xlu1 %v8733_v20, %s8230_s20 }
  0xd7   : > { %v7582_v53 = vcombine.low %v2738_v61, %v2750_v33  ;;  %v8858_v4 = vrot.slane %v596_v35, %v8431_v48  ;;  %v544_v62 = vcombine.low %v8835_v41, %v8848_v3  ;;  %v2739_v60 = vshrl.u32 %v8804_v8, 16 }
  0xd8   : > { %v8864_v44 = vrot.slane %v597_v50, %v8431_v48  ;;  %v8867_v42 = vrot.slane %v612_v11, %v8431_v48  ;;  %v8870_v24 = vrot.slane %v613_v58, %v8431_v48  ;;  %v8873_v2 = vrot.slane %v528_v56, %v8431_v48  ;;  %2824 = vrot.lane.b32.xlu0 %v8738_v15, %s8230_s20  ;;  %v477_v14 = vpop.permute.xlu0 %476 }
  0xd9   : > { %7895 = vmatprep.subr.msk.bf16.mxu0 %vm359_vm0, %v7582_v53  ;;  %v4032_v61 = vsel %vm359_vm0, %v7582_v53, 0  ;;  %v8880_v6 = vrot.slane %v529_v59, %v8431_v48  ;;  %v545_v34 = vcombine.high %v8835_v41, %v8848_v3  ;;  %v2741_v33 = vpack.i.b16 %v2740_v39, %v2739_v60  ;;  %v479_v60 = vpop.permute.xlu1 %478 }
  0xda   : > { %7770 = vmatpush3.bf16.xpose.msra.mxu0 %v4032_v61  ;;  %v2751_v35 = vshrl.u32 %v8816_v12, 16  ;;  %v2752_v50 = vshrl.u32 %v8838_v25, 16  ;;  %v700_v11 = vcombine.low %v8375_v17, %v455_v10  ;;  %v701_v58 = vcombine.high %v8375_v17, %v455_v10  ;;  %2830 = vrot.lane.b32.xlu1 %v8752_v9, %s8230_s20 }
  0xdb   : > { %v8891_v56 = vrot.slane %v544_v62, %v8431_v48  ;;  %v632_v59 = vcombine.low %v8377_v18, %v453_v26  ;;  %v633_v53 = vcombine.high %v8377_v18, %v453_v26  ;;  %v8899_v39 = vrot.slane %v2604_v16, %v8431_v48 }
  0xdc   : > { %v2753_v61 = vpack.i.b16 %v2752_v50, %v2751_v35  ;;  %v708_v17 = vrot.slane %v700_v11, %v8427_v45  ;;  %v715_v10 = vrot.slane %v701_v58, %v8427_v45  ;;  %v2629_v62 = vcombine.low %v8784_v7, %v8796_v52  ;;  %2828 = vrot.lane.b32.xlu0 %v8767_v40, %s8230_s20 }
  0xdd   : > { %v640_v18 = vrot.slane %v632_v59, %v8427_v45  ;;  %v647_v26 = vrot.slane %v633_v53, %v8427_v45  ;;  %v8913_v46 = vrot.slane %v2654_v21, %v8431_v48  ;;  %v2679_v36 = vcombine.low %v8772_v30, %v8779_v55 }
  0xde   : > { %v7590_v16 = vcombine.low %v2741_v33, %v2753_v61  ;;  %v8918_v7 = vrot.slane %v2629_v62, %v8431_v48  ;;  %v716_v52 = vcombine.low %v8808_v63, %v479_v60  ;;  %v717_v35 = vcombine.high %v8808_v63, %v479_v60  ;;  %2834 = vrot.lane.b32.xlu1 %v8682_v37, %s8232_s22 }
  0xdf   : > { %v8925_v50 = vrot.slane %v2679_v36, %v8431_v48  ;;  %v648_v47 = vcombine.low %v8818_v54, %v477_v14  ;;  %v649_v38 = vcombine.high %v8818_v54, %v477_v14  ;;  %v2763_v21 = vshrl.u32 %v8899_v39, 16 }
  0xe0   : > { %7899 = vmatprep.subr.msk.bf16.mxu1 %vm359_vm0, %v7590_v16  ;;  %v4133_v30 = vsel %vm359_vm0, %v7590_v16, 0  ;;  %v2762_v55 = vpack.i.b16 %v8918_v7, %v8899_v39  ;;  %v724_v63 = vrot.slane %v716_v52, %v8427_v45  ;;  %v731_v33 = vrot.slane %v717_v35, %v8427_v45  ;;  %2832 = vrot.lane.b32.xlu0 %v8685_v13, %s8232_s22 }
  0xe1   : > { %7786 = vmatpush3.bf16.xpose.msra.mxu1 %v4133_v30  ;;  %v2774_v14 = vpack.i.b16 %v8925_v50, %v8913_v46  ;;  %v656_v54 = vrot.slane %v648_v47, %v8427_v45  ;;  %v663_v11 = vrot.slane %v649_v38, %v8427_v45  ;;  %v2764_v58 = vshrl.u32 %v8918_v7, 16 }
  0xe2   : > { %v732_v59 = vcombine.low %v708_v17, %v724_v63  ;;  %v733_v53 = vcombine.high %v708_v17, %v724_v63  ;;  %v748_v60 = vcombine.low %v715_v10, %v731_v33  ;;  %v749_v61 = vcombine.high %v715_v10, %v731_v33  ;;  %2838 = vrot.lane.b32.xlu1 %v8708_v29, %s8232_s22 }
  0xe3   : > { %v7583_v62 = vcombine.low %v2762_v55, %v2774_v14  ;;  %v664_v36 = vcombine.low %v640_v18, %v656_v54  ;;  %v665_v37 = vcombine.high %v640_v18, %v656_v54  ;;  %v680_v16 = vcombine.low %v647_v26, %v663_v11  ;;  %v8955_v14 = vpop.permute.xlu1 %434 }
  0xe4   : > { %v740_v52 = vrot.slane %v732_v59, %v8431_v48  ;;  %v747_v35 = vrot.slane %v733_v53, %v8431_v48  ;;  %v756_v47 = vrot.slane %v748_v60, %v8431_v48  ;;  %v763_v38 = vrot.slane %v749_v61, %v8431_v48  ;;  %2836 = vrot.lane.b32.xlu0 %v8714_v31, %s8232_s22 }
  0xe5   : > { %7896 = vmatprep.subr.msk.bf16.mxu0 %vm359_vm0, %v7583_v62  ;;  %v4035_v17 = vsel %vm359_vm0, %v7583_v62, 0  ;;  %v672_v13 = vrot.slane %v664_v36, %v8431_v48  ;;  %v679_v10 = vrot.slane %v665_v37, %v8431_v48  ;;  %v681_v18 = vcombine.high %v647_v26, %v663_v11  ;;  %v8973_v62 = vpop.permute.xlu0 %432 }
  0xe6   : > { %7772 = vmatpush3.bf16.xpose.msra.mxu0 %v4035_v17  ;;  %v1244_v30 = vcombine.low %v740_v52, %v747_v35  ;;  %v7538_v55 = vcombine.high %v740_v52, %v747_v35  ;;  %v1260_v63 = vcombine.low %v756_v47, %v763_v38  ;;  %v7539_v33 = vcombine.high %v756_v47, %v763_v38 }
  0xe7   : > { %v688_v54 = vrot.slane %v680_v16, %v8431_v48  ;;  %v695_v29 = vrot.slane %v681_v18, %v8431_v48  ;;  %v1176_v59 = vcombine.low %v672_v13, %v679_v10  ;;  %v7536_v53 = vcombine.high %v672_v13, %v679_v10  ;;  %2842 = vrot.lane.b32.xlu1 %v8733_v20, %s8232_s22  ;;  %v459_v18 = vpop.permute.xlu1 %458 }
  0xe8   : > { %v8962_v60 = vrot.slane %v1244_v30, %v8427_v45  ;;  %v8965_v26 = vrot.slane %v7538_v55, %v8427_v45  ;;  %v8968_v11 = vrot.slane %v1260_v63, %v8427_v45  ;;  %v8971_v61 = vrot.slane %v7539_v33, %v8427_v45  ;;  %2840 = vrot.lane.b32.xlu0 %v8738_v15, %s8232_s22 }
  0xe9   : > { %v8978_v36 = vrot.slane %v1176_v59, %v8427_v45  ;;  %v8981_v31 = vrot.slane %v7536_v53, %v8427_v45  ;;  %v1192_v37 = vcombine.low %v688_v54, %v695_v29  ;;  %v7537_v16 = vcombine.high %v688_v54, %v695_v29  ;;  %v457_v29 = vpop.permute.xlu0 %456 }
  0xea   : > { %v559_v52 = vrot.slane %v545_v34, %v8431_v48  ;;  %v1277_v35 = vcombine.high %v8962_v60, %v8965_v26  ;;  %v2765_v47 = vpack.i.b16 %v2764_v58, %v2763_v21  ;;  %v2775_v38 = vshrl.u32 %v8913_v46, 16 }
  0xeb   : > { %v8991_v20 = vrot.slane %v1192_v37, %v8427_v45  ;;  %v8994_v17 = vrot.slane %v7537_v16, %v8427_v45  ;;  %v1209_v13 = vcombine.high %v8978_v36, %v8981_v31  ;;  %v2776_v10 = vshrl.u32 %v8925_v50, 16  ;;  %2846 = vrot.lane.b32.xlu1 %v8752_v9, %s8232_s22 }
  0xec   : > { %v9002_v41 = vrot.slane %v1277_v35, %v8431_v48  ;;  %v11370_v34 = vmov 0   ;;  %v836_v37 = vcombine.low %v8392_v22, %v459_v18  ;;  %2844 = vrot.lane.b32.xlu0 %v8767_v40, %s8232_s22 }
  0xed   : > { %v2312_v21 = vcombine.high %v8565_v5, %v11370_v34  ;;  %v2337_v58 = vcombine.high %v8582_v19, %v11370_v34  ;;  %v9013_v30 = vrot.slane %v1209_v13, %v8431_v48  ;;  %v1225_v15 = vcombine.high %v8991_v20, %v8994_v17 }
  0xee   : > { %11369 = vst [vmem:[#allocation7_spill] sm:$0xff] %v9002_v41  ;;  %v2777_v55 = vpack.i.b16 %v2776_v10, %v2775_v38  ;;  %v2362_v63 = vcombine.high %v8585_v43, %v11370_v34  ;;  %v2387_v5 = vcombine.high %v8589_v1, %v11370_v34  ;;  %v837_v38 = vcombine.high %v8392_v22, %v459_v18 }
  0xef   : > { %11371 = vst [vmem:[#allocation8_spill] sm:$0xff] %v9013_v30  ;;  %v2696_v33 = vpack.i.b16 %v2337_v58, %v2312_v21  ;;  %v2697_v54 = vshrl.u32 %v2312_v21, 16  ;;  %v2698_v19 = vshrl.u32 %v2337_v58, 16  ;;  %v9022_v59 = vrot.slane %v1225_v15, %v8431_v48 }
  0xf0   : > { %v7591_v9 = vcombine.low %v2765_v47, %v2777_v55  ;;  %v2709_v53 = vshrl.u32 %v2362_v63, 16  ;;  %v2708_v16 = vpack.i.b16 %v2387_v5, %v2362_v63  ;;  %v2710_v43 = vshrl.u32 %v2387_v5, 16  ;;  %v483_v63 = vpop.permute.xlu1 %482 }
  0xf1   : > { %11372 = vst [vmem:[#allocation9_spill] sm:$0xff] %v9022_v59  ;;  %v2699_v35 = vpack.i.b16 %v2698_v19, %v2697_v54  ;;  %v844_v13 = vrot.slane %v836_v37, %v8427_v45  ;;  %v768_v10 = vcombine.low %v8394_v23, %v457_v29  ;;  %v769_v47 = vcombine.high %v8394_v23, %v457_v29 }
  0xf2   : > { %7900 = vmatprep.subr.msk.bf16.mxu1 %vm359_vm0, %v7591_v9  ;;  %v4136_v1 = vsel %vm359_vm0, %v7591_v9, 0  ;;  %v9033_v21 = vcombine.low %v2696_v33, %v2708_v16  ;;  %v2711_v58 = vpack.i.b16 %v2710_v43, %v2709_v53  ;;  %v851_v40 = vrot.slane %v837_v38, %v8427_v45  ;;  %v481_v16 = vpop.permute.xlu0 %480 }
  0xf3   : > { %7788 = vmatpush3.bf16.xpose.msra.mxu1 %v4136_v1  ;;  %v1040_v15 = vcombine.low %v8873_v2, %v8880_v6  ;;  %v9039_v22 = vrot.slane %v768_v10, %v8427_v45  ;;  %v9042_v18 = vrot.slane %v769_v47, %v8427_v45  ;;  %v7532_v55 = vcombine.high %v8873_v2, %v8880_v6 }
  0xf4   : > { %v1056_v23 = vcombine.low %v8891_v56, %v559_v52  ;;  %7901 = vmatprep.subr.msk.bf16.mxu0 %vm359_vm0, %v9033_v21  ;;  %v9049_v5 = vcombine.low %v2699_v35, %v2711_v58  ;;  %v7533_v54 = vcombine.high %v8891_v56, %v559_v52  ;;  %v1108_v19 = vcombine.low %v8858_v4, %v8864_v44 }
  0xf5   : > { %v9052_v33 = vrot.slane %v1040_v15, %v8427_v45  ;;  %v9058_v29 = vrot.slane %v7532_v55, %v8427_v45  ;;  %v7534_v6 = vcombine.high %v8858_v4, %v8864_v44  ;;  %v1124_v9 = vcombine.low %v8867_v42, %v8870_v24 }
  0xf6   : > { %v9061_v2 = vrot.slane %v1056_v23, %v8427_v45  ;;  %7905 = vmatprep.subr.msk.bf16.mxu1 %vm359_vm0, %v9049_v5  ;;  %v9070_v56 = vrot.slane %v7533_v54, %v8427_v45  ;;  %v9073_v52 = vrot.slane %v1108_v19, %v8427_v45  ;;  %v7535_v53 = vcombine.high %v8867_v42, %v8870_v24  ;;  %v9113_v58 = vpop.permute.xlu0 %436 }
  0xf7   : > { %v852_v37 = vcombine.low %v8955_v14, %v483_v63  ;;  %v1072_v4 = vcombine.low %v9052_v33, %v9058_v29  ;;  %v9083_v35 = vrot.slane %v7534_v6, %v8427_v45  ;;  %v9086_v43 = vrot.slane %v1124_v9, %v8427_v45 }
  0xf8   : > { %v1088_v38 = vcombine.low %v9061_v2, %v9070_v56  ;;  %v9093_v24 = vrot.slane %v7535_v53, %v8427_v45  ;;  %v853_v1 = vcombine.high %v8955_v14, %v483_v63  ;;  %v9108_v63 = vpop.permute.xlu1 %438  ;;  %v784_v53 = vcombine.low %v8973_v62, %v481_v16 }
  0xf9   : > { %v1080_v10 = vrot.slane %v1072_v4, %v8431_v48  ;;  %v1140_v47 = vcombine.low %v9073_v52, %v9083_v35  ;;  %v860_v15 = vrot.slane %v852_v37, %v8427_v45  ;;  %v785_v44 = vcombine.high %v8973_v62, %v481_v16 }
  0xfa   : > { %11373 = vst [vmem:[#allocation10_spill] sm:$0xff] %v9093_v24  ;;  %v1096_v55 = vrot.slane %v1088_v38, %v8431_v48  ;;  %v1156_v23 = vcombine.low %v9086_v43, %v9093_v24  ;;  %v867_v14 = vrot.slane %v853_v1, %v8427_v45 }
  0xfb   : > { %v1148_v19 = vrot.slane %v1140_v47, %v8431_v48  ;;  %v868_v6 = vcombine.low %v844_v13, %v860_v15  ;;  %v869_v9 = vcombine.high %v844_v13, %v860_v15  ;;  %v792_v15 = vrot.slane %v784_v53, %v8427_v45 }
  0xfc   : > { %v1104_v4 = vcombine.low %v1080_v10, %v1096_v55  ;;  %v1164_v37 = vrot.slane %v1156_v23, %v8431_v48  ;;  %v1105_v38 = vcombine.high %v1080_v10, %v1096_v55  ;;  %v884_v3 = vcombine.low %v851_v40, %v867_v14 }
  0xfd   : > { %v876_v42 = vrot.slane %v868_v6, %v8431_v48  ;;  %v883_v54 = vrot.slane %v869_v9, %v8431_v48  ;;  %v885_v1 = vcombine.high %v851_v40, %v867_v14  ;;  %v799_v55 = vrot.slane %v785_v44, %v8427_v45  ;;  %v463_v14 = vpop.permute.xlu1 %462 }
  0xfe   : > { %v1172_v41 = vcombine.low %v1148_v19, %v1164_v37  ;;  %v1173_v47 = vcombine.high %v1148_v19, %v1164_v37  ;;  %v892_v13 = vrot.slane %v884_v3, %v8431_v48  ;;  %v800_v6 = vcombine.low %v9039_v22, %v792_v15 }
  0xff   : > { %v899_v30 = vrot.slane %v885_v1, %v8431_v48  ;;  %v1380_v23 = vcombine.low %v876_v42, %v883_v54  ;;  %v7542_v10 = vcombine.high %v876_v42, %v883_v54  ;;  %v801_v40 = vcombine.high %v9039_v22, %v792_v15  ;;  %v461_v22 = vpop.permute.xlu0 %460 }
 0x100   : > { %v3984_v59 = vpack.c.bf16 %v1172_v41, %v1104_v4  ;;  %v3988_v24 = vpack.c.bf16 %v1173_v47, %v1105_v38  ;;  %v808_v41 = vrot.slane %v800_v6, %v8431_v48  ;;  %v816_v42 = vcombine.low %v9042_v18, %v799_v55 }
 0x101   : > { %v9125_v62 = vrot.slane %v1380_v23, %v8427_v45  ;;  %v9128_v3 = vrot.slane %v7542_v10, %v8427_v45  ;;  %v1396_v16 = vcombine.low %v892_v13, %v899_v30  ;;  %v7543_v19 = vcombine.high %v892_v13, %v899_v30 }
 0x102   : > { %7773 = vmatprep.mubr.msk.bf16.mxu0 %vm359_vm0, %v3984_v59  ;;  %7789 = vmatprep.mubr.msk.bf16.mxu1 %vm359_vm0, %v3988_v24  ;;  %v815_v44 = vrot.slane %v801_v40, %v8431_v48  ;;  %v817_v9 = vcombine.high %v9042_v18, %v799_v55  ;;  %v972_v53 = vcombine.low %v8409_v27, %v463_v14  ;;  %v4228_v30 = vsel %vm359_vm0, %v9033_v21, 0 }
 0x103   : > { %v9136_v54 = vrot.slane %v1396_v16, %v8427_v45  ;;  %v824_v59 = vrot.slane %v816_v42, %v8431_v48  ;;  %v973_v37 = vcombine.high %v8409_v27, %v463_v14  ;;  %v9145_v38 = vrot.slane %v7543_v19, %v8427_v45  ;;  %v487_v19 = vpop.permute.xlu1 %486 }
 0x104   : > { %v1312_v24 = vcombine.low %v808_v41, %v815_v44  ;;  %v7540_v4 = vcombine.high %v808_v41, %v815_v44  ;;  %v831_v1 = vrot.slane %v817_v9, %v8431_v48  ;;  %v904_v47 = vcombine.low %v8411_v28, %v461_v22 }
 0x105   : > { %v905_v18 = vcombine.high %v8411_v28, %v461_v22  ;;  %v980_v15 = vrot.slane %v972_v53, %v8427_v45  ;;  %v1208_v27 = vcombine.low %v8978_v36, %v8981_v31  ;;  %v987_v55 = vrot.slane %v973_v37, %v8427_v45  ;;  %v485_v37 = vpop.permute.xlu0 %484 }
 0x106   : > { %v9151_v13 = vrot.slane %v1312_v24, %v8427_v45  ;;  %v9154_v21 = vrot.slane %v7540_v4, %v8427_v45  ;;  %v1328_v23 = vcombine.low %v824_v59, %v831_v1  ;;  %v7541_v10 = vcombine.high %v824_v59, %v831_v1 }
 0x107   : > { %v9161_v6 = vrot.slane %v904_v47, %v8427_v45  ;;  %v1216_v28 = vrot.slane %v1208_v27, %v8431_v48  ;;  %v1224_v40 = vcombine.low %v8991_v20, %v8994_v17  ;;  %v1276_v14 = vcombine.low %v8962_v60, %v8965_v26 }
 0x108   : > { %v1292_v16 = vcombine.low %v8968_v11, %v8971_v61  ;;  %v9171_v36 = vrot.slane %v1328_v23, %v8427_v45  ;;  %v9174_v31 = vrot.slane %v7541_v10, %v8427_v45  ;;  %v919_v41 = vrot.slane %v905_v18, %v8427_v45 }
 0x109   : > { %v2412_v44 = vcombine.high %v8666_v51, %v11370_v34  ;;  %v1232_v20 = vrot.slane %v1224_v40, %v8431_v48  ;;  %v1284_v17 = vrot.slane %v1276_v14, %v8431_v48  ;;  %v2437_v26 = vcombine.high %v8699_v57, %v11370_v34 }
 0x10a   : > { %v1300_v60 = vrot.slane %v1292_v16, %v8431_v48  ;;  %v2462_v42 = vcombine.high %v8693_v49, %v11370_v34  ;;  %v2487_v22 = vcombine.high %v8702_v0, %v11370_v34  ;;  %v988_v53 = vcombine.low %v9108_v63, %v487_v19 }
 0x10b   : > { %v2721_v9 = vshrl.u32 %v2412_v44, 16  ;;  %v1240_v59 = vcombine.low %v1216_v28, %v1232_v20  ;;  %v1241_v24 = vcombine.high %v1216_v28, %v1232_v20  ;;  %v2720_v1 = vpack.i.b16 %v2437_v26, %v2412_v44 }
 0x10c   : > { %v1308_v51 = vcombine.low %v1284_v17, %v1300_v60  ;;  %v1309_v4 = vcombine.high %v1284_v17, %v1300_v60  ;;  %v2732_v47 = vpack.i.b16 %v2487_v22, %v2462_v42  ;;  %v2722_v18 = vshrl.u32 %v2437_v26, 16 }
 0x10d   : > { %v2733_v27 = vshrl.u32 %v2462_v42, 16  ;;  %v2734_v10 = vshrl.u32 %v2487_v22, 16  ;;  %v989_v49 = vcombine.high %v9108_v63, %v487_v19  ;;  %v996_v0 = vrot.slane %v988_v53, %v8427_v45 }
 0x10e   : > { %v3985_v23 = vpack.c.bf16 %v1308_v51, %v1240_v59  ;;  %v3989_v57 = vpack.c.bf16 %v1309_v4, %v1241_v24  ;;  %v7597_v40 = vcombine.low %v2720_v1, %v2732_v47  ;;  %v2723_v14 = vpack.i.b16 %v2722_v18, %v2721_v9 }
 0x10f   : > { %v920_v16 = vcombine.low %v9113_v58, %v485_v37  ;;  %v4329_v28 = vsel %vm359_vm0, %v9049_v5, 0  ;;  %v2735_v44 = vpack.i.b16 %v2734_v10, %v2733_v27  ;;  %v1003_v20 = vrot.slane %v989_v49, %v8427_v45 }
 0x110   : > { %7774 = vmatmul.mubr.msk.bf16.vlgmr.msra.gmra.mrb[0].mxu0 %vm359_vm0, %v3985_v23  ;;  %7790 = vmatmul.mubr.msk.bf16.vlgmr.msra.gmra.mrb[0].mxu1 %vm359_vm0, %v3989_v57  ;;  %v921_v17 = vcombine.high %v9113_v58, %v485_v37  ;;  %v1004_v63 = vcombine.low %v980_v15, %v996_v0  ;;  %v1005_v19 = vcombine.high %v980_v15, %v996_v0  ;;  %v4231_v26 = vsel %vm359_vm0, %v7597_v40, 0 }
 0x111   : > { %7798 = vmatpush3.bf16.xpose.msra.mxu0 %v4228_v30  ;;  %7814 = vmatpush3.bf16.xpose.msra.mxu1 %v4329_v28  ;;  %v928_v60 = vrot.slane %v920_v16, %v8427_v45  ;;  %v7605_v42 = vcombine.low %v2723_v14, %v2735_v44  ;;  %v1020_v22 = vcombine.low %v987_v55, %v1003_v20 }
 0x112   : > { %7902 = vmatprep.subr.msk.bf16.mxu0 %vm359_vm0, %v7597_v40  ;;  %v1021_v9 = vcombine.high %v987_v55, %v1003_v20  ;;  %v935_v5 = vrot.slane %v921_v17, %v8427_v45  ;;  %v1012_v53 = vrot.slane %v1004_v63, %v8431_v48  ;;  %v1019_v59 = vrot.slane %v1005_v19, %v8431_v48 }
 0x113   : > { %v936_v58 = vcombine.low %v9161_v6, %v928_v60  ;;  %v937_v30 = vcombine.high %v9161_v6, %v928_v60  ;;  %7906 = vmatprep.subr.msk.bf16.mxu1 %vm359_vm0, %v7605_v42  ;;  %v1028_v15 = vrot.slane %v1020_v22, %v8431_v48  ;;  %v4332_v20 = vsel %vm359_vm0, %v7605_v42, 0 }
 0x114   : > { %v1035_v51 = vrot.slane %v1021_v9, %v8431_v48  ;;  %v952_v24 = vcombine.low %v919_v41, %v935_v5  ;;  %v953_v4 = vcombine.high %v919_v41, %v935_v5  ;;  %v1516_v37 = vcombine.low %v1012_v53, %v1019_v59 }
 0x115   : > { %v7546_v55 = vcombine.high %v1012_v53, %v1019_v59  ;;  %v944_v1 = vrot.slane %v936_v58, %v8431_v48  ;;  %v951_v47 = vrot.slane %v937_v30, %v8431_v48  ;;  %v2512_v17 = vcombine.high %v8804_v8, %v11370_v34 }
 0x116   : > { %v1532_v18 = vcombine.low %v1028_v15, %v1035_v51  ;;  %v7547_v27 = vcombine.high %v1028_v15, %v1035_v51  ;;  %v960_v23 = vrot.slane %v952_v24, %v8431_v48  ;;  %v967_v6 = vrot.slane %v953_v4, %v8431_v48 }
 0x117   : > { %v9214_v57 = vrot.slane %v1516_v37, %v8427_v45  ;;  %v9217_v10 = vrot.slane %v7546_v55, %v8427_v45  ;;  %v1448_v49 = vcombine.low %v944_v1, %v951_v47  ;;  %v7544_v41 = vcombine.high %v944_v1, %v951_v47 }
 0x118   : > { %v9220_v40 = vrot.slane %v1532_v18, %v8427_v45  ;;  %v9223_v14 = vrot.slane %v7547_v27, %v8427_v45  ;;  %v1464_v0 = vcombine.low %v960_v23, %v967_v6  ;;  %v7545_v16 = vcombine.high %v960_v23, %v967_v6 }
 0x119   : > { %v9226_v28 = vrot.slane %v1448_v49, %v8427_v45  ;;  %v9229_v44 = vrot.slane %v7544_v41, %v8427_v45  ;;  %7800 = vmatpush3.bf16.xpose.msra.mxu0 %v4231_v26  ;;  %7816 = vmatpush3.bf16.xpose.msra.mxu1 %v4332_v20  ;;  %v2537_v60 = vcombine.high %v8824_v32, %v11370_v34  ;;  %v2745_v42 = vshrl.u32 %v2512_v17, 16 }
 0x11a   : > { %v9235_v63 = vrot.slane %v1464_v0, %v8427_v45  ;;  %v9238_v19 = vrot.slane %v7545_v16, %v8427_v45  ;;  %v2562_v22 = vcombine.high %v8816_v12, %v11370_v34  ;;  %v2587_v26 = vcombine.high %v8838_v25, %v11370_v34 }
 0x11b   : > { %v1344_v8 = vcombine.low %v9151_v13, %v9154_v21  ;;  %v1360_v9 = vcombine.low %v9171_v36, %v9174_v31  ;;  %v2744_v5 = vpack.i.b16 %v2537_v60, %v2512_v17  ;;  %v2746_v53 = vshrl.u32 %v2537_v60, 16 }
 0x11c   : > { %v2757_v59 = vshrl.u32 %v2562_v22, 16  ;;  %v1412_v58 = vcombine.low %v9125_v62, %v9128_v3  ;;  %v2756_v32 = vpack.i.b16 %v2587_v26, %v2562_v22  ;;  %v2758_v30 = vshrl.u32 %v2587_v26, 16 }
 0x11d   : > { %v1352_v12 = vrot.slane %v1344_v8, %v8431_v48  ;;  %v1368_v15 = vrot.slane %v1360_v9, %v8431_v48  ;;  %v2747_v25 = vpack.i.b16 %v2746_v53, %v2745_v42  ;;  %v1428_v24 = vcombine.low %v9136_v54, %v9145_v38 }
 0x11e   : > { %v1420_v51 = vrot.slane %v1412_v58, %v8431_v48  ;;  %v2612_v4 = vcombine.high %v8899_v39, %v11370_v34  ;;  %v7598_v37 = vcombine.low %v2744_v5, %v2756_v32  ;;  %v2759_v55 = vpack.i.b16 %v2758_v30, %v2757_v59 }
 0x11f   : > { %v1376_v1 = vcombine.low %v1352_v12, %v1368_v15  ;;  %v1377_v47 = vcombine.high %v1352_v12, %v1368_v15  ;;  %v1436_v18 = vrot.slane %v1428_v24, %v8431_v48  ;;  %v2637_v27 = vcombine.high %v8918_v7, %v11370_v34 }
 0x120   : > { %v2662_v23 = vcombine.high %v8913_v46, %v11370_v34  ;;  %v2687_v6 = vcombine.high %v8925_v50, %v11370_v34  ;;  %7903 = vmatprep.subr.msk.bf16.mxu0 %vm359_vm0, %v7598_v37  ;;  %v7606_v49 = vcombine.low %v2747_v25, %v2759_v55  ;;  %v4234_v39 = vsel %vm359_vm0, %v7598_v37, 0 }
 0x121   : > { %v2769_v41 = vshrl.u32 %v2612_v4, 16  ;;  %v1480_v0 = vcombine.low %v9226_v28, %v9229_v44  ;;  %v1444_v16 = vcombine.low %v1420_v51, %v1436_v18  ;;  %v1445_v20 = vcombine.high %v1420_v51, %v1436_v18  ;;  %7802 = vmatpush3.bf16.xpose.msra.mxu0 %v4234_v39 }
 0x122   : > { %v2768_v17 = vpack.i.b16 %v2637_v27, %v2612_v4  ;;  %v2780_v7 = vpack.i.b16 %v2687_v6, %v2662_v23  ;;  %7907 = vmatprep.subr.msk.bf16.mxu1 %vm359_vm0, %v7606_v49  ;;  %v4335_v46 = vsel %vm359_vm0, %v7606_v49, 0  ;;  %v2770_v60 = vshrl.u32 %v2637_v27, 16 }
 0x123   : > { %v2781_v50 = vshrl.u32 %v2662_v23, 16  ;;  %v2782_v22 = vshrl.u32 %v2687_v6, 16  ;;  %v3986_v26 = vpack.c.bf16 %v1444_v16, %v1376_v1  ;;  %v3990_v42 = vpack.c.bf16 %v1445_v20, %v1377_v47  ;;  %7818 = vmatpush3.bf16.xpose.msra.mxu1 %v4335_v46  ;;  %v11378_v1 = vld [vmem:[#allocation10_spill] sm:$0xff] }
 0x124   : > { %v7599_v8 = vcombine.low %v2768_v17, %v2780_v7  ;;  %v1488_v9 = vrot.slane %v1480_v0, %v8431_v48  ;;  %v2771_v5 = vpack.i.b16 %v2770_v60, %v2769_v41  ;;  %v1496_v59 = vcombine.low %v9235_v63, %v9238_v19  ;;  %v11380_v41 = vld [vmem:[#allocation9_spill] sm:$0xff]  ;;  %v11381_v0 = vld [vmem:[#allocation8_spill] sm:$0xff]  ;;  %v11382_v7 = vld [vmem:[#allocation7_spill] sm:$0xff] }
 0x125   : > { %v2783_v53 = vpack.i.b16 %v2782_v22, %v2781_v50  ;;  %v1548_v58 = vcombine.low %v9214_v57, %v9217_v10  ;;  %7777 = vmatprep.mubr.msk.bf16.mxu0 %vm359_vm0, %v3986_v26  ;;  %7793 = vmatprep.mubr.msk.bf16.mxu1 %vm359_vm0, %v3990_v42  ;;  %v1564_v32 = vcombine.low %v9220_v40, %v9223_v14 }
 0x126   : > { %v11374_v30 = vcombine.high %v9052_v33, %v9058_v29  ;;  %v11375_v15 = vcombine.high %v9061_v2, %v9070_v56  ;;  %7904 = vmatprep.subr.msk.bf16.mxu0 %vm359_vm0, %v7599_v8  ;;  %v1504_v24 = vrot.slane %v1496_v59, %v8431_v48  ;;  %v11376_v37 = vcombine.high %v9073_v52, %v9083_v35 }
 0x127   : > { %v7607_v51 = vcombine.low %v2771_v5, %v2783_v53  ;;  %v1556_v4 = vrot.slane %v1548_v58, %v8431_v48  ;;  %v11377_v33 = vcombine.high %v8968_v11, %v8971_v61  ;;  %v1572_v2 = vrot.slane %v1564_v32, %v8431_v48 }
 0x128   : > { %v1087_v12 = vrot.slane %v11374_v30, %v8431_v48  ;;  %v1103_v25 = vrot.slane %v11375_v15, %v8431_v48  ;;  %v1155_v55 = vrot.slane %v11376_v37, %v8431_v48  ;;  %v4237_v56 = vsel %vm359_vm0, %v7599_v8, 0 }
 0x129   : > { %v1307_v29 = vrot.slane %v11377_v33, %v8431_v48  ;;  %v11379_v47 = vcombine.high %v9086_v43, %v11378_v1  ;;  %7908 = vmatprep.subr.msk.bf16.mxu1 %vm359_vm0, %v7607_v51  ;;  %v1512_v27 = vcombine.low %v1488_v9, %v1504_v24  ;;  %v1513_v23 = vcombine.high %v1488_v9, %v1504_v24  ;;  %v2803_v24 = vpop.permute.xlu1 %2802 }
 0x12a   : > { %v1106_v52 = vcombine.low %v1087_v12, %v1103_v25  ;;  %v1107_v35 = vcombine.high %v1087_v12, %v1103_v25  ;;  %v1580_v6 = vcombine.low %v1556_v4, %v1572_v2  ;;  %v1581_v49 = vcombine.high %v1556_v4, %v1572_v2  ;;  %7804 = vmatpush3.bf16.xpose.msra.mxu0 %v4237_v56 }
 0x12b   : > { %v1171_v18 = vrot.slane %v11379_v47, %v8431_v48  ;;  %v4338_v39 = vsel %vm359_vm0, %v7607_v51, 0  ;;  %v1242_v16 = vcombine.low %v11381_v0, %v11380_v41  ;;  %v1345_v43 = vcombine.high %v9151_v13, %v9154_v21 }
 0x12c   : > { %v3987_v20 = vpack.c.bf16 %v1580_v6, %v1512_v27  ;;  %v3991_v17 = vpack.c.bf16 %v1581_v49, %v1513_v23  ;;  %7820 = vmatpush3.bf16.xpose.msra.mxu1 %v4338_v39  ;;  %v1310_v46 = vcombine.low %v11382_v7, %v1307_v29  ;;  %v1243_v60 = vcombine.high %v11381_v0, %v11380_v41  ;;  %v8198_v23 = vld [vmem:[%s8674_s28 + $0x4] sm:$0xf]  ;;  %v8199_v6 = vld [vmem:[%s8674_s28] sm:$0xf]  ;;  %v8200_v41 = vld [vmem:[%s8674_s28 + $0xc] sm:$0xf] }
 0x12d   : > { %v1174_v11 = vcombine.low %v1155_v55, %v1171_v18  ;;  %v1175_v61 = vcombine.high %v1155_v55, %v1171_v18  ;;  %v1359_v26 = vrot.slane %v1345_v43, %v8431_v48  ;;  %v1361_v42 = vcombine.high %v9171_v36, %v9174_v31  ;;  %v2807_v37 = vpop.permute.xlu1 %2806  ;;  %v8201_v43 = vld [vmem:[%s8674_s28 + $0x8] sm:$0xf] }
 0x12e   : > { %7778 = vmatmul.mubr.msk.bf16.gmra.mrb[4].mxu0 %vm359_vm0, %v3987_v20  ;;  %7794 = vmatmul.mubr.msk.bf16.gmra.mrb[4].mxu1 %vm359_vm0, %v3991_v17  ;;  %v1311_v13 = vcombine.high %v11382_v7, %v1307_v29  ;;  %v1413_v21 = vcombine.high %v9125_v62, %v9128_v3  ;;  %v1429_v8 = vcombine.high %v9136_v54, %v9145_v38  ;;  %v2851_v49 = vshrl.u32 %v8199_v6, 16 }
 0x12f   : > { %v3992_v50 = vpack.c.bf16 %v1174_v11, %v1106_v52  ;;  %v3996_v22 = vpack.c.bf16 %v1175_v61, %v1107_v35  ;;  %v1375_v9 = vrot.slane %v1361_v42, %v8431_v48  ;;  %v1481_v36 = vcombine.high %v9226_v28, %v9229_v44 }
 0x130   : > { %v1497_v31 = vcombine.high %v9235_v63, %v9238_v19  ;;  %v1427_v5 = vrot.slane %v1413_v21, %v8431_v48  ;;  %v1443_v53 = vrot.slane %v1429_v8, %v8431_v48  ;;  %v1549_v62 = vcombine.high %v9214_v57, %v9217_v10 }
 0x131   : > { %7805 = vmatprep.mubr.msk.bf16.mxu0 %vm359_vm0, %v3992_v50  ;;  %7821 = vmatprep.mubr.msk.bf16.mxu1 %vm359_vm0, %v3996_v22  ;;  %v1565_v3 = vcombine.high %v9220_v40, %v9223_v14  ;;  %v1378_v54 = vcombine.low %v1359_v26, %v1375_v9  ;;  %v1379_v38 = vcombine.high %v1359_v26, %v1375_v9  ;;  %v2801_v4 = vpop.permute.xlu0 %2800  ;;  %v2863_v52 = vshrl.u32 %v8198_v23, 16  ;;  %v8204_v9 = vld [vmem:[%s8674_s28 + $0x1c] sm:$0xf] }
 0x132   : > { %v1446_v59 = vcombine.low %v1427_v5, %v1443_v53  ;;  %v1447_v58 = vcombine.high %v1427_v5, %v1443_v53  ;;  %v3993_v32 = vpack.c.bf16 %v1310_v46, %v1242_v16  ;;  %v3997_v30 = vpack.c.bf16 %v1311_v13, %v1243_v60  ;;  %v8202_v60 = vld [vmem:[%s8674_s28 + $0x14] sm:$0xf]  ;;  %v8203_v13 = vld [vmem:[%s8674_s28 + $0x10] sm:$0xf]  ;;  %v8205_v5 = vld [vmem:[%s8674_s28 + $0x18] sm:$0xf] }
 0x133   : > { %v1495_v28 = vrot.slane %v1481_v36, %v8431_v48  ;;  %v1511_v44 = vrot.slane %v1497_v31, %v8431_v48  ;;  %v1563_v63 = vrot.slane %v1549_v62, %v8431_v48  ;;  %v1579_v19 = vrot.slane %v1565_v3, %v8431_v48 }
 0x134   : > { %v3994_v12 = vpack.c.bf16 %v1446_v59, %v1378_v54  ;;  %v3998_v15 = vpack.c.bf16 %v1447_v58, %v1379_v38  ;;  %v2864_v35 = vshrl.u32 %v2803_v24, 16  ;;  %v2852_v11 = vshrl.u32 %v2801_v4, 16 }
 0x135   : > { %v1514_v57 = vcombine.low %v1495_v28, %v1511_v44  ;;  %v1582_v10 = vcombine.low %v1563_v63, %v1579_v19  ;;  %v1515_v40 = vcombine.high %v1495_v28, %v1511_v44  ;;  %v1583_v14 = vcombine.high %v1563_v63, %v1579_v19  ;;  %v2805_v55 = vpop.permute.xlu0 %2804 }
 0x136   : > { %7806 = vmatmul.mubr.msk.bf16.vlgmr.msra.gmra.mrb[8].mxu0 %vm359_vm0, %v3993_v32  ;;  %7822 = vmatmul.mubr.msk.bf16.vlgmr.msra.gmra.mrb[8].mxu1 %vm359_vm0, %v3997_v30  ;;  %v2811_v33 = vpop.permute.xlu1 %2810  ;;  %v2887_v0 = vshrl.u32 %v8200_v41, 16  ;;  %v2888_v16 = vshrl.u32 %v2807_v37, 16  ;;  %v2875_v20 = vshrl.u32 %v8201_v43, 16  ;;  %v2876_v17 = vshrl.u32 %v2805_v55, 16 }
 0x137   : > { %7809 = vmatprep.mubr.msk.bf16.mxu0 %vm359_vm0, %v3994_v12  ;;  %7825 = vmatprep.mubr.msk.bf16.mxu1 %vm359_vm0, %v3998_v15  ;;  %v3995_v25 = vpack.c.bf16 %v1582_v10, %v1514_v57  ;;  %v3999_v51 = vpack.c.bf16 %v1583_v14, %v1515_v40  ;;  %v2862_v7 = vpack.i.b16 %v2803_v24, %v8198_v23  ;;  %v2911_v50 = vshrl.u32 %v8202_v60, 16 }
 0x138   : > { %v2865_v46 = vpack.i.b16 %v2864_v35, %v2863_v52  ;;  %v2912_v22 = vshrl.u32 %v2811_v33, 16  ;;  %v2850_v26 = vpack.i.b16 %v2801_v4, %v8199_v6  ;;  %v2853_v42 = vpack.i.b16 %v2852_v11, %v2851_v49 }
 0x139   : > { %v2899_v21 = vshrl.u32 %v8203_v13, 16  ;;  %v2935_v36 = vshrl.u32 %v8204_v9, 16  ;;  %v2923_v53 = vshrl.u32 %v8205_v5, 16  ;;  %v2886_v3 = vpack.i.b16 %v2807_v37, %v8200_v41 }
 0x13a   : > { %v2809_v29 = vpop.permute.xlu0 %2808  ;;  %v2889_v54 = vpack.i.b16 %v2888_v16, %v2887_v0  ;;  %v2874_v38 = vpack.i.b16 %v2805_v55, %v8201_v43  ;;  %v2877_v59 = vpack.i.b16 %v2876_v17, %v2875_v20  ;;  %v3019_v32 = vrot.slane %v2862_v7, %v8427_v45 }
 0x13b   : > { %v9348_v2 = vpop.permute.xlu1 %2814  ;;  %v2900_v8 = vshrl.u32 %v2809_v29, 16  ;;  %v2910_v30 = vpack.i.b16 %v2811_v33, %v8202_v60  ;;  %v2913_v28 = vpack.i.b16 %v2912_v22, %v2911_v50  ;;  %v2898_v44 = vpack.i.b16 %v2809_v29, %v8203_v13 }
 0x13c   : > { %v2936_v31 = vshrl.u32 %v9348_v2, 16  ;;  %v3053_v19 = vrot.slane %v2865_v46, %v8427_v45  ;;  %v2934_v15 = vpack.i.b16 %v9348_v2, %v8204_v9  ;;  %v2951_v10 = vrot.slane %v2850_v26, %v8427_v45 }
 0x13d   : > { %v2901_v12 = vpack.i.b16 %v2900_v8, %v2899_v21  ;;  %v2985_v40 = vrot.slane %v2853_v42, %v8427_v45  ;;  %v9388_v24 = vrot.slane %v2889_v54, %v8427_v45  ;;  %v9391_v4 = vrot.slane %v2874_v38, %v8427_v45 }
 0x13e   : > { %7810 = vmatmul.mubr.msk.bf16.gmra.mrb[12].mxu0 %vm359_vm0, %v3995_v25  ;;  %7826 = vmatmul.mubr.msk.bf16.gmra.mrb[12].mxu1 %vm359_vm0, %v3999_v51  ;;  %v9350_v56 = vpop.permute.xlu0 %2812  ;;  %v2937_v14 = vpack.i.b16 %v2936_v31, %v2935_v36  ;;  %v9385_v51 = vrot.slane %v2886_v3, %v8427_v45  ;;  %v9394_v37 = vrot.slane %v2877_v59, %v8427_v45 }
 0x13f   : > { %v2924_v62 = vshrl.u32 %v9350_v56, 16  ;;  %v2922_v57 = vpack.i.b16 %v9350_v56, %v8205_v5  ;;  %v9397_v55 = vrot.slane %v2910_v30, %v8427_v45  ;;  %v9400_v33 = vrot.slane %v2913_v28, %v8427_v45 }
 0x140   : > { %v9352_v1 = vpop.permute.xlu1 %2818  ;;  %v9403_v29 = vrot.slane %v2898_v44, %v8427_v45  ;;  %v9407_v56 = vrot.slane %v2901_v12, %v8427_v45  ;;  %v9410_v23 = vrot.slane %v2934_v15, %v8427_v45  ;;  %v9417_v49 = vrot.slane %v2937_v14, %v8427_v45 }
 0x141   : > { %v2925_v25 = vpack.i.b16 %v2924_v62, %v2923_v53  ;;  %v2869_v2 = vshrl.u32 %v9352_v1, 16  ;;  %v9413_v52 = vrot.slane %v2922_v57, %v8427_v45 }
 0x142   : > { %v9354_v47 = vpop.permute.xlu0 %2816 }
 0x143   : > { %v2857_v35 = vshrl.u32 %v9354_v47, 16  ;;  %v9420_v11 = vrot.slane %v2925_v25, %v8427_v45 }
 0x144   : > { %v9356_v18 = vpop.permute.xlu1 %2822 }
 0x145   : > { %v2893_v43 = vshrl.u32 %v9356_v18, 16 }
 0x146   : > { %v9358_v27 = vpop.permute.xlu0 %2820 }
 0x147   : > { %v2881_v20 = vshrl.u32 %v9358_v27, 16 }
 0x148   : > { %v9362_v61 = vpop.permute.xlu1 %2826 }
 0x149   : > { %v2917_v46 = vshrl.u32 %v9362_v61, 16 }
 0x14a   : > { %v9364_v39 = vpop.permute.xlu0 %2824 }
 0x14b   : > { %v2905_v60 = vshrl.u32 %v9364_v39, 16 }
 0x14c   : > { %v9374_v58 = vpop.permute.xlu1 %2830 }
 0x14d   : > { %v2941_v26 = vshrl.u32 %v9374_v58, 16 }
 0x14e   : > { %v9377_v63 = vpop.permute.xlu0 %2828 }
 0x150   : > { %v2835_v6 = vpop.permute.xlu1 %2834 }
 0x151   : > { %v2868_v41 = vpack.i.b16 %v2835_v6, %v9352_v1  ;;  %v2870_v0 = vshrl.u32 %v2835_v6, 16  ;;  %v2929_v1 = vshrl.u32 %v9377_v63, 16 }
 0x152   : > { %v2833_v16 = vpop.permute.xlu0 %2832 }
 0x153   : > { %v2856_v17 = vpack.i.b16 %v2833_v16, %v9354_v47  ;;  %v2858_v7 = vshrl.u32 %v2833_v16, 16  ;;  %v2871_v50 = vpack.i.b16 %v2870_v0, %v2869_v2  ;;  %v3027_v22 = vrot.slane %v2868_v41, %v8427_v45 }
 0x154   : > { %v2839_v21 = vpop.permute.xlu1 %2838 }
 0x155   : > { %v2859_v42 = vpack.i.b16 %v2858_v7, %v2857_v35  ;;  %v2959_v13 = vrot.slane %v2856_v17, %v8427_v45  ;;  %v3028_v8 = vcombine.low %v3019_v32, %v3027_v22  ;;  %v3029_v9 = vcombine.high %v3019_v32, %v3027_v22 }
 0x156   : > { %v3061_v47 = vrot.slane %v2871_v50, %v8427_v45  ;;  %v2892_v36 = vpack.i.b16 %v2839_v21, %v9356_v18  ;;  %v2837_v31 = vpop.permute.xlu0 %2836  ;;  %v2894_v3 = vshrl.u32 %v2839_v21, 16 }
 0x157   : > { %v2960_v5 = vcombine.low %v2951_v10, %v2959_v13  ;;  %v2961_v53 = vcombine.high %v2951_v10, %v2959_v13  ;;  %v2993_v62 = vrot.slane %v2859_v42, %v8427_v45  ;;  %v3036_v54 = vrot.slane %v3028_v8, %v8431_v48 }
 0x158   : > { %v3043_v38 = vrot.slane %v3029_v9, %v8431_v48  ;;  %v3062_v59 = vcombine.low %v3053_v19, %v3061_v47  ;;  %v3063_v30 = vcombine.high %v3053_v19, %v3061_v47  ;;  %v2895_v42 = vpack.i.b16 %v2894_v3, %v2893_v43 }
 0x159   : > { %v2968_v28 = vrot.slane %v2960_v5, %v8431_v48  ;;  %v2975_v32 = vrot.slane %v2961_v53, %v8431_v48  ;;  %v2994_v44 = vcombine.low %v2985_v40, %v2993_v62  ;;  %v2995_v12 = vcombine.high %v2985_v40, %v2993_v62  ;;  %v2843_v0 = vpop.permute.xlu1 %2842 }
 0x15a   : > { %v9440_v18 = vrot.slane %v3062_v59, %v8431_v48  ;;  %v9443_v15 = vrot.slane %v3063_v30, %v8431_v48  ;;  %v3538_v57 = vcombine.low %v3036_v54, %v3043_v38  ;;  %v7566_v10 = vcombine.high %v3036_v54, %v3043_v38  ;;  %v2841_v16 = vpop.permute.xlu0 %2840 }
 0x15b   : > { %v9446_v14 = vrot.slane %v2994_v44, %v8431_v48  ;;  %v9449_v25 = vrot.slane %v2995_v12, %v8431_v48  ;;  %v3488_v19 = vcombine.low %v2968_v28, %v2975_v32  ;;  %v7564_v2 = vcombine.high %v2968_v28, %v2975_v32 }
 0x15c   : > { %v9452_v35 = vrot.slane %v3538_v57, %v8427_v45  ;;  %v9455_v40 = vrot.slane %v7566_v10, %v8427_v45  ;;  %v3563_v6 = vcombine.low %v9440_v18, %v9443_v15  ;;  %v7567_v41 = vcombine.high %v9440_v18, %v9443_v15 }
 0x15d   : > { %v9462_v17 = vrot.slane %v3488_v19, %v8427_v45  ;;  %v9465_v7 = vrot.slane %v7564_v2, %v8427_v45  ;;  %v3513_v50 = vcombine.low %v9446_v14, %v9449_v25  ;;  %v7565_v22 = vcombine.high %v9446_v14, %v9449_v25 }
 0x15e   : > { %v3163_v13 = vrot.slane %v2892_v36, %v8427_v45  ;;  %v2880_v21 = vpack.i.b16 %v2837_v31, %v9358_v27  ;;  %v2882_v8 = vshrl.u32 %v2837_v31, 16  ;;  %v2916_v9 = vpack.i.b16 %v2843_v0, %v9362_v61 }
 0x15f   : > { %v2918_v47 = vshrl.u32 %v2843_v0, 16  ;;  %v2904_v5 = vpack.i.b16 %v2841_v16, %v9364_v39  ;;  %v2906_v53 = vshrl.u32 %v2841_v16, 16  ;;  %v3197_v38 = vrot.slane %v2895_v42, %v8427_v45 }
 0x160   : > { %v3164_v62 = vcombine.low %v9385_v51, %v3163_v13  ;;  %v3165_v54 = vcombine.high %v9385_v51, %v3163_v13  ;;  %v2883_v59 = vpack.i.b16 %v2882_v8, %v2881_v20  ;;  %v3095_v43 = vrot.slane %v2880_v21, %v8427_v45 }
 0x161   : > { %v2919_v3 = vpack.i.b16 %v2918_v47, %v2917_v46  ;;  %v3299_v36 = vrot.slane %v2916_v9, %v8427_v45  ;;  %v2907_v27 = vpack.i.b16 %v2906_v53, %v2905_v60  ;;  %v3198_v39 = vcombine.low %v9388_v24, %v3197_v38 }
 0x162   : > { %v3172_v31 = vrot.slane %v3164_v62, %v8431_v48  ;;  %v3179_v61 = vrot.slane %v3165_v54, %v8431_v48  ;;  %v3199_v30 = vcombine.high %v9388_v24, %v3197_v38  ;;  %v3096_v28 = vcombine.low %v9391_v4, %v3095_v43  ;;  %v2847_v62 = vpop.permute.xlu1 %2846 }
 0x163   : > { %v3097_v51 = vcombine.high %v9391_v4, %v3095_v43  ;;  %v3129_v20 = vrot.slane %v2883_v59, %v8427_v45  ;;  %v3300_v32 = vcombine.low %v9397_v55, %v3299_v36  ;;  %v9489_v46 = vrot.slane %v3198_v39, %v8431_v48 }
 0x164   : > { %v9492_v60 = vrot.slane %v3199_v30, %v8431_v48  ;;  %v3638_v44 = vcombine.low %v3172_v31, %v3179_v61  ;;  %v7570_v12 = vcombine.high %v3172_v31, %v3179_v61  ;;  %v3104_v57 = vrot.slane %v3096_v28, %v8431_v48 }
 0x165   : > { %v3111_v24 = vrot.slane %v3097_v51, %v8431_v48  ;;  %v3130_v10 = vcombine.low %v9394_v37, %v3129_v20  ;;  %v3131_v4 = vcombine.high %v9394_v37, %v3129_v20  ;;  %v3301_v8 = vcombine.high %v9397_v55, %v3299_v36 }
 0x166   : > { %v9499_v19 = vrot.slane %v3638_v44, %v8427_v45  ;;  %v9502_v2 = vrot.slane %v7570_v12, %v8427_v45  ;;  %v3663_v0 = vcombine.low %v9489_v46, %v9492_v60  ;;  %v7571_v16 = vcombine.high %v9489_v46, %v9492_v60 }
 0x167   : > { %v9509_v42 = vrot.slane %v3130_v10, %v8431_v48  ;;  %v9512_v13 = vrot.slane %v3131_v4, %v8431_v48  ;;  %v3588_v21 = vcombine.low %v3104_v57, %v3111_v24  ;;  %v7568_v37 = vcombine.high %v3104_v57, %v3111_v24 }
 0x168   : > { %v3308_v9 = vrot.slane %v3300_v32, %v8431_v48  ;;  %v3333_v47 = vrot.slane %v2919_v3, %v8427_v45  ;;  %v3231_v53 = vrot.slane %v2904_v5, %v8427_v45  ;;  %v3315_v55 = vrot.slane %v3301_v8, %v8431_v48 }
 0x169   : > { %v9519_v54 = vrot.slane %v3588_v21, %v8427_v45  ;;  %v9522_v38 = vrot.slane %v7568_v37, %v8427_v45  ;;  %v3613_v59 = vcombine.low %v9509_v42, %v9512_v13  ;;  %v7569_v43 = vcombine.high %v9509_v42, %v9512_v13 }
 0x16a   : > { %v3334_v36 = vcombine.low %v9400_v33, %v3333_v47  ;;  %v3335_v3 = vcombine.high %v9400_v33, %v3333_v47  ;;  %v3232_v5 = vcombine.low %v9403_v29, %v3231_v53  ;;  %v3233_v31 = vcombine.high %v9403_v29, %v3231_v53 }
 0x16b   : > { %v3265_v61 = vrot.slane %v2907_v27, %v8427_v45  ;;  %v2940_v39 = vpack.i.b16 %v2847_v62, %v9374_v58  ;;  %v2942_v30 = vshrl.u32 %v2847_v62, 16  ;;  %v3738_v20 = vcombine.low %v3308_v9, %v3315_v55  ;;  %v2845_v27 = vpop.permute.xlu0 %2844 }
 0x16c   : > { %v9536_v28 = vrot.slane %v3334_v36, %v8431_v48  ;;  %v9539_v51 = vrot.slane %v3335_v3, %v8431_v48  ;;  %v7574_v32 = vcombine.high %v3308_v9, %v3315_v55  ;;  %v3240_v44 = vrot.slane %v3232_v5, %v8431_v48 }
 0x16d   : > { %v3247_v33 = vrot.slane %v3233_v31, %v8431_v48  ;;  %v3266_v12 = vcombine.low %v9407_v56, %v3265_v61  ;;  %v3267_v29 = vcombine.high %v9407_v56, %v3265_v61  ;;  %v9546_v57 = vrot.slane %v3738_v20, %v8427_v45 }
 0x16e   : > { %v9549_v24 = vrot.slane %v7574_v32, %v8427_v45  ;;  %v3763_v10 = vcombine.low %v9536_v28, %v9539_v51  ;;  %v7575_v4 = vcombine.high %v9536_v28, %v9539_v51  ;;  %v2943_v9 = vpack.i.b16 %v2942_v30, %v2941_v26 }
 0x16f   : > { %v9556_v21 = vrot.slane %v3266_v12, %v8431_v48  ;;  %v9559_v37 = vrot.slane %v3267_v29, %v8431_v48  ;;  %v3688_v56 = vcombine.low %v3240_v44, %v3247_v33  ;;  %v7572_v8 = vcombine.high %v3240_v44, %v3247_v33 }
 0x170   : > { %v3435_v47 = vrot.slane %v2940_v39, %v8427_v45  ;;  %v2928_v53 = vpack.i.b16 %v2845_v27, %v9377_v63  ;;  %v2930_v62 = vshrl.u32 %v2845_v27, 16  ;;  %v3469_v31 = vrot.slane %v2943_v9, %v8427_v45 }
 0x171   : > { %v9566_v55 = vrot.slane %v3688_v56, %v8427_v45  ;;  %v9569_v36 = vrot.slane %v7572_v8, %v8427_v45  ;;  %v3713_v3 = vcombine.low %v9556_v21, %v9559_v37  ;;  %v7573_v5 = vcombine.high %v9556_v21, %v9559_v37 }
 0x172   : > { %v3436_v58 = vcombine.low %v9410_v23, %v3435_v47  ;;  %v3437_v26 = vcombine.high %v9410_v23, %v3435_v47  ;;  %v2931_v61 = vpack.i.b16 %v2930_v62, %v2929_v1  ;;  %v3367_v39 = vrot.slane %v2928_v53, %v8427_v45 }
 0x173   : > { %v3504_v30 = vcombine.low %v9462_v17, %v9465_v7  ;;  %v3520_v20 = vrot.slane %v3513_v50, %v8427_v45  ;;  %v3528_v23 = vrot.slane %v7565_v22, %v8427_v45  ;;  %v3470_v1 = vcombine.low %v9417_v49, %v3469_v31 }
 0x174   : > { %v3444_v32 = vrot.slane %v3436_v58, %v8431_v48  ;;  %v3451_v63 = vrot.slane %v3437_v26, %v8431_v48  ;;  %v3471_v44 = vcombine.high %v9417_v49, %v3469_v31  ;;  %v3368_v17 = vcombine.low %v9413_v52, %v3367_v39 }
 0x175   : > { %v3369_v7 = vcombine.high %v9413_v52, %v3367_v39  ;;  %v3401_v33 = vrot.slane %v2931_v61, %v8427_v45  ;;  %v9599_v50 = vrot.slane %v3504_v30, %v8431_v48  ;;  %v9602_v14 = vrot.slane %v3470_v1, %v8431_v48 }
 0x176   : > { %v9605_v25 = vrot.slane %v3471_v44, %v8431_v48  ;;  %v3838_v22 = vcombine.low %v3444_v32, %v3451_v63  ;;  %v7578_v12 = vcombine.high %v3444_v32, %v3451_v63  ;;  %v3376_v29 = vrot.slane %v3368_v17, %v8431_v48 }
 0x177   : > { %v3383_v49 = vrot.slane %v3369_v7, %v8431_v48  ;;  %v3402_v27 = vcombine.low %v9420_v11, %v3401_v33  ;;  %v3403_v52 = vcombine.high %v9420_v11, %v3401_v33  ;;  %v3529_v26 = vcombine.low %v3520_v20, %v3528_v23 }
 0x178   : > { %v9612_v56 = vrot.slane %v3838_v22, %v8427_v45  ;;  %v9615_v8 = vrot.slane %v7578_v12, %v8427_v45  ;;  %v3863_v9 = vcombine.low %v9602_v14, %v9605_v25  ;;  %v7579_v47 = vcombine.high %v9602_v14, %v9605_v25 }
 0x179   : > { %v9622_v53 = vrot.slane %v3402_v27, %v8431_v48  ;;  %v9625_v62 = vrot.slane %v3403_v52, %v8431_v48  ;;  %v3788_v58 = vcombine.low %v3376_v29, %v3383_v49  ;;  %v7576_v11 = vcombine.high %v3376_v29, %v3383_v49 }
 0x17a   : > { %v3554_v31 = vcombine.low %v9452_v35, %v9455_v40  ;;  %v3570_v61 = vrot.slane %v3563_v6, %v8427_v45  ;;  %v3578_v39 = vrot.slane %v7567_v41, %v8427_v45  ;;  %v9644_v40 = vrot.slane %v3529_v26, %v8431_v48 }
 0x17b   : > { %v3795_v30 = vrot.slane %v3788_v58, %v8427_v45  ;;  %v3803_v32 = vrot.slane %v7576_v11, %v8427_v45  ;;  %v3813_v20 = vcombine.low %v9622_v53, %v9625_v62  ;;  %v7577_v35 = vcombine.high %v9622_v53, %v9625_v62 }
 0x17c   : > { %v9647_v6 = vrot.slane %v3554_v31, %v8431_v48  ;;  %v3579_v23 = vcombine.low %v3570_v61, %v3578_v39  ;;  %v3891_v18 = vshrl.u32 %v9599_v50, 16  ;;  %v3604_v15 = vcombine.low %v9519_v54, %v9522_v38 }
 0x17d   : > { %v3620_v41 = vrot.slane %v3613_v59, %v8427_v45  ;;  %v3628_v63 = vrot.slane %v7569_v43, %v8427_v45  ;;  %v3654_v1 = vcombine.low %v9499_v19, %v9502_v2  ;;  %v3890_v17 = vpack.i.b16 %v9644_v40, %v9599_v50 }
 0x17e   : > { %v9663_v44 = vrot.slane %v3579_v23, %v8431_v48  ;;  %v3892_v54 = vshrl.u32 %v9644_v40, 16  ;;  %v3903_v38 = vshrl.u32 %v9647_v6, 16  ;;  %v9670_v59 = vrot.slane %v3604_v15, %v8431_v48 }
 0x17f   : > { %v3629_v7 = vcombine.low %v3620_v41, %v3628_v63  ;;  %v9673_v42 = vrot.slane %v3654_v1, %v8431_v48  ;;  %v3670_v19 = vrot.slane %v3663_v0, %v8427_v45  ;;  %v3678_v33 = vrot.slane %v7571_v16, %v8427_v45 }
 0x180   : > { %v3902_v2 = vpack.i.b16 %v9663_v44, %v9647_v6  ;;  %v3893_v13 = vpack.i.b16 %v3892_v54, %v3891_v18  ;;  %v3904_v43 = vshrl.u32 %v9663_v44, 16  ;;  %v3915_v12 = vshrl.u32 %v9670_v59, 16 }
 0x181   : > { %v9687_v22 = vrot.slane %v3629_v7, %v8431_v48  ;;  %v3927_v29 = vshrl.u32 %v9673_v42, 16  ;;  %v3704_v0 = vcombine.low %v9566_v55, %v9569_v36  ;;  %v3679_v52 = vcombine.low %v3670_v19, %v3678_v33 }
 0x182   : > { %v7612_v49 = vcombine.low %v3890_v17, %v3902_v2  ;;  %v3905_v27 = vpack.i.b16 %v3904_v43, %v3903_v38  ;;  %v3720_v53 = vrot.slane %v3713_v3, %v8427_v45  ;;  %v3728_v55 = vrot.slane %v7573_v5, %v8427_v45 }
 0x183   : > { %v3914_v46 = vpack.i.b16 %v9687_v22, %v9670_v59  ;;  %v3916_v60 = vshrl.u32 %v9687_v22, 16  ;;  %v9701_v16 = vrot.slane %v3704_v0, %v8431_v48  ;;  %v9708_v62 = vrot.slane %v3679_v52, %v8431_v48 }
 0x184   : > { %7829 = vmatprep.subr.bf16.mxu0 %v7612_v49  ;;  %v7620_v36 = vcombine.low %v3893_v13, %v3905_v27  ;;  %v3754_v3 = vcombine.low %v9546_v57, %v9549_v24  ;;  %v3770_v58 = vrot.slane %v3763_v10, %v8427_v45  ;;  %v3729_v26 = vcombine.low %v3720_v53, %v3728_v55 }
 0x185   : > { %7830 = vmatpush3.bf16.msra.mxu0 %v7612_v49  ;;  %v3917_v11 = vpack.i.b16 %v3916_v60, %v3915_v12  ;;  %v3778_v21 = vrot.slane %v7575_v4, %v8427_v45  ;;  %v3939_v37 = vshrl.u32 %v9701_v16, 16  ;;  %v3926_v5 = vpack.i.b16 %v9708_v62, %v9673_v42 }
 0x186   : > { %7845 = vmatprep.subr.bf16.mxu1 %v7620_v36  ;;  %v3928_v57 = vshrl.u32 %v9708_v62, 16  ;;  %v9725_v24 = vrot.slane %v3754_v3, %v8431_v48  ;;  %v3804_v10 = vcombine.low %v3795_v30, %v3803_v32  ;;  %v9728_v31 = vrot.slane %v3729_v26, %v8431_v48 }
 0x187   : > { %7846 = vmatpush3.bf16.msra.mxu1 %v7620_v36  ;;  %v3779_v61 = vcombine.low %v3770_v58, %v3778_v21  ;;  %v3820_v28 = vrot.slane %v3813_v20, %v8427_v45  ;;  %v3828_v51 = vrot.slane %v7577_v35, %v8427_v45  ;;  %v7613_v4 = vcombine.low %v3914_v46, %v3926_v5 }
 0x188   : > { %v3929_v39 = vpack.i.b16 %v3928_v57, %v3927_v29  ;;  %v3951_v23 = vshrl.u32 %v9725_v24, 16  ;;  %v9734_v18 = vrot.slane %v3804_v10, %v8431_v48  ;;  %v3938_v30 = vpack.i.b16 %v9728_v31, %v9701_v16 }
 0x189   : > { %v9737_v15 = vrot.slane %v3779_v61, %v8431_v48  ;;  %v3940_v32 = vshrl.u32 %v9728_v31, 16  ;;  %v3829_v41 = vcombine.low %v3820_v28, %v3828_v51  ;;  %7831 = vmatprep.subr.bf16.mxu0 %v7613_v4  ;;  %v3854_v35 = vcombine.low %v9612_v56, %v9615_v8 }
 0x18a   : > { %v7621_v20 = vcombine.low %v3917_v11, %v3929_v39  ;;  %v3870_v63 = vrot.slane %v3863_v9, %v8427_v45  ;;  %v3878_v1 = vrot.slane %v7579_v47, %v8427_v45  ;;  %7832 = vmatpush3.bf16.msra.mxu0 %v7613_v4  ;;  %v3963_v9 = vshrl.u32 %v9734_v18, 16 }
 0x18b   : > { %v3950_v17 = vpack.i.b16 %v9737_v15, %v9725_v24  ;;  %v3941_v54 = vpack.i.b16 %v3940_v32, %v3939_v37  ;;  %v3952_v38 = vshrl.u32 %v9737_v15, 16  ;;  %v9756_v7 = vrot.slane %v3829_v41, %v8431_v48 }
 0x18c   : > { %7847 = vmatprep.subr.bf16.mxu1 %v7621_v20  ;;  %v9759_v56 = vrot.slane %v3854_v35, %v8431_v48  ;;  %v3879_v8 = vcombine.low %v3870_v63, %v3878_v1  ;;  %v3512_v14 = vcombine.high %v9599_v50, %v11370_v34  ;;  %v3537_v33 = vcombine.high %v9644_v40, %v11370_v34 }
 0x18d   : > { %7848 = vmatpush3.bf16.msra.mxu1 %v7621_v20  ;;  %v7614_v25 = vcombine.low %v3938_v30, %v3950_v17  ;;  %v3953_v47 = vpack.i.b16 %v3952_v38, %v3951_v23  ;;  %v3962_v19 = vpack.i.b16 %v9756_v7, %v9734_v18  ;;  %v3964_v2 = vshrl.u32 %v9756_v7, 16 }
 0x18e   : > { %v9768_v13 = vrot.slane %v3879_v8, %v8431_v48  ;;  %v3975_v43 = vshrl.u32 %v9759_v56, 16  ;;  %v3562_v12 = vcombine.high %v9647_v6, %v11370_v34  ;;  %v3587_v0 = vcombine.high %v9663_v44, %v11370_v34 }
 0x18f   : > { %7833 = vmatprep.subr.bf16.mxu0 %v7614_v25  ;;  %v7622_v50 = vcombine.low %v3941_v54, %v3953_v47  ;;  %v3965_v29 = vpack.i.b16 %v3964_v2, %v3963_v9  ;;  %v3897_v49 = vshrl.u32 %v3512_v14, 16  ;;  %v3896_v53 = vpack.i.b16 %v3537_v33, %v3512_v14 }
 0x190   : > { %7834 = vmatpush3.bf16.msra.mxu0 %v7614_v25  ;;  %v3974_v27 = vpack.i.b16 %v9768_v13, %v9759_v56  ;;  %v3976_v52 = vshrl.u32 %v9768_v13, 16  ;;  %v3898_v46 = vshrl.u32 %v3537_v33, 16  ;;  %v3908_v40 = vpack.i.b16 %v3587_v0, %v3562_v12 }
 0x191   : > { %7849 = vmatprep.subr.bf16.mxu1 %v7622_v50  ;;  %v3909_v60 = vshrl.u32 %v3562_v12, 16  ;;  %v3910_v55 = vshrl.u32 %v3587_v0, 16  ;;  %v8236_v11 = vmov -inf   ;;  %v3612_v37 = vcombine.high %v9670_v59, %v11370_v34 }
 0x192   : > { %7850 = vmatpush3.bf16.msra.mxu1 %v7622_v50  ;;  %v7615_v6 = vcombine.low %v3962_v19, %v3974_v27  ;;  %v3977_v36 = vpack.i.b16 %v3976_v52, %v3975_v43  ;;  %v3899_v3 = vpack.i.b16 %v3898_v46, %v3897_v49  ;;  %v9780_v58 = vcombine.low %v3896_v53, %v3908_v40 }
 0x193   : > { %v3911_v44 = vpack.i.b16 %v3910_v55, %v3909_v60  ;;  %305 = vst.msk [vmem:[#allocation2 + $0x50] sm:$0xff] %vm294_vm1, %v8236_v11  ;;  %295 = vst.msk [vmem:[#allocation2] sm:$0xff] %vm294_vm1, %v8236_v11  ;;  %v3637_v5 = vcombine.high %v9687_v22, %v11370_v34  ;;  %v3662_v57 = vcombine.high %v9673_v42, %v11370_v34  ;;  %v3921_v51 = vshrl.u32 %v3612_v37, 16 }
 0x194   : > { %11383 = vst [vmem:[#allocation10_spill] sm:$0xff] %v9780_v58  ;;  %296 = vst.msk [vmem:[#allocation2 + $0x8] sm:$0xff] %vm294_vm1, %v8236_v11  ;;  %7835 = vmatprep.subr.bf16.mxu0 %v7615_v6  ;;  %v7623_v26 = vcombine.low %v3965_v29, %v3977_v36  ;;  %v3687_v10 = vcombine.high %v9708_v62, %v11370_v34  ;;  %v3712_v59 = vcombine.high %v9701_v16, %v11370_v34 }
 0x195   : > { %297 = vst.msk [vmem:[#allocation2 + $0x10] sm:$0xff] %vm294_vm1, %v8236_v11  ;;  %298 = vst.msk [vmem:[#allocation2 + $0x18] sm:$0xff] %vm294_vm1, %v8236_v11  ;;  %7836 = vmatpush3.bf16.msra.mxu0 %v7615_v6  ;;  %v9814_v21 = vcombine.low %v3899_v3, %v3911_v44  ;;  %v3920_v61 = vpack.i.b16 %v3637_v5, %v3612_v37  ;;  %v3922_v4 = vshrl.u32 %v3637_v5, 16  ;;  %v3933_v39 = vshrl.u32 %v3662_v57, 16 }
 0x196   : > { %299 = vst.msk [vmem:[#allocation2 + $0x20] sm:$0xff] %vm294_vm1, %v8236_v11  ;;  %300 = vst.msk [vmem:[#allocation2 + $0x28] sm:$0xff] %vm294_vm1, %v8236_v11  ;;  %7851 = vmatprep.subr.bf16.mxu1 %v7623_v26  ;;  %7861 = vmatprep.subr.bf16.mxu0 %v9780_v58  ;;  %v3932_v28 = vpack.i.b16 %v3687_v10, %v3662_v57  ;;  %v3934_v23 = vshrl.u32 %v3687_v10, 16  ;;  %v3737_v22 = vcombine.high %v9728_v31, %v11370_v34 }
 0x197   : > { %301 = vst.msk [vmem:[#allocation2 + $0x30] sm:$0xff] %vm294_vm1, %v8236_v11  ;;  %302 = vst.msk [vmem:[#allocation2 + $0x38] sm:$0xff] %vm294_vm1, %v8236_v11  ;;  %7852 = vmatpush3.bf16.msra.mxu1 %v7623_v26  ;;  %v3762_v42 = vcombine.high %v9725_v24, %v11370_v34  ;;  %v3787_v62 = vcombine.high %v9737_v15, %v11370_v34  ;;  %v3923_v32 = vpack.i.b16 %v3922_v4, %v3921_v51 }
 0x198   : > { %303 = vst.msk [vmem:[#allocation2 + $0x40] sm:$0xff] %vm294_vm1, %v8236_v11  ;;  %304 = vst.msk [vmem:[#allocation2 + $0x48] sm:$0xff] %vm294_vm1, %v8236_v11  ;;  %7877 = vmatprep.subr.bf16.mxu1 %v9814_v21  ;;  %v9826_v30 = vcombine.low %v3920_v61, %v3932_v28  ;;  %v3935_v41 = vpack.i.b16 %v3934_v23, %v3933_v39  ;;  %v3944_v20 = vpack.i.b16 %v3737_v22, %v3712_v59 }
 0x199   : > { %306 = vst.msk [vmem:[#allocation2 + $0x58] sm:$0xff] %vm294_vm1, %v8236_v11  ;;  %307 = vst.msk [vmem:[#allocation2 + $0x60] sm:$0xff] %vm294_vm1, %v8236_v11  ;;  %v3945_v35 = vshrl.u32 %v3712_v59, 16  ;;  %v3946_v63 = vshrl.u32 %v3737_v22, 16  ;;  %v3957_v1 = vshrl.u32 %v3762_v42, 16  ;;  %v3956_v17 = vpack.i.b16 %v3787_v62, %v3762_v42 }
 0x19a   : > { %308 = vst.msk [vmem:[#allocation2 + $0x68] sm:$0xff] %vm294_vm1, %v8236_v11  ;;  %309 = vst.msk [vmem:[#allocation2 + $0x70] sm:$0xff] %vm294_vm1, %v8236_v11  ;;  %v9836_v54 = vcombine.low %v3923_v32, %v3935_v41  ;;  %v3958_v38 = vshrl.u32 %v3787_v62, 16  ;;  %v3812_v16 = vcombine.high %v9734_v18, %v11370_v34  ;;  %v3837_v31 = vcombine.high %v9756_v7, %v11370_v34 }
 0x19b   : > { %310 = vst.msk [vmem:[#allocation2 + $0x78] sm:$0xff] %vm294_vm1, %v8236_v11  ;;  %311 = vst.msk [vmem:[#allocation2 + $0x80] sm:$0xff] %vm294_vm1, %v8236_v11  ;;  %v3862_v24 = vcombine.high %v9759_v56, %v11370_v34  ;;  %v3887_v15 = vcombine.high %v9768_v13, %v11370_v34  ;;  %v9846_v8 = vcombine.low %v3944_v20, %v3956_v17 }
 0x19c   : > { %312 = vst.msk [vmem:[#allocation2 + $0x88] sm:$0xff] %vm294_vm1, %v8236_v11  ;;  %313 = vst.msk [vmem:[#allocation2 + $0x90] sm:$0xff] %vm294_vm1, %v8236_v11  ;;  %v3947_v9 = vpack.i.b16 %v3946_v63, %v3945_v35  ;;  %v3959_v14 = vpack.i.b16 %v3958_v38, %v3957_v1  ;;  %v3968_v25 = vpack.i.b16 %v3837_v31, %v3812_v16  ;;  %v3969_v19 = vshrl.u32 %v3812_v16, 16 }
 0x19d   : > { %314 = vst.msk [vmem:[#allocation2 + $0x98] sm:$0xff] %vm294_vm1, %v8236_v11  ;;  %315 = vst.msk [vmem:[#allocation2 + $0xa0] sm:$0xff] %vm294_vm1, %v8236_v11  ;;  %v3980_v47 = vpack.i.b16 %v3887_v15, %v3862_v24  ;;  %v3970_v2 = vshrl.u32 %v3837_v31, 16  ;;  %v3981_v18 = vshrl.u32 %v3862_v24, 16  ;;  %v3982_v33 = vshrl.u32 %v3887_v15, 16  ;;  %v10197_v48 = vld [vmem:[#allocation2 + $0x20] sm:$0xff] }
 0x19e   : > { %316 = vst.msk [vmem:[#allocation2 + $0xa8] sm:$0xff] %vm294_vm1, %v8236_v11  ;;  %317 = vst.msk [vmem:[#allocation2 + $0xb0] sm:$0xff] %vm294_vm1, %v8236_v11  ;;  %v9848_v43 = vcombine.low %v3947_v9, %v3959_v14 }
 0x19f   : > { %318 = vst.msk [vmem:[#allocation2 + $0xb8] sm:$0xff] %vm294_vm1, %v8236_v11  ;;  %319 = vst.msk [vmem:[#allocation2 + $0xc0] sm:$0xff] %vm294_vm1, %v8236_v11  ;;  %v9850_v12 = vcombine.low %v3968_v25, %v3980_v47  ;;  %v3971_v7 = vpack.i.b16 %v3970_v2, %v3969_v19  ;;  %v3983_v50 = vpack.i.b16 %v3982_v33, %v3981_v18 }
 0x1a0   : > { %320 = vst.msk [vmem:[#allocation2 + $0xc8] sm:$0xff] %vm294_vm1, %v8236_v11  ;;  %321 = vst.msk [vmem:[#allocation2 + $0xd0] sm:$0xff] %vm294_vm1, %v8236_v11 }
 0x1a1   : > { %322 = vst.msk [vmem:[#allocation2 + $0xd8] sm:$0xff] %vm294_vm1, %v8236_v11  ;;  %323 = vst.msk [vmem:[#allocation2 + $0xe0] sm:$0xff] %vm294_vm1, %v8236_v11  ;;  %v9852_v56 = vcombine.low %v3971_v7, %v3983_v50 }
 0x1a2   : > { %324 = vst.msk [vmem:[#allocation2 + $0xe8] sm:$0xff] %vm294_vm1, %v8236_v11  ;;  %325 = vst.msk [vmem:[#allocation2 + $0xf0] sm:$0xff] %vm294_vm1, %v8236_v11 }
 0x1a3   : > { %326 = vst.msk [vmem:[#allocation2 + $0xf8] sm:$0xff] %vm294_vm1, %v8236_v11  ;;  %11384 = vst [vmem:[#allocation9_spill] sm:$0xff] %v9814_v21 }
 0x1a4   : > { %11385 = vst [vmem:[#allocation8_spill] sm:$0xff] %v9826_v30  ;;  %11386 = vst [vmem:[#allocation7_spill] sm:$0xff] %v9836_v54  ;;  %v10325_v30 = vld [vmem:[#allocation2 + $0xa0] sm:$0xff] }
 0x1a5   : > { %11387 = vst [vmem:[#allocation11_spill] sm:$0xff] %v9846_v8  ;;  %11388 = vst [vmem:[#allocation12_spill] sm:$0xff] %v9848_v43 }
 0x1a6   : > { %11389 = vst [vmem:[#allocation13_spill] sm:$0xff] %v9850_v12  ;;  %11390 = vst [vmem:[#allocation14_spill] sm:$0xff] %v9852_v56 }
 0x1a7   : > { %v10302_v21 = vld [vmem:[#allocation2 + $0xc8] sm:$0xff] }
 0x1a8   : > { %v10286_v43 = vld [vmem:[#allocation2 + $0xd8] sm:$0xff]  ;;  %11423 = vst [vmem:[#allocation47_spill] sm:$0xff] %v10302_v21 }
 0x1e3   : > { %v9854_v34 = vpop.f32.mrb[0].mxu0  ;;  %v9856_v13 = vpop.f32.mrb[0].mxu1 }
 0x1e4   : > { %11391 = vst [vmem:[#allocation15_spill] sm:$0xff] %v9854_v34  ;;  %11392 = vst [vmem:[#allocation16_spill] sm:$0xff] %v9856_v13  ;;  %v9858_v29 = vpop.f32.mrb[1].mxu0  ;;  %v9860_v0 = vpop.f32.mrb[1].mxu1  ;;  %v4468_v49 = vsel %vm4437_vm2, %v9856_v13, -inf  ;;  %v4444_v27 = vsel %vm4437_vm2, %v9854_v34, -inf }
 0x1e5   : > { %11393 = vst [vmem:[#allocation17_spill] sm:$0xff] %v9858_v29  ;;  %11394 = vst [vmem:[#allocation18_spill] sm:$0xff] %v9860_v0  ;;  %4469 = vmax.xlane.f32.xlu1 %v4468_v49  ;;  %v9866_v52 = vpop.f32.mrb[2].mxu1  ;;  %4445 = vmax.xlane.f32.xlu0 %v4444_v27  ;;  %v9868_v53 = vpop.f32.mrb[2].mxu0  ;;  %v4438_v55 = vsel %vm4437_vm2, %v9858_v29, -inf  ;;  %v4462_v36 = vsel %vm4437_vm2, %v9860_v0, -inf }
 0x1e6   : > { %11395 = vst [vmem:[#allocation19_spill] sm:$0xff] %v9866_v52  ;;  %11396 = vst [vmem:[#allocation20_spill] sm:$0xff] %v9868_v53  ;;  %v9870_v46 = vpop.f32.mrb[3].mxu0  ;;  %v9872_v40 = vpop.f32.mrb[3].mxu1  ;;  %v4447_v6 = vsel %vm4437_vm2, %v9868_v53, -inf  ;;  %v4471_v3 = vsel %vm4437_vm2, %v9866_v52, -inf }
 0x1e7   : > { %11397 = vst [vmem:[#allocation21_spill] sm:$0xff] %v9870_v46  ;;  %11398 = vst [vmem:[#allocation22_spill] sm:$0xff] %v9872_v40  ;;  %v4441_v60 = vsel %vm4437_vm2, %v9870_v46, -inf  ;;  %v4465_v44 = vsel %vm4437_vm2, %v9872_v40, -inf  ;;  %v10334_v40 = vld [vmem:[#allocation2 + $0xa8] sm:$0xff]  ;;  %v10341_v0 = vld [vmem:[#allocation2 + $0xf0] sm:$0xff] }
 0x1e8   : > { %11425 = vst [vmem:[#allocation49_spill] sm:$0xff] %v10334_v40  ;;  %v10355_v29 = vld [vmem:[#allocation2 + $0xf8] sm:$0xff] }
 0x1e9   : > { %4439 = vmax.xlane.f32.xlu0 %v4438_v55  ;;  %4442 = vmax.xlane.f32.xlu1 %v4441_v60 }
 0x1ed   : > { %4448 = vmax.xlane.f32.xlu0 %v4447_v6  ;;  %4463 = vmax.xlane.f32.xlu1 %v4462_v36 }
 0x1f1   : > { %4472 = vmax.xlane.f32.xlu0 %v4471_v3 }
 0x1f5   : > { %4466 = vmax.xlane.f32.xlu0 %v4465_v44 }
 0x201   : > { %v9886_v11 = vpop.f32.mrb[4].mxu0  ;;  %v9888_v26 = vpop.f32.mrb[4].mxu1 }
 0x202   : > { %11399 = vst [vmem:[#allocation23_spill] sm:$0xff] %v9886_v11  ;;  %11400 = vst [vmem:[#allocation24_spill] sm:$0xff] %v9888_v26  ;;  %v9890_v37 = vpop.f32.mrb[5].mxu0  ;;  %v9892_v5 = vpop.f32.mrb[5].mxu1  ;;  %v4456_v57 = vsel %vm4437_vm2, %v9886_v11, -inf  ;;  %v4480_v32 = vsel %vm4437_vm2, %v9888_v26, -inf }
 0x203   : > { %11401 = vst [vmem:[#allocation25_spill] sm:$0xff] %v9890_v37  ;;  %11402 = vst [vmem:[#allocation26_spill] sm:$0xff] %v9892_v5  ;;  %v9896_v10 = vpop.f32.mrb[6].mxu1  ;;  %4457 = vmax.xlane.f32.xlu1 %v4456_v57  ;;  %v9898_v61 = vpop.f32.mrb[6].mxu0  ;;  %v4450_v39 = vsel %vm4437_vm2, %v9890_v37, -inf  ;;  %v4474_v17 = vsel %vm4437_vm2, %v9892_v5, -inf }
 0x204   : > { %11403 = vst [vmem:[#allocation27_spill] sm:$0xff] %v9896_v10  ;;  %11404 = vst [vmem:[#allocation28_spill] sm:$0xff] %v9898_v61  ;;  %v9900_v28 = vpop.f32.mrb[7].mxu0  ;;  %v9902_v51 = vpop.f32.mrb[7].mxu1  ;;  %v4459_v4 = vsel %vm4437_vm2, %v9898_v61, -inf  ;;  %v4483_v1 = vsel %vm4437_vm2, %v9896_v10, -inf }
 0x205   : > { %11405 = vst [vmem:[#allocation29_spill] sm:$0xff] %v9900_v28  ;;  %11406 = vst [vmem:[#allocation30_spill] sm:$0xff] %v9902_v51  ;;  %4460 = vmax.xlane.f32.xlu0 %v4459_v4  ;;  %v4453_v23 = vsel %vm4437_vm2, %v9900_v28, -inf  ;;  %v4477_v38 = vsel %vm4437_vm2, %v9902_v51, -inf  ;;  %v8237_v4 = vmov 0.0   ;;  %v10277_v10 = vld [vmem:[#allocation2 + $0xd0] sm:$0xff] }
 0x206   : > { %361 = vst.msk [vmem:[#allocation4 + $0x8] sm:$0xff] %vm359_vm0, %v8237_v4  ;;  %360 = vst.msk [vmem:[#allocation4] sm:$0xff] %vm359_vm0, %v8237_v4  ;;  %v10293_v26 = vld [vmem:[#allocation2 + $0xc0] sm:$0xff]  ;;  %v10309_v37 = vld [vmem:[#allocation2 + $0xb0] sm:$0xff] }
 0x207   : > { %4451 = vmax.xlane.f32.xlu1 %v4450_v39  ;;  %327 = vst.msk [vmem:[#allocation3] sm:$0xff] %vm294_vm1, %v8237_v4  ;;  %328 = vst.msk [vmem:[#allocation3 + $0x8] sm:$0xff] %vm294_vm1, %v8237_v4  ;;  %v10318_v11 = vld [vmem:[#allocation2 + $0xb8] sm:$0xff] }
 0x208   : > { %329 = vst.msk [vmem:[#allocation3 + $0x10] sm:$0xff] %vm294_vm1, %v8237_v4  ;;  %330 = vst.msk [vmem:[#allocation3 + $0x18] sm:$0xff] %vm294_vm1, %v8237_v4 }
 0x209   : > { %v9910_v59 = vpop.f32.mrb[8].mxu1  ;;  %4454 = vmax.xlane.f32.xlu0 %v4453_v23  ;;  %v9912_v22 = vpop.f32.mrb[8].mxu0  ;;  %331 = vst.msk [vmem:[#allocation3 + $0x20] sm:$0xff] %vm294_vm1, %v8237_v4  ;;  %332 = vst.msk [vmem:[#allocation3 + $0x28] sm:$0xff] %vm294_vm1, %v8237_v4  ;;  %v10110_v23 = vld [vmem:[#allocation2 + $0x50] sm:$0xff] }
 0x20a   : > { %11407 = vst [vmem:[#allocation31_spill] sm:$0xff] %v9910_v59  ;;  %11408 = vst [vmem:[#allocation32_spill] sm:$0xff] %v9912_v22  ;;  %v9914_v42 = vpop.f32.mrb[9].mxu0  ;;  %v9916_v62 = vpop.f32.mrb[9].mxu1  ;;  %v4492_v9 = vsel %vm4437_vm2, %v9912_v22, -inf  ;;  %v4516_v7 = vsel %vm4437_vm2, %v9910_v59, -inf }
 0x20b   : > { %11409 = vst [vmem:[#allocation33_spill] sm:$0xff] %v9914_v42  ;;  %11410 = vst [vmem:[#allocation34_spill] sm:$0xff] %v9916_v62  ;;  %v9920_v41 = vpop.f32.mrb[10].mxu1  ;;  %4481 = vmax.xlane.f32.xlu1 %v4480_v32  ;;  %v9922_v20 = vpop.f32.mrb[10].mxu0  ;;  %v4486_v18 = vsel %vm4437_vm2, %v9914_v42, -inf  ;;  %v4510_v49 = vsel %vm4437_vm2, %v9916_v62, -inf }
 0x20c   : > { %11411 = vst [vmem:[#allocation35_spill] sm:$0xff] %v9920_v41  ;;  %11412 = vst [vmem:[#allocation36_spill] sm:$0xff] %v9922_v20  ;;  %v9924_v35 = vpop.f32.mrb[11].mxu0  ;;  %v9926_v63 = vpop.f32.mrb[11].mxu1  ;;  %v4495_v2 = vsel %vm4437_vm2, %v9922_v20, -inf  ;;  %v4519_v50 = vsel %vm4437_vm2, %v9920_v41, -inf }
 0x20d   : > { %11413 = vst [vmem:[#allocation37_spill] sm:$0xff] %v9924_v35  ;;  %11414 = vst [vmem:[#allocation38_spill] sm:$0xff] %v9926_v63  ;;  %4484 = vmax.xlane.f32.xlu0 %v4483_v1  ;;  %v4489_v33 = vsel %vm4437_vm2, %v9924_v35, -inf  ;;  %v4513_v27 = vsel %vm4437_vm2, %v9926_v63, -inf  ;;  %v10112_v32 = vld [vmem:[#allocation2 + $0x10] sm:$0xff]  ;;  %v10254_v59 = vld [vmem:[#allocation2 + $0x98] sm:$0xff] }
 0x20e   : > { %333 = vst.msk [vmem:[#allocation3 + $0x30] sm:$0xff] %vm294_vm1, %v8237_v4  ;;  %334 = vst.msk [vmem:[#allocation3 + $0x38] sm:$0xff] %vm294_vm1, %v8237_v4  ;;  %v10245_v35 = vld [vmem:[#allocation2 + $0x90] sm:$0xff]  ;;  %v10261_v42 = vld [vmem:[#allocation2 + $0x80] sm:$0xff] }
 0x20f   : > { %4475 = vmax.xlane.f32.xlu1 %v4474_v17  ;;  %335 = vst.msk [vmem:[#allocation3 + $0x40] sm:$0xff] %vm294_vm1, %v8237_v4  ;;  %336 = vst.msk [vmem:[#allocation3 + $0x48] sm:$0xff] %vm294_vm1, %v8237_v4  ;;  %v10270_v22 = vld [vmem:[#allocation2 + $0x88] sm:$0xff] }
 0x210   : > { %337 = vst.msk [vmem:[#allocation3 + $0x50] sm:$0xff] %vm294_vm1, %v8237_v4  ;;  %338 = vst.msk [vmem:[#allocation3 + $0x58] sm:$0xff] %vm294_vm1, %v8237_v4 }
 0x211   : > { %v9934_v16 = vpop.f32.mrb[12].mxu1  ;;  %4478 = vmax.xlane.f32.xlu0 %v4477_v38  ;;  %v9936_v31 = vpop.f32.mrb[12].mxu0  ;;  %339 = vst.msk [vmem:[#allocation3 + $0x60] sm:$0xff] %vm294_vm1, %v8237_v4  ;;  %340 = vst.msk [vmem:[#allocation3 + $0x68] sm:$0xff] %vm294_vm1, %v8237_v4 }
 0x212   : > { %11415 = vst [vmem:[#allocation39_spill] sm:$0xff] %v9934_v16  ;;  %11416 = vst [vmem:[#allocation40_spill] sm:$0xff] %v9936_v31  ;;  %v9938_v24 = vpop.f32.mrb[13].mxu0  ;;  %v9940_v15 = vpop.f32.mrb[13].mxu1  ;;  %v4504_v60 = vsel %vm4437_vm2, %v9936_v31, -inf  ;;  %v4528_v3 = vsel %vm4437_vm2, %v9934_v16, -inf }
 0x213   : > { %11417 = vst [vmem:[#allocation41_spill] sm:$0xff] %v9938_v24  ;;  %11418 = vst [vmem:[#allocation42_spill] sm:$0xff] %v9940_v15  ;;  %v9944_v14 = vpop.f32.mrb[14].mxu1  ;;  %4493 = vmax.xlane.f32.xlu1 %v4492_v9  ;;  %v9946_v25 = vpop.f32.mrb[14].mxu0  ;;  %v4498_v6 = vsel %vm4437_vm2, %v9938_v24, -inf  ;;  %v4522_v57 = vsel %vm4437_vm2, %v9940_v15, -inf }
 0x214   : > { %11419 = vst [vmem:[#allocation43_spill] sm:$0xff] %v9944_v14  ;;  %11420 = vst [vmem:[#allocation44_spill] sm:$0xff] %v9946_v25  ;;  %v9948_v47 = vpop.f32.mrb[15].mxu0  ;;  %v9950_v19 = vpop.f32.mrb[15].mxu1  ;;  %v4507_v55 = vsel %vm4437_vm2, %v9946_v25, -inf  ;;  %v4531_v44 = vsel %vm4437_vm2, %v9944_v14, -inf }
 0x215   : > { %11421 = vst [vmem:[#allocation45_spill] sm:$0xff] %v9948_v47  ;;  %11422 = vst [vmem:[#allocation46_spill] sm:$0xff] %v9950_v19  ;;  %4496 = vmax.xlane.f32.xlu0 %v4495_v2  ;;  %v4501_v36 = vsel %vm4437_vm2, %v9948_v47, -inf  ;;  %v4525_v39 = vsel %vm4437_vm2, %v9950_v19, -inf  ;;  %v10120_v2 = vld [vmem:[#allocation2 + $0x8] sm:$0xff]  ;;  %v10212_v19 = vld [vmem:[#allocation2 + $0x70] sm:$0xff] }
 0x216   : > { %341 = vst.msk [vmem:[#allocation3 + $0x70] sm:$0xff] %vm294_vm1, %v8237_v4  ;;  %342 = vst.msk [vmem:[#allocation3 + $0x78] sm:$0xff] %vm294_vm1, %v8237_v4  ;;  %v10205_v14 = vld [vmem:[#allocation2 + $0x28] sm:$0xff]  ;;  %v10220_v47 = vld [vmem:[#allocation2 + $0x78] sm:$0xff] }
 0x217   : > { %4487 = vmax.xlane.f32.xlu1 %v4486_v18  ;;  %343 = vst.msk [vmem:[#allocation3 + $0x80] sm:$0xff] %vm294_vm1, %v8237_v4  ;;  %344 = vst.msk [vmem:[#allocation3 + $0x88] sm:$0xff] %vm294_vm1, %v8237_v4  ;;  %v10122_v18 = vld [vmem:[#allocation2] sm:$0xff]  ;;  %v10236_v31 = vld [vmem:[#allocation2 + $0x68] sm:$0xff] }
 0x218   : > { %345 = vst.msk [vmem:[#allocation3 + $0x90] sm:$0xff] %vm294_vm1, %v8237_v4  ;;  %346 = vst.msk [vmem:[#allocation3 + $0x98] sm:$0xff] %vm294_vm1, %v8237_v4  ;;  %v10227_v24 = vld [vmem:[#allocation2 + $0x60] sm:$0xff] }
 0x219   : > { %4490 = vmax.xlane.f32.xlu0 %v4489_v33  ;;  %347 = vst.msk [vmem:[#allocation3 + $0xa0] sm:$0xff] %vm294_vm1, %v8237_v4  ;;  %348 = vst.msk [vmem:[#allocation3 + $0xa8] sm:$0xff] %vm294_vm1, %v8237_v4 }
 0x21a   : > { %349 = vst.msk [vmem:[#allocation3 + $0xb0] sm:$0xff] %vm294_vm1, %v8237_v4  ;;  %350 = vst.msk [vmem:[#allocation3 + $0xb8] sm:$0xff] %vm294_vm1, %v8237_v4 }
 0x21b   : > { %4517 = vmax.xlane.f32.xlu1 %v4516_v7  ;;  %351 = vst.msk [vmem:[#allocation3 + $0xc0] sm:$0xff] %vm294_vm1, %v8237_v4  ;;  %352 = vst.msk [vmem:[#allocation3 + $0xc8] sm:$0xff] %vm294_vm1, %v8237_v4 }
 0x21c   : > { %353 = vst.msk [vmem:[#allocation3 + $0xd0] sm:$0xff] %vm294_vm1, %v8237_v4  ;;  %354 = vst.msk [vmem:[#allocation3 + $0xd8] sm:$0xff] %vm294_vm1, %v8237_v4 }
 0x21d   : > { %4520 = vmax.xlane.f32.xlu0 %v4519_v50  ;;  %355 = vst.msk [vmem:[#allocation3 + $0xe0] sm:$0xff] %vm294_vm1, %v8237_v4  ;;  %356 = vst.msk [vmem:[#allocation3 + $0xe8] sm:$0xff] %vm294_vm1, %v8237_v4 }
 0x21e   : > { %357 = vst.msk [vmem:[#allocation3 + $0xf0] sm:$0xff] %vm294_vm1, %v8237_v4  ;;  %358 = vst.msk [vmem:[#allocation3 + $0xf8] sm:$0xff] %vm294_vm1, %v8237_v4 }
 0x21f   : > { %4511 = vmax.xlane.f32.xlu1 %v4510_v49  ;;  %362 = vst.msk [vmem:[#allocation4 + $0x10] sm:$0xff] %vm359_vm0, %v8237_v4  ;;  %363 = vst.msk [vmem:[#allocation4 + $0x18] sm:$0xff] %vm359_vm0, %v8237_v4 }
 0x220   : > { %364 = vst.msk [vmem:[#allocation4 + $0x20] sm:$0xff] %vm359_vm0, %v8237_v4  ;;  %365 = vst.msk [vmem:[#allocation4 + $0x28] sm:$0xff] %vm359_vm0, %v8237_v4 }
 0x221   : > { %4514 = vmax.xlane.f32.xlu0 %v4513_v27  ;;  %366 = vst.msk [vmem:[#allocation4 + $0x30] sm:$0xff] %vm359_vm0, %v8237_v4  ;;  %367 = vst.msk [vmem:[#allocation4 + $0x38] sm:$0xff] %vm359_vm0, %v8237_v4 }
 0x222   : > { %368 = vst.msk [vmem:[#allocation4 + $0x40] sm:$0xff] %vm359_vm0, %v8237_v4  ;;  %369 = vst.msk [vmem:[#allocation4 + $0x48] sm:$0xff] %vm359_vm0, %v8237_v4 }
 0x223   : > { %4505 = vmax.xlane.f32.xlu1 %v4504_v60  ;;  %370 = vst.msk [vmem:[#allocation4 + $0x50] sm:$0xff] %vm359_vm0, %v8237_v4  ;;  %371 = vst.msk [vmem:[#allocation4 + $0x58] sm:$0xff] %vm359_vm0, %v8237_v4 }
 0x224   : > { %372 = vst.msk [vmem:[#allocation4 + $0x60] sm:$0xff] %vm359_vm0, %v8237_v4  ;;  %373 = vst.msk [vmem:[#allocation4 + $0x68] sm:$0xff] %vm359_vm0, %v8237_v4 }
 0x225   : > { %4508 = vmax.xlane.f32.xlu0 %v4507_v55  ;;  %374 = vst.msk [vmem:[#allocation4 + $0x70] sm:$0xff] %vm359_vm0, %v8237_v4  ;;  %375 = vst.msk [vmem:[#allocation4 + $0x78] sm:$0xff] %vm359_vm0, %v8237_v4  ;;  %v10140_v55 = vld [vmem:[#allocation2 + $0x40] sm:$0xff] }
 0x226   : > { %376 = vst.msk [vmem:[#allocation4 + $0x80] sm:$0xff] %vm359_vm0, %v8237_v4  ;;  %377 = vst.msk [vmem:[#allocation4 + $0x88] sm:$0xff] %vm359_vm0, %v8237_v4 }
 0x227   : > { %4499 = vmax.xlane.f32.xlu1 %v4498_v6  ;;  %378 = vst.msk [vmem:[#allocation4 + $0x90] sm:$0xff] %vm359_vm0, %v8237_v4  ;;  %379 = vst.msk [vmem:[#allocation4 + $0x98] sm:$0xff] %vm359_vm0, %v8237_v4  ;;  %v10142_v6 = vld [vmem:[#allocation2 + $0x18] sm:$0xff] }
 0x228   : > { %380 = vst.msk [vmem:[#allocation4 + $0xa0] sm:$0xff] %vm359_vm0, %v8237_v4  ;;  %381 = vst.msk [vmem:[#allocation4 + $0xa8] sm:$0xff] %vm359_vm0, %v8237_v4 }
 0x229   : > { %4502 = vmax.xlane.f32.xlu0 %v4501_v36  ;;  %382 = vst.msk [vmem:[#allocation4 + $0xb0] sm:$0xff] %vm359_vm0, %v8237_v4  ;;  %383 = vst.msk [vmem:[#allocation4 + $0xb8] sm:$0xff] %vm359_vm0, %v8237_v4 }
 0x22a   : > { %384 = vst.msk [vmem:[#allocation4 + $0xc0] sm:$0xff] %vm359_vm0, %v8237_v4  ;;  %385 = vst.msk [vmem:[#allocation4 + $0xc8] sm:$0xff] %vm359_vm0, %v8237_v4 }
 0x22b   : > { %4529 = vmax.xlane.f32.xlu1 %v4528_v3  ;;  %386 = vst.msk [vmem:[#allocation4 + $0xd0] sm:$0xff] %vm359_vm0, %v8237_v4  ;;  %387 = vst.msk [vmem:[#allocation4 + $0xd8] sm:$0xff] %vm359_vm0, %v8237_v4  ;;  %v10192_v3 = vld [vmem:[#allocation2 + $0x38] sm:$0xff] }
 0x22c   : > { %388 = vst.msk [vmem:[#allocation4 + $0xe0] sm:$0xff] %vm359_vm0, %v8237_v4  ;;  %389 = vst.msk [vmem:[#allocation4 + $0xe8] sm:$0xff] %vm359_vm0, %v8237_v4 }
 0x22d   : > { %4532 = vmax.xlane.f32.xlu0 %v4531_v44  ;;  %390 = vst.msk [vmem:[#allocation4 + $0xf0] sm:$0xff] %vm359_vm0, %v8237_v4  ;;  %391 = vst.msk [vmem:[#allocation4 + $0xf8] sm:$0xff] %vm359_vm0, %v8237_v4 }
 0x22e   : > { %11424 = vst [vmem:[#allocation48_spill] sm:$0xff] %v10318_v11 }
 0x22f   : > { %4523 = vmax.xlane.f32.xlu1 %v4522_v57 }
 0x231   : > { %4526 = vmax.xlane.f32.xlu0 %v4525_v39 }
 0x272   : > { %v4470_v1 = vpop.xlane.xlu1 %4469  ;;  %v4446_v17 = vpop.xlane.xlu0 %4445 }
 0x273   : > { %v10115_v38 = vmax.f32 %v10110_v23, %v4470_v1  ;;  %v10118_v9 = vmax.f32 %v10112_v32, %v4446_v17  ;;  %v10160_v1 = vld [vmem:[#allocation2 + $0x58] sm:$0xff] }
 0x275   : > { %5829 = vst.msk [vmem:[#allocation2 + $0x50] sm:$0xff] %vm294_vm1, %v10115_v38  ;;  %5821 = vst.msk [vmem:[#allocation2 + $0x10] sm:$0xff] %vm294_vm1, %v10118_v9  ;;  %4714 = vperm.xlu0 %7945, %v10115_v38   ;;  %4674 = vperm.xlu1 %7944, %v10118_v9  }
 0x276   : > { %v4443_v50 = vpop.xlane.xlu1 %4442  ;;  %v4440_v49 = vpop.xlane.xlu0 %4439 }
 0x277   : > { %v10135_v27 = vmax.f32 %v10120_v2, %v4443_v50  ;;  %v10138_v60 = vmax.f32 %v10122_v18, %v4440_v49 }
 0x279   : > { %5820 = vst.msk [vmem:[#allocation2 + $0x8] sm:$0xff] %vm294_vm1, %v10135_v27  ;;  %5819 = vst.msk [vmem:[#allocation2] sm:$0xff] %vm294_vm1, %v10138_v60  ;;  %4669 = vperm.xlu0 %7945, %v10135_v27   ;;  %4664 = vperm.xlu1 %7944, %v10138_v60   ;;  %v11426_v13 = vsub.f32 %v10120_v2, %v10135_v27 }
 0x27a   : > { %v4464_v44 = vpop.xlane.xlu1 %4463  ;;  %v4449_v57 = vpop.xlane.xlu0 %4448 }
 0x27b   : > { %v10155_v4 = vmax.f32 %v10140_v55, %v4464_v44  ;;  %v10158_v39 = vmax.f32 %v10142_v6, %v4449_v57  ;;  %v10174_v57 = vld [vmem:[#allocation2 + $0x48] sm:$0xff]  ;;  %v4600_v53 = vmul.f32 1.442695, %v11426_v13 }
 0x27d   : > { %5827 = vst.msk [vmem:[#allocation2 + $0x40] sm:$0xff] %vm294_vm1, %v10155_v4  ;;  %5822 = vst.msk [vmem:[#allocation2 + $0x18] sm:$0xff] %vm294_vm1, %v10158_v39  ;;  %4679 = vperm.xlu1 %7944, %v10158_v39   ;;  %8006 = vpow2.f32 %v4600_v53  ;;  %v11428_v53 = vsub.f32 %v10112_v32, %v10118_v9  ;;  %v11429_v32 = vsub.f32 %v10140_v55, %v10155_v4 }
 0x27e   : > { %v4473_v49 = vpop.xlane.xlu0 %4472 }
 0x27f   : > { %v10172_v44 = vmax.f32 %v10160_v1, %v4473_v49  ;;  %v10190_v49 = vld [vmem:[#allocation2 + $0x30] sm:$0xff]  ;;  %v4614_v9 = vmul.f32 1.442695, %v11429_v32 }
 0x281   : > { %5830 = vst.msk [vmem:[#allocation2 + $0x58] sm:$0xff] %vm294_vm1, %v10172_v44  ;;  %4704 = vperm.xlu1 %7944, %v10155_v4  }
 0x282   : > { %v4467_v50 = vpop.xlane.xlu0 %4466 }
 0x283   : > { %v10182_v17 = vmax.f32 %v10174_v57, %v4467_v50 }
 0x285   : > { %5828 = vst.msk [vmem:[#allocation2 + $0x48] sm:$0xff] %vm294_vm1, %v10182_v17  ;;  %4719 = vperm.xlu1 %7944, %v10172_v44  }
 0x289   : > { %4709 = vperm.xlu1 %7944, %v10182_v17  }
 0x290   : > { %v4458_v33 = vpop.xlane.xlu1 %4457 }
 0x291   : > { %v10195_v36 = vmax.f32 %v10190_v49, %v4458_v33 }
 0x292   : > { %v4461_v50 = vpop.xlane.xlu0 %4460 }
 0x293   : > { %5825 = vst.msk [vmem:[#allocation2 + $0x30] sm:$0xff] %vm294_vm1, %v10195_v36  ;;  %v10202_v7 = vmax.f32 %v10192_v3, %v4461_v50  ;;  %4694 = vperm.xlu1 %7944, %v10195_v36  }
 0x294   : > { %v4452_v45 = vpop.xlane.xlu1 %4451 }
 0x295   : > { %5826 = vst.msk [vmem:[#allocation2 + $0x38] sm:$0xff] %vm294_vm1, %v10202_v7  ;;  %v10210_v33 = vmax.f32 %v10197_v48, %v4452_v45  ;;  %v4573_v55 = vsub.f32 %v10192_v3, %v10202_v7 }
 0x296   : > { %v4455_v16 = vpop.xlane.xlu0 %4454 }
 0x297   : > { %5823 = vst.msk [vmem:[#allocation2 + $0x20] sm:$0xff] %vm294_vm1, %v10210_v33  ;;  %v10217_v50 = vmax.f32 %v10205_v14, %v4455_v16  ;;  %4684 = vperm.xlu1 %7944, %v10210_v33  }
 0x298   : > { %v4482_v15 = vpop.xlane.xlu1 %4481 }
 0x299   : > { %5824 = vst.msk [vmem:[#allocation2 + $0x28] sm:$0xff] %vm294_vm1, %v10217_v50  ;;  %v10225_v45 = vmax.f32 %v10212_v19, %v4482_v15 }
 0x29a   : > { %v4485_v25 = vpop.xlane.xlu0 %4484 }
 0x29b   : > { %5833 = vst.msk [vmem:[#allocation2 + $0x70] sm:$0xff] %vm294_vm1, %v10225_v45  ;;  %v10232_v16 = vmax.f32 %v10220_v47, %v4485_v25  ;;  %4734 = vperm.xlu0 %7945, %v10225_v45   ;;  %4699 = vperm.xlu1 %7944, %v10202_v7  }
 0x29c   : > { %v4476_v63 = vpop.xlane.xlu1 %4475 }
 0x29d   : > { %5834 = vst.msk [vmem:[#allocation2 + $0x78] sm:$0xff] %vm294_vm1, %v10232_v16  ;;  %v10243_v41 = vmax.f32 %v10227_v24, %v4476_v63 }
 0x29e   : > { %v4479_v62 = vpop.xlane.xlu0 %4478 }
 0x29f   : > { %5831 = vst.msk [vmem:[#allocation2 + $0x60] sm:$0xff] %vm294_vm1, %v10243_v41  ;;  %v10250_v25 = vmax.f32 %v10236_v31, %v4479_v62  ;;  %4724 = vperm.xlu0 %7945, %v10243_v41   ;;  %4689 = vperm.xlu1 %7944, %v10217_v50   ;;  %v4578_v4 = vsub.f32 %v10227_v24, %v10243_v41 }
 0x2a0   : > { %v4494_v15 = vpop.xlane.xlu1 %4493  ;;  %v11432_v41 = vsub.f32 %v10174_v57, %v10182_v17 }
 0x2a1   : > { %5832 = vst.msk [vmem:[#allocation2 + $0x68] sm:$0xff] %vm294_vm1, %v10250_v25  ;;  %v10259_v63 = vmax.f32 %v10245_v35, %v4494_v15  ;;  %v4622_v7 = vmul.f32 1.442695, %v4578_v4  ;;  %v4579_v17 = vsub.f32 %v10236_v31, %v10250_v25  ;;  %v11435_v4 = vld [vmem:[#allocation47_spill] sm:$0xff] }
 0x2a2   : > { %v4497_v20 = vpop.xlane.xlu0 %4496  ;;  %v4616_v24 = vmul.f32 1.442695, %v11432_v41 }
 0x2a3   : > { %5837 = vst.msk [vmem:[#allocation2 + $0x90] sm:$0xff] %vm294_vm1, %v10259_v63  ;;  %v10266_v62 = vmax.f32 %v10254_v59, %v4497_v20  ;;  %4754 = vperm.xlu0 %7945, %v10259_v63   ;;  %4739 = vperm.xlu1 %7944, %v10232_v16  }
 0x2a4   : > { %v4488_v51 = vpop.xlane.xlu1 %4487 }
 0x2a5   : > { %5838 = vst.msk [vmem:[#allocation2 + $0x98] sm:$0xff] %vm294_vm1, %v10266_v62  ;;  %v10275_v15 = vmax.f32 %v10261_v42, %v4488_v51 }
 0x2a6   : > { %v4491_v56 = vpop.xlane.xlu0 %4490 }
 0x2a7   : > { %5835 = vst.msk [vmem:[#allocation2 + $0x80] sm:$0xff] %vm294_vm1, %v10275_v15  ;;  %v10282_v20 = vmax.f32 %v10270_v22, %v4491_v56  ;;  %4744 = vperm.xlu0 %7945, %v10275_v15   ;;  %4729 = vperm.xlu1 %7944, %v10250_v25  }
 0x2a8   : > { %v4518_v5 = vpop.xlane.xlu1 %4517 }
 0x2a9   : > { %5836 = vst.msk [vmem:[#allocation2 + $0x88] sm:$0xff] %vm294_vm1, %v10282_v20  ;;  %v10291_v51 = vmax.f32 %v10277_v10, %v4518_v5 }
 0x2aa   : > { %v4521_v28 = vpop.xlane.xlu0 %4520 }
 0x2ab   : > { %5845 = vst.msk [vmem:[#allocation2 + $0xd0] sm:$0xff] %vm294_vm1, %v10291_v51  ;;  %v10298_v56 = vmax.f32 %v10286_v43, %v4521_v28  ;;  %4794 = vperm.xlu0 %7945, %v10291_v51   ;;  %4759 = vperm.xlu1 %7944, %v10266_v62  }
 0x2ac   : > { %v4512_v54 = vpop.xlane.xlu1 %4511 }
 0x2ad   : > { %5846 = vst.msk [vmem:[#allocation2 + $0xd8] sm:$0xff] %vm294_vm1, %v10298_v56  ;;  %v10307_v5 = vmax.f32 %v10293_v26, %v4512_v54 }
 0x2ae   : > { %v4515_v61 = vpop.xlane.xlu0 %4514 }
 0x2af   : > { %5843 = vst.msk [vmem:[#allocation2 + $0xc0] sm:$0xff] %vm294_vm1, %v10307_v5  ;;  %v10314_v28 = vmax.f32 %v10302_v21, %v4515_v61  ;;  %4784 = vperm.xlu0 %7945, %v10307_v5   ;;  %4749 = vperm.xlu1 %7944, %v10282_v20   ;;  %v10377_v21 = vld [vmem:[#allocation2 + $0xe8] sm:$0xff] }
 0x2b0   : > { %v4506_v12 = vpop.xlane.xlu1 %4505 }
 0x2b1   : > { %5844 = vst.msk [vmem:[#allocation2 + $0xc8] sm:$0xff] %vm294_vm1, %v10314_v28  ;;  %v10323_v54 = vmax.f32 %v10309_v37, %v4506_v12 }
 0x2b2   : > { %v4509_v8 = vpop.xlane.xlu0 %4508 }
 0x2b3   : > { %5841 = vst.msk [vmem:[#allocation2 + $0xb0] sm:$0xff] %vm294_vm1, %v10323_v54  ;;  %v10330_v61 = vmax.f32 %v10318_v11, %v4509_v8  ;;  %4774 = vperm.xlu0 %7945, %v10323_v54   ;;  %4799 = vperm.xlu1 %7944, %v10298_v56   ;;  %v11427_v11 = vsub.f32 %v10122_v18, %v10138_v60  ;;  %v4602_v60 = vmul.f32 1.442695, %v11428_v53 }
 0x2b4   : > { %v4500_v58 = vpop.xlane.xlu1 %4499 }
 0x2b5   : > { %5842 = vst.msk [vmem:[#allocation2 + $0xb8] sm:$0xff] %vm294_vm1, %v10330_v61  ;;  %v10339_v12 = vmax.f32 %v10325_v30, %v4500_v58  ;;  %v4570_v58 = vsub.f32 %v10197_v48, %v10210_v33  ;;  %v4598_v2 = vmul.f32 1.442695, %v11427_v11 }
 0x2b6   : > { %v4503_v52 = vpop.xlane.xlu0 %4502 }
 0x2b7   : > { %5839 = vst.msk [vmem:[#allocation2 + $0xa0] sm:$0xff] %vm294_vm1, %v10339_v12  ;;  %v10346_v8 = vmax.f32 %v10334_v40, %v4503_v52  ;;  %4764 = vperm.xlu0 %7945, %v10339_v12   ;;  %4789 = vperm.xlu1 %7944, %v10314_v28   ;;  %v10362_v40 = vld [vmem:[#allocation2 + $0xe0] sm:$0xff]  ;;  %v4606_v27 = vmul.f32 1.442695, %v4570_v58  ;;  %8008 = vpow2.f32 %v4598_v2  ;;  %v11430_v58 = vsub.f32 %v10142_v6, %v10158_v39 }
 0x2b8   : > { %v4530_v46 = vpop.xlane.xlu1 %4529 }
 0x2b9   : > { %5840 = vst.msk [vmem:[#allocation2 + $0xa8] sm:$0xff] %vm294_vm1, %v10346_v8  ;;  %v10360_v52 = vmax.f32 %v10341_v0, %v4530_v46  ;;  %v4572_v46 = vsub.f32 %v10190_v49, %v10195_v36  ;;  %8010 = vpow2.f32 %v4606_v27  ;;  %v4604_v2 = vmul.f32 1.442695, %v11430_v58  ;;  %v10408_v27 = vpop.eup %8006 }
 0x2ba   : > { %v4533_v34 = vpop.xlane.xlu0 %4532  ;;  %8012 = vpow2.f32 %v4602_v60  ;;  %v4584_v60 = vsub.f32 %v10245_v35, %v10259_v63  ;;  %v4582_v35 = vsub.f32 %v10261_v42, %v10275_v15  ;;  %v11434_v42 = vsub.f32 %v10220_v47, %v10232_v16 }
 0x2bb   : > { %v4596_v13 = vsub.f32 %v10341_v0, %v10360_v52  ;;  %5849 = vst.msk [vmem:[#allocation2 + $0xf0] sm:$0xff] %vm294_vm1, %v10360_v52  ;;  %v10372_v48 = vmax.f32 %v10355_v29, %v4533_v34  ;;  %4779 = vperm.xlu1 %7944, %v10330_v61   ;;  %v4610_v49 = vmul.f32 1.442695, %v4572_v46  ;;  %v4571_v46 = vsub.f32 %v10205_v14, %v10217_v50 }
 0x2bc   : > { %v4524_v33 = vpop.xlane.xlu1 %4523  ;;  %v4634_v57 = vmul.f32 1.442695, %v4584_v60  ;;  %v4630_v31 = vmul.f32 1.442695, %v4582_v35  ;;  %v4628_v15 = vmul.f32 1.442695, %v11434_v42  ;;  %v4583_v16 = vsub.f32 %v10270_v22, %v10282_v20 }
 0x2bd   : > { %v4597_v11 = vsub.f32 %v10355_v29, %v10372_v48  ;;  %5850 = vst.msk [vmem:[#allocation2 + $0xf8] sm:$0xff] %vm294_vm1, %v10372_v48  ;;  %v10384_v18 = vmax.f32 %v10362_v40, %v4524_v33  ;;  %8014 = vpow2.f32 %v4610_v49  ;;  %v11431_v33 = vsub.f32 %v10110_v23, %v10115_v38 }
 0x2be   : > { %v4527_v34 = vpop.xlane.xlu0 %4526  ;;  %8016 = vpow2.f32 %v4614_v9  ;;  %v4608_v6 = vmul.f32 1.442695, %v4571_v46  ;;  %v4612_v23 = vmul.f32 1.442695, %v4573_v55  ;;  %v4580_v38 = vsub.f32 %v10212_v19, %v10225_v45 }
 0x2bf   : > { %5847 = vst.msk [vmem:[#allocation2 + $0xe0] sm:$0xff] %vm294_vm1, %v10384_v18  ;;  %v10392_v36 = vmax.f32 %v10377_v21, %v4527_v34  ;;  %4804 = vperm.xlu0 %7945, %v10384_v18   ;;  %4769 = vperm.xlu1 %7944, %v10346_v8   ;;  %v4618_v34 = vmul.f32 1.442695, %v11431_v33  ;;  %8018 = vpow2.f32 %v4604_v2  ;;  %v11433_v49 = vsub.f32 %v10160_v1, %v10172_v44 }
 0x2c0   : > { %v4626_v53 = vmul.f32 1.442695, %v4580_v38  ;;  %v4624_v1 = vmul.f32 1.442695, %v4579_v17  ;;  %v4592_v44 = vsub.f32 %v10277_v10, %v10291_v51  ;;  %v4585_v2 = vsub.f32 %v10254_v59, %v10266_v62 }
 0x2c1   : > { %5848 = vst.msk [vmem:[#allocation2 + $0xe8] sm:$0xff] %vm294_vm1, %v10392_v36  ;;  %v10419_v14 = vpop.eup %8008  ;;  %8020 = vpow2.f32 %v4618_v34  ;;  %v4620_v32 = vmul.f32 1.442695, %v11433_v49  ;;  %v4590_v10 = vsub.f32 %v10293_v26, %v10307_v5  ;;  %v4588_v62 = vsub.f32 %v10309_v37, %v10323_v54 }
 0x2c2   : > { %8022 = vpow2.f32 %v4608_v6  ;;  %v4650_v46 = vmul.f32 1.442695, %v4592_v44  ;;  %v4636_v47 = vmul.f32 1.442695, %v4585_v2  ;;  %v4632_v5 = vmul.f32 1.442695, %v4583_v16 }
 0x2c3   : > { %4814 = vperm.xlu0 %7945, %v10360_v52   ;;  %4809 = vperm.xlu1 %7944, %v10392_v36   ;;  %v10421_v39 = vpop.eup %8010  ;;  %8024 = vpow2.f32 %v4612_v23  ;;  %v4646_v59 = vmul.f32 1.442695, %v4590_v10  ;;  %v4593_v55 = vsub.f32 %v10286_v43, %v10298_v56  ;;  %v4642_v22 = vmul.f32 1.442695, %v4588_v62  ;;  %v11438_v44 = vld [vmem:[#allocation15_spill] sm:$0xff]  ;;  %v11439_v10 = vld [vmem:[#allocation17_spill] sm:$0xff] }
 0x2c4   : > { %v10427_v3 = vpop.eup %8012  ;;  %8026 = vpow2.f32 %v4622_v7  ;;  %v4586_v20 = vsub.f32 %v10325_v30, %v10339_v12  ;;  %v4591_v23 = vsub.f32 %v11435_v4, %v10314_v28  ;;  %v4594_v56 = vsub.f32 %v10362_v40, %v10384_v18  ;;  %v11436_v28 = vld [vmem:[#allocation48_spill] sm:$0xff]  ;;  %v11437_v18 = vld [vmem:[#allocation49_spill] sm:$0xff] }
 0x2c5   : > { %8028 = vpow2.f32 %v4616_v24  ;;  %v4652_v54 = vmul.f32 1.442695, %v4593_v55  ;;  %v4589_v7 = vsub.f32 %v11436_v28, %v10330_v61  ;;  %v4587_v60 = vsub.f32 %v11437_v18, %v10346_v8  ;;  %v11444_v18 = vld [vmem:[#allocation19_spill] sm:$0xff] }
 0x2c6   : > { %8030 = vpow2.f32 %v4626_v53  ;;  %v4638_v43 = vmul.f32 1.442695, %v4586_v20  ;;  %v4648_v12 = vmul.f32 1.442695, %v4591_v23  ;;  %v4654_v41 = vmul.f32 1.442695, %v4594_v56 }
 0x2c7   : > { %5182 = vperm.xlu0 %7945, %v10408_v27   ;;  %4819 = vperm.xlu1 %7944, %v10372_v48   ;;  %v10429_v50 = vpop.eup %8014  ;;  %8032 = vpow2.f32 %v4620_v32  ;;  %v4644_v40 = vmul.f32 1.442695, %v4589_v7  ;;  %v4640_v61 = vmul.f32 1.442695, %v4587_v60  ;;  %v4595_v17 = vsub.f32 %v10377_v21, %v10392_v36  ;;  %v11440_v36 = vld [vmem:[#allocation21_spill] sm:$0xff]  ;;  %v11442_v23 = vld [vmem:[#allocation16_spill] sm:$0xff] }
 0x2c8   : > { %v10438_v19 = vpop.eup %8016  ;;  %8034 = vpow2.f32 %v4634_v57  ;;  %v11443_v7 = vld [vmem:[#allocation18_spill] sm:$0xff] }
 0x2c9   : > { %v10440_v45 = vpop.eup %8018  ;;  %8036 = vpow2.f32 %v4624_v1  ;;  %v4656_v8 = vmul.f32 1.442695, %v4595_v17 }
 0x2ca   : > { %8038 = vpow2.f32 %v4630_v31 }
 0x2cb   : > { %5197 = vperm.xlu0 %7945, %v10421_v39   ;;  %5177 = vperm.xlu1 %7944, %v10419_v14   ;;  %v10451_v63 = vpop.eup %8020  ;;  %8040 = vpow2.f32 %v4628_v15 }
 0x2cc   : > { %v10453_v9 = vpop.eup %8022  ;;  %8042 = vpow2.f32 %v4650_v46 }
 0x2cd   : > { %v10459_v25 = vpop.eup %8024  ;;  %8044 = vpow2.f32 %v4636_v47 }
 0x2ce   : > { %v10461_v58 = vpop.eup %8026  ;;  %8046 = vpow2.f32 %v4646_v59 }
 0x2cf   : > { %5207 = vperm.xlu0 %7945, %v10429_v50   ;;  %5187 = vperm.xlu1 %7944, %v10427_v3   ;;  %v10472_v51 = vpop.eup %8028  ;;  %8048 = vpow2.f32 %v4632_v5 }
 0x2d0   : > { %v10474_v33 = vpop.eup %8030  ;;  %8050 = vpow2.f32 %v4642_v22  ;;  %v11441_v22 = vld [vmem:[#allocation20_spill] sm:$0xff] }
 0x2d1   : > { %v10482_v34 = vpop.eup %8032  ;;  %8052 = vpow2.f32 %v4652_v54 }
 0x2d2   : > { %v10484_v26 = vpop.eup %8034  ;;  %8054 = vpow2.f32 %v4638_v43 }
 0x2d3   : > { %5217 = vperm.xlu0 %7945, %v10438_v19   ;;  %5192 = vperm.xlu1 %7944, %v10440_v45   ;;  %v10492_v6 = vpop.eup %8036  ;;  %8056 = vpow2.f32 %v4648_v12 }
 0x2d4   : > { %v10494_v37 = vpop.eup %8038  ;;  %8058 = vpow2.f32 %v4654_v41 }
 0x2d5   : > { %v10502_v38 = vpop.eup %8040  ;;  %8060 = vpow2.f32 %v4644_v40 }
 0x2d6   : > { %v10504_v30 = vpop.eup %8042  ;;  %8062 = vpow2.f32 %v4640_v61 }
 0x2d7   : > { %5227 = vperm.xlu0 %7945, %v10451_v63   ;;  %5202 = vperm.xlu1 %7944, %v10453_v9   ;;  %v10510_v24 = vpop.eup %8044  ;;  %8064 = vpow2.f32 %v4656_v8 }
 0x2d8   : > { %v10512_v53 = vpop.eup %8046 }
 0x2d9   : > { %v10518_v49 = vpop.eup %8048 }
 0x2da   : > { %v10520_v32 = vpop.eup %8050 }
 0x2db   : > { %5237 = vperm.xlu0 %7945, %v10461_v58   ;;  %5212 = vperm.xlu1 %7944, %v10459_v25   ;;  %v10526_v1 = vpop.eup %8052 }
 0x2dc   : > { %v10528_v31 = vpop.eup %8054 }
 0x2dd   : > { %v10533_v46 = vpop.eup %8056 }
 0x2de   : > { %v10537_v16 = vpop.eup %8058 }
 0x2df   : > { %5247 = vperm.xlu0 %7945, %v10474_v33   ;;  %5222 = vperm.xlu1 %7944, %v10472_v51   ;;  %v10542_v54 = vpop.eup %8060 }
 0x2e0   : > { %v10546_v12 = vpop.eup %8062 }
 0x2e1   : > { %v10551_v61 = vpop.eup %8064 }
 0x2e3   : > { %5267 = vperm.xlu0 %7945, %v10484_v26   ;;  %5232 = vperm.xlu1 %7944, %v10482_v34  }
 0x2e7   : > { %5257 = vperm.xlu0 %7945, %v10494_v37   ;;  %5242 = vperm.xlu1 %7944, %v10492_v6  }
 0x2eb   : > { %5307 = vperm.xlu0 %7945, %v10504_v30   ;;  %5252 = vperm.xlu1 %7944, %v10502_v38  }
 0x2ef   : > { %5297 = vperm.xlu0 %7945, %v10512_v53   ;;  %5272 = vperm.xlu1 %7944, %v10510_v24  }
 0x2f3   : > { %5287 = vperm.xlu0 %7945, %v10520_v32   ;;  %5262 = vperm.xlu1 %7944, %v10518_v49  }
 0x2f4   : > { %v4675_v57 = vpop.permute.xlu1 %4674  ;;  %v4715_v35 = vpop.permute.xlu0 %4714 }
 0x2f5   : > { %v4824_v42 = vsub.f32 %v11438_v44, %v4675_v57  ;;  %v4832_v43 = vsub.f32 %v11442_v23, %v4715_v35 }
 0x2f7   : > { %5277 = vperm.xlu0 %7945, %v10528_v31   ;;  %5312 = vperm.xlu1 %7944, %v10526_v1   ;;  %v4858_v5 = vmul.f32 1.442695, %v4824_v42  ;;  %v4874_v28 = vmul.f32 1.442695, %v4832_v43  ;;  %v11445_v42 = vld [vmem:[#allocation22_spill] sm:$0xff]  ;;  %v11449_v43 = vld [vmem:[#allocation23_spill] sm:$0xff] }
 0x2f8   : > { %v4665_v15 = vpop.permute.xlu1 %4664  ;;  %v4670_v2 = vpop.permute.xlu0 %4669 }
 0x2f9   : > { %v4822_v21 = vsub.f32 %v11439_v10, %v4665_v15  ;;  %v4823_v47 = vsub.f32 %v11440_v36, %v4670_v2 }
 0x2fb   : > { %5317 = vperm.xlu0 %7945, %v10537_v16   ;;  %5302 = vperm.xlu1 %7944, %v10533_v46   ;;  %v4854_v59 = vmul.f32 1.442695, %v4822_v21  ;;  %v4856_v62 = vmul.f32 1.442695, %v4823_v47 }
 0x2fc   : > { %v4680_v55 = vpop.permute.xlu1 %4679 }
 0x2fd   : > { %8066 = vpow2.f32 %v4854_v59  ;;  %v4825_v20 = vsub.f32 %v11441_v22, %v4680_v55  ;;  %v11446_v59 = vld [vmem:[#allocation10_spill] sm:$0xff] }
 0x2fe   : > { %8068 = vpow2.f32 %v4856_v62  ;;  %v11447_v62 = vld [vmem:[#allocation8_spill] sm:$0xff] }
 0x2ff   : > { %5292 = vperm.xlu1 %7944, %v10542_v54   ;;  %v4860_v4 = vmul.f32 1.442695, %v4825_v20  ;;  %8070 = vpow2.f32 %v4858_v5 }
 0x300   : > { %v4705_v56 = vpop.permute.xlu1 %4704 }
 0x301   : > { %8072 = vpow2.f32 %v4860_v4  ;;  %v4830_v41 = vsub.f32 %v11443_v7, %v4705_v56  ;;  %v11448_v4 = vld [vmem:[#allocation11_spill] sm:$0xff] }
 0x302   : > { %8074 = vpow2.f32 %v4874_v28 }
 0x303   : > { %5282 = vperm.xlu1 %7944, %v10546_v12   ;;  %v4870_v35 = vmul.f32 1.442695, %v4830_v41  ;;  %v11450_v41 = vld [vmem:[#allocation13_spill] sm:$0xff] }
 0x304   : > { %v4720_v40 = vpop.permute.xlu1 %4719 }
 0x305   : > { %v4833_v60 = vsub.f32 %v11444_v18, %v4720_v40 }
 0x307   : > { %v8067_v17 = vpop.eup %8066  ;;  %5322 = vperm.xlu1 %7944, %v10551_v61   ;;  %v4876_v57 = vmul.f32 1.442695, %v4833_v60 }
 0x308   : > { %v10554_v8 = vpop.eup %8068  ;;  %v4710_v44 = vpop.permute.xlu1 %4709 }
 0x309   : > { %8076 = vpow2.f32 %v4876_v57  ;;  %v4831_v15 = vsub.f32 %v11445_v42, %v4710_v44  ;;  %v5367_v2 = vpack.c.bf16 %v10554_v8, %v8067_v17  ;;  %v8071_v10 = vpop.eup %8070  ;;  %v11451_v57 = vld [vmem:[#allocation25_spill] sm:$0xff] }
 0x30a   : > { %8078 = vpow2.f32 %v4870_v35  ;;  %v4988_v18 = vsel %vm4437_vm2, %v8071_v10, 0.0 }
 0x30b   : > { %v8073_v21 = vpop.eup %8072  ;;  %v4872_v36 = vmul.f32 1.442695, %v4831_v15  ;;  %7837 = vmatprep.mubr.msk.bf16.mxu0 %vm4437_vm2, %v5367_v2  ;;  %v11452_v15 = vld [vmem:[#allocation28_spill] sm:$0xff] }
 0x30c   : > { %v5368_v47 = vpack.c.bf16 %v8073_v21, %v8071_v10  ;;  %v10562_v5 = vpop.eup %8074  ;;  %v11454_v10 = vld [vmem:[#allocation7_spill] sm:$0xff] }
 0x30d   : > { %8080 = vpow2.f32 %v4872_v36  ;;  %v11453_v36 = vld [vmem:[#allocation9_spill] sm:$0xff] }
 0x30e   : > { %7838 = vmatmul.mubr.msk.bf16.vlgmr.msra.gmra.mrb[16].mxu0 %vm4437_vm2, %v5368_v47 }
 0x30f   : > { %7862 = vmatpush3.bf16.msra.mxu0 %v11446_v59  ;;  %v4982_v59 = vsel %vm4437_vm2, %v8067_v17, 0.0 }
 0x310   : > { %7863 = vmatprep.subr.bf16.mxu0 %v11447_v62 }
 0x312   : > { %v4695_v55 = vpop.permute.xlu1 %4694 }
 0x313   : > { %v8077_v22 = vpop.eup %8076  ;;  %7864 = vmatpush3.bf16.msra.mxu0 %v11447_v62  ;;  %v4828_v56 = vsub.f32 %v11449_v43, %v4695_v55  ;;  %v11455_v55 = vld [vmem:[#allocation24_spill] sm:$0xff] }
 0x314   : > { %v5372_v20 = vpack.c.bf16 %v8077_v22, %v10562_v5  ;;  %7865 = vmatprep.subr.bf16.mxu0 %v11448_v4  ;;  %v10567_v23 = vpop.eup %8078 }
 0x315   : > { %v4866_v60 = vmul.f32 1.442695, %v4828_v56 }
 0x316   : > { %v4685_v28 = vpop.permute.xlu1 %4684 }
 0x317   : > { %v8081_v7 = vpop.eup %8080  ;;  %7866 = vmatpush3.bf16.msra.mxu0 %v11448_v4  ;;  %v4826_v35 = vsub.f32 %v11451_v57, %v4685_v28  ;;  %8082 = vpow2.f32 %v4866_v60  ;;  %v11456_v28 = vld [vmem:[#allocation29_spill] sm:$0xff]  ;;  %v11458_v57 = vld [vmem:[#allocation26_spill] sm:$0xff] }
 0x318   : > { %7867 = vmatprep.subr.bf16.mxu0 %v11450_v41  ;;  %v5371_v40 = vpack.c.bf16 %v8081_v7, %v10567_v23 }
 0x319   : > { %v4862_v62 = vmul.f32 1.442695, %v4826_v35 }
 0x31a   : > { %4989 = vadd.xlane.f32.xlu0 %v4988_v18  ;;  %v4700_v44 = vpop.permute.xlu1 %4699  ;;  %v4735_v42 = vpop.permute.xlu0 %4734  ;;  %7853 = vmatprep.mubr.msk.bf16.mxu1 %vm4437_vm2, %v5371_v40  ;;  %v11457_v18 = vld [vmem:[#allocation12_spill] sm:$0xff] }
 0x31b   : > { %v4829_v2 = vsub.f32 %v11452_v15, %v4700_v44  ;;  %7868 = vmatpush3.bf16.msra.mxu0 %v11450_v41  ;;  %7854 = vmatmul.mubr.msk.bf16.vlgmr.msra.gmra.mrb[16].mxu1 %vm4437_vm2, %v5372_v20  ;;  %v4836_v4 = vsub.f32 %v11455_v55, %v4735_v42  ;;  %v4991_v41 = vsel %vm4437_vm2, %v8073_v21, 0.0  ;;  %v11459_v42 = vld [vmem:[#allocation27_spill] sm:$0xff] }
 0x31c   : > { %7878 = vmatpush3.bf16.msra.mxu1 %v11453_v36  ;;  %v5015_v36 = vsel %vm4437_vm2, %v8077_v22, 0.0  ;;  %v5012_v22 = vsel %vm4437_vm2, %v10562_v5, 0.0  ;;  %v4985_v5 = vsel %vm4437_vm2, %v10554_v8, 0.0 }
 0x31d   : > { %v4868_v47 = vmul.f32 1.442695, %v4829_v2  ;;  %7879 = vmatprep.subr.bf16.mxu1 %v11454_v10  ;;  %v4882_v17 = vmul.f32 1.442695, %v4836_v4  ;;  %v11462_v4 = vld [vmem:[#allocation30_spill] sm:$0xff] }
 0x31e   : > { %4983 = vadd.xlane.f32.xlu0 %v4982_v59  ;;  %v4690_v43 = vpop.permute.xlu1 %4689  ;;  %v4725_v56 = vpop.permute.xlu0 %4724  ;;  %v11461_v59 = vld [vmem:[#allocation32_spill] sm:$0xff] }
 0x31f   : > { %8084 = vpow2.f32 %v4868_v47  ;;  %v4827_v40 = vsub.f32 %v11456_v28, %v4690_v43  ;;  %v4834_v60 = vsub.f32 %v11458_v57, %v4725_v56  ;;  %v11460_v47 = vld [vmem:[#allocation14_spill] sm:$0xff] }
 0x320   : > { %7880 = vmatpush3.bf16.msra.mxu1 %v11454_v10  ;;  %8086 = vpow2.f32 %v4862_v62 }
 0x321   : > { %v4864_v20 = vmul.f32 1.442695, %v4827_v40  ;;  %7881 = vmatprep.subr.bf16.mxu1 %v11457_v18  ;;  %v4878_v21 = vmul.f32 1.442695, %v4834_v60  ;;  %v8083_v56 = vpop.eup %8082 }
 0x322   : > { %4992 = vadd.xlane.f32.xlu0 %v4991_v41  ;;  %v4740_v35 = vpop.permute.xlu1 %4739  ;;  %v4755_v44 = vpop.permute.xlu0 %4754 }
 0x323   : > { %8088 = vpow2.f32 %v4864_v20  ;;  %v4837_v15 = vsub.f32 %v11459_v42, %v4740_v35  ;;  %v4840_v10 = vsub.f32 %v11461_v59, %v4755_v44  ;;  %v5009_v20 = vsel %vm4437_vm2, %v8081_v7, 0.0  ;;  %v11464_v44 = vld [vmem:[#allocation36_spill] sm:$0xff] }
 0x324   : > { %7882 = vmatpush3.bf16.msra.mxu1 %v11457_v18  ;;  %8090 = vpow2.f32 %v4882_v17  ;;  %v11463_v18 = vld [vmem:[#allocation33_spill] sm:$0xff] }
 0x325   : > { %v4884_v2 = vmul.f32 1.442695, %v4837_v15  ;;  %7883 = vmatprep.subr.bf16.mxu1 %v11460_v47  ;;  %v4890_v41 = vmul.f32 1.442695, %v4840_v10 }
 0x326   : > { %5016 = vadd.xlane.f32.xlu0 %v5015_v36  ;;  %v4730_v62 = vpop.permute.xlu1 %4729  ;;  %v4745_v55 = vpop.permute.xlu0 %4744 }
 0x327   : > { %8092 = vpow2.f32 %v4884_v2  ;;  %v4835_v43 = vsub.f32 %v11462_v4, %v4730_v62  ;;  %v4838_v17 = vsub.f32 %v11463_v18, %v4745_v55  ;;  %v11466_v4 = vld [vmem:[#allocation37_spill] sm:$0xff]  ;;  %v11467_v18 = vld [vmem:[#allocation34_spill] sm:$0xff] }
 0x328   : > { %7884 = vmatpush3.bf16.msra.mxu1 %v11460_v47  ;;  %8094 = vpow2.f32 %v4878_v21  ;;  %v11465_v21 = vld [vmem:[#allocation31_spill] sm:$0xff] }
 0x329   : > { %v8085_v28 = vpop.eup %8084  ;;  %v4880_v40 = vmul.f32 1.442695, %v4835_v43  ;;  %v4886_v47 = vmul.f32 1.442695, %v4838_v17 }
 0x32a   : > { %5010 = vadd.xlane.f32.xlu0 %v5009_v20  ;;  %v4760_v57 = vpop.permute.xlu1 %4759  ;;  %v4795_v60 = vpop.permute.xlu0 %4794  ;;  %v5370_v35 = vpack.c.bf16 %v8085_v28, %v8083_v56  ;;  %v5003_v7 = vsel %vm4437_vm2, %v8085_v28, 0.0 }
 0x32b   : > { %8096 = vpow2.f32 %v4880_v40  ;;  %v4841_v42 = vsub.f32 %v11464_v44, %v4760_v57  ;;  %5013 = vadd.xlane.f32.xlu1 %v5012_v22  ;;  %v8087_v15 = vpop.eup %8086  ;;  %v4848_v59 = vsub.f32 %v11465_v21, %v4795_v60  ;;  %v5006_v22 = vsel %vm4437_vm2, %v10567_v23, 0.0 }
 0x32c   : > { %8098 = vpow2.f32 %v4890_v41  ;;  %v5000_v21 = vsel %vm4437_vm2, %v8083_v56, 0.0 }
 0x32d   : > { %v8089_v2 = vpop.eup %8088  ;;  %v4892_v36 = vmul.f32 1.442695, %v4841_v42  ;;  %v4906_v41 = vmul.f32 1.442695, %v4848_v59  ;;  %v11468_v42 = vld [vmem:[#allocation35_spill] sm:$0xff] }
 0x32e   : > { %5004 = vadd.xlane.f32.xlu0 %v5003_v7  ;;  %v4750_v10 = vpop.permute.xlu1 %4749  ;;  %v4785_v62 = vpop.permute.xlu0 %4784  ;;  %v5369_v55 = vpack.c.bf16 %v8089_v2, %v8087_v15  ;;  %v4997_v8 = vsel %vm4437_vm2, %v8089_v2, 0.0 }
 0x32f   : > { %8100 = vpow2.f32 %v4892_v36  ;;  %v4839_v43 = vsub.f32 %v11466_v4, %v4750_v10  ;;  %4986 = vadd.xlane.f32.xlu1 %v4985_v5  ;;  %v8091_v40 = vpop.eup %8090  ;;  %v4846_v17 = vsub.f32 %v11467_v18, %v4785_v62 }
 0x330   : > { %7841 = vmatprep.mubr.msk.bf16.mxu0 %vm4437_vm2, %v5369_v55  ;;  %8102 = vpow2.f32 %v4886_v47  ;;  %v11469_v47 = vld [vmem:[#allocation40_spill] sm:$0xff]  ;;  %v11470_v55 = vld [vmem:[#allocation38_spill] sm:$0xff] }
 0x331   : > { %v8093_v20 = vpop.eup %8092  ;;  %v4888_v28 = vmul.f32 1.442695, %v4839_v43  ;;  %7842 = vmatmul.mubr.msk.bf16.gmra.mrb[20].mxu0 %vm4437_vm2, %v5370_v35  ;;  %v4902_v23 = vmul.f32 1.442695, %v4846_v17  ;;  %v11471_v17 = vld [vmem:[#allocation41_spill] sm:$0xff] }
 0x332   : > { %4998 = vadd.xlane.f32.xlu0 %v4997_v8  ;;  %v4800_v57 = vpop.permute.xlu1 %4799  ;;  %v4775_v60 = vpop.permute.xlu0 %4774  ;;  %v5374_v44 = vpack.c.bf16 %v8093_v20, %v8091_v40  ;;  %v5027_v2 = vsel %vm4437_vm2, %v8093_v20, 0.0  ;;  %v4994_v20 = vsel %vm4437_vm2, %v8087_v15, 0.0 }
 0x333   : > { %8104 = vpow2.f32 %v4888_v28  ;;  %v4849_v36 = vsub.f32 %v11468_v42, %v4800_v57  ;;  %5007 = vadd.xlane.f32.xlu1 %v5006_v22  ;;  %v8095_v7 = vpop.eup %8094  ;;  %v4844_v59 = vsub.f32 %v11469_v47, %v4775_v60  ;;  %v11472_v42 = vld [vmem:[#allocation44_spill] sm:$0xff] }
 0x334   : > { %8106 = vpow2.f32 %v4906_v41 }
 0x335   : > { %v8097_v5 = vpop.eup %8096  ;;  %v4908_v35 = vmul.f32 1.442695, %v4849_v36  ;;  %v4898_v18 = vmul.f32 1.442695, %v4844_v59 }
 0x336   : > { %5028 = vadd.xlane.f32.xlu0 %v5027_v2  ;;  %v4790_v10 = vpop.permute.xlu1 %4789  ;;  %v5373_v62 = vpack.c.bf16 %v8097_v5, %v8095_v7  ;;  %v4765_v43 = vpop.permute.xlu0 %4764  ;;  %v5021_v56 = vsel %vm4437_vm2, %v8097_v5, 0.0 }
 0x337   : > { %8108 = vpow2.f32 %v4908_v35  ;;  %v4847_v4 = vsub.f32 %v11470_v55, %v4790_v10  ;;  %5001 = vadd.xlane.f32.xlu1 %v5000_v21  ;;  %v8099_v28 = vpop.eup %8098  ;;  %v4842_v57 = vsub.f32 %v11471_v17, %v4765_v43  ;;  %v11473_v10 = vld [vmem:[#allocation45_spill] sm:$0xff]  ;;  %v11474_v55 = vld [vmem:[#allocation42_spill] sm:$0xff] }
 0x338   : > { %7857 = vmatprep.mubr.msk.bf16.mxu1 %vm4437_vm2, %v5373_v62  ;;  %8110 = vpow2.f32 %v4902_v23  ;;  %v5024_v23 = vsel %vm4437_vm2, %v8091_v40, 0.0 }
 0x339   : > { %v8101_v8 = vpop.eup %8100  ;;  %v4904_v22 = vmul.f32 1.442695, %v4847_v4  ;;  %7858 = vmatmul.mubr.msk.bf16.gmra.mrb[20].mxu1 %vm4437_vm2, %v5374_v44  ;;  %v4894_v5 = vmul.f32 1.442695, %v4842_v57  ;;  %v5018_v57 = vsel %vm4437_vm2, %v8095_v7, 0.0  ;;  %v11477_v7 = vld [vmem:[#allocation43_spill] sm:$0xff] }
 0x33a   : > { %v5376_v41 = vpack.c.bf16 %v8101_v8, %v8099_v28  ;;  %5022 = vadd.xlane.f32.xlu0 %v5021_v56  ;;  %v4780_v60 = vpop.permute.xlu1 %4779  ;;  %v8103_v35 = vpop.eup %8102  ;;  %v5039_v44 = vsel %vm4437_vm2, %v8101_v8, 0.0 }
 0x33b   : > { %8112 = vpow2.f32 %v4904_v22  ;;  %v4845_v36 = vsub.f32 %v11472_v42, %v4780_v60  ;;  %4995 = vadd.xlane.f32.xlu1 %v4994_v20  ;;  %v11475_v60 = vld [vmem:[#allocation46_spill] sm:$0xff] }
 0x33c   : > { %8114 = vpow2.f32 %v4898_v18 }
 0x33d   : > { %v8105_v2 = vpop.eup %8104  ;;  %v4900_v21 = vmul.f32 1.442695, %v4845_v36  ;;  %v11476_v36 = vld [vmem:[#allocation39_spill] sm:$0xff] }
 0x33e   : > { %5040 = vadd.xlane.f32.xlu0 %v5039_v44  ;;  %v4770_v15 = vpop.permute.xlu1 %4769  ;;  %v4805_v47 = vpop.permute.xlu0 %4804  ;;  %v5375_v59 = vpack.c.bf16 %v8105_v2, %v8103_v35  ;;  %v5033_v8 = vsel %vm4437_vm2, %v8105_v2, 0.0 }
 0x33f   : > { %8116 = vpow2.f32 %v4900_v21  ;;  %v4843_v62 = vsub.f32 %v11473_v10, %v4770_v15  ;;  %v4850_v4 = vsub.f32 %v11474_v55, %v4805_v47  ;;  %5025 = vadd.xlane.f32.xlu1 %v5024_v23  ;;  %v8107_v43 = vpop.eup %8106  ;;  %v5036_v23 = vsel %vm4437_vm2, %v8099_v28, 0.0 }
 0x340   : > { %7869 = vmatprep.mubr.msk.bf16.mxu0 %vm4437_vm2, %v5375_v59  ;;  %8118 = vpow2.f32 %v4894_v5 }
 0x341   : > { %v8109_v22 = vpop.eup %8108  ;;  %v4896_v56 = vmul.f32 1.442695, %v4843_v62  ;;  %7870 = vmatmul.mubr.msk.bf16.vlgmr.msra.gmra.mrb[24].mxu0 %vm4437_vm2, %v5376_v41  ;;  %v4910_v18 = vmul.f32 1.442695, %v4850_v4 }
 0x342   : > { %v5380_v20 = vpack.c.bf16 %v8109_v22, %v8107_v43  ;;  %5034 = vadd.xlane.f32.xlu0 %v5033_v8  ;;  %v4810_v40 = vpop.permute.xlu1 %4809  ;;  %v4815_v17 = vpop.permute.xlu0 %4814  ;;  %v5063_v41 = vsel %vm4437_vm2, %v8109_v22, 0.0 }
 0x343   : > { %8120 = vpow2.f32 %v4896_v56  ;;  %v4851_v42 = vsub.f32 %v11475_v60, %v4810_v40  ;;  %v4852_v21 = vsub.f32 %v11476_v36, %v4815_v17  ;;  %5019 = vadd.xlane.f32.xlu1 %v5018_v57  ;;  %v8111_v44 = vpop.eup %8110  ;;  %v5030_v56 = vsel %vm4437_vm2, %v8103_v35, 0.0 }
 0x344   : > { %8122 = vpow2.f32 %v4910_v18  ;;  %v5060_v17 = vsel %vm4437_vm2, %v8107_v43, 0.0 }
 0x345   : > { %v8113_v15 = vpop.eup %8112  ;;  %v4912_v47 = vmul.f32 1.442695, %v4851_v42  ;;  %v4914_v2 = vmul.f32 1.442695, %v4852_v21  ;;  %v5054_v42 = vsel %vm4437_vm2, %v8111_v44, 0.0 }
 0x346   : > { %5064 = vadd.xlane.f32.xlu0 %v5063_v41  ;;  %v4820_v5 = vpop.permute.xlu1 %4819  ;;  %v5379_v59 = vpack.c.bf16 %v8113_v15, %v8111_v44  ;;  %v8115_v62 = vpop.eup %8114  ;;  %v5057_v22 = vsel %vm4437_vm2, %v8113_v15, 0.0 }
 0x347   : > { %8124 = vpow2.f32 %v4912_v47  ;;  %v4853_v10 = vsub.f32 %v11477_v7, %v4820_v5  ;;  %5037 = vadd.xlane.f32.xlu1 %v5036_v23  ;;  %v10646_v43 = vpop.permute.xlu0 %5182  ;;  %v5048_v41 = vsel %vm4437_vm2, %v8115_v62, 0.0 }
 0x348   : > { %7885 = vmatprep.mubr.msk.bf16.mxu1 %vm4437_vm2, %v5379_v59  ;;  %8126 = vpow2.f32 %v4914_v2 }
 0x349   : > { %v8117_v55 = vpop.eup %8116  ;;  %v4916_v4 = vmul.f32 1.442695, %v4853_v10  ;;  %7886 = vmatmul.mubr.msk.bf16.vlgmr.msra.gmra.mrb[24].mxu1 %vm4437_vm2, %v5380_v20 }
 0x34a   : > { %5058 = vadd.xlane.f32.xlu0 %v5057_v22  ;;  %v5378_v8 = vpack.c.bf16 %v8117_v55, %v8115_v62  ;;  %v8119_v28 = vpop.eup %8118  ;;  %v5051_v40 = vsel %vm4437_vm2, %v8117_v55, 0.0  ;;  %v10651_v5 = vpop.permute.xlu1 %5177  ;;  %v4658_v55 = vmul.f32 1.442695, %v4596_v13  ;;  %v4660_v22 = vmul.f32 1.442695, %v4597_v11 }
 0x34b   : > { %8128 = vpow2.f32 %v4916_v4  ;;  %5031 = vadd.xlane.f32.xlu1 %v5030_v56  ;;  %v5042_v23 = vsel %vm4437_vm2, %v8119_v28, 0.0  ;;  %v10655_v59 = vpop.permute.xlu0 %5197 }
 0x34c   : > { %8130 = vpow2.f32 %v4658_v55 }
 0x34d   : > { %v8121_v18 = vpop.eup %8120  ;;  %8132 = vpow2.f32 %v4660_v22 }
 0x34e   : > { %5052 = vadd.xlane.f32.xlu0 %v5051_v40  ;;  %v5377_v57 = vpack.c.bf16 %v8121_v18, %v8119_v28  ;;  %v8123_v60 = vpop.eup %8122  ;;  %v5045_v35 = vsel %vm4437_vm2, %v8121_v18, 0.0  ;;  %v10658_v10 = vpop.permute.xlu1 %5187 }
 0x34f   : > { %5061 = vadd.xlane.f32.xlu1 %v5060_v17  ;;  %v10660_v62 = vpop.permute.xlu0 %5207  ;;  %v5066_v4 = vsel %vm4437_vm2, %v8123_v60, 0.0 }
 0x350   : > { %7873 = vmatprep.mubr.msk.bf16.mxu0 %vm4437_vm2, %v5377_v57 }
 0x351   : > { %v8125_v20 = vpop.eup %8124  ;;  %7874 = vmatmul.mubr.msk.bf16.gmra.mrb[28].mxu0 %vm4437_vm2, %v5378_v8 }
 0x352   : > { %5046 = vadd.xlane.f32.xlu0 %v5045_v35  ;;  %v5381_v36 = vpack.c.bf16 %v8125_v20, %v8123_v60  ;;  %v8127_v21 = vpop.eup %8126  ;;  %v5069_v44 = vsel %vm4437_vm2, %v8125_v20, 0.0  ;;  %v10669_v56 = vpop.permute.xlu1 %5192 }
 0x353   : > { %5055 = vadd.xlane.f32.xlu1 %v5054_v42  ;;  %v5072_v7 = vsel %vm4437_vm2, %v8127_v21, 0.0  ;;  %v10671_v8 = vpop.permute.xlu0 %5217 }
 0x354   : > { %7889 = vmatprep.mubr.msk.bf16.mxu1 %vm4437_vm2, %v5381_v36 }
 0x355   : > { %v8129_v15 = vpop.eup %8128 }
 0x356   : > { %v5075_v47 = vsel %vm4437_vm2, %v8129_v15, 0.0  ;;  %v5382_v2 = vpack.c.bf16 %v8129_v15, %v8127_v21  ;;  %v10673_v28 = vpop.permute.xlu1 %5202  ;;  %v10677_v40 = vpop.eup %8130 }
 0x357   : > { %5076 = vadd.xlane.f32.xlu0 %v5075_v47  ;;  %5049 = vadd.xlane.f32.xlu1 %v5048_v41  ;;  %v10675_v18 = vpop.permute.xlu0 %5227  ;;  %v10682_v52 = vpop.eup %8132 }
 0x358   : > { %7890 = vmatmul.mubr.msk.bf16.gmra.mrb[28].mxu1 %vm4437_vm2, %v5382_v2 }
 0x35a   : > { %v10680_v0 = vpop.permute.xlu1 %5212 }
 0x35b   : > { %5070 = vadd.xlane.f32.xlu0 %v5069_v44  ;;  %5043 = vadd.xlane.f32.xlu1 %v5042_v23  ;;  %v10684_v29 = vpop.permute.xlu0 %5237  ;;  %v4920_v23 = vld [vmem:[#allocation3 + $0x10] sm:$0xff] }
 0x35e   : > { %v10687_v13 = vpop.permute.xlu1 %5222 }
 0x35f   : > { %5073 = vadd.xlane.f32.xlu1 %v5072_v7  ;;  %v10689_v48 = vpop.permute.xlu0 %5247  ;;  %v4952_v7 = vmul.f32 %v10427_v3, %v4920_v23  ;;  %v4929_v3 = vld [vmem:[#allocation3 + $0x58] sm:$0xff] }
 0x362   : > { %v10691_v11 = vpop.permute.xlu1 %5232 }
 0x363   : > { %5067 = vadd.xlane.f32.xlu1 %v5066_v4  ;;  %v10693_v17 = vpop.permute.xlu0 %5267  ;;  %v4918_v4 = vld [vmem:[#allocation3] sm:$0xff] }
 0x366   : > { %v10695_v57 = vpop.permute.xlu1 %5242 }
 0x367   : > { %v10697_v60 = vpop.permute.xlu0 %5257 }
 0x36a   : > { %v10699_v20 = vpop.permute.xlu1 %5252 }
 0x36b   : > { %v10701_v35 = vpop.permute.xlu0 %5307 }
 0x36c   : > { %11478 = vst [vmem:[#allocation47_spill] sm:$0xff] %v10701_v35 }
 0x36e   : > { %v10703_v42 = vpop.permute.xlu1 %5272 }
 0x36f   : > { %11479 = vst [vmem:[#allocation48_spill] sm:$0xff] %v10703_v42  ;;  %v10705_v36 = vpop.permute.xlu0 %5297 }
 0x370   : > { %11480 = vst [vmem:[#allocation49_spill] sm:$0xff] %v10705_v36 }
 0x371   : > { %5327 = vperm.xlu0 %7945, %v10677_v40  }
 0x372   : > { %v10707_v21 = vpop.permute.xlu1 %5262 }
 0x373   : > { %11481 = vst [vmem:[#allocation15_spill] sm:$0xff] %v10707_v21  ;;  %v10709_v15 = vpop.permute.xlu0 %5287 }
 0x374   : > { %5332 = vperm.xlu1 %7944, %v10682_v52   ;;  %11482 = vst [vmem:[#allocation17_spill] sm:$0xff] %v10709_v15  ;;  %v4950_v15 = vmul.f32 %v10419_v14, %v4918_v4  ;;  %v4927_v14 = vld [vmem:[#allocation3 + $0x48] sm:$0xff] }
 0x376   : > { %v10711_v47 = vpop.permute.xlu1 %5312 }
 0x377   : > { %11483 = vst [vmem:[#allocation21_spill] sm:$0xff] %v10711_v47  ;;  %v10713_v41 = vpop.permute.xlu0 %5277  ;;  %v4921_v47 = vld [vmem:[#allocation3 + $0x18] sm:$0xff] }
 0x378   : > { %11484 = vst [vmem:[#allocation20_spill] sm:$0xff] %v10713_v41 }
 0x37a   : > { %v10715_v2 = vpop.permute.xlu1 %5302 }
 0x37b   : > { %11485 = vst [vmem:[#allocation16_spill] sm:$0xff] %v10715_v2  ;;  %v10717_v44 = vpop.permute.xlu0 %5317 }
 0x37c   : > { %11486 = vst [vmem:[#allocation18_spill] sm:$0xff] %v10717_v44  ;;  %v4953_v44 = vmul.f32 %v10440_v45, %v4921_v47  ;;  %v4959_v45 = vmul.f32 %v10472_v51, %v4927_v14  ;;  %v4923_v51 = vld [vmem:[#allocation3 + $0x28] sm:$0xff] }
 0x37e   : > { %v10720_v22 = vpop.permute.xlu1 %5292 }
 0x382   : > { %v10724_v41 = vpop.permute.xlu1 %5282 }
 0x3a7   : > { %v4990_v55 = vpop.xlane.xlu0 %4989 }
 0x3a8   : > { %v5080_v36 = vadd.f32 %v4990_v55, %v4952_v7  ;;  %v10730_v55 = vpop.permute.xlu1 %5322 }
 0x3aa   : > { %5113 = vst.msk [vmem:[#allocation3 + $0x10] sm:$0xff] %vm294_vm1, %v5080_v36  ;;  %v4961_v36 = vmul.f32 %v10482_v34, %v4929_v3 }
 0x3ab   : > { %v4984_v35 = vpop.xlane.xlu0 %4983 }
 0x3ac   : > { %v5078_v21 = vadd.f32 %v4984_v35, %v4950_v15  ;;  %v4928_v15 = vld [vmem:[#allocation3 + $0x50] sm:$0xff] }
 0x3ad   : > { %v4960_v47 = vmul.f32 %v10451_v63, %v4928_v15  ;;  %v4926_v15 = vld [vmem:[#allocation3 + $0x40] sm:$0xff] }
 0x3ae   : > { %5111 = vst.msk [vmem:[#allocation3] sm:$0xff] %vm294_vm1, %v5078_v21 }
 0x3af   : > { %v4993_v2 = vpop.xlane.xlu0 %4992 }
 0x3b0   : > { %v5081_v23 = vadd.f32 %v4993_v2, %v4953_v44 }
 0x3b1   : > { %v5888_v42 = vld [vmem:[#allocation3 + $0x10] sm:$0xff] }
 0x3b2   : > { %8134 = vrcp.f32 %v5888_v42  ;;  %5114 = vst.msk [vmem:[#allocation3 + $0x18] sm:$0xff] %vm294_vm1, %v5081_v23  ;;  %v4925_v42 = vld [vmem:[#allocation3 + $0x38] sm:$0xff]  ;;  %v4919_v23 = vld [vmem:[#allocation3 + $0x8] sm:$0xff] }
 0x3b3   : > { %v5017_v7 = vpop.xlane.xlu0 %5016 }
 0x3b4   : > { %v5089_v35 = vadd.f32 %v5017_v7, %v4961_v36  ;;  %v4957_v36 = vmul.f32 %v10459_v25, %v4925_v42  ;;  %v4958_v25 = vmul.f32 %v10438_v19, %v4926_v15  ;;  %v4933_v42 = vld [vmem:[#allocation3 + $0x78] sm:$0xff] }
 0x3b5   : > { %v5886_v4 = vld [vmem:[#allocation3] sm:$0xff] }
 0x3b6   : > { %8136 = vrcp.f32 %v5886_v4  ;;  %5122 = vst.msk [vmem:[#allocation3 + $0x58] sm:$0xff] %vm294_vm1, %v5089_v35  ;;  %v4951_v35 = vmul.f32 %v10408_v27, %v4919_v23  ;;  %v4924_v23 = vld [vmem:[#allocation3 + $0x30] sm:$0xff] }
 0x3b7   : > { %v5011_v21 = vpop.xlane.xlu0 %5010 }
 0x3b8   : > { %v5087_v2 = vadd.f32 %v5011_v21, %v4959_v45  ;;  %v5014_v44 = vpop.xlane.xlu1 %5013  ;;  %v4955_v21 = vmul.f32 %v10453_v9, %v4923_v51 }
 0x3b9   : > { %v5889_v34 = vld [vmem:[#allocation3 + $0x18] sm:$0xff]  ;;  %v5088_v3 = vadd.f32 %v5014_v44, %v4960_v47 }
 0x3ba   : > { %8138 = vrcp.f32 %v5889_v34  ;;  %5120 = vst.msk [vmem:[#allocation3 + $0x48] sm:$0xff] %vm294_vm1, %v5087_v2 }
 0x3bb   : > { %5121 = vst.msk [vmem:[#allocation3 + $0x50] sm:$0xff] %vm294_vm1, %v5088_v3  ;;  %v5005_v7 = vpop.xlane.xlu0 %5004 }
 0x3bc   : > { %v8135_v14 = vpop.eup %8134  ;;  %v5085_v4 = vadd.f32 %v5005_v7, %v4957_v36  ;;  %v4987_v63 = vpop.xlane.xlu1 %4986  ;;  %v4965_v36 = vmul.f32 %v10502_v38, %v4933_v42  ;;  %v4956_v7 = vmul.f32 %v10429_v50, %v4924_v23  ;;  %v4937_v50 = vld [vmem:[#allocation3 + $0x98] sm:$0xff] }
 0x3bd   : > { %v5079_v45 = vadd.f32 %v4987_v63, %v4951_v35  ;;  %5962 = vperm.xlu0 %7945, %v8135_v14   ;;  %v4931_v35 = vld [vmem:[#allocation3 + $0x68] sm:$0xff]  ;;  %v4969_v23 = vmul.f32 %v10510_v24, %v4937_v50 }
 0x3be   : > { %5118 = vst.msk [vmem:[#allocation3 + $0x38] sm:$0xff] %vm294_vm1, %v5085_v4  ;;  %v4922_v4 = vld [vmem:[#allocation3 + $0x20] sm:$0xff] }
 0x3bf   : > { %5112 = vst.msk [vmem:[#allocation3 + $0x8] sm:$0xff] %vm294_vm1, %v5079_v45  ;;  %v4999_v47 = vpop.xlane.xlu0 %4998  ;;  %v4963_v45 = vmul.f32 %v10492_v6, %v4931_v35 }
 0x3c0   : > { %v8137_v2 = vpop.eup %8136  ;;  %v5083_v44 = vadd.f32 %v4999_v47, %v4955_v21  ;;  %v5008_v27 = vpop.xlane.xlu1 %5007  ;;  %v5897_v21 = vld [vmem:[#allocation3 + $0x58] sm:$0xff]  ;;  %v4954_v47 = vmul.f32 %v10421_v39, %v4922_v4 }
 0x3c1   : > { %v5086_v34 = vadd.f32 %v5008_v27, %v4958_v25  ;;  %5952 = vperm.xlu0 %7945, %v8137_v2   ;;  %v4932_v2 = vld [vmem:[#allocation3 + $0x70] sm:$0xff] }
 0x3c2   : > { %v5896_v3 = vld [vmem:[#allocation3 + $0x50] sm:$0xff]  ;;  %5116 = vst.msk [vmem:[#allocation3 + $0x28] sm:$0xff] %vm294_vm1, %v5083_v44 }
 0x3c3   : > { %8140 = vrcp.f32 %v5896_v3  ;;  %5119 = vst.msk [vmem:[#allocation3 + $0x40] sm:$0xff] %vm294_vm1, %v5086_v34  ;;  %v5029_v9 = vpop.xlane.xlu0 %5028  ;;  %v5895_v34 = vld [vmem:[#allocation3 + $0x48] sm:$0xff]  ;;  %v4964_v3 = vmul.f32 %v10474_v33, %v4932_v2 }
 0x3c4   : > { %v8139_v19 = vpop.eup %8138  ;;  %v5093_v51 = vadd.f32 %v5029_v9, %v4965_v36  ;;  %v5002_v14 = vpop.xlane.xlu1 %5001  ;;  %v4935_v36 = vld [vmem:[#allocation3 + $0x88] sm:$0xff] }
 0x3c5   : > { %v5084_v63 = vadd.f32 %v5002_v14, %v4956_v7  ;;  %5967 = vperm.xlu1 %7944, %v8139_v19   ;;  %v4930_v7 = vld [vmem:[#allocation3 + $0x60] sm:$0xff]  ;;  %v4967_v24 = vmul.f32 %v10518_v49, %v4935_v36  ;;  %v5893_v14 = vld [vmem:[#allocation3 + $0x38] sm:$0xff]  ;;  %v4943_v2 = vld [vmem:[#allocation3 + $0xc8] sm:$0xff] }
 0x3c6   : > { %v5887_v15 = vld [vmem:[#allocation3 + $0x8] sm:$0xff]  ;;  %5126 = vst.msk [vmem:[#allocation3 + $0x78] sm:$0xff] %vm294_vm1, %v5093_v51  ;;  %v4962_v33 = vmul.f32 %v10461_v58, %v4930_v7  ;;  %v4941_v7 = vld [vmem:[#allocation3 + $0xb8] sm:$0xff] }
 0x3c7   : > { %8142 = vrcp.f32 %v5887_v15  ;;  %5117 = vst.msk [vmem:[#allocation3 + $0x30] sm:$0xff] %vm294_vm1, %v5084_v63  ;;  %v5023_v38 = vpop.xlane.xlu0 %5022  ;;  %v4945_v63 = vld [vmem:[#allocation3 + $0xd8] sm:$0xff] }
 0x3c8   : > { %v5091_v25 = vadd.f32 %v5023_v38, %v4963_v45  ;;  %v4996_v42 = vpop.xlane.xlu1 %4995  ;;  %8144 = vrcp.f32 %v5897_v21  ;;  %v4936_v21 = vld [vmem:[#allocation3 + $0x90] sm:$0xff]  ;;  %v4977_v49 = vmul.f32 %v10526_v1, %v4945_v63  ;;  %v4975_v1 = vmul.f32 %v10533_v46, %v4943_v2 }
 0x3c9   : > { %v5082_v44 = vadd.f32 %v4996_v42, %v4954_v47  ;;  %v4968_v58 = vmul.f32 %v10484_v26, %v4936_v21  ;;  %v4973_v46 = vmul.f32 %v10542_v54, %v4941_v7 }
 0x3ca   : > { %v5894_v27 = vld [vmem:[#allocation3 + $0x40] sm:$0xff]  ;;  %5124 = vst.msk [vmem:[#allocation3 + $0x68] sm:$0xff] %vm294_vm1, %v5091_v25  ;;  %v5891_v25 = vld [vmem:[#allocation3 + $0x28] sm:$0xff] }
 0x3cb   : > { %8146 = vrcp.f32 %v5894_v27  ;;  %5115 = vst.msk [vmem:[#allocation3 + $0x20] sm:$0xff] %vm294_vm1, %v5082_v44  ;;  %v5041_v6 = vpop.xlane.xlu0 %5040 }
 0x3cc   : > { %v5097_v39 = vadd.f32 %v5041_v6, %v4969_v23  ;;  %v5026_v9 = vpop.xlane.xlu1 %5025  ;;  %8148 = vrcp.f32 %v5895_v34  ;;  %v4934_v34 = vld [vmem:[#allocation3 + $0x80] sm:$0xff] }
 0x3cd   : > { %v8141_v35 = vpop.eup %8140  ;;  %v5092_v19 = vadd.f32 %v5026_v9, %v4964_v3  ;;  %v4966_v9 = vmul.f32 %v10494_v37, %v4934_v34 }
 0x3ce   : > { %v5892_v51 = vld [vmem:[#allocation3 + $0x30] sm:$0xff]  ;;  %5130 = vst.msk [vmem:[#allocation3 + $0x98] sm:$0xff] %vm294_vm1, %v5097_v39  ;;  %6002 = vperm.xlu0 %7945, %v8141_v35   ;;  %v5901_v39 = vld [vmem:[#allocation3 + $0x78] sm:$0xff] }
 0x3cf   : > { %8150 = vrcp.f32 %v5892_v51  ;;  %5125 = vst.msk [vmem:[#allocation3 + $0x70] sm:$0xff] %vm294_vm1, %v5092_v19  ;;  %v5035_v4 = vpop.xlane.xlu0 %5034 }
 0x3d0   : > { %v5095_v15 = vadd.f32 %v5035_v4, %v4967_v24  ;;  %v5020_v45 = vpop.xlane.xlu1 %5019  ;;  %8152 = vrcp.f32 %v5893_v14  ;;  %v4944_v24 = vld [vmem:[#allocation3 + $0xd0] sm:$0xff] }
 0x3d1   : > { %v8143_v38 = vpop.eup %8142  ;;  %v5090_v47 = vadd.f32 %v5020_v45, %v4962_v33  ;;  %v5899_v63 = vld [vmem:[#allocation3 + $0x68] sm:$0xff] }
 0x3d2   : > { %v5890_v50 = vld [vmem:[#allocation3 + $0x20] sm:$0xff]  ;;  %5128 = vst.msk [vmem:[#allocation3 + $0x88] sm:$0xff] %vm294_vm1, %v5095_v15  ;;  %5957 = vperm.xlu1 %7944, %v8143_v38   ;;  %v8145_v44 = vpop.eup %8144  ;;  %v4976_v15 = vmul.f32 %v10504_v30, %v4944_v24  ;;  %v4939_v45 = vld [vmem:[#allocation3 + $0xa8] sm:$0xff] }
 0x3d3   : > { %8154 = vrcp.f32 %v5890_v50  ;;  %5123 = vst.msk [vmem:[#allocation3 + $0x60] sm:$0xff] %vm294_vm1, %v5090_v47  ;;  %v5065_v42 = vpop.xlane.xlu0 %5064  ;;  %v4942_v50 = vld [vmem:[#allocation3 + $0xc0] sm:$0xff]  ;;  %v4971_v54 = vmul.f32 %v10546_v12, %v4939_v45  ;;  %v4947_v45 = vld [vmem:[#allocation3 + $0xe8] sm:$0xff] }
 0x3d4   : > { %v5105_v27 = vadd.f32 %v5065_v42, %v4977_v49  ;;  %v5038_v23 = vpop.xlane.xlu1 %5037  ;;  %8156 = vrcp.f32 %v5891_v25  ;;  %v5145_v25 = vld [vmem:[#allocation4 + $0x10] sm:$0xff] }
 0x3d5   : > { %v8147_v6 = vpop.eup %8146  ;;  %v5096_v3 = vadd.f32 %v5038_v23, %v4968_v58  ;;  %v5143_v58 = vld [vmem:[#allocation4] sm:$0xff]  ;;  %v4974_v23 = vmul.f32 %v10512_v53, %v4942_v50 }
 0x3d6   : > { %v5900_v36 = vld [vmem:[#allocation3 + $0x70] sm:$0xff]  ;;  %5138 = vst.msk [vmem:[#allocation3 + $0xd8] sm:$0xff] %vm294_vm1, %v5105_v27  ;;  %5992 = vperm.xlu0 %7945, %v8147_v6   ;;  %6007 = vperm.xlu1 %7944, %v8145_v44   ;;  %v8149_v35 = vpop.eup %8148  ;;  %v5146_v44 = vld [vmem:[#allocation4 + $0x18] sm:$0xff]  ;;  %v5337_v6 = vmul.f32 %v10658_v10, %v5145_v25  ;;  %v5335_v7 = vmul.f32 %v10651_v5, %v5143_v58 }
 0x3d7   : > { %8158 = vrcp.f32 %v5900_v36  ;;  %5129 = vst.msk [vmem:[#allocation3 + $0x90] sm:$0xff] %vm294_vm1, %v5096_v3  ;;  %v5059_v26 = vpop.xlane.xlu0 %5058  ;;  %v5905_v27 = vld [vmem:[#allocation3 + $0x98] sm:$0xff] }
 0x3d8   : > { %v5103_v19 = vadd.f32 %v5059_v26, %v4975_v1  ;;  %v5032_v51 = vpop.xlane.xlu1 %5031  ;;  %8160 = vrcp.f32 %v5901_v39  ;;  %v4940_v1 = vld [vmem:[#allocation3 + $0xb0] sm:$0xff]  ;;  %v4949_v39 = vld [vmem:[#allocation3 + $0xf8] sm:$0xff] }
 0x3d9   : > { %v8151_v14 = vpop.eup %8150  ;;  %v5094_v4 = vadd.f32 %v5032_v51, %v4966_v9  ;;  %v5144_v9 = vld [vmem:[#allocation4 + $0x8] sm:$0xff]  ;;  %v4981_v5 = vmul.f32 %v10682_v52, %v4949_v39  ;;  %v4946_v39 = vld [vmem:[#allocation3 + $0xe0] sm:$0xff] }
 0x3da   : > { %v5898_v33 = vld [vmem:[#allocation3 + $0x60] sm:$0xff]  ;;  %5136 = vst.msk [vmem:[#allocation3 + $0xc8] sm:$0xff] %vm294_vm1, %v5103_v19  ;;  %5982 = vperm.xlu0 %7945, %v8151_v14   ;;  %5997 = vperm.xlu1 %7944, %v8149_v35   ;;  %v8153_v21 = vpop.eup %8152  ;;  %v5338_v19 = vmul.f32 %v10669_v56, %v5146_v44  ;;  %v5903_v24 = vld [vmem:[#allocation3 + $0x88] sm:$0xff]  ;;  %v4972_v14 = vmul.f32 %v10520_v32, %v4940_v1  ;;  %v4948_v44 = vld [vmem:[#allocation3 + $0xf0] sm:$0xff] }
 0x3db   : > { %8162 = vrcp.f32 %v5898_v33  ;;  %5127 = vst.msk [vmem:[#allocation3 + $0x80] sm:$0xff] %vm294_vm1, %v5094_v4  ;;  %v5053_v37 = vpop.xlane.xlu0 %5052  ;;  %v5336_v56 = vmul.f32 %v10646_v43, %v5144_v9 }
 0x3dc   : > { %v5101_v38 = vadd.f32 %v5053_v37, %v4973_v46  ;;  %v5062_v47 = vpop.xlane.xlu1 %5061  ;;  %8164 = vrcp.f32 %v5899_v63 }
 0x3dd   : > { %v8155_v49 = vpop.eup %8154  ;;  %v5104_v42 = vadd.f32 %v5062_v47, %v4976_v15  ;;  %v4938_v15 = vld [vmem:[#allocation3 + $0xa0] sm:$0xff] }
 0x3de   : > { %v5904_v2 = vld [vmem:[#allocation3 + $0x90] sm:$0xff]  ;;  %5134 = vst.msk [vmem:[#allocation3 + $0xb8] sm:$0xff] %vm294_vm1, %v5101_v38  ;;  %5972 = vperm.xlu0 %7945, %v8155_v49   ;;  %5987 = vperm.xlu1 %7944, %v8153_v21   ;;  %v8157_v34 = vpop.eup %8156  ;;  %v5913_v49 = vld [vmem:[#allocation3 + $0xd8] sm:$0xff]  ;;  %v4970_v25 = vmul.f32 %v10528_v31, %v4938_v15  ;;  %v4980_v31 = vmul.f32 %v10677_v40, %v4948_v44 }
 0x3df   : > { %8166 = vrcp.f32 %v5904_v2  ;;  %5137 = vst.msk [vmem:[#allocation3 + $0xd0] sm:$0xff] %vm294_vm1, %v5104_v42  ;;  %v5047_v30 = vpop.xlane.xlu0 %5046  ;;  %v4979_v42 = vmul.f32 %v10551_v61, %v4947_v45  ;;  %v4978_v40 = vmul.f32 %v10537_v16, %v4946_v39 }
 0x3e0   : > { %v5099_v3 = vadd.f32 %v5047_v30, %v4971_v54  ;;  %v5056_v36 = vpop.xlane.xlu1 %5055  ;;  %8168 = vrcp.f32 %v5905_v27 }
 0x3e1   : > { %v8159_v26 = vpop.eup %8158  ;;  %v5102_v12 = vadd.f32 %v5056_v36, %v4974_v23  ;;  %v7839_v35 = vpop.f32.mrb[16].mxu0  ;;  %v5911_v36 = vld [vmem:[#allocation3 + $0xc8] sm:$0xff] }
 0x3e2   : > { %v5902_v51 = vld [vmem:[#allocation3 + $0x80] sm:$0xff]  ;;  %5132 = vst.msk [vmem:[#allocation3 + $0xa8] sm:$0xff] %vm294_vm1, %v5099_v3  ;;  %6022 = vperm.xlu0 %7945, %v8159_v26   ;;  %5977 = vperm.xlu1 %7944, %v8157_v34   ;;  %v5757_v53 = vadd.f32 %v7839_v35, %v5337_v6  ;;  %v5445_v10 = vpop.f32.mrb[17].mxu0  ;;  %v8161_v46 = vpop.eup %8160  ;;  %v5153_v34 = vld [vmem:[#allocation4 + $0x50] sm:$0xff] }
 0x3e3   : > { %8170 = vrcp.f32 %v5902_v51  ;;  %5135 = vst.msk [vmem:[#allocation3 + $0xc0] sm:$0xff] %vm294_vm1, %v5102_v12  ;;  %v5755_v4 = vadd.f32 %v5445_v10, %v5335_v7  ;;  %v7840_v33 = vpop.f32.mrb[18].mxu0  ;;  %v5151_v3 = vld [vmem:[#allocation4 + $0x40] sm:$0xff]  ;;  %v5345_v9 = vmul.f32 %v10675_v18, %v5153_v34  ;;  %v5154_v7 = vld [vmem:[#allocation4 + $0x58] sm:$0xff] }
 0x3e4   : > { %v5050_v63 = vpop.xlane.xlu1 %5049  ;;  %v5077_v37 = vpop.xlane.xlu0 %5076  ;;  %5789 = vst.msk [vmem:[#allocation4 + $0x10] sm:$0xff] %vm359_vm0, %v5757_v53  ;;  %v5758_v21 = vadd.f32 %v7840_v33, %v5338_v19  ;;  %8172 = vrcp.f32 %v5903_v24  ;;  %v5343_v35 = vmul.f32 %v10671_v8, %v5151_v3  ;;  %v5152_v19 = vld [vmem:[#allocation4 + $0x48] sm:$0xff]  ;;  %v5346_v18 = vmul.f32 %v10691_v11, %v5154_v7  ;;  %v5157_v7 = vld [vmem:[#allocation4 + $0x70] sm:$0xff] }
 0x3e5   : > { %v8163_v38 = vpop.eup %8162  ;;  %v5100_v47 = vadd.f32 %v5050_v63, %v4972_v14  ;;  %v5109_v50 = vadd.f32 %v5077_v37, %v4981_v5  ;;  %5787 = vst.msk [vmem:[#allocation4] sm:$0xff] %vm359_vm0, %v5755_v4  ;;  %v5448_v32 = vpop.f32.mrb[19].mxu0  ;;  %v5909_v10 = vld [vmem:[#allocation3 + $0xb8] sm:$0xff] }
 0x3e6   : > { %v5912_v52 = vld [vmem:[#allocation3 + $0xd0] sm:$0xff]  ;;  %6012 = vperm.xlu0 %7945, %v8163_v38   ;;  %6027 = vperm.xlu1 %7944, %v8161_v46   ;;  %5790 = vst.msk [vmem:[#allocation4 + $0x18] sm:$0xff] %vm359_vm0, %v5758_v21  ;;  %v5756_v43 = vadd.f32 %v5448_v32, %v5336_v56  ;;  %v8165_v58 = vpop.eup %8164  ;;  %v5344_v46 = vmul.f32 %v10687_v13, %v5152_v19  ;;  %v5156_v19 = vld [vmem:[#allocation4 + $0x68] sm:$0xff] }
 0x3e7   : > { %8174 = vrcp.f32 %v5912_v52  ;;  %5133 = vst.msk [vmem:[#allocation3 + $0xb0] sm:$0xff] %vm294_vm1, %v5100_v47  ;;  %5142 = vst.msk [vmem:[#allocation3 + $0xf8] sm:$0xff] %vm294_vm1, %v5109_v50 }
 0x3e8   : > { %v5044_v2 = vpop.xlane.xlu1 %5043  ;;  %v5071_v54 = vpop.xlane.xlu0 %5070  ;;  %5788 = vst.msk [vmem:[#allocation4 + $0x8] sm:$0xff] %vm359_vm0, %v5756_v43  ;;  %8176 = vrcp.f32 %v5913_v49 }
 0x3e9   : > { %v8167_v27 = vpop.eup %8166  ;;  %v5098_v30 = vadd.f32 %v5044_v2, %v4970_v25  ;;  %v5107_v23 = vadd.f32 %v5071_v54, %v4979_v42  ;;  %v5907_v21 = vld [vmem:[#allocation3 + $0xa8] sm:$0xff]  ;;  %v5149_v42 = vld [vmem:[#allocation4 + $0x30] sm:$0xff]  ;;  %v5147_v2 = vld [vmem:[#allocation4 + $0x20] sm:$0xff] }
 0x3ea   : > { %v5910_v6 = vld [vmem:[#allocation3 + $0xc0] sm:$0xff]  ;;  %6042 = vperm.xlu0 %7945, %v8167_v27   ;;  %6017 = vperm.xlu1 %7944, %v8165_v58   ;;  %v8169_v61 = vpop.eup %8168  ;;  %v5150_v54 = vld [vmem:[#allocation4 + $0x38] sm:$0xff]  ;;  %v5341_v44 = vmul.f32 %v10660_v62, %v5149_v42  ;;  %v5148_v27 = vld [vmem:[#allocation4 + $0x28] sm:$0xff] }
 0x3eb   : > { %8178 = vrcp.f32 %v5910_v6  ;;  %5131 = vst.msk [vmem:[#allocation3 + $0xa0] sm:$0xff] %vm294_vm1, %v5098_v30  ;;  %5140 = vst.msk [vmem:[#allocation3 + $0xe8] sm:$0xff] %vm294_vm1, %v5107_v23  ;;  %v5339_v23 = vmul.f32 %v10655_v59, %v5147_v2  ;;  %v5342_v3 = vmul.f32 %v10680_v0, %v5150_v54  ;;  %v5158_v0 = vld [vmem:[#allocation4 + $0x78] sm:$0xff]  ;;  %v11490_v42 = vld [vmem:[#allocation49_spill] sm:$0xff] }
 0x3ec   : > { %v5074_v1 = vpop.xlane.xlu1 %5073  ;;  %8180 = vrcp.f32 %v5911_v36  ;;  %v11491_v54 = vld [vmem:[#allocation21_spill] sm:$0xff] }
 0x3ed   : > { %v8171_v26 = vpop.eup %8170  ;;  %v5108_v12 = vadd.f32 %v5074_v1, %v4980_v31 }
 0x3ee   : > { %v5908_v51 = vld [vmem:[#allocation3 + $0xb0] sm:$0xff]  ;;  %6032 = vperm.xlu0 %7945, %v8171_v26   ;;  %6047 = vperm.xlu1 %7944, %v8169_v61   ;;  %v7855_v53 = vpop.f32.mrb[16].mxu1  ;;  %v8173_v5 = vpop.eup %8172  ;;  %v5917_v52 = vld [vmem:[#allocation3 + $0xf8] sm:$0xff]  ;;  %v5340_v61 = vmul.f32 %v10673_v28, %v5148_v27  ;;  %v5349_v28 = vmul.f32 %v10689_v48, %v5157_v7  ;;  %v5164_v7 = vld [vmem:[#allocation4 + $0xa8] sm:$0xff] }
 0x3ef   : > { %8182 = vrcp.f32 %v5908_v51  ;;  %5141 = vst.msk [vmem:[#allocation3 + $0xf0] sm:$0xff] %vm294_vm1, %v5108_v12  ;;  %v5765_v24 = vadd.f32 %v7855_v53, %v5345_v9  ;;  %v5538_v14 = vpop.f32.mrb[17].mxu1 }
 0x3f0   : > { %v5068_v4 = vpop.xlane.xlu1 %5067  ;;  %v5763_v33 = vadd.f32 %v5538_v14, %v5343_v35  ;;  %v7856_v63 = vpop.f32.mrb[18].mxu1  ;;  %8184 = vrcp.f32 %v5909_v10  ;;  %v5155_v35 = vld [vmem:[#allocation4 + $0x60] sm:$0xff]  ;;  %v5350_v10 = vmul.f32 %v10699_v20, %v5158_v0  ;;  %v5348_v14 = vmul.f32 %v10695_v57, %v5156_v19 }
 0x3f1   : > { %v8175_v8 = vpop.eup %8174  ;;  %v5106_v56 = vadd.f32 %v5068_v4, %v4978_v40  ;;  %5797 = vst.msk [vmem:[#allocation4 + $0x50] sm:$0xff] %vm359_vm0, %v5765_v24  ;;  %v5766_v16 = vadd.f32 %v7856_v63, %v5346_v18  ;;  %v5541_v15 = vpop.f32.mrb[19].mxu1  ;;  %v5347_v51 = vmul.f32 %v10684_v29, %v5155_v35  ;;  %v5162_v29 = vld [vmem:[#allocation4 + $0x98] sm:$0xff] }
 0x3f2   : > { %v5906_v37 = vld [vmem:[#allocation3 + $0xa0] sm:$0xff]  ;;  %6082 = vperm.xlu0 %7945, %v8175_v8   ;;  %6037 = vperm.xlu1 %7944, %v8173_v5   ;;  %5795 = vst.msk [vmem:[#allocation4 + $0x40] sm:$0xff] %vm359_vm0, %v5763_v33  ;;  %v5764_v11 = vadd.f32 %v5541_v15, %v5344_v46  ;;  %v8177_v45 = vpop.eup %8176  ;;  %v5915_v38 = vld [vmem:[#allocation3 + $0xe8] sm:$0xff]  ;;  %v5161_v8 = vld [vmem:[#allocation4 + $0x90] sm:$0xff] }
 0x3f3   : > { %8186 = vrcp.f32 %v5906_v37  ;;  %5139 = vst.msk [vmem:[#allocation3 + $0xe0] sm:$0xff] %vm294_vm1, %v5106_v56  ;;  %v5159_v46 = vld [vmem:[#allocation4 + $0x80] sm:$0xff]  ;;  %v5353_v20 = vmul.f32 %v10693_v17, %v5161_v8  ;;  %v5160_v56 = vld [vmem:[#allocation4 + $0x88] sm:$0xff]  ;;  %v11487_v37 = vld [vmem:[#allocation48_spill] sm:$0xff] }
 0x3f4   : > { %5798 = vst.msk [vmem:[#allocation4 + $0x58] sm:$0xff] %vm359_vm0, %v5766_v16  ;;  %5796 = vst.msk [vmem:[#allocation4 + $0x48] sm:$0xff] %vm359_vm0, %v5764_v11  ;;  %8188 = vrcp.f32 %v5907_v21  ;;  %v5351_v57 = vmul.f32 %v10697_v60, %v5159_v46  ;;  %v5354_v16 = vmul.f32 %v11487_v37, %v5162_v29  ;;  %v5170_v60 = vld [vmem:[#allocation4 + $0xd8] sm:$0xff]  ;;  %v5333_v8 = vpop.permute.xlu1 %5332 }
 0x3f5   : > { %v8179_v13 = vpop.eup %8178  ;;  %8190 = vrcp.f32 %v5915_v38 }
 0x3f6   : > { %6072 = vperm.xlu0 %7945, %v8179_v13   ;;  %6087 = vperm.xlu1 %7944, %v8177_v45   ;;  %v8181_v47 = vpop.eup %8180  ;;  %v5916_v49 = vld [vmem:[#allocation3 + $0xf0] sm:$0xff] }
 0x3f7   : > { %v11488_v45 = vld [vmem:[#allocation15_spill] sm:$0xff] }
 0x3f8   : > { %v5352_v21 = vmul.f32 %v11488_v45, %v5160_v56 }
 0x3f9   : > { %v8183_v50 = vpop.eup %8182 }
 0x3fa   : > { %v5914_v32 = vld [vmem:[#allocation3 + $0xe0] sm:$0xff]  ;;  %6062 = vperm.xlu0 %7945, %v8183_v50   ;;  %6077 = vperm.xlu1 %7944, %v8181_v47   ;;  %v8185_v43 = vpop.eup %8184 }
 0x3fb   : > { %8192 = vrcp.f32 %v5914_v32  ;;  %v5169_v32 = vld [vmem:[#allocation4 + $0xd0] sm:$0xff] }
 0x3fc   : > { %8194 = vrcp.f32 %v5917_v52  ;;  %v5167_v52 = vld [vmem:[#allocation4 + $0xc0] sm:$0xff] }
 0x3fd   : > { %v8187_v25 = vpop.eup %8186  ;;  %8196 = vrcp.f32 %v5916_v49 }
 0x3fe   : > { %6052 = vperm.xlu0 %7945, %v8187_v25   ;;  %6067 = vperm.xlu1 %7944, %v8185_v43   ;;  %v8189_v58 = vpop.eup %8188  ;;  %v11489_v43 = vld [vmem:[#allocation47_spill] sm:$0xff]  ;;  %v5168_v25 = vld [vmem:[#allocation4 + $0xc8] sm:$0xff] }
 0x3ff   : > { %v8191_v30 = vpop.eup %8190  ;;  %v5361_v49 = vmul.f32 %v11489_v43, %v5169_v32 }
 0x402   : > { %6057 = vperm.xlu1 %7944, %v8189_v58   ;;  %v5359_v58 = vmul.f32 %v11490_v42, %v5167_v52 }
 0x404   : > { %v7843_v34 = vpop.f32.mrb[20].mxu0 }
 0x405   : > { %v8193_v6 = vpop.eup %8192  ;;  %v5761_v36 = vadd.f32 %v7843_v34, %v5341_v44  ;;  %v5461_v31 = vpop.f32.mrb[21].mxu0  ;;  %v5362_v44 = vmul.f32 %v11491_v54, %v5170_v60 }
 0x406   : > { %v5759_v1 = vadd.f32 %v5461_v31, %v5339_v23  ;;  %v7844_v39 = vpop.f32.mrb[22].mxu0  ;;  %6092 = vperm.xlu0 %7945, %v8193_v6   ;;  %6097 = vperm.xlu1 %7944, %v8191_v30   ;;  %v8195_v9 = vpop.eup %8194  ;;  %v11492_v23 = vld [vmem:[#allocation16_spill] sm:$0xff] }
 0x407   : > { %5793 = vst.msk [vmem:[#allocation4 + $0x30] sm:$0xff] %vm359_vm0, %v5761_v36  ;;  %v5762_v26 = vadd.f32 %v7844_v39, %v5342_v3  ;;  %v5464_v62 = vpop.f32.mrb[23].mxu0  ;;  %v8197_v12 = vpop.eup %8196  ;;  %v5360_v34 = vmul.f32 %v11492_v23, %v5168_v25  ;;  %v5163_v39 = vld [vmem:[#allocation4 + $0xa0] sm:$0xff] }
 0x408   : > { %5791 = vst.msk [vmem:[#allocation4 + $0x20] sm:$0xff] %vm359_vm0, %v5759_v1  ;;  %v5760_v59 = vadd.f32 %v5464_v62, %v5340_v61  ;;  %v5165_v61 = vld [vmem:[#allocation4 + $0xb0] sm:$0xff]  ;;  %v11493_v62 = vld [vmem:[#allocation17_spill] sm:$0xff] }
 0x409   : > { %5794 = vst.msk [vmem:[#allocation4 + $0x38] sm:$0xff] %vm359_vm0, %v5762_v26  ;;  %v5166_v26 = vld [vmem:[#allocation4 + $0xb8] sm:$0xff] }
 0x40a   : > { %5792 = vst.msk [vmem:[#allocation4 + $0x28] sm:$0xff] %vm359_vm0, %v5760_v59  ;;  %6102 = vperm.xlu0 %7945, %v8197_v12   ;;  %6107 = vperm.xlu1 %7944, %v8195_v9   ;;  %v5357_v9 = vmul.f32 %v11493_v62, %v5165_v61  ;;  %v11494_v59 = vld [vmem:[#allocation20_spill] sm:$0xff]  ;;  %v5358_v0 = vmul.f32 %v10720_v22, %v5166_v26  ;;  %v5172_v22 = vld [vmem:[#allocation4 + $0xe8] sm:$0xff] }
 0x40b   : > { %v5355_v12 = vmul.f32 %v11494_v59, %v5163_v39  ;;  %v5864_v39 = vld [vmem:[#allocation4 + $0x50] sm:$0xff]  ;;  %v5855_v26 = vld [vmem:[#allocation4 + $0x8] sm:$0xff]  ;;  %v5865_v62 = vld [vmem:[#allocation4 + $0x58] sm:$0xff] }
 0x40c   : > { %v7859_v53 = vpop.f32.mrb[20].mxu1 }
 0x40d   : > { %v5769_v40 = vadd.f32 %v7859_v53, %v5349_v28  ;;  %v5554_v24 = vpop.f32.mrb[21].mxu1 }
 0x40e   : > { %v5767_v5 = vadd.f32 %v5554_v24, %v5347_v51  ;;  %v7860_v18 = vpop.f32.mrb[22].mxu1  ;;  %v5356_v51 = vmul.f32 %v10724_v41, %v5164_v7  ;;  %v5328_v24 = vpop.permute.xlu0 %5327  ;;  %v11495_v41 = vld [vmem:[#allocation18_spill] sm:$0xff] }
 0x40f   : > { %5801 = vst.msk [vmem:[#allocation4 + $0x70] sm:$0xff] %vm359_vm0, %v5769_v40  ;;  %v5770_v4 = vadd.f32 %v7860_v18, %v5350_v10  ;;  %v5557_v33 = vpop.f32.mrb[23].mxu1  ;;  %v5173_v40 = vld [vmem:[#allocation4 + $0xf0] sm:$0xff]  ;;  %v5171_v18 = vld [vmem:[#allocation4 + $0xe0] sm:$0xff] }
 0x410   : > { %5799 = vst.msk [vmem:[#allocation4 + $0x60] sm:$0xff] %vm359_vm0, %v5767_v5  ;;  %v5768_v48 = vadd.f32 %v5557_v33, %v5348_v14  ;;  %v5174_v33 = vld [vmem:[#allocation4 + $0xf8] sm:$0xff]  ;;  %v5363_v46 = vmul.f32 %v11495_v41, %v5171_v18 }
 0x411   : > { %5802 = vst.msk [vmem:[#allocation4 + $0x78] sm:$0xff] %vm359_vm0, %v5770_v4 }
 0x412   : > { %5800 = vst.msk [vmem:[#allocation4 + $0x68] sm:$0xff] %vm359_vm0, %v5768_v48  ;;  %v5365_v48 = vmul.f32 %v5328_v24, %v5173_v40  ;;  %v5861_v40 = vld [vmem:[#allocation4 + $0x38] sm:$0xff] }
 0x414   : > { %v7871_v63 = vpop.f32.mrb[24].mxu0 }
 0x415   : > { %v5773_v15 = vadd.f32 %v7871_v63, %v5353_v20  ;;  %v5631_v11 = vpop.f32.mrb[25].mxu0  ;;  %v5366_v20 = vmul.f32 %v5333_v8, %v5174_v33  ;;  %v5364_v63 = vmul.f32 %v10730_v55, %v5172_v22  ;;  %v5859_v33 = vld [vmem:[#allocation4 + $0x28] sm:$0xff] }
 0x416   : > { %v5771_v13 = vadd.f32 %v5631_v11, %v5351_v57  ;;  %v7872_v38 = vpop.f32.mrb[26].mxu0  ;;  %v5868_v8 = vld [vmem:[#allocation4 + $0x70] sm:$0xff] }
 0x417   : > { %5805 = vst.msk [vmem:[#allocation4 + $0x90] sm:$0xff] %vm359_vm0, %v5773_v15  ;;  %v5774_v47 = vadd.f32 %v7872_v38, %v5354_v16  ;;  %v5634_v50 = vpop.f32.mrb[27].mxu0 }
 0x418   : > { %5803 = vst.msk [vmem:[#allocation4 + $0x80] sm:$0xff] %vm359_vm0, %v5771_v13  ;;  %v5772_v17 = vadd.f32 %v5634_v50, %v5352_v21 }
 0x419   : > { %5806 = vst.msk [vmem:[#allocation4 + $0x98] sm:$0xff] %vm359_vm0, %v5774_v47 }
 0x41a   : > { %5804 = vst.msk [vmem:[#allocation4 + $0x88] sm:$0xff] %vm359_vm0, %v5772_v17 }
 0x41c   : > { %v7887_v2 = vpop.f32.mrb[24].mxu1 }
 0x41d   : > { %v5781_v27 = vadd.f32 %v7887_v2, %v5361_v49  ;;  %v5724_v30 = vpop.f32.mrb[25].mxu1 }
 0x41e   : > { %v5779_v6 = vadd.f32 %v5724_v30, %v5359_v58  ;;  %v7888_v3 = vpop.f32.mrb[26].mxu1  ;;  %v5854_v30 = vld [vmem:[#allocation4] sm:$0xff] }
 0x41f   : > { %5813 = vst.msk [vmem:[#allocation4 + $0xd0] sm:$0xff] %vm359_vm0, %v5781_v27  ;;  %v5782_v36 = vadd.f32 %v7888_v3, %v5362_v44  ;;  %v5727_v31 = vpop.f32.mrb[27].mxu1  ;;  %v5872_v44 = vld [vmem:[#allocation4 + $0x90] sm:$0xff] }
 0x420   : > { %5811 = vst.msk [vmem:[#allocation4 + $0xc0] sm:$0xff] %vm359_vm0, %v5779_v6  ;;  %v5780_v1 = vadd.f32 %v5727_v31, %v5360_v34  ;;  %v5856_v27 = vld [vmem:[#allocation4 + $0x10] sm:$0xff]  ;;  %v5857_v34 = vld [vmem:[#allocation4 + $0x18] sm:$0xff] }
 0x421   : > { %5814 = vst.msk [vmem:[#allocation4 + $0xd8] sm:$0xff] %vm359_vm0, %v5782_v36  ;;  %v5873_v6 = vld [vmem:[#allocation4 + $0x98] sm:$0xff]  ;;  %v5870_v36 = vld [vmem:[#allocation4 + $0x80] sm:$0xff] }
 0x422   : > { %5812 = vst.msk [vmem:[#allocation4 + $0xc8] sm:$0xff] %vm359_vm0, %v5780_v1 }
 0x424   : > { %v7875_v35 = vpop.f32.mrb[28].mxu0 }
 0x425   : > { %v5777_v28 = vadd.f32 %v7875_v35, %v5357_v9  ;;  %v5647_v19 = vpop.f32.mrb[29].mxu0 }
 0x426   : > { %v5775_v53 = vadd.f32 %v5647_v19, %v5355_v12  ;;  %v7876_v10 = vpop.f32.mrb[30].mxu0  ;;  %v5863_v19 = vld [vmem:[#allocation4 + $0x48] sm:$0xff] }
 0x427   : > { %5809 = vst.msk [vmem:[#allocation4 + $0xb0] sm:$0xff] %vm359_vm0, %v5777_v28  ;;  %v5778_v14 = vadd.f32 %v7876_v10, %v5358_v0  ;;  %v5650_v5 = vpop.f32.mrb[31].mxu0  ;;  %v5862_v28 = vld [vmem:[#allocation4 + $0x40] sm:$0xff]  ;;  %v5860_v10 = vld [vmem:[#allocation4 + $0x30] sm:$0xff] }
 0x428   : > { %5807 = vst.msk [vmem:[#allocation4 + $0xa0] sm:$0xff] %vm359_vm0, %v5775_v53  ;;  %v5776_v4 = vadd.f32 %v5650_v5, %v5356_v51 }
 0x429   : > { %5810 = vst.msk [vmem:[#allocation4 + $0xb8] sm:$0xff] %vm359_vm0, %v5778_v14 }
 0x42a   : > { %5808 = vst.msk [vmem:[#allocation4 + $0xa8] sm:$0xff] %vm359_vm0, %v5776_v4  ;;  %v5858_v4 = vld [vmem:[#allocation4 + $0x20] sm:$0xff] }
 0x42b   : > { %v7891_v29 = vpop.f32.mrb[28].mxu1 }
 0x42c   : > { %v5785_v56 = vadd.f32 %v7891_v29, %v5365_v48  ;;  %v5740_v57 = vpop.f32.mrb[29].mxu1 }
 0x42d   : > { %v5783_v37 = vadd.f32 %v5740_v57, %v5363_v46  ;;  %v7892_v16 = vpop.f32.mrb[30].mxu1 }
 0x42e   : > { %5817 = vst.msk [vmem:[#allocation4 + $0xf0] sm:$0xff] %vm359_vm0, %v5785_v56  ;;  %v5786_v15 = vadd.f32 %v7892_v16, %v5366_v20  ;;  %v5743_v11 = vpop.f32.mrb[31].mxu1  ;;  %v5869_v56 = vld [vmem:[#allocation4 + $0x78] sm:$0xff]  ;;  %v5880_v16 = vld [vmem:[#allocation4 + $0xd0] sm:$0xff] }
 0x42f   : > { %5815 = vst.msk [vmem:[#allocation4 + $0xe0] sm:$0xff] %vm359_vm0, %v5783_v37  ;;  %v5784_v45 = vadd.f32 %v5743_v11, %v5364_v63  ;;  %v5871_v37 = vld [vmem:[#allocation4 + $0x88] sm:$0xff] }
 0x430   : > { %5818 = vst.msk [vmem:[#allocation4 + $0xf8] sm:$0xff] %vm359_vm0, %v5786_v15 }
 0x431   : > { %5816 = vst.msk [vmem:[#allocation4 + $0xe8] sm:$0xff] %vm359_vm0, %v5784_v45  ;;  %v5866_v45 = vld [vmem:[#allocation4 + $0x60] sm:$0xff] }
 0x43c   : > { %v5963_v21 = vpop.permute.xlu0 %5962 }
 0x43d   : > { %v6112_v61 = vmul.f32 %v5963_v21, %v5856_v27  ;;  %v5867_v21 = vld [vmem:[#allocation4 + $0x68] sm:$0xff] }
 0x440   : > { %v5953_v13 = vpop.permute.xlu0 %5952 }
 0x441   : > { %v6110_v1 = vmul.f32 %v5953_v13, %v5854_v30 }
 0x444   : > { %v5968_v38 = vpop.permute.xlu1 %5967 }
 0x445   : > { %v6113_v59 = vmul.f32 %v5968_v38, %v5857_v34 }
 0x44d   : > { %v6003_v47 = vpop.permute.xlu0 %6002 }
 0x44e   : > { %v6120_v12 = vmul.f32 %v6003_v47, %v5864_v39 }
 0x451   : > { %v5958_v50 = vpop.permute.xlu1 %5957 }
 0x452   : > { %v10851_v35 = vmul.f32 %v5958_v50, %v5855_v26 }
 0x455   : > { %v6008_v32 = vpop.permute.xlu1 %6007  ;;  %v5993_v55 = vpop.permute.xlu0 %5992 }
 0x456   : > { %v6121_v0 = vmul.f32 %v6008_v32, %v5865_v62  ;;  %v6118_v51 = vmul.f32 %v5993_v55, %v5862_v28  ;;  %v11496_v32 = vld [vmem:[#allocation5_spill] sm:$0xff] }
 0x459   : > { %v5998_v17 = vpop.permute.xlu1 %5997  ;;  %v5983_v52 = vpop.permute.xlu0 %5982 }
 0x45a   : > { %v10853_v53 = vmul.f32 %v5998_v17, %v5863_v19  ;;  %v10855_v5 = vmul.f32 %v5983_v52, %v5860_v10  ;;  %v11497_v19 = vld [vmem:[#allocation6_spill] sm:$0xff] }
 0x45d   : > { %v5988_v60 = vpop.permute.xlu1 %5987  ;;  %v5973_v43 = vpop.permute.xlu0 %5972 }
 0x45e   : > { %v10857_v18 = vmul.f32 %v5988_v60, %v5861_v40  ;;  %v10859_v29 = vmul.f32 %v5973_v43, %v5858_v4 }
 0x461   : > { %v5978_v49 = vpop.permute.xlu1 %5977  ;;  %v6023_v25 = vpop.permute.xlu0 %6022 }
 0x462   : > { %v10861_v20 = vmul.f32 %v5978_v49, %v5859_v33  ;;  %v10863_v15 = vmul.f32 %v6023_v25, %v5868_v8  ;;  %v5881_v25 = vld [vmem:[#allocation4 + $0xd8] sm:$0xff] }
 0x465   : > { %v6028_v42 = vpop.permute.xlu1 %6027  ;;  %v6013_v58 = vpop.permute.xlu0 %6012 }
 0x466   : > { %v10865_v11 = vmul.f32 %v6028_v42, %v5869_v56  ;;  %v10867_v47 = vmul.f32 %v6013_v58, %v5866_v45 }
 0x469   : > { %v6018_v2 = vpop.permute.xlu1 %6017  ;;  %v6043_v54 = vpop.permute.xlu0 %6042 }
 0x46a   : > { %v6128_v23 = vmul.f32 %v6043_v54, %v5872_v44  ;;  %v10869_v50 = vmul.f32 %v6018_v2, %v5867_v21  ;;  %v5878_v54 = vld [vmem:[#allocation4 + $0xc0] sm:$0xff] }
 0x46c   : > { %v6278_v24 = vcombine.low %v6112_v61, %v6128_v23  ;;  %v6279_v14 = vcombine.high %v6112_v61, %v6128_v23 }
 0x46d   : > { %v6048_v3 = vpop.permute.xlu1 %6047  ;;  %v6033_v31 = vpop.permute.xlu0 %6032 }
 0x46e   : > { %v6129_v9 = vmul.f32 %v6048_v3, %v5873_v6  ;;  %v6126_v7 = vmul.f32 %v6033_v31, %v5870_v36  ;;  %v6286_v55 = vrot.slane %v6278_v24, %v11496_v32  ;;  %v6293_v17 = vrot.slane %v6279_v14, %v11496_v32 }
 0x470   : > { %v6346_v22 = vcombine.low %v6113_v59, %v6129_v9  ;;  %v6347_v48 = vcombine.high %v6113_v59, %v6129_v9  ;;  %v6142_v57 = vcombine.low %v6110_v1, %v6126_v7  ;;  %v6143_v63 = vcombine.high %v6110_v1, %v6126_v7 }
 0x471   : > { %v6038_v41 = vpop.permute.xlu1 %6037  ;;  %v6083_v46 = vpop.permute.xlu0 %6082 }
 0x472   : > { %v6127_v13 = vmul.f32 %v6038_v41, %v5871_v37  ;;  %v6136_v38 = vmul.f32 %v6083_v46, %v5880_v16  ;;  %v6354_v52 = vrot.slane %v6346_v22, %v11496_v32  ;;  %v6361_v60 = vrot.slane %v6347_v48, %v11496_v32 }
 0x473   : > { %v6150_v27 = vrot.slane %v6142_v57, %v11496_v32  ;;  %v6157_v58 = vrot.slane %v6143_v63, %v11496_v32 }
 0x474   : > { %v6294_v43 = vcombine.low %v6120_v12, %v6136_v38  ;;  %v6295_v49 = vcombine.high %v6120_v12, %v6136_v38  ;;  %v6210_v23 = vcombine.low %v10851_v35, %v6127_v13  ;;  %v6211_v34 = vcombine.high %v10851_v35, %v6127_v13 }
 0x475   : > { %v6088_v42 = vpop.permute.xlu1 %6087  ;;  %v6073_v44 = vpop.permute.xlu0 %6072 }
 0x476   : > { %v6137_v2 = vmul.f32 %v6088_v42, %v5881_v25  ;;  %v6134_v30 = vmul.f32 %v6073_v44, %v5878_v54  ;;  %v6302_v6 = vrot.slane %v6294_v43, %v11496_v32  ;;  %v6309_v3 = vrot.slane %v6295_v49, %v11496_v32 }
 0x477   : > { %v10894_v45 = vrot.slane %v6210_v23, %v11496_v32  ;;  %v10897_v21 = vrot.slane %v6211_v34, %v11496_v32 }
 0x478   : > { %v6362_v36 = vcombine.low %v6121_v0, %v6137_v2  ;;  %v6363_v31 = vcombine.high %v6121_v0, %v6137_v2  ;;  %v6158_v61 = vcombine.low %v6118_v51, %v6134_v30  ;;  %v6159_v1 = vcombine.high %v6118_v51, %v6134_v30 }
 0x479   : > { %v6310_v39 = vcombine.low %v6286_v55, %v6302_v6  ;;  %v6311_v26 = vcombine.high %v6286_v55, %v6302_v6  ;;  %v6326_v62 = vcombine.low %v6293_v17, %v6309_v3  ;;  %v6327_v9 = vcombine.high %v6293_v17, %v6309_v3  ;;  %v6078_v7 = vpop.permute.xlu1 %6077  ;;  %v6063_v24 = vpop.permute.xlu0 %6062  ;;  %v5879_v6 = vld [vmem:[#allocation4 + $0xc8] sm:$0xff] }
 0x47a   : > { %v6370_v59 = vrot.slane %v6362_v36, %v11496_v32  ;;  %v6377_v12 = vrot.slane %v6363_v31, %v11496_v32  ;;  %v6166_v28 = vrot.slane %v6158_v61, %v11496_v32  ;;  %v6173_v35 = vrot.slane %v6159_v1, %v11496_v32  ;;  %v5877_v61 = vld [vmem:[#allocation4 + $0xb8] sm:$0xff]  ;;  %v5874_v1 = vld [vmem:[#allocation4 + $0xa0] sm:$0xff] }
 0x47b   : > { %v6318_v10 = vrot.slane %v6310_v39, %v11497_v19  ;;  %v6325_v40 = vrot.slane %v6311_v26, %v11497_v19  ;;  %v6334_v0 = vrot.slane %v6326_v62, %v11497_v19  ;;  %v6341_v51 = vrot.slane %v6327_v9, %v11497_v19 }
 0x47c   : > { %v6378_v14 = vcombine.low %v6354_v52, %v6370_v59  ;;  %v6379_v4 = vcombine.high %v6354_v52, %v6370_v59  ;;  %v6394_v33 = vcombine.low %v6361_v60, %v6377_v12  ;;  %v6395_v8 = vcombine.high %v6361_v60, %v6377_v12 }
 0x47d   : > { %v6822_v22 = vcombine.low %v6318_v10, %v6325_v40  ;;  %v7648_v48 = vcombine.high %v6318_v10, %v6325_v40  ;;  %v6838_v41 = vcombine.low %v6334_v0, %v6341_v51  ;;  %v7649_v46 = vcombine.high %v6334_v0, %v6341_v51  ;;  %v6068_v56 = vpop.permute.xlu1 %6067  ;;  %v6053_v54 = vpop.permute.xlu0 %6052 }
 0x47e   : > { %v6386_v57 = vrot.slane %v6378_v14, %v11497_v19  ;;  %v6393_v63 = vrot.slane %v6379_v4, %v11497_v19  ;;  %v6402_v37 = vrot.slane %v6394_v33, %v11497_v19  ;;  %v6409_v16 = vrot.slane %v6395_v8, %v11497_v19 }
 0x47f   : > { %v10900_v13 = vrot.slane %v6822_v22, %v11496_v32  ;;  %v10903_v38 = vrot.slane %v7648_v48, %v11496_v32  ;;  %v10906_v55 = vrot.slane %v6838_v41, %v11496_v32  ;;  %v10909_v17 = vrot.slane %v7649_v46, %v11496_v32 }
 0x480   : > { %v6890_v52 = vcombine.low %v6386_v57, %v6393_v63  ;;  %v7650_v60 = vcombine.high %v6386_v57, %v6393_v63  ;;  %v6174_v43 = vcombine.low %v6150_v27, %v6166_v28  ;;  %v6175_v49 = vcombine.high %v6150_v27, %v6166_v28 }
 0x481   : > { %v6190_v25 = vcombine.low %v6157_v58, %v6173_v35  ;;  %v6191_v42 = vcombine.high %v6157_v58, %v6173_v35  ;;  %v6058_v44 = vpop.permute.xlu1 %6057  ;;  %v6906_v23 = vcombine.low %v6402_v37, %v6409_v16  ;;  %v7651_v34 = vcombine.high %v6402_v37, %v6409_v16  ;;  %v5876_v58 = vld [vmem:[#allocation4 + $0xb0] sm:$0xff] }
 0x482   : > { %v10912_v2 = vrot.slane %v6890_v52, %v11496_v32  ;;  %v10915_v30 = vrot.slane %v7650_v60, %v11496_v32  ;;  %v6182_v3 = vrot.slane %v6174_v43, %v11497_v19  ;;  %v6189_v36 = vrot.slane %v6175_v49, %v11497_v19 }
 0x483   : > { %v6198_v31 = vrot.slane %v6190_v25, %v11497_v19  ;;  %v6205_v27 = vrot.slane %v6191_v42, %v11497_v19  ;;  %v6135_v39 = vmul.f32 %v6078_v7, %v5879_v6  ;;  %v6132_v26 = vmul.f32 %v6063_v24, %v5876_v58 }
 0x484   : > { %v6133_v62 = vmul.f32 %v6068_v56, %v5877_v61  ;;  %v6130_v9 = vmul.f32 %v6053_v54, %v5874_v1  ;;  %v6686_v59 = vcombine.low %v6182_v3, %v6189_v36  ;;  %v7644_v12 = vcombine.high %v6182_v3, %v6189_v36  ;;  %v5875_v54 = vld [vmem:[#allocation4 + $0xa8] sm:$0xff] }
 0x485   : > { %v6702_v28 = vcombine.low %v6198_v31, %v6205_v27  ;;  %v7645_v35 = vcombine.high %v6198_v31, %v6205_v27  ;;  %v6098_v10 = vpop.permute.xlu1 %6097  ;;  %v10922_v40 = vrot.slane %v6906_v23, %v11496_v32  ;;  %v10925_v0 = vrot.slane %v7651_v34, %v11496_v32  ;;  %v5883_v23 = vld [vmem:[#allocation4 + $0xe8] sm:$0xff]  ;;  %v5882_v31 = vld [vmem:[#allocation4 + $0xe0] sm:$0xff]  ;;  %v5885_v27 = vld [vmem:[#allocation4 + $0xf8] sm:$0xff] }
 0x486   : > { %v6226_v51 = vcombine.low %v10853_v53, %v6135_v39  ;;  %v6227_v14 = vcombine.high %v10853_v53, %v6135_v39  ;;  %v10930_v7 = vrot.slane %v6686_v59, %v11496_v32  ;;  %v10933_v24 = vrot.slane %v7644_v12, %v11496_v32 }
 0x487   : > { %v6550_v4 = vcombine.low %v10855_v5, %v6132_v26  ;;  %v6551_v33 = vcombine.high %v10855_v5, %v6132_v26  ;;  %v10938_v8 = vrot.slane %v6702_v28, %v11496_v32  ;;  %v10941_v22 = vrot.slane %v7645_v35, %v11496_v32 }
 0x488   : > { %v6234_v48 = vrot.slane %v6226_v51, %v11496_v32  ;;  %v6241_v53 = vrot.slane %v6227_v14, %v11496_v32  ;;  %v6618_v41 = vcombine.low %v10857_v18, %v6133_v62  ;;  %v6619_v46 = vcombine.high %v10857_v18, %v6133_v62 }
 0x489   : > { %v6414_v56 = vcombine.low %v10859_v29, %v6130_v9  ;;  %v6415_v57 = vcombine.high %v10859_v29, %v6130_v9  ;;  %v10954_v52 = vrot.slane %v6550_v4, %v11496_v32  ;;  %v10957_v60 = vrot.slane %v6551_v33, %v11496_v32  ;;  %v6093_v29 = vpop.permute.xlu0 %6092  ;;  %v6108_v49 = vpop.permute.xlu1 %6107 }
 0x48a   : > { %v6242_v5 = vcombine.low %v10894_v45, %v6234_v48  ;;  %v6243_v63 = vcombine.high %v10894_v45, %v6234_v48  ;;  %v6258_v37 = vcombine.low %v10897_v21, %v6241_v53  ;;  %v6259_v16 = vcombine.high %v10897_v21, %v6241_v53 }
 0x48b   : > { %v10960_v18 = vrot.slane %v6618_v41, %v11496_v32  ;;  %v10963_v43 = vrot.slane %v6619_v46, %v11496_v32  ;;  %v6422_v34 = vrot.slane %v6414_v56, %v11496_v32  ;;  %v6429_v6 = vrot.slane %v6415_v57, %v11496_v32 }
 0x48c   : > { %v6250_v45 = vrot.slane %v6242_v5, %v11497_v19  ;;  %v6257_v25 = vrot.slane %v6243_v63, %v11497_v19  ;;  %v6266_v21 = vrot.slane %v6258_v37, %v11497_v19  ;;  %v6273_v42 = vrot.slane %v6259_v16, %v11497_v19 }
 0x48d   : > { %v6131_v3 = vmul.f32 %v6058_v44, %v5875_v54  ;;  %v6139_v36 = vmul.f32 %v6098_v10, %v5883_v23  ;;  %v6138_v1 = vmul.f32 %v6093_v29, %v5882_v31  ;;  %v6141_v39 = vmul.f32 %v6108_v49, %v5885_v27 }
 0x48e   : > { %v6754_v58 = vcombine.low %v6250_v45, %v6257_v25  ;;  %v7646_v61 = vcombine.high %v6250_v45, %v6257_v25  ;;  %v6770_v28 = vcombine.low %v6266_v21, %v6273_v42  ;;  %v7647_v35 = vcombine.high %v6266_v21, %v6273_v42 }
 0x48f   : > { %v6482_v26 = vcombine.low %v10861_v20, %v6131_v3  ;;  %v6483_v62 = vcombine.high %v10861_v20, %v6131_v3  ;;  %v6498_v9 = vcombine.low %v10869_v50, %v6139_v36  ;;  %v6499_v59 = vcombine.high %v10869_v50, %v6139_v36 }
 0x490   : > { %v10976_v12 = vrot.slane %v6754_v58, %v11496_v32  ;;  %v10979_v44 = vrot.slane %v7646_v61, %v11496_v32  ;;  %v6430_v4 = vcombine.low %v10867_v47, %v6138_v1  ;;  %v6431_v50 = vcombine.high %v10867_v47, %v6138_v1 }
 0x491   : > { %v6490_v10 = vrot.slane %v6482_v26, %v11496_v32  ;;  %v6497_v51 = vrot.slane %v6483_v62, %v11496_v32  ;;  %v6506_v14 = vrot.slane %v6498_v9, %v11496_v32  ;;  %v6513_v20 = vrot.slane %v6499_v59, %v11496_v32 }
 0x492   : > { %v6634_v33 = vcombine.low %v10865_v11, %v6141_v39  ;;  %v6635_v48 = vcombine.high %v10865_v11, %v6141_v39  ;;  %v6438_v57 = vrot.slane %v6430_v4, %v11496_v32  ;;  %v6445_v5 = vrot.slane %v6431_v50, %v11496_v32 }
 0x493   : > { %v6514_v53 = vcombine.low %v6490_v10, %v6506_v14  ;;  %v6515_v41 = vcombine.high %v6490_v10, %v6506_v14  ;;  %v6530_v46 = vcombine.low %v6497_v51, %v6513_v20  ;;  %v6531_v56 = vcombine.high %v6497_v51, %v6513_v20  ;;  %v6103_v51 = vpop.permute.xlu0 %6102 }
 0x494   : > { %v6642_v63 = vrot.slane %v6634_v33, %v11496_v32  ;;  %v6649_v37 = vrot.slane %v6635_v48, %v11496_v32  ;;  %v6446_v49 = vcombine.low %v6422_v34, %v6438_v57  ;;  %v6447_v45 = vcombine.high %v6422_v34, %v6438_v57 }
 0x495   : > { %v6522_v16 = vrot.slane %v6514_v53, %v11497_v19  ;;  %v6529_v47 = vrot.slane %v6515_v41, %v11497_v19  ;;  %v6538_v29 = vrot.slane %v6530_v46, %v11497_v19  ;;  %v6545_v11 = vrot.slane %v6531_v56, %v11497_v19 }
 0x496   : > { %v6462_v25 = vcombine.low %v6429_v6, %v6445_v5  ;;  %v6463_v21 = vcombine.high %v6429_v6, %v6445_v5  ;;  %v6454_v36 = vrot.slane %v6446_v49, %v11497_v19  ;;  %v6461_v31 = vrot.slane %v6447_v45, %v11497_v19 }
 0x497   : > { %v7026_v42 = vcombine.low %v6522_v16, %v6529_v47  ;;  %v7654_v54 = vcombine.high %v6522_v16, %v6529_v47  ;;  %v7042_v23 = vcombine.low %v6538_v29, %v6545_v11  ;;  %v7655_v3 = vcombine.high %v6538_v29, %v6545_v11 }
 0x498   : > { %v6470_v27 = vrot.slane %v6462_v25, %v11497_v19  ;;  %v6477_v58 = vrot.slane %v6463_v21, %v11497_v19  ;;  %v11002_v61 = vrot.slane %v6770_v28, %v11496_v32  ;;  %v11005_v1 = vrot.slane %v7647_v35, %v11496_v32 }
 0x499   : > { %v11008_v34 = vrot.slane %v7026_v42, %v11496_v32  ;;  %v11011_v6 = vrot.slane %v7654_v54, %v11496_v32  ;;  %v11014_v39 = vrot.slane %v7042_v23, %v11496_v32  ;;  %v6958_v26 = vcombine.low %v6454_v36, %v6461_v31 }
 0x49a   : > { %v7652_v62 = vcombine.high %v6454_v36, %v6461_v31  ;;  %v6974_v9 = vcombine.low %v6470_v27, %v6477_v58  ;;  %v6650_v59 = vcombine.low %v10960_v18, %v6642_v63  ;;  %v6651_v28 = vcombine.high %v10960_v18, %v6642_v63 }
 0x49b   : > { %v6666_v10 = vcombine.low %v10963_v43, %v6649_v37  ;;  %v6667_v35 = vcombine.high %v10963_v43, %v6649_v37  ;;  %v11021_v14 = vrot.slane %v7655_v3, %v11496_v32  ;;  %v11024_v20 = vrot.slane %v6958_v26, %v11496_v32  ;;  %v5884_v43 = vld [vmem:[#allocation4 + $0xf0] sm:$0xff] }
 0x49c   : > { %v11027_v4 = vrot.slane %v7652_v62, %v11496_v32  ;;  %v7653_v50 = vcombine.high %v6470_v27, %v6477_v58  ;;  %v6658_v33 = vrot.slane %v6650_v59, %v11497_v19  ;;  %v6665_v48 = vrot.slane %v6651_v28, %v11497_v19 }
 0x49d   : > { %v6674_v18 = vrot.slane %v6666_v10, %v11497_v19  ;;  %v6681_v53 = vrot.slane %v6667_v35, %v11497_v19  ;;  %v6140_v41 = vmul.f32 %v6103_v51, %v5884_v43  ;;  %v6854_v46 = vcombine.low %v10900_v13, %v10903_v38 }
 0x49e   : > { %v6870_v56 = vcombine.low %v10906_v55, %v10909_v17  ;;  %v6922_v57 = vcombine.low %v10912_v2, %v10915_v30  ;;  %v11040_v5 = vrot.slane %v6974_v9, %v11496_v32  ;;  %v7162_v63 = vcombine.low %v6658_v33, %v6665_v48 }
 0x49f   : > { %v7658_v37 = vcombine.high %v6658_v33, %v6665_v48  ;;  %v7178_v16 = vcombine.low %v6674_v18, %v6681_v53  ;;  %v11043_v47 = vrot.slane %v7653_v50, %v11496_v32  ;;  %v7659_v29 = vcombine.high %v6674_v18, %v6681_v53 }
 0x4a0   : > { %v6566_v11 = vcombine.low %v10863_v15, %v6140_v41  ;;  %v6567_v49 = vcombine.high %v10863_v15, %v6140_v41  ;;  %v11048_v45 = vrot.slane %v7162_v63, %v11496_v32  ;;  %v11054_v21 = vrot.slane %v6854_v46, %v11497_v19 }
 0x4a1   : > { %v11051_v25 = vrot.slane %v7658_v37, %v11496_v32  ;;  %v11057_v42 = vrot.slane %v6870_v56, %v11497_v19  ;;  %v11060_v54 = vrot.slane %v7178_v16, %v11496_v32  ;;  %v11065_v15 = vrot.slane %v6922_v57, %v11497_v19 }
 0x4a2   : > { %v6574_v23 = vrot.slane %v6566_v11, %v11496_v32  ;;  %v6581_v3 = vrot.slane %v6567_v49, %v11496_v32  ;;  %v6938_v36 = vcombine.low %v10922_v40, %v10925_v0  ;;  %v6855_v31 = vcombine.high %v10900_v13, %v10903_v38 }
 0x4a3   : > { %v6871_v27 = vcombine.high %v10906_v55, %v10909_v17  ;;  %v6923_v58 = vcombine.high %v10912_v2, %v10915_v30  ;;  %v6887_v28 = vcombine.high %v11054_v21, %v11057_v42  ;;  %v6939_v35 = vcombine.high %v10922_v40, %v10925_v0 }
 0x4a4   : > { %v6582_v26 = vcombine.low %v10954_v52, %v6574_v23  ;;  %v6583_v62 = vcombine.high %v10954_v52, %v6574_v23  ;;  %v6598_v9 = vcombine.low %v10957_v60, %v6581_v3  ;;  %v6599_v59 = vcombine.high %v10957_v60, %v6581_v3 }
 0x4a5   : > { %v11082_v10 = vrot.slane %v6938_v36, %v11497_v19  ;;  %v6869_v13 = vrot.slane %v6855_v31, %v11497_v19  ;;  %v6885_v38 = vrot.slane %v6871_v27, %v11497_v19  ;;  %v6937_v60 = vrot.slane %v6923_v58, %v11497_v19 }
 0x4a6   : > { %v6590_v55 = vrot.slane %v6582_v26, %v11497_v19  ;;  %v6597_v17 = vrot.slane %v6583_v62, %v11497_v19  ;;  %v6606_v2 = vrot.slane %v6598_v9, %v11497_v19  ;;  %v6613_v30 = vrot.slane %v6599_v59, %v11497_v19 }
 0x4a7   : > { %v6955_v52 = vcombine.high %v11065_v15, %v11082_v10  ;;  %v6718_v51 = vcombine.low %v10930_v7, %v10933_v24  ;;  %v11098_v50 = vrot.slane %v7659_v29, %v11496_v32  ;;  %v6888_v43 = vcombine.low %v6869_v13, %v6885_v38 }
 0x4a8   : > { %v7094_v33 = vcombine.low %v6590_v55, %v6597_v17  ;;  %v7656_v48 = vcombine.high %v6590_v55, %v6597_v17  ;;  %v7110_v18 = vcombine.low %v6606_v2, %v6613_v30  ;;  %v6953_v41 = vrot.slane %v6939_v35, %v11497_v19 }
 0x4a9   : > { %v7946_v53 = vpack.i.bf16 %v6955_v52, %v6887_v28  ;;  %v6734_v46 = vcombine.low %v10938_v8, %v10941_v22  ;;  %v7657_v0 = vcombine.high %v6606_v2, %v6613_v30  ;;  %v11110_v57 = vrot.slane %v6718_v51, %v11497_v19 }
 0x4aa   : > { %v11104_v56 = vrot.slane %v7094_v33, %v11496_v32  ;;  %v11107_v40 = vrot.slane %v7656_v48, %v11496_v32  ;;  %v6956_v63 = vcombine.low %v6937_v60, %v6953_v41  ;;  %v6786_v16 = vcombine.low %v10976_v12, %v10979_v44 }
 0x4ab   : > { %7947 = vrot.lane.b32.xlu1 %v7946_v53, %s8238_s29  ;;  %v11114_v37 = vrot.slane %v6734_v46, %v11497_v19  ;;  %v6802_v29 = vcombine.low %v11002_v61, %v11005_v1  ;;  %v11121_v11 = vrot.slane %v7110_v18, %v11496_v32  ;;  %v6957_v49 = vcombine.high %v6937_v60, %v6953_v41 }
 0x4ac   : > { %v6719_v23 = vcombine.high %v10930_v7, %v10933_v24  ;;  %v6735_v3 = vcombine.high %v10938_v8, %v10941_v22  ;;  %v7951_v36 = vpack.i.bf16 %v6956_v63, %v6888_v43  ;;  %v11128_v31 = vrot.slane %v6786_v16, %v11497_v19 }
 0x4ad   : > { %v11131_v27 = vrot.slane %v6802_v29, %v11497_v19  ;;  %v6889_v58 = vcombine.high %v6869_v13, %v6885_v38  ;;  %v6751_v26 = vcombine.high %v11110_v57, %v11114_v37  ;;  %v6787_v7 = vcombine.high %v10976_v12, %v10979_v44 }
 0x4ae   : > { %v6733_v62 = vrot.slane %v6719_v23, %v11497_v19  ;;  %v6749_v9 = vrot.slane %v6735_v3, %v11497_v19  ;;  %v6803_v8 = vcombine.high %v11002_v61, %v11005_v1  ;;  %v6990_v22 = vcombine.low %v11024_v20, %v11027_v4 }
 0x4af   : > { %7952 = vrot.lane.b32.xlu1 %v7951_v36, %s8239_s30  ;;  %v6819_v24 = vcombine.high %v11128_v31, %v11131_v27  ;;  %v7006_v59 = vcombine.low %v11040_v5, %v11043_v47  ;;  %v7125_v28 = vrot.slane %v7657_v0, %v11496_v32  ;;  %v7956_v13 = vpack.i.bf16 %v6957_v49, %v6889_v58 }
 0x4b0   : > { %v6801_v12 = vrot.slane %v6787_v7, %v11497_v19  ;;  %v7058_v44 = vcombine.low %v11008_v34, %v11011_v6  ;;  %v6817_v55 = vrot.slane %v6803_v8, %v11497_v19  ;;  %v11154_v17 = vrot.slane %v6990_v22, %v11497_v19 }
 0x4b1   : > { %v7961_v38 = vpack.i.bf16 %v6819_v24, %v6751_v26  ;;  %v11157_v61 = vrot.slane %v7006_v59, %v11497_v19  ;;  %v7074_v32 = vcombine.low %v11014_v39, %v11021_v14  ;;  %v6991_v2 = vcombine.high %v11024_v20, %v11027_v4 }
 0x4b2   : > { %v11160_v1 = vrot.slane %v7058_v44, %v11497_v19  ;;  %v7007_v30 = vcombine.high %v11040_v5, %v11043_v47  ;;  %v6752_v52 = vcombine.low %v6733_v62, %v6749_v9  ;;  %v6820_v60 = vcombine.low %v6801_v12, %v6817_v55 }
 0x4b3   : > { %7962 = vrot.lane.b32.xlu0 %v7961_v38, %s8238_s29  ;;  %7957 = vrot.lane.b32.xlu1 %v7956_v13, %s8240_s4  ;;  %v6753_v35 = vcombine.high %v6733_v62, %v6749_v9  ;;  %v6821_v51 = vcombine.high %v6801_v12, %v6817_v55  ;;  %v11171_v33 = vrot.slane %v7074_v32, %v11497_v19 }
 0x4b4   : > { %v7005_v48 = vrot.slane %v6991_v2, %v11497_v19  ;;  %v7059_v20 = vcombine.high %v11008_v34, %v11011_v6  ;;  %v7966_v4 = vpack.i.bf16 %v6820_v60, %v6752_v52  ;;  %v7021_v5 = vrot.slane %v7007_v30, %v11497_v19 }
 0x4b5   : > { %v7075_v47 = vcombine.high %v11014_v39, %v11021_v14  ;;  %v7126_v18 = vcombine.low %v11104_v56, %v11107_v40  ;;  %v7023_v53 = vcombine.high %v11154_v17, %v11157_v61  ;;  %v7091_v43 = vcombine.high %v11160_v1, %v11171_v33 }
 0x4b6   : > { %v7073_v41 = vrot.slane %v7059_v20, %v11497_v19  ;;  %v7142_v46 = vcombine.low %v11121_v11, %v7125_v28  ;;  %v7194_v39 = vcombine.low %v11048_v45, %v11051_v25  ;;  %v7210_v14 = vcombine.low %v11060_v54, %v11098_v50 }
 0x4b7   : > { %7967 = vrot.lane.b32.xlu0 %v7966_v4, %s8239_s30  ;;  %v7089_v34 = vrot.slane %v7075_v47, %v11497_v19  ;;  %v11190_v6 = vrot.slane %v7126_v18, %v11497_v19  ;;  %v7127_v63 = vcombine.high %v11104_v56, %v11107_v40  ;;  %v7971_v16 = vpack.i.bf16 %v6821_v51, %v6753_v35 }
 0x4b8   : > { %v11197_v0 = vrot.slane %v7142_v46, %v11497_v19  ;;  %v7024_v29 = vcombine.low %v7005_v48, %v7021_v5  ;;  %v11202_v49 = vrot.slane %v7194_v39, %v11497_v19  ;;  %v11205_v23 = vrot.slane %v7210_v14, %v11497_v19 }
 0x4b9   : > { %v7141_v36 = vrot.slane %v7127_v63, %v11497_v19  ;;  %v7143_v58 = vcombine.high %v11121_v11, %v7125_v28  ;;  %v7195_v26 = vcombine.high %v11048_v45, %v11051_v25  ;;  %v7986_v56 = vpack.i.bf16 %v7091_v43, %v7023_v53 }
 0x4ba   : > { %v7159_v3 = vcombine.high %v11190_v6, %v11197_v0  ;;  %v7092_v40 = vcombine.low %v7073_v41, %v7089_v34  ;;  %v7227_v62 = vcombine.high %v11202_v49, %v11205_v23  ;;  %v7211_v9 = vcombine.high %v11060_v54, %v11098_v50 }
 0x4bb   : > { %7972 = vrot.lane.b32.xlu0 %v7971_v16, %s8240_s4  ;;  %v7157_v7 = vrot.slane %v7143_v58, %v11497_v19  ;;  %v7209_v24 = vrot.slane %v7195_v26, %v11497_v19  ;;  %v6954_v11 = vcombine.low %v11065_v15, %v11082_v10  ;;  %v6886_v45 = vcombine.low %v11054_v21, %v11057_v42 }
 0x4bc   : > { %v7976_v25 = vpack.i.bf16 %v7227_v62, %v7159_v3  ;;  %v7225_v8 = vrot.slane %v7211_v9, %v11497_v19  ;;  %v6750_v22 = vcombine.low %v11110_v57, %v11114_v37  ;;  %v6818_v59 = vcombine.low %v11128_v31, %v11131_v27 }
 0x4bd   : > { %v7160_v54 = vcombine.low %v7141_v36, %v7157_v7  ;;  %v7025_v50 = vcombine.high %v7005_v48, %v7021_v5  ;;  %v7022_v15 = vcombine.low %v11154_v17, %v11157_v61  ;;  %v7093_v21 = vcombine.high %v7073_v41, %v7089_v34 }
 0x4be   : > { %7977 = vrot.lane.b32.xlu1 %v7976_v25, %s8238_s29  ;;  %v7228_v28 = vcombine.low %v7209_v24, %v7225_v8  ;;  %v7090_v19 = vcombine.low %v11160_v1, %v11171_v33  ;;  %v7226_v42 = vcombine.low %v11202_v49, %v11205_v23  ;;  %v7158_v10 = vcombine.low %v11190_v6, %v11197_v0 }
 0x4bf   : > { %7987 = vrot.lane.b32.xlu0 %v7986_v56, %s8238_s29  ;;  %v7991_v57 = vpack.i.bf16 %v7092_v40, %v7024_v29  ;;  %v7161_v31 = vcombine.high %v7141_v36, %v7157_v7  ;;  %v7229_v27 = vcombine.high %v7209_v24, %v7225_v8  ;;  %v7996_v13 = vpack.i.bf16 %v7093_v21, %v7025_v50 }
 0x4c0   : > { %v7981_v37 = vpack.i.bf16 %v7228_v28, %v7160_v54 }
 0x4c1   : > { %v8001_v12 = vpack.i.bf16 %v7229_v27, %v7161_v31 }
 0x4c2   : > { %7982 = vrot.lane.b32.xlu1 %v7981_v37, %s8239_s30 }
 0x4c3   : > { %7992 = vrot.lane.b32.xlu0 %v7991_v57, %s8239_s30 }
 0x4c6   : > { %8002 = vrot.lane.b32.xlu1 %v8001_v12, %s8240_s4 }
 0x4c7   : > { %7997 = vrot.lane.b32.xlu0 %v7996_v13, %s8240_s4 }
 0x51d   : > { %v7948_v44 = vpop.permute.xlu1 %7947 }
 0x51e   : > { %v7950_v55 = vunpack.i.h.bf16 %v7948_v44  ;;  %v7949_v32 = vunpack.i.l.bf16 %v7948_v44 }
 0x520   : > { %v7329_v35 = vsel %vm359_vm0, %v6954_v11, %v7950_v55  ;;  %v7328_v51 = vsel %vm359_vm0, %v6886_v45, %v7949_v32 }
 0x521   : > { %v7953_v38 = vpop.permute.xlu1 %7952 }
 0x522   : > { %v7955_v2 = vunpack.i.h.bf16 %v7953_v38  ;;  %v7954_v30 = vunpack.i.l.bf16 %v7953_v38 }
 0x524   : > { %v7337_v4 = vsel %vm7334_vm3, %v7328_v51, %v7954_v30  ;;  %v7338_v5 = vsel %vm7334_vm3, %v7329_v35, %v7955_v2 }
 0x525   : > { %v7963_v52 = vpop.permute.xlu0 %7962  ;;  %v7958_v60 = vpop.permute.xlu1 %7957 }
 0x526   : > { %v7960_v48 = vunpack.i.h.bf16 %v7958_v60  ;;  %v7959_v20 = vunpack.i.l.bf16 %v7958_v60  ;;  %v7965_v46 = vunpack.i.h.bf16 %v7963_v52  ;;  %v7964_v34 = vunpack.i.l.bf16 %v7963_v52 }
 0x528   : > { %v7346_v47 = vsel %vm7343_vm4, %v7337_v4, %v7959_v20  ;;  %v7347_v18 = vsel %vm7343_vm4, %v7338_v5, %v7960_v48  ;;  %v7327_v16 = vsel %vm359_vm0, %v6818_v59, %v7965_v46  ;;  %v7326_v29 = vsel %vm359_vm0, %v6750_v22, %v7964_v34 }
 0x529   : > { %v7676_v53 = vpack.c.bf16 %v7346_v47, %v7346_v47  ;;  %v7677_v43 = vpack.c.bf16 %v7347_v18, %v7347_v18  ;;  %v7968_v41 = vpop.permute.xlu0 %7967 }
 0x52a   : > { %v7970_v39 = vunpack.i.h.bf16 %v7968_v41  ;;  %v7969_v14 = vunpack.i.l.bf16 %v7968_v41 }
 0x52b   : > { %7387 = vst.msk [vmem:[%s11251_s7 + $0x8] sm:$0xf] %vm7384_vm5, %v7676_v53  ;;  %7388 = vst.msk [vmem:[%s11251_s7 + $0xc] sm:$0xf] %vm7384_vm5, %v7677_v43 }
 0x52c   : > { %v7335_v58 = vsel %vm7334_vm3, %v7326_v29, %v7969_v14  ;;  %v7336_v26 = vsel %vm7334_vm3, %v7327_v16, %v7970_v39 }
 0x52d   : > { %v7973_v63 = vpop.permute.xlu0 %7972 }
 0x52e   : > { %v7975_v3 = vunpack.i.h.bf16 %v7973_v63  ;;  %v7974_v36 = vunpack.i.l.bf16 %v7973_v63 }
 0x530   : > { %v7344_v56 = vsel %vm7343_vm4, %v7335_v58, %v7974_v36  ;;  %v7345_v40 = vsel %vm7343_vm4, %v7336_v26, %v7975_v3  ;;  %v7978_v24 = vpop.permute.xlu1 %7977 }
 0x531   : > { %v7674_v62 = vpack.c.bf16 %v7344_v56, %v7344_v56  ;;  %v7675_v9 = vpack.c.bf16 %v7345_v40, %v7345_v40  ;;  %v7988_v7 = vpop.permute.xlu0 %7987  ;;  %v7980_v25 = vunpack.i.h.bf16 %v7978_v24  ;;  %v7979_v8 = vunpack.i.l.bf16 %v7978_v24 }
 0x532   : > { %v7990_v11 = vunpack.i.h.bf16 %v7988_v7  ;;  %v7989_v45 = vunpack.i.l.bf16 %v7988_v7 }
 0x533   : > { %7385 = vst.msk [vmem:[%s11251_s7] sm:$0xf] %vm7384_vm5, %v7674_v62  ;;  %7386 = vst.msk [vmem:[%s11251_s7 + $0x4] sm:$0xf] %vm7384_vm5, %v7675_v9  ;;  %v7333_v31 = vsel %vm359_vm0, %v7226_v42, %v7980_v25  ;;  %v7332_v27 = vsel %vm359_vm0, %v7158_v10, %v7979_v8 }
 0x534   : > { %v7983_v59 = vpop.permute.xlu1 %7982  ;;  %v7331_v57 = vsel %vm359_vm0, %v7090_v19, %v7990_v11  ;;  %v7330_v37 = vsel %vm359_vm0, %v7022_v15, %v7989_v45 }
 0x535   : > { %v7993_v22 = vpop.permute.xlu0 %7992  ;;  %v7985_v28 = vunpack.i.h.bf16 %v7983_v59  ;;  %v7984_v21 = vunpack.i.l.bf16 %v7983_v59 }
 0x536   : > { %v7995_v54 = vunpack.i.h.bf16 %v7993_v22  ;;  %v7994_v50 = vunpack.i.l.bf16 %v7993_v22 }
 0x537   : > { %v7341_v23 = vsel %vm7334_vm3, %v7332_v27, %v7984_v21  ;;  %v7342_v6 = vsel %vm7334_vm3, %v7333_v31, %v7985_v28 }
 0x538   : > { %v8003_v12 = vpop.permute.xlu1 %8002  ;;  %v7339_v61 = vsel %vm7334_vm3, %v7330_v37, %v7994_v50  ;;  %v7340_v49 = vsel %vm7334_vm3, %v7331_v57, %v7995_v54 }
 0x539   : > { %v7998_v13 = vpop.permute.xlu0 %7997  ;;  %v8005_v19 = vunpack.i.h.bf16 %v8003_v12  ;;  %v8004_v17 = vunpack.i.l.bf16 %v8003_v12 }
 0x53a   : > { %v8000_v1 = vunpack.i.h.bf16 %v7998_v13  ;;  %v7999_v33 = vunpack.i.l.bf16 %v7998_v13 }
 0x53b   : > { %v7350_v42 = vsel %vm7343_vm4, %v7341_v23, %v8004_v17  ;;  %v7351_v10 = vsel %vm7343_vm4, %v7342_v6, %v8005_v19 }
 0x53c   : > { %v7348_v0 = vsel %vm7343_vm4, %v7339_v61, %v7999_v33  ;;  %v7349_v15 = vsel %vm7343_vm4, %v7340_v49, %v8000_v1  ;;  %v7680_v55 = vpack.c.bf16 %v7350_v42, %v7350_v42  ;;  %v7681_v32 = vpack.c.bf16 %v7351_v10, %v7351_v10 }
 0x53d   : > { %v7678_v44 = vpack.c.bf16 %v7348_v0, %v7348_v0  ;;  %v7679_v38 = vpack.c.bf16 %v7349_v15, %v7349_v15 }
 0x53e   : > { %7391 = vst.msk [vmem:[%s11251_s7 + $0x18] sm:$0xf] %vm7384_vm5, %v7680_v55  ;;  %7392 = vst.msk [vmem:[%s11251_s7 + $0x1c] sm:$0xf] %vm7384_vm5, %v7681_v32 }
 0x53f   : > { %7389 = vst.msk [vmem:[%s11251_s7 + $0x10] sm:$0xf] %vm7384_vm5, %v7678_v44  ;;  %7390 = vst.msk [vmem:[%s11251_s7 + $0x14] sm:$0xf] %vm7384_vm5, %v7679_v38 }
 0x540 PF: > { %s13_s14 = sadd.s32 1, %s8228_s14   ;;  %s11498_s12 = smov %s8224_s13 }
 0x541   : > { %p10_p5 = scmp.ge.s32.totalorder %s13_s14, 4   ;;  %s11499_s13 = smov %s11501_s15 }
 0x543   :  { %12 = sbr.rel (!%p10_p5) target bundleno = 2 (0x2), region = 76 }

// kernel: _lambda_.60
= control target key start
LH: loop header
LB: loop body
LE: loop exit
PB: predicated region body
PF: predicated region fallthrough
CT: control target
= control target key end

     0   :  { %s606_s18 = smov 0   ;;  %s672_s0 = inlined_call_operand.vmem [shape: bf16[16,64], index: 0, kind: input, shape index: {}]   ;;  %s673_s1 = inlined_call_operand.vmem [shape: bf16[64,128], index: 1, kind: input, shape index: {}]   ;;  %s674_s2 = inlined_call_operand.vmem [shape: f32[1,128], index: 2, kind: input, shape index: {}]   ;;  %s675_s3 = inlined_call_operand.vmem [shape: bf16[128,64], index: 3, kind: input, shape index: {}]   ;;  %s676_s4 = inlined_call_operand.vmem [shape: f32[1,64], index: 4, kind: input, shape index: {}]   ;;  %s677_s5 = inlined_call_operand.vmem [shape: bf16[16,64], index: 5, kind: output, shape index: {}]  }
   0x1 LB: > { %s474_s19 = sadd.s32 4294967295, %s572_s18   ;;  %p478_p0 = scmp.ge.s32.totalorder %s572_s18, 1  ;;  %s572_s18 = sphi %s606_s18, %s15_s18  }
   0x2   : > { %p186_p1 = scmp.lt.s32.totalorder %s572_s18, 3 }
   0x4   : > { %p187_p2 = pnand %p478_p0, %p186_p1 }
   0x5   : > { %v554_v0 = vld [vmem:[%s673_s1] sm:$0xff] (!%p187_p2)   ;;  %v574_v1 = vmov (!%p187_p2), 0.0   ;;  %v555_v2 = vld [vmem:[%s673_s1 + $0x8] sm:$0xff] (!%p187_p2)   ;;  %vm575_vm0 = vmmov (!%p187_p2), 0   ;;  %p212_p3 = scmp.lt.s32.totalorder (!%p187_p2), %s474_s19, 1  ;;  %v556_v4 = vld [vmem:[%s673_s1 + $0x10] sm:$0xff] (!%p187_p2)  }
   0x6   : > { %190 = sbr.rel (%p187_p2) target bundleno = 457 (0x1c9), region = 40  ;;  %512 = vmatprep.subr.bf16.mxu0 (!%p187_p2), %v574_v1  ;;  %524 = vmatprep.subr.bf16.mxu1 (!%p187_p2), %v574_v1  ;;  %v558_v3 = vld [vmem:[%s675_s3] sm:$0xff] (!%p187_p2)   ;;  %v559_v5 = vld [vmem:[%s675_s3 + $0x8] sm:$0xff] (!%p187_p2)   ;;  %v557_v6 = vld [vmem:[%s673_s1 + $0x18] sm:$0xff] (!%p187_p2)   ;;  %vm261_vm1 = vcmask (!%p187_p2), 523264   ;;  %vm419_vm2 = vcmask (!%p187_p2), 519168  }
   0x7   : > { %513 = vmatpush3.bf16.msra.mxu0 (!%p187_p2), %v554_v0  ;;  %520 = vmatprep.mubr.msk.bf16.mxu0 (!%p187_p2), %vm575_vm0, %v574_v1  ;;  %v560_v7 = vld [vmem:[%s675_s3 + $0x10] sm:$0xff] (!%p187_p2)   ;;  %v561_v9 = vld [vmem:[%s675_s3 + $0x18] sm:$0xff] (!%p187_p2)   ;;  %v562_v10 = vld [vmem:[%s675_s3 + $0x20] sm:$0xff] (!%p187_p2)  }
   0x8   : > { %514 = vmatprep.subr.bf16.mxu0 (!%p187_p2), %v574_v1  ;;  %540 = vmatprep.mubr.msk.bf16.mxu1 (!%p187_p2), %vm575_vm0, %v574_v1  ;;  %v563_v11 = vld [vmem:[%s675_s3 + $0x28] sm:$0xff] (!%p187_p2)   ;;  %v564_v12 = vld [vmem:[%s675_s3 + $0x30] sm:$0xff] (!%p187_p2)   ;;  %v565_v13 = vld [vmem:[%s675_s3 + $0x38] sm:$0xff] (!%p187_p2)  }
   0x9   : > { %525 = vmatpush3.bf16.msra.mxu1 (!%p187_p2), %v558_v3  ;;  %v481_v14 = vld [vmem:[%s674_s2] ss:$0 sm:$0xff] (!%p187_p2) }
   0xa   : > { %526 = vmatprep.subr.bf16.mxu1 (!%p187_p2), %v574_v1  ;;  %v487_v22 = vld [vmem:[%s676_s4] ss:$0 sm:$0xff] (!%p187_p2) }
   0xb   : > { %515 = vmatpush3.bf16.msra.mxu0 (!%p187_p2), %v555_v2 }
   0xc   : > { %516 = vmatprep.subr.bf16.mxu0 (!%p187_p2), %v574_v1 }
   0xd   : > { %s679_s19 = smov (!%p212_p3, %s474_s19), 1  ;;  %527 = vmatpush3.bf16.msra.mxu1 %v559_v5 }
   0xe   : > { %s479_s30 = sshll.u32 %s679_s19, 2  ;;  %528 = vmatprep.subr.bf16.mxu1 %v574_v1 }
   0xf   : > { %517 = vmatpush3.bf16.msra.mxu0 %v556_v4  ;;  %s215_s12 = scalar_lea.vmem %s672_s0, %s479_s30  ;;  %s219_s7 = scalar_lea.vmem %s677_s5, %s479_s30 }
  0x10   : > { %518 = vmatprep.subr.bf16.mxu0 %v574_v1  ;;  %v221_v8 = vld [vmem:[%s215_s12] sm:$0xf] }
  0x11   : > { %529 = vmatpush3.bf16.msra.mxu1 %v560_v7 }
  0x12   : > { %530 = vmatprep.subr.bf16.mxu1 %v574_v1 }
  0x13   : > { %519 = vmatpush3.bf16.msra.mxu0 %v557_v6 }
  0x15   : > { %531 = vmatpush3.bf16.msra.mxu1 %v561_v9 }
  0x16   : > { %521 = vmatmul.mubr.msk.bf16.vlgmr.msra.gmra.mrb[0].mxu0 %vm261_vm1, %v221_v8  ;;  %532 = vmatprep.subr.bf16.mxu1 %v574_v1 }
  0x19   : > { %533 = vmatpush3.bf16.msra.mxu1 %v562_v10 }
  0x1a   : > { %534 = vmatprep.subr.bf16.mxu1 %v574_v1 }
  0x1d   : > { %535 = vmatpush3.bf16.msra.mxu1 %v563_v11 }
  0x1e   : > { %536 = vmatprep.subr.bf16.mxu1 %v574_v1 }
  0x21   : > { %537 = vmatpush3.bf16.msra.mxu1 %v564_v12 }
  0x22   : > { %538 = vmatprep.subr.bf16.mxu1 %v574_v1 }
  0x25   : > { %539 = vmatpush3.bf16.msra.mxu1 %v565_v13 }
  0xe9   : > { %v299_v15 = vpop.f32.mrb[0].mxu0 }
  0xea   : > { %v300_v16 = vadd.f32 %v481_v14, %v299_v15  ;;  %v522_v17 = vpop.f32.mrb[1].mxu0 }
  0xeb   : > { %v302_v18 = vpop.f32.mrb[2].mxu0 }
  0xec   : > { %v305_v19 = vmax.f32 %v300_v16, 0.0  ;;  %v523_v20 = vpop.f32.mrb[3].mxu0 }
  0xee   : > { %v306_v21 = vpack.c.bf16 %v305_v19, %v305_v19 }
  0xf0   : > { %541 = vmatmul.mubr.bf16.vlgmr.msra.gmra.mrb[0].mxu1 %v306_v21 }
 0x1c3   : > { %v412_v23 = vpop.f32.mrb[0].mxu1 }
 0x1c4   : > { %v413_v24 = vadd.f32 %v487_v22, %v412_v23  ;;  %v542_v25 = vpop.f32.mrb[1].mxu1 }
 0x1c5   : > { %v415_v26 = vpop.f32.mrb[2].mxu1 }
 0x1c6   : > { %v418_v27 = vpack.c.bf16 %v413_v24, %v413_v24  ;;  %v543_v28 = vpop.f32.mrb[3].mxu1 }
 0x1c8   : > { %420 = vst.msk [vmem:[%s219_s7] sm:$0xf] %vm419_vm2, %v418_v27 }
 0x1c9 PF: > { %s15_s18 = sadd.s32 1, %s572_s18  }
 0x1ca   : > { %p12_p4 = scmp.ge.s32.totalorder %s15_s18, 4  }
 0x1cc   :  { %14 = sbr.rel (!%p12_p4) target bundleno = 1 (0x1), region = 70 }

// kernel: _lambda_.74
= control target key start
LH: loop header
LB: loop body
LE: loop exit
PB: predicated region body
PF: predicated region fallthrough
CT: control target
= control target key end

     0   :  { %s384_s9 = smov 0   ;;  %s410_s0 = inlined_call_operand.vmem [shape: bf16[2,8,64], index: 0, kind: input, shape index: {}]   ;;  %s411_s1 = inlined_call_operand.vmem [shape: bf16[2,64,64], index: 1, kind: input, shape index: {}]   ;;  %s412_s2 = inlined_call_operand.vmem [shape: f32[2,8,64], index: 2, kind: output, shape index: {}]  }
   0x1 LB: > { %s311_s10 = sadd.s32 4294967295, %s365_s9   ;;  %p315_p0 = scmp.ge.s32.totalorder %s365_s9, 1  ;;  %s365_s9 = sphi %s384_s9, %s12_s9  }
   0x2   : > { %p121_p1 = scmp.lt.s32.totalorder %s365_s9, 3 }
   0x4   : > { %p122_p2 = pnand %p315_p0, %p121_p1 }
   0x5   : > { %p146_p3 = scmp.lt.s32.totalorder (!%p122_p2), %s311_s10, 1  ;;  %v367_v0 = vmov (!%p122_p2), 0.0   ;;  %vm368_vm0 = vmmov (!%p122_p2), 0   ;;  %vm189_vm1 = vcmask (!%p122_p2), 523264  }
   0x6   : > { %125 = sbr.rel (%p122_p2) target bundleno = 264 (0x108), region = 28  ;;  %333 = vmatprep.subr.bf16.mxu0 (!%p122_p2), %v367_v0  ;;  %341 = vmatprep.mubr.msk.bf16.mxu0 (!%p122_p2), %vm368_vm0, %v367_v0 }
   0xd   : > { %s414_s10 = smov (!%p146_p3, %s311_s10), 1 }
   0xe   : > { %s327_s11 = sshll.u32 %s414_s10, 5  ;;  %s316_s15 = sshll.u32 %s414_s10, 2 }
   0xf   : > { %s154_s14 = scalar_lea.vmem %s411_s1, %s327_s11  ;;  %s149_s18 = scalar_lea.vmem %s410_s0, %s316_s15 }
  0x10   : > { %v355_v1 = vld [vmem:[%s154_s14] sm:$0xff]   ;;  %v356_v3 = vld [vmem:[%s154_s14 + $0x8] sm:$0xff]   ;;  %v357_v5 = vld [vmem:[%s154_s14 + $0x10] sm:$0xff]   ;;  %s319_s19 = sshll.u32 %s414_s10, 3 }
  0x11   : > { %v194_v2 = vsel %vm189_vm1, %v355_v1, 0  ;;  %v197_v4 = vsel %vm189_vm1, %v356_v3, 0  ;;  %v200_v6 = vsel %vm189_vm1, %v357_v5, 0  ;;  %v358_v7 = vld [vmem:[%s154_s14 + $0x18] sm:$0xff]   ;;  %v160_v9 = vld [vmem:[%s149_s18] sm:$0xf]  ;;  %s158_s22 = scalar_lea.vmem %s412_s2, %s319_s19 }
  0x12   : > { %334 = vmatpush3.bf16.xpose.msra.mxu0 %v194_v2  ;;  %v203_v8 = vsel %vm189_vm1, %v358_v7, 0 }
  0x13   : > { %335 = vmatprep.subr.bf16.mxu0 %v367_v0 }
  0x1a   : > { %336 = vmatpush3.bf16.xpose.msra.mxu0 %v197_v4 }
  0x1b   : > { %337 = vmatprep.subr.bf16.mxu0 %v367_v0 }
  0x22   : > { %338 = vmatpush3.bf16.xpose.msra.mxu0 %v200_v6 }
  0x23   : > { %339 = vmatprep.subr.bf16.mxu0 %v367_v0 }
  0x2a   : > { %340 = vmatpush3.bf16.xpose.msra.mxu0 %v203_v8 }
  0x31   : > { %342 = vmatmul.mubr.msk.bf16.vlgmr.msra.gmra.mrb[0].mxu0 %vm189_vm1, %v160_v9 }
 0x104   : > { %v239_v10 = vpop.f32.mrb[0].mxu0 }
 0x105   : > { %245 = vst.msk [vmem:[%s158_s22] sm:$0xff] %vm189_vm1, %v239_v10  ;;  %v343_v11 = vpop.f32.mrb[1].mxu0 }
 0x106   : > { %v242_v12 = vpop.f32.mrb[2].mxu0 }
 0x107   : > { %v344_v13 = vpop.f32.mrb[3].mxu0 }
 0x108 PF: > { %s12_s9 = sadd.s32 1, %s365_s9  }
 0x109   : > { %p9_p4 = scmp.ge.s32.totalorder %s12_s9, 4  }
 0x10b   :  { %11 = sbr.rel (!%p9_p4) target bundleno = 1 (0x1), region = 61 }

// kernel: _lambda_.72
= control target key start
LH: loop header
LB: loop body
LE: loop exit
PB: predicated region body
PF: predicated region fallthrough
CT: control target
= control target key end

     0   :  { %s382_s12 = smov 0   ;;  %s414_s0 = inlined_call_operand.vmem [shape: bf16[16,64], index: 0, kind: input, shape index: {}]   ;;  %s415_s1 = inlined_call_operand.vmem [shape: bf16[64,6], index: 1, kind: input, shape index: {}]   ;;  %s416_s2 = inlined_call_operand.vmem [shape: f32[1,6], index: 2, kind: input, shape index: {}]   ;;  %s417_s3 = inlined_call_operand.vmem [shape: f32[16,6], index: 3, kind: output, shape index: {}]  }
   0x1 LB: > { %s306_s13 = sadd.s32 4294967295, %s358_s12   ;;  %p310_p0 = scmp.ge.s32.totalorder %s358_s12, 1  ;;  %s358_s12 = sphi %s382_s12, %s13_s12  }
   0x2   : > { %p136_p1 = scmp.lt.s32.totalorder %s358_s12, 3 }
   0x4   : > { %p137_p2 = pnand %p310_p0, %p136_p1 }
   0x5   : > { %v348_v0 = vld [vmem:[%s415_s1] sm:$0xff] (!%p137_p2)   ;;  %v360_v1 = vmov (!%p137_p2), 0.0   ;;  %v349_v2 = vld [vmem:[%s415_s1 + $0x8] sm:$0xff] (!%p137_p2)   ;;  %vm361_vm0 = vmmov (!%p137_p2), 0   ;;  %p158_p3 = scmp.lt.s32.totalorder (!%p137_p2), %s306_s13, 1  ;;  %v350_v3 = vld [vmem:[%s415_s1 + $0x10] sm:$0xff] (!%p137_p2)  }
   0x6   : > { %140 = sbr.rel (%p137_p2) target bundleno = 237 (0xed), region = 32  ;;  %326 = vmatprep.subr.bf16.mxu0 (!%p137_p2), %v360_v1  ;;  %334 = vmatprep.mubr.msk.bf16.mxu0 (!%p137_p2), %vm361_vm0, %v360_v1  ;;  %v351_v4 = vld [vmem:[%s415_s1 + $0x18] sm:$0xff] (!%p137_p2)   ;;  %vm207_vm1 = vcmask (!%p137_p2), 523264   ;;  %v313_v6 = vld [vmem:[%s416_s2] ss:$0 sm:$0xff] (!%p137_p2)  ;;  %vm251_vm2 = vcmask (!%p137_p2), 48128  }
   0x7   : > { %327 = vmatpush3.bf16.msra.mxu0 (!%p137_p2), %v348_v0 }
   0x8   : > { %328 = vmatprep.subr.bf16.mxu0 (!%p137_p2), %v360_v1 }
   0xb   : > { %329 = vmatpush3.bf16.msra.mxu0 (!%p137_p2), %v349_v2 }
   0xc   : > { %330 = vmatprep.subr.bf16.mxu0 (!%p137_p2), %v360_v1 }
   0xd   : > { %s419_s13 = smov (!%p158_p3, %s306_s13), 1 }
   0xe   : > { %s311_s20 = sshll.u32 %s419_s13, 2  ;;  %s312_s26 = sshll.u32 %s419_s13, 3 }
   0xf   : > { %331 = vmatpush3.bf16.msra.mxu0 %v350_v3  ;;  %s161_s25 = scalar_lea.vmem %s414_s0, %s311_s20  ;;  %s165_s4 = scalar_lea.vmem %s417_s3, %s312_s26 }
  0x10   : > { %332 = vmatprep.subr.bf16.mxu0 %v360_v1  ;;  %v167_v5 = vld [vmem:[%s161_s25] sm:$0xf] }
  0x13   : > { %333 = vmatpush3.bf16.msra.mxu0 %v351_v4 }
  0x16   : > { %335 = vmatmul.mubr.msk.bf16.vlgmr.msra.gmra.mrb[0].mxu0 %vm207_vm1, %v167_v5 }
  0xe9   : > { %v245_v7 = vpop.f32.mrb[0].mxu0 }
  0xea   : > { %v246_v8 = vadd.f32 %v313_v6, %v245_v7  ;;  %v336_v9 = vpop.f32.mrb[1].mxu0 }
  0xeb   : > { %v248_v10 = vpop.f32.mrb[2].mxu0 }
  0xec   : > { %252 = vst.msk [vmem:[%s165_s4] sm:$0xff] %vm251_vm2, %v246_v8  ;;  %v337_v11 = vpop.f32.mrb[3].mxu0 }
  0xed PF: > { %s13_s12 = sadd.s32 1, %s358_s12  }
  0xee   : > { %p10_p4 = scmp.ge.s32.totalorder %s13_s12, 4  }
  0xf0   :  { %12 = sbr.rel (!%p10_p4) target bundleno = 1 (0x1), region = 62 }

// kernel: _lambda_.57
= control target key start
LH: loop header
LB: loop body
LE: loop exit
PB: predicated region body
PF: predicated region fallthrough
CT: control target
= control target key end

     0   :  { %s4146_s12 = smov 0   ;;  %s4148_s13 = smov 0   ;;  %s5164_s0 = inlined_call_operand.vmem [shape: bf16[2,8,64], index: 0, kind: input, shape index: {}]   ;;  %s5165_s1 = inlined_call_operand.vmem [shape: bf16[2,64,64], index: 1, kind: input, shape index: {}]   ;;  %s5166_s2 = inlined_call_operand.vmem [shape: bf16[2,64,64], index: 2, kind: input, shape index: {}]   ;;  %s5167_s3 = inlined_call_operand.vmem [shape: bf16[2,8,64], index: 3, kind: output, shape index: {}]  }
   0x1   :  { %s4150_s14 = smov 0  }
   0x2 LB: > { %s32_s15 = sadd.s32 1, %s4108_s13  ;;  %p3803_p0 = scmp.ge.s32.totalorder %s4112_s14, 1  ;;  %s4112_s14 = sphi %s4150_s14, %s13_s14   ;;  %s4108_s13 = sphi %s4148_s13, %s5171_s13   ;;  %s4104_s12 = sphi %s4146_s12, %s5170_s12  }
   0x3   : > { %p34_p1 = scmp.ge.s32.totalorder %s32_s15, 2  ;;  %p196_p2 = scmp.lt.s32.totalorder %s4112_s14, 3 }
   0x5   : > { %s5173_s15 = smov (%p34_p1, %s32_s15), 0  ;;  %p197_p3 = pnand %p3803_p0, %p196_p2 }
   0x6   : > { %p242_p4 = scmp.lt.s32.totalorder (!%p197_p3), %s4104_s12, 1  ;;  %s4114_s20 = smov (!%p197_p3), 96   ;;  %v4117_v6 = vmov (!%p197_p3), 0.0   ;;  %vm290_vm0 = vcmask (!%p197_p3), 130048   ;;  %v4118_v12 = vmov (!%p197_p3), 0   ;;  %vm4119_vm1 = vmmov (!%p197_p3), 0  }
   0x7   : > { %200 = sbr.rel (%p197_p3) target bundleno = 1226 (0x4ca), region = 32  ;;  %s4115_s21 = smov (!%p197_p3), 112   ;;  %3930 = vmatprep.subr.bf16.mxu0 (!%p197_p3), %v4117_v6  ;;  %3942 = vmatprep.subr.bf16.mxu1 (!%p197_p3), %v4117_v6  ;;  %291 = vst.msk [vmem:[#allocation4] sm:$0xff] (!%p197_p3), %vm290_vm0, %v4117_v6  ;;  %292 = vst.msk [vmem:[#allocation4 + $0x8] sm:$0xff] (!%p197_p3), %vm290_vm0, %v4117_v6  ;;  %v4120_v13 = vmov (!%p197_p3), 1983009808   ;;  %v313_v15 = vlaneseq (!%p197_p3) }
   0x8   : > { %s4116_s22 = smov (!%p197_p3), 80   ;;  %293 = vst.msk [vmem:[#allocation4 + $0x10] sm:$0xff] (!%p197_p3), %vm290_vm0, %v4117_v6  ;;  %294 = vst.msk [vmem:[#allocation4 + $0x18] sm:$0xff] (!%p197_p3), %vm290_vm0, %v4117_v6  ;;  %4062 = vset.pattern.permute.xlu1 (!%p197_p3), %v4118_v12  ;;  %4063 = vset.pattern.permute.xlu0 (!%p197_p3), %v4118_v12  ;;  %v311_v14 = vunpack.c.l.s4 (!%p197_p3), %v4120_v13  ;;  %v4121_v16 = vmov (!%p197_p3), 1934713408   ;;  %vm281_vm2 = vcmask (!%p197_p3), 7168  }
   0x9   : > { %3938 = vmatprep.mubr.msk.bf16.mxu0 (!%p197_p3), %vm4119_vm1, %v4117_v6  ;;  %3950 = vmatprep.mubr.msk.bf16.mxu1 (!%p197_p3), %vm4119_vm1, %v4117_v6  ;;  %v343_v17 = vunpack.c.l.s4 (!%p197_p3), %v4121_v16  ;;  %v314_v21 = vshrl.u32 (!%p197_p3), %v313_v15, 7  ;;  %286 = vst.msk [vmem:[#allocation3] sm:$0xff] (!%p197_p3), %vm281_vm2, %v4117_v6  ;;  %287 = vst.msk [vmem:[#allocation3 + $0x8] sm:$0xff] (!%p197_p3), %vm281_vm2, %v4117_v6  ;;  %vm3121_vm3 = vcmask (!%p197_p3), 523264   ;;  %s4123_s30 = smov (!%p197_p3), 32   ;;  %s4124_s4 = smov (!%p197_p3), 16  }
   0xa   : > { %v312_v20 = vunpack.c.0.s8 (!%p197_p3), %v311_v14  ;;  %288 = vst.msk [vmem:[#allocation3 + $0x10] sm:$0xff] (!%p197_p3), %vm281_vm2, %v4117_v6  ;;  %289 = vst.msk [vmem:[#allocation3 + $0x18] sm:$0xff] (!%p197_p3), %vm281_vm2, %v4117_v6  ;;  %s4125_s5 = smov (!%p197_p3), 48   ;;  %vm3679_vm4 = vcmask (!%p197_p3), 261120   ;;  %vm3681_vm5 = vcmask (!%p197_p3), 392192   ;;  %vm3684_vm6 = vcmask (!%p197_p3), 519168  }
   0xb   : > { %v344_v22 = vunpack.c.0.s8 (!%p197_p3), %v343_v17 }
   0xc   : > { %v4278_v29 = vsub.s32 (!%p197_p3), %v312_v20, %v314_v21 }
   0xd   : > { %v4289_v32 = vsub.s32 (!%p197_p3), %v344_v22, %v314_v21 }
   0xe   : > { %s5175_s12 = smov (!%p242_p4, %s4104_s12), 1 }
   0xf   : > { %s3888_s16 = sshll.u32 %s5175_s12, 5  ;;  %s3804_s23 = sshll.u32 %s5175_s12, 2 }
  0x10   : > { %s4172_s19 = scalar_lea.vmem %s5165_s1, %s3888_s16  ;;  %s248_s26 = scalar_lea.vmem %s5164_s0, %s3804_s23 }
  0x11   : > { %v4175_v0 = vld [vmem:[%s4172_s19] sm:$0xf]  ;;  %v4182_v1 = vld [vmem:[%s4172_s19 + $0x4] sm:$0xf]  ;;  %v4193_v2 = vld [vmem:[%s4172_s19 + $0xc] sm:$0xf]  ;;  %s4286_s29 = scalar_lea.vmem %s5166_s2, %s3888_s16  ;;  %s275_s8 = scalar_lea.vmem %s5167_s3, %s3804_s23 }
  0x12   : > { %476 = vrot.lane.b32.xlu1 %v4175_v0, %s4114_s20  ;;  %460 = vrot.lane.b32.xlu0 %v4175_v0, %s4115_s21  ;;  %v4196_v3 = vld [vmem:[%s4172_s19 + $0x8] sm:$0xf]  ;;  %v4211_v4 = vld [vmem:[%s4172_s19 + $0x14] sm:$0xf]  ;;  %v511_v23 = vshrl.u32 %v4175_v0, 16  ;;  %v523_v26 = vshrl.u32 %v4182_v1, 16 }
  0x13   : > { %v4214_v5 = vld [vmem:[%s4172_s19 + $0x10] sm:$0xf]  ;;  %v4240_v7 = vld [vmem:[%s4172_s19 + $0x1c] sm:$0xf]  ;;  %v4243_v8 = vld [vmem:[%s4172_s19 + $0x18] sm:$0xf] }
  0x14   : > { %v295_v9 = vld [vmem:[%s248_s26] sm:$0xf]  ;;  %v547_v33 = vshrl.u32 %v4193_v2, 16  ;;  %v535_v34 = vshrl.u32 %v4196_v3, 16  ;;  %v4294_v35 = vld [vmem:[%s4286_s29 + $0x4] sm:$0xf] }
  0x15   : > { %v296_v10 = vunpack.c.l.bf16 %v295_v9  ;;  %v4297_v36 = vld [vmem:[%s4286_s29] sm:$0xf]  ;;  %v571_v41 = vshrl.u32 %v4211_v4, 16  ;;  %v559_v42 = vshrl.u32 %v4214_v5, 16  ;;  %v595_v50 = vshrl.u32 %v4240_v7, 16 }
  0x16   : > { %478 = vrot.lane.b32.xlu1 %v4182_v1, %s4114_s20  ;;  %462 = vrot.lane.b32.xlu0 %v4182_v1, %s4115_s21  ;;  %v583_v60 = vshrl.u32 %v4243_v8, 16 }
  0x17   : > { %v4262_v11 = vmul.f32 0.25, %v296_v10 }
  0x1a   : > { %494 = vrot.lane.b32.xlu1 %v4182_v1, %s4116_s22  ;;  %492 = vrot.lane.b32.xlu0 %v4175_v0, %s4116_s22 }
  0x1e   : > { %466 = vrot.lane.b32.xlu1 %v4193_v2, %s4115_s21  ;;  %464 = vrot.lane.b32.xlu0 %v4196_v3, %s4115_s21 }
  0x22   : > { %482 = vrot.lane.b32.xlu1 %v4193_v2, %s4114_s20  ;;  %480 = vrot.lane.b32.xlu0 %v4196_v3, %s4114_s20 }
  0x26   : > { %498 = vrot.lane.b32.xlu1 %v4193_v2, %s4116_s22  ;;  %496 = vrot.lane.b32.xlu0 %v4196_v3, %s4116_s22 }
  0x2a   : > { %470 = vrot.lane.b32.xlu1 %v4211_v4, %s4115_s21  ;;  %468 = vrot.lane.b32.xlu0 %v4214_v5, %s4115_s21 }
  0x2e   : > { %486 = vrot.lane.b32.xlu1 %v4211_v4, %s4114_s20  ;;  %484 = vrot.lane.b32.xlu0 %v4214_v5, %s4114_s20 }
  0x32   : > { %502 = vrot.lane.b32.xlu1 %v4211_v4, %s4116_s22  ;;  %500 = vrot.lane.b32.xlu0 %v4214_v5, %s4116_s22 }
  0x36   : > { %474 = vrot.lane.b32.xlu1 %v4240_v7, %s4115_s21  ;;  %472 = vrot.lane.b32.xlu0 %v4243_v8, %s4115_s21 }
  0x3a   : > { %490 = vrot.lane.b32.xlu1 %v4240_v7, %s4114_s20  ;;  %488 = vrot.lane.b32.xlu0 %v4243_v8, %s4114_s20 }
  0x3e   : > { %506 = vrot.lane.b32.xlu1 %v4240_v7, %s4116_s22  ;;  %504 = vrot.lane.b32.xlu0 %v4243_v8, %s4116_s22 }
  0x42   : > { %299 = vrot.lane.b32.xlu0 %v4262_v11, %s4115_s21  ;;  %302 = vrot.lane.b32.xlu1 %v4262_v11, %s4114_s20 }
  0x46   : > { %305 = vrot.lane.b32.xlu0 %v4262_v11, %s4116_s22  ;;  %1662 = vrot.lane.b32.xlu1 %v4294_v35, %s4115_s21 }
  0x4a   : > { %1660 = vrot.lane.b32.xlu0 %v4297_v36, %s4115_s21  ;;  %1676 = vrot.lane.b32.xlu1 %v4297_v36, %s4114_s20 }
  0x4e   : > { %1678 = vrot.lane.b32.xlu0 %v4294_v35, %s4114_s20  ;;  %1692 = vrot.lane.b32.xlu1 %v4297_v36, %s4116_s22 }
  0x52   : > { %1694 = vrot.lane.b32.xlu0 %v4294_v35, %s4116_s22 }
  0x84   : > { %v477_v18 = vpop.permute.xlu1 %476  ;;  %v461_v19 = vpop.permute.xlu0 %460 }
  0x85   : > { %v512_v24 = vshrl.u32 %v461_v19, 16  ;;  %v510_v30 = vpack.i.b16 %v461_v19, %v4175_v0  ;;  %v517_v47 = vshrl.u32 %v477_v18, 16 }
  0x87   : > { %v513_v37 = vpack.i.b16 %v512_v24, %v511_v23  ;;  %v611_v48 = vrot.slane %v510_v30, %v4278_v29 }
  0x88   : > { %v479_v25 = vpop.permute.xlu1 %478  ;;  %v463_v27 = vpop.permute.xlu0 %462 }
  0x89   : > { %v524_v28 = vshrl.u32 %v463_v27, 16  ;;  %v522_v31 = vpack.i.b16 %v463_v27, %v4182_v1  ;;  %v529_v43 = vshrl.u32 %v479_v25, 16  ;;  %v645_v55 = vrot.slane %v513_v37, %v4278_v29 }
  0x8b   : > { %v525_v38 = vpack.i.b16 %v524_v28, %v523_v26  ;;  %v679_v51 = vrot.slane %v522_v31, %v4278_v29  ;;  %v1646_v28 = vld [vmem:[%s4286_s29 + $0x8] sm:$0xf] }
  0x8c   : > { %v495_v39 = vpop.permute.xlu1 %494  ;;  %v493_v40 = vpop.permute.xlu0 %492  ;;  %1664 = vrot.lane.b32.xlu1 %v1646_v28, %s4115_s21 }
  0x8d   : > { %v528_v44 = vpack.i.b16 %v495_v39, %v479_v25  ;;  %v530_v45 = vshrl.u32 %v495_v39, 16  ;;  %v516_v46 = vpack.i.b16 %v493_v40, %v477_v18  ;;  %v518_v49 = vshrl.u32 %v493_v40, 16  ;;  %v1647_v39 = vld [vmem:[%s4286_s29 + $0xc] sm:$0xf] }
  0x8e   : > { %v713_v56 = vrot.slane %v525_v38, %v4278_v29  ;;  %1666 = vrot.lane.b32.xlu0 %v1647_v39, %s4115_s21 }
  0x8f   : > { %v531_v52 = vpack.i.b16 %v530_v45, %v529_v43  ;;  %v687_v53 = vrot.slane %v528_v44, %v4278_v29  ;;  %v619_v54 = vrot.slane %v516_v46, %v4278_v29  ;;  %v519_v57 = vpack.i.b16 %v518_v49, %v517_v47 }
  0x90   : > { %v467_v58 = vpop.permute.xlu1 %466  ;;  %v465_v59 = vpop.permute.xlu0 %464  ;;  %1680 = vrot.lane.b32.xlu1 %v1646_v28, %s4114_s20 }
  0x91   : > { %v688_v61 = vcombine.low %v679_v51, %v687_v53  ;;  %v689_v62 = vcombine.high %v679_v51, %v687_v53  ;;  %v721_v63 = vrot.slane %v531_v52, %v4278_v29  ;;  %v620_v0 = vcombine.low %v611_v48, %v619_v54 }
  0x92   : > { %v621_v1 = vcombine.high %v611_v48, %v619_v54  ;;  %v653_v9 = vrot.slane %v519_v57, %v4278_v29  ;;  %v546_v10 = vpack.i.b16 %v467_v58, %v4193_v2  ;;  %v548_v13 = vshrl.u32 %v467_v58, 16 }
  0x93   : > { %v696_v14 = vrot.slane %v688_v61, %v4289_v32  ;;  %v703_v15 = vrot.slane %v689_v62, %v4289_v32  ;;  %v722_v16 = vcombine.low %v713_v56, %v721_v63  ;;  %v723_v17 = vcombine.high %v713_v56, %v721_v63 }
  0x94   : > { %v628_v18 = vrot.slane %v620_v0, %v4289_v32  ;;  %v635_v19 = vrot.slane %v621_v1, %v4289_v32  ;;  %v654_v20 = vcombine.low %v645_v55, %v653_v9  ;;  %v655_v21 = vcombine.high %v645_v55, %v653_v9  ;;  %v483_v22 = vpop.permute.xlu1 %482  ;;  %v481_v23 = vpop.permute.xlu0 %480 }
  0x95   : > { %v4327_v24 = vrot.slane %v722_v16, %v4289_v32  ;;  %v4330_v25 = vrot.slane %v723_v17, %v4289_v32  ;;  %v1198_v26 = vcombine.low %v696_v14, %v703_v15  ;;  %v3814_v27 = vcombine.high %v696_v14, %v703_v15 }
  0x96   : > { %v4336_v30 = vrot.slane %v654_v20, %v4289_v32  ;;  %v4339_v31 = vrot.slane %v655_v21, %v4289_v32  ;;  %v1148_v37 = vcombine.low %v628_v18, %v635_v19  ;;  %v3812_v38 = vcombine.high %v628_v18, %v635_v19 }
  0x97   : > { %v4343_v40 = vrot.slane %v1198_v26, %v4278_v29  ;;  %v4346_v43 = vrot.slane %v3814_v27, %v4278_v29  ;;  %v1223_v44 = vcombine.low %v4327_v24, %v4330_v25  ;;  %v3815_v45 = vcombine.high %v4327_v24, %v4330_v25 }
  0x98   : > { %v4353_v46 = vrot.slane %v1148_v37, %v4278_v29  ;;  %v4356_v47 = vrot.slane %v3812_v38, %v4278_v29  ;;  %v1173_v48 = vcombine.low %v4336_v30, %v4339_v31  ;;  %v3813_v49 = vcombine.high %v4336_v30, %v4339_v31  ;;  %v499_v51 = vpop.permute.xlu1 %498  ;;  %v497_v52 = vpop.permute.xlu0 %496 }
  0x99   : > { %v549_v53 = vpack.i.b16 %v548_v13, %v547_v33  ;;  %v815_v54 = vrot.slane %v546_v10, %v4278_v29  ;;  %v534_v55 = vpack.i.b16 %v465_v59, %v4196_v3  ;;  %v536_v56 = vshrl.u32 %v465_v59, 16 }
  0x9a   : > { %v553_v57 = vshrl.u32 %v483_v22, 16  ;;  %v541_v58 = vshrl.u32 %v481_v23, 16  ;;  %v552_v61 = vpack.i.b16 %v499_v51, %v483_v22  ;;  %v554_v62 = vshrl.u32 %v499_v51, 16 }
  0x9b   : > { %v849_v63 = vrot.slane %v549_v53, %v4278_v29  ;;  %v537_v0 = vpack.i.b16 %v536_v56, %v535_v34  ;;  %v747_v1 = vrot.slane %v534_v55, %v4278_v29  ;;  %v540_v2 = vpack.i.b16 %v497_v52, %v481_v23 }
  0x9c   : > { %v555_v33 = vpack.i.b16 %v554_v62, %v553_v57  ;;  %v823_v9 = vrot.slane %v552_v61, %v4278_v29  ;;  %v542_v10 = vshrl.u32 %v497_v52, 16  ;;  %v471_v13 = vpop.permute.xlu1 %470  ;;  %v469_v59 = vpop.permute.xlu0 %468  ;;  %v1164_v14 = vcombine.low %v4353_v46, %v4356_v47 }
  0x9d   : > { %v781_v15 = vrot.slane %v537_v0, %v4278_v29  ;;  %v755_v16 = vrot.slane %v540_v2, %v4278_v29  ;;  %v570_v3 = vpack.i.b16 %v471_v13, %v4211_v4  ;;  %v572_v34 = vshrl.u32 %v471_v13, 16 }
  0x9e   : > { %v824_v17 = vcombine.low %v815_v54, %v823_v9  ;;  %v825_v18 = vcombine.high %v815_v54, %v823_v9  ;;  %v857_v19 = vrot.slane %v555_v33, %v4278_v29  ;;  %v543_v20 = vpack.i.b16 %v542_v10, %v541_v58 }
  0x9f   : > { %v756_v21 = vcombine.low %v747_v1, %v755_v16  ;;  %v757_v22 = vcombine.high %v747_v1, %v755_v16  ;;  %v573_v23 = vpack.i.b16 %v572_v34, %v571_v41  ;;  %v4383_v26 = vrot.slane %v570_v3, %v4278_v29 }
  0xa0   : > { %v832_v27 = vrot.slane %v824_v17, %v4289_v32  ;;  %v839_v28 = vrot.slane %v825_v18, %v4289_v32  ;;  %v858_v37 = vcombine.low %v849_v63, %v857_v19  ;;  %v859_v38 = vcombine.high %v849_v63, %v857_v19  ;;  %v487_v39 = vpop.permute.xlu1 %486  ;;  %v485_v46 = vpop.permute.xlu0 %484 }
  0xa1   : > { %v764_v47 = vrot.slane %v756_v21, %v4289_v32  ;;  %v771_v51 = vrot.slane %v757_v22, %v4289_v32  ;;  %v789_v52 = vrot.slane %v543_v20, %v4278_v29  ;;  %v4391_v4 = vrot.slane %v573_v23, %v4278_v29 }
  0xa2   : > { %v866_v41 = vrot.slane %v858_v37, %v4289_v32  ;;  %v873_v53 = vrot.slane %v859_v38, %v4289_v32  ;;  %v1298_v54 = vcombine.low %v832_v27, %v839_v28  ;;  %v3818_v55 = vcombine.high %v832_v27, %v839_v28 }
  0xa3   : > { %v790_v56 = vcombine.low %v781_v15, %v789_v52  ;;  %v791_v57 = vcombine.high %v781_v15, %v789_v52  ;;  %v1248_v58 = vcombine.low %v764_v47, %v771_v51  ;;  %v3816_v61 = vcombine.high %v764_v47, %v771_v51 }
  0xa4   : > { %v4396_v62 = vrot.slane %v1298_v54, %v4278_v29  ;;  %v4399_v63 = vrot.slane %v3818_v55, %v4278_v29  ;;  %v1323_v0 = vcombine.low %v866_v41, %v873_v53  ;;  %v3819_v1 = vcombine.high %v866_v41, %v873_v53  ;;  %v503_v13 = vpop.permute.xlu1 %502  ;;  %v501_v15 = vpop.permute.xlu0 %500 }
  0xa5   : > { %v798_v2 = vrot.slane %v790_v56, %v4289_v32  ;;  %v805_v33 = vrot.slane %v791_v57, %v4289_v32  ;;  %v4404_v9 = vrot.slane %v1248_v58, %v4278_v29  ;;  %v4407_v10 = vrot.slane %v3816_v61, %v4278_v29 }
  0xa6   : > { %v4410_v16 = vrot.slane %v1323_v0, %v4278_v29  ;;  %v4413_v3 = vrot.slane %v3819_v1, %v4278_v29  ;;  %v558_v34 = vpack.i.b16 %v469_v59, %v4214_v5  ;;  %v560_v17 = vshrl.u32 %v469_v59, 16 }
  0xa7   : > { %v1273_v18 = vcombine.low %v798_v2, %v805_v33  ;;  %v3817_v19 = vcombine.high %v798_v2, %v805_v33  ;;  %v577_v20 = vshrl.u32 %v487_v39, 16  ;;  %v565_v21 = vshrl.u32 %v485_v46, 16 }
  0xa8   : > { %v561_v22 = vpack.i.b16 %v560_v17, %v559_v42  ;;  %v883_v23 = vrot.slane %v558_v34, %v4278_v29  ;;  %v576_v27 = vpack.i.b16 %v503_v13, %v487_v39  ;;  %v578_v28 = vshrl.u32 %v503_v13, 16  ;;  %v475_v54 = vpop.permute.xlu1 %474  ;;  %v473_v55 = vpop.permute.xlu0 %472 }
  0xa9   : > { %v4420_v37 = vrot.slane %v1273_v18, %v4278_v29  ;;  %v4423_v38 = vrot.slane %v3817_v19, %v4278_v29  ;;  %v564_v47 = vpack.i.b16 %v501_v15, %v485_v46  ;;  %v566_v51 = vshrl.u32 %v501_v15, 16 }
  0xaa   : > { %v917_v59 = vrot.slane %v561_v22, %v4278_v29  ;;  %v579_v52 = vpack.i.b16 %v578_v28, %v577_v20  ;;  %v959_v41 = vrot.slane %v576_v27, %v4278_v29  ;;  %v4428_v5 = vrot.slane %v1164_v14, %v4289_v32 }
  0xab   : > { %v567_v42 = vpack.i.b16 %v566_v51, %v565_v21  ;;  %v891_v39 = vrot.slane %v564_v47, %v4278_v29  ;;  %v1180_v53 = vrot.slane %v1173_v48, %v4278_v29  ;;  %v1188_v46 = vrot.slane %v3813_v49, %v4278_v29 }
  0xac   : > { %v960_v56 = vcombine.low %v4383_v26, %v959_v41  ;;  %v961_v14 = vcombine.high %v4383_v26, %v959_v41  ;;  %v993_v57 = vrot.slane %v579_v52, %v4278_v29  ;;  %v1214_v58 = vcombine.low %v4343_v40, %v4346_v43  ;;  %v491_v22 = vpop.permute.xlu1 %490 }
  0xad   : > { %v892_v61 = vcombine.low %v883_v23, %v891_v39  ;;  %v893_v0 = vcombine.high %v883_v23, %v891_v39  ;;  %v925_v48 = vrot.slane %v567_v42, %v4278_v29  ;;  %v1189_v1 = vcombine.low %v1180_v53, %v1188_v46 }
  0xae   : > { %v968_v2 = vrot.slane %v960_v56, %v4289_v32  ;;  %v975_v30 = vrot.slane %v961_v14, %v4289_v32  ;;  %v994_v31 = vcombine.low %v4391_v4, %v993_v57  ;;  %v995_v49 = vcombine.high %v4391_v4, %v993_v57  ;;  %v489_v4 = vpop.permute.xlu0 %488 }
  0xaf   : > { %v900_v26 = vrot.slane %v892_v61, %v4289_v32  ;;  %v907_v33 = vrot.slane %v893_v0, %v4289_v32  ;;  %v926_v13 = vcombine.low %v917_v59, %v925_v48  ;;  %v927_v15 = vcombine.high %v917_v59, %v925_v48 }
  0xb0   : > { %v1002_v40 = vrot.slane %v994_v31, %v4289_v32  ;;  %v1009_v43 = vrot.slane %v995_v49, %v4289_v32  ;;  %v1398_v34 = vcombine.low %v968_v2, %v975_v30  ;;  %v3822_v17 = vcombine.high %v968_v2, %v975_v30  ;;  %v507_v49 = vpop.permute.xlu1 %506 }
  0xb1   : > { %v934_v18 = vrot.slane %v926_v13, %v4289_v32  ;;  %v941_v19 = vrot.slane %v927_v15, %v4289_v32  ;;  %v1348_v20 = vcombine.low %v900_v26, %v907_v33  ;;  %v3820_v21 = vcombine.high %v900_v26, %v907_v33 }
  0xb2   : > { %v4456_v23 = vrot.slane %v1398_v34, %v4278_v29  ;;  %v4459_v27 = vrot.slane %v3822_v17, %v4278_v29  ;;  %v1423_v28 = vcombine.low %v1002_v40, %v1009_v43  ;;  %v3823_v47 = vcombine.high %v1002_v40, %v1009_v43  ;;  %v505_v26 = vpop.permute.xlu0 %504 }
  0xb3   : > { %v4462_v51 = vrot.slane %v1348_v20, %v4278_v29  ;;  %v4465_v59 = vrot.slane %v3820_v21, %v4278_v29  ;;  %v1373_v52 = vcombine.low %v934_v18, %v941_v19  ;;  %v3821_v41 = vcombine.high %v934_v18, %v941_v19 }
  0xb4   : > { %v4468_v42 = vrot.slane %v1423_v28, %v4278_v29  ;;  %v4471_v39 = vrot.slane %v3823_v47, %v4278_v29  ;;  %v4474_v53 = vrot.slane %v1189_v1, %v4289_v32  ;;  %v4477_v46 = vrot.slane %v1214_v58, %v4289_v32 }
  0xb5   : > { %v4480_v56 = vrot.slane %v1373_v52, %v4278_v29  ;;  %v4483_v14 = vrot.slane %v3821_v41, %v4278_v29  ;;  %v1230_v57 = vrot.slane %v1223_v44, %v4278_v29  ;;  %v1238_v61 = vrot.slane %v3815_v45, %v4278_v29 }
  0xb6   : > { %v1550_v58 = vpack.i.b16 %v4474_v53, %v4428_v5  ;;  %v1551_v0 = vshrl.u32 %v4428_v5, 16  ;;  %v1552_v48 = vshrl.u32 %v4474_v53, 16  ;;  %v1563_v1 = vshrl.u32 %v4477_v46, 16 }
  0xb7   : > { %v1239_v2 = vcombine.low %v1230_v57, %v1238_v61  ;;  %v594_v30 = vpack.i.b16 %v475_v54, %v4240_v7  ;;  %v596_v31 = vshrl.u32 %v475_v54, 16  ;;  %v582_v44 = vpack.i.b16 %v473_v55, %v4243_v8 }
  0xb8   : > { %v1553_v33 = vpack.i.b16 %v1552_v48, %v1551_v0  ;;  %v584_v24 = vshrl.u32 %v473_v55, 16  ;;  %v601_v25 = vshrl.u32 %v491_v22, 16  ;;  %v589_v45 = vshrl.u32 %v489_v4, 16 }
  0xb9   : > { %v4501_v13 = vrot.slane %v1239_v2, %v4289_v32  ;;  %v597_v15 = vpack.i.b16 %v596_v31, %v595_v50  ;;  %v1087_v40 = vrot.slane %v594_v30, %v4278_v29  ;;  %v1019_v43 = vrot.slane %v582_v44, %v4278_v29 }
  0xba   : > { %v585_v54 = vpack.i.b16 %v584_v24, %v583_v60  ;;  %v600_v34 = vpack.i.b16 %v507_v49, %v491_v22  ;;  %v602_v17 = vshrl.u32 %v507_v49, 16  ;;  %v588_v18 = vpack.i.b16 %v505_v26, %v489_v4  ;;  %v300_v49 = vpop.permute.xlu0 %299 }
  0xbb   : > { %v1562_v55 = vpack.i.b16 %v4501_v13, %v4477_v46  ;;  %v1564_v19 = vshrl.u32 %v4501_v13, 16  ;;  %v1121_v20 = vrot.slane %v597_v15, %v4278_v29  ;;  %v590_v21 = vshrl.u32 %v505_v26, 16 }
  0xbc   : > { %v1053_v7 = vrot.slane %v585_v54, %v4278_v29  ;;  %v603_v50 = vpack.i.b16 %v602_v17, %v601_v25  ;;  %v1095_v28 = vrot.slane %v600_v34, %v4278_v29  ;;  %v1027_v47 = vrot.slane %v588_v18, %v4278_v29 }
  0xbd   : > { %v3844_v8 = vcombine.low %v1550_v58, %v1562_v55  ;;  %v1565_v60 = vpack.i.b16 %v1564_v19, %v1563_v1  ;;  %v591_v22 = vpack.i.b16 %v590_v21, %v589_v45  ;;  %v1264_v4 = vcombine.low %v4404_v9, %v4407_v10 }
  0xbe   : > { %v1096_v52 = vcombine.low %v1087_v40, %v1095_v28  ;;  %v1097_v41 = vcombine.high %v1087_v40, %v1095_v28  ;;  %v1129_v57 = vrot.slane %v603_v50, %v4278_v29  ;;  %v1028_v61 = vcombine.low %v1019_v43, %v1027_v47  ;;  %v303_v28 = vpop.permute.xlu1 %302 }
  0xbf   : > { %v2865_v0 = vsel %vm290_vm0, %v3844_v8, 0  ;;  %v3849_v48 = vcombine.low %v1553_v33, %v1565_v60  ;;  %v1029_v2 = vcombine.high %v1019_v43, %v1027_v47  ;;  %v1061_v30 = vrot.slane %v591_v22, %v4278_v29 }
  0xc0   : > { %3931 = vmatpush3.bf16.xpose.msra.mxu0 %v2865_v0  ;;  %v1104_v31 = vrot.slane %v1096_v52, %v4289_v32  ;;  %v1111_v58 = vrot.slane %v1097_v41, %v4289_v32  ;;  %v1130_v1 = vcombine.low %v1121_v20, %v1129_v57  ;;  %v1131_v44 = vcombine.high %v1121_v20, %v1129_v57  ;;  %v306_v52 = vpop.permute.xlu0 %305 }
  0xc1   : > { %v2932_v9 = vsel %vm290_vm0, %v3849_v48, 0  ;;  %3932 = vmatprep.subr.bf16.mxu0 %v4117_v6  ;;  %v1036_v10 = vrot.slane %v1028_v61, %v4289_v32  ;;  %v1043_v26 = vrot.slane %v1029_v2, %v4289_v32  ;;  %v1062_v33 = vcombine.low %v1053_v7, %v1061_v30 }
  0xc2   : > { %3943 = vmatpush3.bf16.xpose.msra.mxu1 %v2932_v9  ;;  %v1138_v24 = vrot.slane %v1130_v1, %v4289_v32  ;;  %v1145_v25 = vrot.slane %v1131_v44, %v4289_v32  ;;  %v1498_v45 = vcombine.low %v1104_v31, %v1111_v58  ;;  %v3826_v15 = vcombine.high %v1104_v31, %v1111_v58 }
  0xc3   : > { %v1063_v40 = vcombine.high %v1053_v7, %v1061_v30  ;;  %v1070_v43 = vrot.slane %v1062_v33, %v4289_v32  ;;  %v1448_v54 = vcombine.low %v1036_v10, %v1043_v26  ;;  %v3824_v34 = vcombine.high %v1036_v10, %v1043_v26  ;;  %3944 = vmatprep.subr.bf16.mxu1 %v4117_v6 }
  0xc4   : > { %v4532_v17 = vrot.slane %v1498_v45, %v4278_v29  ;;  %v4535_v18 = vrot.slane %v3826_v15, %v4278_v29  ;;  %v1523_v55 = vcombine.low %v1138_v24, %v1145_v25  ;;  %v3827_v19 = vcombine.high %v1138_v24, %v1145_v25 }
  0xc5   : > { %v1077_v20 = vrot.slane %v1063_v40, %v4289_v32  ;;  %v4539_v21 = vrot.slane %v1448_v54, %v4278_v29  ;;  %v4542_v7 = vrot.slane %v3824_v34, %v4278_v29  ;;  %v4545_v50 = vrot.slane %v1264_v4, %v4289_v32 }
  0xc6   : > { %v4548_v47 = vrot.slane %v1523_v55, %v4278_v29  ;;  %v4551_v8 = vrot.slane %v3827_v19, %v4278_v29  ;;  %v1289_v60 = vcombine.low %v4420_v37, %v4423_v38  ;;  %v1314_v22 = vcombine.low %v4396_v62, %v4399_v63 }
  0xc7   : > { %v1473_v41 = vcombine.low %v1070_v43, %v1077_v20  ;;  %v3825_v57 = vcombine.high %v1070_v43, %v1077_v20  ;;  %v1339_v4 = vcombine.low %v4410_v16, %v4413_v3  ;;  %v1575_v61 = vshrl.u32 %v4545_v50, 16 }
  0xc8   : > { %v4561_v0 = vrot.slane %v1289_v60, %v4289_v32  ;;  %v4564_v48 = vrot.slane %v1314_v22, %v4289_v32  ;;  %v308_v2 = vcombine.low %v4262_v11, %v303_v28  ;;  %v309_v37 = vcombine.high %v4262_v11, %v303_v28 }
  0xc9   : > { %v4569_v62 = vrot.slane %v1473_v41, %v4278_v29  ;;  %v4572_v63 = vrot.slane %v3825_v57, %v4278_v29  ;;  %v4575_v16 = vrot.slane %v1339_v4, %v4289_v32  ;;  %v324_v3 = vcombine.low %v300_v49, %v306_v52 }
  0xca   : > { %v1574_v38 = vpack.i.b16 %v4561_v0, %v4545_v50  ;;  %v1576_v30 = vshrl.u32 %v4561_v0, 16  ;;  %v1587_v31 = vshrl.u32 %v4564_v48, 16  ;;  %v316_v58 = vrot.slane %v308_v2, %v4278_v29 }
  0xcb   : > { %v1586_v11 = vpack.i.b16 %v4575_v16, %v4564_v48  ;;  %v1588_v1 = vshrl.u32 %v4575_v16, 16  ;;  %v323_v44 = vrot.slane %v309_v37, %v4278_v29  ;;  %v325_v9 = vcombine.high %v300_v49, %v306_v52 }
  0xcc   : > { %v1577_v10 = vpack.i.b16 %v1576_v30, %v1575_v61  ;;  %v332_v26 = vrot.slane %v324_v3, %v4278_v29  ;;  %v1364_v33 = vcombine.low %v4462_v51, %v4465_v59  ;;  %v1389_v24 = vcombine.low %v4480_v56, %v4483_v14 }
  0xcd   : > { %v3845_v25 = vcombine.low %v1574_v38, %v1586_v11  ;;  %v1589_v45 = vpack.i.b16 %v1588_v1, %v1587_v31  ;;  %v339_v15 = vrot.slane %v325_v9, %v4278_v29  ;;  %v1414_v40 = vcombine.low %v4456_v23, %v4459_v27 }
  0xce   : > { %v340_v43 = vcombine.low %v316_v58, %v332_v26  ;;  %v341_v54 = vcombine.high %v316_v58, %v332_v26  ;;  %v4595_v49 = vrot.slane %v1364_v33, %v4289_v32  ;;  %v4598_v34 = vrot.slane %v1389_v24, %v4289_v32 }
  0xcf   : > { %v2868_v51 = vsel %vm290_vm0, %v3845_v25, 0  ;;  %v3850_v59 = vcombine.low %v1577_v10, %v1589_v45  ;;  %v356_v55 = vcombine.low %v323_v44, %v339_v15  ;;  %v357_v56 = vcombine.high %v323_v44, %v339_v15 }
  0xd0   : > { %3933 = vmatpush3.bf16.xpose.msra.mxu0 %v2868_v51  ;;  %v348_v14 = vrot.slane %v340_v43, %v4289_v32  ;;  %v355_v19 = vrot.slane %v341_v54, %v4289_v32  ;;  %v4604_v23 = vrot.slane %v1414_v40, %v4289_v32  ;;  %v1439_v27 = vcombine.low %v4468_v42, %v4471_v39 }
  0xd1   : > { %v2935_v20 = vsel %vm290_vm0, %v3850_v59, 0  ;;  %v364_v28 = vrot.slane %v356_v55, %v4289_v32  ;;  %v371_v60 = vrot.slane %v357_v56, %v4289_v32  ;;  %3934 = vmatprep.subr.bf16.mxu0 %v4117_v6  ;;  %v1598_v22 = vpack.i.b16 %v4598_v34, %v4595_v49 }
  0xd2   : > { %3945 = vmatpush3.bf16.xpose.msra.mxu1 %v2935_v20  ;;  %v376_v52 = vcombine.low %v348_v14, %v355_v19  ;;  %v3810_v41 = vcombine.high %v348_v14, %v355_v19  ;;  %v4615_v57 = vrot.slane %v1439_v27, %v4289_v32  ;;  %v1599_v4 = vshrl.u32 %v4595_v49, 16 }
  0xd3   : > { %v392_v42 = vcombine.low %v364_v28, %v371_v60  ;;  %v3811_v39 = vcombine.high %v364_v28, %v371_v60  ;;  %3946 = vmatprep.subr.bf16.mxu1 %v4117_v6  ;;  %v1600_v61 = vshrl.u32 %v4598_v34, 16  ;;  %v1611_v2 = vshrl.u32 %v4604_v23, 16 }
  0xd4   : > { %v4622_v37 = vrot.slane %v376_v52, %v4278_v29  ;;  %v4625_v3 = vrot.slane %v3810_v41, %v4278_v29  ;;  %v1610_v38 = vpack.i.b16 %v4615_v57, %v4604_v23  ;;  %v1612_v30 = vshrl.u32 %v4615_v57, 16 }
  0xd5   : > { %v4631_v31 = vrot.slane %v392_v42, %v4278_v29  ;;  %v4634_v58 = vrot.slane %v3811_v39, %v4278_v29  ;;  %v1601_v11 = vpack.i.b16 %v1600_v61, %v1599_v4  ;;  %v1464_v1 = vcombine.low %v4539_v21, %v4542_v7 }
  0xd6   : > { %v3846_v44 = vcombine.low %v1598_v22, %v1610_v38  ;;  %v1613_v9 = vpack.i.b16 %v1612_v30, %v1611_v2  ;;  %v1489_v10 = vcombine.low %v4569_v62, %v4572_v63  ;;  %v1514_v33 = vcombine.low %v4532_v17, %v4535_v18 }
  0xd7   : > { %v4641_v26 = vrot.slane %v1464_v1, %v4289_v32  ;;  %v1539_v24 = vcombine.low %v4548_v47, %v4551_v8  ;;  %v408_v21 = vcombine.low %v4622_v37, %v4625_v3  ;;  %v424_v17 = vcombine.low %v4631_v31, %v4634_v58 }
  0xd8   : > { %v2871_v25 = vsel %vm290_vm0, %v3846_v44, 0  ;;  %v3851_v45 = vcombine.low %v1601_v11, %v1613_v9  ;;  %v4649_v15 = vrot.slane %v1489_v10, %v4289_v32  ;;  %v4654_v7 = vrot.slane %v1514_v33, %v4289_v32 }
  0xd9   : > { %3935 = vmatpush3.bf16.xpose.msra.mxu0 %v2871_v25  ;;  %v4657_v62 = vrot.slane %v1539_v24, %v4289_v32  ;;  %v1623_v8 = vshrl.u32 %v4641_v26, 16  ;;  %v416_v51 = vrot.slane %v408_v21, %v4289_v32  ;;  %v1172_v55 = vcombine.high %v4428_v5, %v4118_v12 }
  0xda   : > { %v2938_v18 = vsel %vm290_vm0, %v3851_v45, 0  ;;  %3936 = vmatprep.subr.bf16.mxu0 %v4117_v6  ;;  %v1622_v47 = vpack.i.b16 %v4649_v15, %v4641_v26  ;;  %v1624_v63 = vshrl.u32 %v4649_v15, 16  ;;  %v1635_v43 = vshrl.u32 %v4654_v7, 16 }
  0xdb   : > { %3947 = vmatpush3.bf16.xpose.msra.mxu1 %v2938_v18  ;;  %v1634_v40 = vpack.i.b16 %v4657_v62, %v4654_v7  ;;  %v1636_v54 = vshrl.u32 %v4657_v62, 16  ;;  %v1197_v56 = vcombine.high %v4474_v53, %v4118_v12  ;;  %v1222_v14 = vcombine.high %v4477_v46, %v4118_v12 }
  0xdc   : > { %3948 = vmatprep.subr.bf16.mxu1 %v4117_v6  ;;  %v1625_v59 = vpack.i.b16 %v1624_v63, %v1623_v8  ;;  %v432_v20 = vrot.slane %v424_v17, %v4289_v32  ;;  %v1247_v28 = vcombine.high %v4501_v13, %v4118_v12  ;;  %v1557_v5 = vshrl.u32 %v1172_v55, 16 }
  0xdd   : > { %v3847_v19 = vcombine.low %v1622_v47, %v1634_v40  ;;  %v1637_v27 = vpack.i.b16 %v1636_v54, %v1635_v43  ;;  %v1558_v60 = vshrl.u32 %v1197_v56, 16  ;;  %v1556_v41 = vpack.i.b16 %v1197_v56, %v1172_v55 }
  0xde   : > { %v1568_v4 = vpack.i.b16 %v1247_v28, %v1222_v14  ;;  %v1569_v42 = vshrl.u32 %v1222_v14, 16  ;;  %v1570_v39 = vshrl.u32 %v1247_v28, 16  ;;  %v440_v46 = vcombine.low %v416_v51, %v432_v20 }
  0xdf   : > { %v2874_v22 = vsel %vm290_vm0, %v3847_v19, 0  ;;  %v3852_v52 = vcombine.low %v1625_v59, %v1637_v27  ;;  %v1559_v61 = vpack.i.b16 %v1558_v60, %v1557_v5  ;;  %v1297_v13 = vcombine.high %v4561_v0, %v4118_v12 }
  0xe0   : > { %v1571_v2 = vpack.i.b16 %v1570_v39, %v1569_v42  ;;  %v1347_v38 = vcombine.high %v4575_v16, %v4118_v12  ;;  %v3854_v30 = vcombine.low %v1556_v41, %v1568_v4  ;;  %v441_v11 = vcombine.high %v416_v51, %v432_v20 }
  0xe1   : > { %3937 = vmatpush3.bf16.xpose.msra.mxu0 %v2874_v22  ;;  %v2941_v53 = vsel %vm290_vm0, %v3852_v52, 0  ;;  %v1272_v1 = vcombine.high %v4545_v50, %v4118_v12  ;;  %v1322_v44 = vcombine.high %v4564_v48, %v4118_v12  ;;  %v2844_v9 = vpack.c.bf16 %v440_v46, %v440_v46 }
  0xe2   : > { %3954 = vmatprep.subr.bf16.mxu0 %v4117_v6  ;;  %v3859_v10 = vcombine.low %v1559_v61, %v1571_v2  ;;  %v1582_v33 = vshrl.u32 %v1297_v13, 16  ;;  %v1594_v24 = vshrl.u32 %v1347_v38, 16  ;;  %v2999_v0 = vsel %vm290_vm0, %v3854_v30, 0 }
  0xe3   : > { %3949 = vmatpush3.bf16.xpose.msra.mxu1 %v2941_v53  ;;  %v2845_v25 = vpack.c.bf16 %v441_v11, %v441_v11  ;;  %v1580_v16 = vpack.i.b16 %v1297_v13, %v1272_v1  ;;  %v1592_v45 = vpack.i.b16 %v1347_v38, %v1322_v44  ;;  %v1581_v21 = vshrl.u32 %v1272_v1, 16 }
  0xe4   : > { %3966 = vmatprep.subr.bf16.mxu1 %v4117_v6  ;;  %v1593_v17 = vshrl.u32 %v1322_v44, 16  ;;  %v1397_v50 = vcombine.high %v4598_v34, %v4118_v12  ;;  %v3066_v48 = vsel %vm290_vm0, %v3859_v10, 0  ;;  %v1447_v8 = vcombine.high %v4615_v57, %v4118_v12  ;;  %v1663_v44 = vpop.permute.xlu1 %1662 }
  0xe5   : > { %v1583_v18 = vpack.i.b16 %v1582_v33, %v1581_v21  ;;  %v1372_v63 = vcombine.high %v4595_v49, %v4118_v12  ;;  %v3855_v40 = vcombine.low %v1580_v16, %v1592_v45  ;;  %v1422_v34 = vcombine.high %v4604_v23, %v4118_v12 }
  0xe6   : > { %v1595_v47 = vpack.i.b16 %v1594_v24, %v1593_v17  ;;  %v1606_v43 = vshrl.u32 %v1397_v50, 16  ;;  %v1618_v51 = vshrl.u32 %v1447_v8, 16  ;;  %v1497_v23 = vcombine.high %v4649_v15, %v4118_v12 }
  0xe7   : > { %v1605_v57 = vshrl.u32 %v1372_v63, 16  ;;  %v3002_v59 = vsel %vm290_vm0, %v3855_v40, 0  ;;  %v1604_v55 = vpack.i.b16 %v1397_v50, %v1372_v63  ;;  %v1616_v49 = vpack.i.b16 %v1447_v8, %v1422_v34 }
  0xe8   : > { %3939 = vmatmul.mubr.msk.bf16.vlgmr.msra.gmra.mrb[0].mxu0 %vm290_vm0, %v2844_v9  ;;  %v3860_v54 = vcombine.low %v1583_v18, %v1595_v47  ;;  %v1617_v56 = vshrl.u32 %v1422_v34, 16  ;;  %v1547_v20 = vcombine.high %v4657_v62, %v4118_v12  ;;  %v1472_v28 = vcombine.high %v4641_v26, %v4118_v12  ;;  %v1661_v9 = vpop.permute.xlu0 %1660  ;;  %v1677_v45 = vpop.permute.xlu1 %1676 }
  0xe9   : > { %3955 = vmatpush3.bf16.xpose.msra.mxu0 %v2999_v0  ;;  %3962 = vmatprep.mubr.msk.bf16.mxu0 %vm4119_vm1, %v4117_v6  ;;  %v1607_v14 = vpack.i.b16 %v1606_v43, %v1605_v57  ;;  %v3856_v60 = vcombine.low %v1604_v55, %v1616_v49  ;;  %v1522_v22 = vcombine.high %v4654_v7, %v4118_v12  ;;  %v1630_v41 = vshrl.u32 %v1497_v23, 16 }
  0xea   : > { %3951 = vmatmul.mubr.msk.bf16.vlgmr.msra.gmra.mrb[0].mxu1 %vm290_vm0, %v2845_v25  ;;  %3956 = vmatprep.subr.bf16.mxu0 %v4117_v6  ;;  %v3069_v19 = vsel %vm290_vm0, %v3860_v54, 0  ;;  %v1619_v27 = vpack.i.b16 %v1618_v51, %v1617_v56  ;;  %v1642_v4 = vshrl.u32 %v1547_v20, 16  ;;  %v1629_v5 = vshrl.u32 %v1472_v28, 16 }
  0xeb   : > { %3967 = vmatpush3.bf16.xpose.msra.mxu1 %v3066_v48  ;;  %3974 = vmatprep.mubr.msk.bf16.mxu1 %vm4119_vm1, %v4117_v6  ;;  %v3005_v42 = vsel %vm290_vm0, %v3856_v60, 0  ;;  %v1628_v15 = vpack.i.b16 %v1497_v23, %v1472_v28  ;;  %v1640_v39 = vpack.i.b16 %v1547_v20, %v1522_v22  ;;  %v1641_v53 = vshrl.u32 %v1522_v22, 16 }
  0xec   : > { %3968 = vmatprep.subr.bf16.mxu1 %v4117_v6  ;;  %v3861_v52 = vcombine.low %v1607_v14, %v1619_v27  ;;  %v409_v62 = vcombine.high %v4622_v37, %v4625_v3  ;;  %v425_v26 = vcombine.high %v4631_v31, %v4634_v58  ;;  %v1631_v7 = vpack.i.b16 %v1630_v41, %v1629_v5  ;;  %v1679_v21 = vpop.permute.xlu0 %1678  ;;  %v1693_v63 = vpop.permute.xlu1 %1692 }
  0xed   : > { %v1643_v61 = vpack.i.b16 %v1642_v4, %v1641_v53  ;;  %v3857_v2 = vcombine.low %v1628_v15, %v1640_v39  ;;  %v1711_v10 = vshrl.u32 %v4297_v36, 16  ;;  %v1712_v33 = vshrl.u32 %v1661_v9, 16 }
  0xee   : > { %v3072_v46 = vsel %vm290_vm0, %v3861_v52, 0  ;;  %v423_v38 = vrot.slane %v409_v62, %v4289_v32  ;;  %v439_v30 = vrot.slane %v425_v26, %v4289_v32  ;;  %v1723_v24 = vshrl.u32 %v4294_v35, 16 }
  0xef   : > { %v3862_v13 = vcombine.low %v1631_v7, %v1643_v61  ;;  %v3008_v37 = vsel %vm290_vm0, %v3857_v2, 0  ;;  %v1722_v0 = vpack.i.b16 %v1663_v44, %v4294_v35  ;;  %v1724_v25 = vshrl.u32 %v1663_v44, 16 }
  0xf0   : > { %v442_v31 = vcombine.low %v423_v38, %v439_v30  ;;  %v443_v58 = vcombine.high %v423_v38, %v439_v30  ;;  %v1710_v16 = vpack.i.b16 %v1661_v9, %v4297_v36  ;;  %v1713_v17 = vpack.i.b16 %v1712_v33, %v1711_v10  ;;  %v1695_v40 = vpop.permute.xlu0 %1694 }
  0xf1   : > { %3957 = vmatpush3.bf16.xpose.msra.mxu0 %v3002_v59  ;;  %v3075_v3 = vsel %vm290_vm0, %v3862_v13, 0  ;;  %v1717_v50 = vshrl.u32 %v1677_v45, 16  ;;  %v1729_v48 = vshrl.u32 %v1679_v21, 16  ;;  %v1725_v18 = vpack.i.b16 %v1724_v25, %v1723_v24 }
  0xf2   : > { %3958 = vmatprep.subr.bf16.mxu0 %v4117_v6  ;;  %v2846_v11 = vpack.c.bf16 %v442_v31, %v442_v31  ;;  %v2847_v1 = vpack.c.bf16 %v443_v58, %v443_v58  ;;  %v1879_v47 = vrot.slane %v1722_v0, %v4278_v29  ;;  %v1811_v8 = vrot.slane %v1710_v16, %v4278_v29 }
  0xf3   : > { %3969 = vmatpush3.bf16.xpose.msra.mxu1 %v3069_v19  ;;  %v1716_v34 = vpack.i.b16 %v1693_v63, %v1677_v45  ;;  %v1718_v43 = vshrl.u32 %v1693_v63, 16  ;;  %v1728_v54 = vpack.i.b16 %v1695_v40, %v1679_v21  ;;  %v1730_v51 = vshrl.u32 %v1695_v40, 16 }
  0xf4   : > { %3970 = vmatprep.subr.bf16.mxu1 %v4117_v6  ;;  %v1845_v35 = vrot.slane %v1713_v17, %v4278_v29  ;;  %v1913_v49 = vrot.slane %v1725_v18, %v4278_v29 }
  0xf5   : > { %v1719_v57 = vpack.i.b16 %v1718_v43, %v1717_v50  ;;  %v1819_v36 = vrot.slane %v1716_v34, %v4278_v29  ;;  %v1731_v59 = vpack.i.b16 %v1730_v51, %v1729_v48  ;;  %v1887_v55 = vrot.slane %v1728_v54, %v4278_v29 }
  0xf6   : > { %v4122_v54 = vmov -inf  }
  0xf7   : > { %v1820_v56 = vcombine.low %v1811_v8, %v1819_v36  ;;  %v1821_v14 = vcombine.high %v1811_v8, %v1819_v36  ;;  %v1853_v19 = vrot.slane %v1719_v57, %v4278_v29  ;;  %v1888_v27 = vcombine.low %v1879_v47, %v1887_v55  ;;  %282 = vst.msk [vmem:[#allocation2] sm:$0xff] %vm281_vm2, %v4122_v54 }
  0xf8   : > { %v1889_v23 = vcombine.high %v1879_v47, %v1887_v55  ;;  %v1921_v20 = vrot.slane %v1731_v59, %v4278_v29  ;;  %283 = vst.msk [vmem:[#allocation2 + $0x8] sm:$0xff] %vm281_vm2, %v4122_v54  ;;  %284 = vst.msk [vmem:[#allocation2 + $0x10] sm:$0xff] %vm281_vm2, %v4122_v54 }
  0xf9   : > { %3959 = vmatpush3.bf16.xpose.msra.mxu0 %v3005_v42  ;;  %v1828_v28 = vrot.slane %v1820_v56, %v4289_v32  ;;  %v1835_v60 = vrot.slane %v1821_v14, %v4289_v32  ;;  %v1854_v22 = vcombine.low %v1845_v35, %v1853_v19  ;;  %v1855_v52 = vcombine.high %v1845_v35, %v1853_v19 }
  0xfa   : > { %3960 = vmatprep.subr.bf16.mxu0 %v4117_v6  ;;  %v1896_v41 = vrot.slane %v1888_v27, %v4289_v32  ;;  %v1903_v4 = vrot.slane %v1889_v23, %v4289_v32  ;;  %v1922_v5 = vcombine.low %v1913_v49, %v1921_v20  ;;  %v1923_v42 = vcombine.high %v1913_v49, %v1921_v20 }
  0xfb   : > { %3971 = vmatpush3.bf16.xpose.msra.mxu1 %v3072_v46  ;;  %v1862_v15 = vrot.slane %v1854_v22, %v4289_v32  ;;  %v1869_v39 = vrot.slane %v1855_v52, %v4289_v32  ;;  %v2348_v53 = vcombine.low %v1828_v28, %v1835_v60  ;;  %v3828_v62 = vcombine.high %v1828_v28, %v1835_v60 }
  0xfc   : > { %3972 = vmatprep.subr.bf16.mxu1 %v4117_v6  ;;  %v1930_v26 = vrot.slane %v1922_v5, %v4289_v32  ;;  %v1937_v46 = vrot.slane %v1923_v42, %v4289_v32  ;;  %v2398_v7 = vcombine.low %v1896_v41, %v1903_v4  ;;  %v3830_v61 = vcombine.high %v1896_v41, %v1903_v4 }
  0xfd   : > { %v2355_v2 = vrot.slane %v2348_v53, %v4278_v29  ;;  %v2363_v13 = vrot.slane %v3828_v62, %v4278_v29  ;;  %v2373_v38 = vcombine.low %v1862_v15, %v1869_v39  ;;  %v3829_v30 = vcombine.high %v1862_v15, %v1869_v39  ;;  %285 = vst.msk [vmem:[#allocation2 + $0x18] sm:$0xff] %vm281_vm2, %v4122_v54  ;;  %v4088_v62 = vld [vmem:[%s4286_s29 + $0x8] sm:$0xf] }
  0xfe   : > { %v2423_v31 = vcombine.low %v1930_v26, %v1937_v46  ;;  %v3831_v58 = vcombine.high %v1930_v26, %v1937_v46  ;;  %v4813_v26 = vld [vmem:[%s4286_s29 + $0xc] sm:$0xf] }
  0xff   : > { %v2388_v44 = vrot.slane %v3829_v30, %v4278_v29 }
 0x100   : > { %v2430_v10 = vrot.slane %v2423_v31, %v4278_v29  ;;  %v2438_v33 = vrot.slane %v3831_v58, %v4278_v29  ;;  %v4826_v58 = vld [vmem:[%s4286_s29 + $0x10] sm:$0xf] }
 0x101   : > { %3961 = vmatpush3.bf16.xpose.msra.mxu0 %v3008_v37  ;;  %v2405_v37 = vrot.slane %v2398_v7, %v4278_v29 }
 0x102   : > { %3978 = vmatprep.subr.bf16.mxu0 %v4117_v6  ;;  %v2439_v0 = vcombine.low %v2430_v10, %v2438_v33  ;;  %v4863_v33 = vpop.permute.xlu0 %1666 }
 0x103   : > { %3973 = vmatpush3.bf16.xpose.msra.mxu1 %v3075_v3  ;;  %v2413_v3 = vrot.slane %v3830_v61, %v4278_v29 }
 0x104   : > { %3990 = vmatprep.subr.bf16.mxu1 %v4117_v6  ;;  %v2446_v21 = vrot.slane %v2439_v0, %v4289_v32  ;;  %v1735_v0 = vshrl.u32 %v4088_v62, 16 }
 0x105   : > { %v2414_v9 = vcombine.low %v2405_v37, %v2413_v3 }
 0x106   : > { %v2764_v8 = vshrl.u32 %v2446_v21, 16  ;;  %v2447_v36 = vcombine.high %v2446_v21, %v4118_v12 }
 0x107   : > { %v2421_v16 = vrot.slane %v2414_v9, %v4289_v32  ;;  %v1665_v9 = vpop.permute.xlu1 %1664 }
 0x108   : > { %3963 = vmatmul.mubr.msk.bf16.vlgmr.msra.gmra.mrb[4].mxu0 %vm290_vm0, %v2846_v11  ;;  %v2364_v11 = vcombine.low %v2355_v2, %v2363_v13  ;;  %v2770_v60 = vshrl.u32 %v2447_v36, 16 }
 0x109   : > { %3986 = vmatprep.mubr.msk.bf16.mxu0 %vm4119_vm1, %v4117_v6  ;;  %v2763_v50 = vshrl.u32 %v2421_v16, 16  ;;  %v2762_v47 = vpack.i.b16 %v2446_v21, %v2421_v16  ;;  %v2422_v57 = vcombine.high %v2421_v16, %v4118_v12 }
 0x10a   : > { %3975 = vmatmul.mubr.msk.bf16.vlgmr.msra.gmra.mrb[4].mxu1 %vm290_vm0, %v2847_v1  ;;  %v2380_v1 = vrot.slane %v2373_v38, %v4278_v29  ;;  %v2371_v25 = vrot.slane %v2364_v11, %v4289_v32  ;;  %v4835_v11 = vld [vmem:[%s4286_s29 + $0x14] sm:$0xf] }
 0x10b   : > { %3998 = vmatprep.mubr.msk.bf16.mxu1 %vm4119_vm1, %v4117_v6  ;;  %v2765_v34 = vpack.i.b16 %v2764_v8, %v2763_v50  ;;  %v2768_v14 = vpack.i.b16 %v2447_v36, %v2422_v57  ;;  %v2769_v28 = vshrl.u32 %v2422_v57, 16  ;;  %v1681_v10 = vpop.permute.xlu1 %1680  ;;  %v1734_v50 = vpack.i.b16 %v1665_v9, %v4088_v62 }
 0x10c   : > { %v2389_v24 = vcombine.low %v2380_v1, %v2388_v44  ;;  %v2751_v17 = vshrl.u32 %v2371_v25, 16  ;;  %v2372_v51 = vcombine.high %v2371_v25, %v4118_v12  ;;  %v4840_v1 = vld [vmem:[%s4286_s29 + $0x18] sm:$0xf]  ;;  %v4853_v44 = vld [vmem:[%s4286_s29 + $0x1c] sm:$0xf] }
 0x10d   : > { %v4806_v15 = vpack.i.b16 %v2770_v60, %v2769_v28  ;;  %v1947_v54 = vrot.slane %v1734_v50, %v4278_v29 }
 0x10e   : > { %v2396_v45 = vrot.slane %v2389_v24, %v4289_v32  ;;  %v2757_v19 = vshrl.u32 %v2372_v51, 16  ;;  %v4865_v24 = vld [vmem:[#allocation2] sm:$0xff] }
 0x110   : > { %v2750_v48 = vpack.i.b16 %v2396_v45, %v2371_v25  ;;  %v2752_v18 = vshrl.u32 %v2396_v45, 16  ;;  %v2397_v35 = vcombine.high %v2396_v45, %v4118_v12  ;;  %v1736_v25 = vshrl.u32 %v1665_v9, 16  ;;  %v4867_v45 = vld [vmem:[#allocation2 + $0x8] sm:$0xff] }
 0x112   : > { %v2753_v63 = vpack.i.b16 %v2752_v18, %v2751_v17  ;;  %v3864_v40 = vcombine.low %v2750_v48, %v2762_v47  ;;  %v2756_v56 = vpack.i.b16 %v2397_v35, %v2372_v51  ;;  %v2758_v20 = vshrl.u32 %v2397_v35, 16 }
 0x113   : > { %v1737_v47 = vpack.i.b16 %v1736_v25, %v1735_v0 }
 0x114   : > { %3979 = vmatpush3.bf16.msra.mxu0 %v3864_v40  ;;  %v3869_v43 = vcombine.low %v2753_v63, %v2765_v34  ;;  %v4802_v4 = vcombine.low %v2756_v56, %v2768_v14  ;;  %v4804_v42 = vpack.i.b16 %v2758_v20, %v2757_v19  ;;  %v1741_v63 = vshrl.u32 %v1681_v10, 16 }
 0x115   : > { %3980 = vmatprep.subr.bf16.mxu0 %v4117_v6  ;;  %v1981_v57 = vrot.slane %v1737_v47, %v4278_v29 }
 0x116   : > { %3991 = vmatpush3.bf16.msra.mxu1 %v3869_v43  ;;  %v3879_v53 = vcombine.low %v4804_v42, %v4806_v15 }
 0x117   : > { %3992 = vmatprep.subr.bf16.mxu1 %v4117_v6 }
 0x1bb   : > { %v4794_v59 = vpop.f32.mrb[0].mxu0 }
 0x1bc   : > { %v3940_v55 = vpop.f32.mrb[1].mxu0  ;;  %v3122_v49 = vsel %vm3121_vm3, %v4794_v59, -inf }
 0x1bd   : > { %v4798_v27 = vpop.f32.mrb[0].mxu1  ;;  %3123 = vmax.xlane.f32.xlu1 %v3122_v49  ;;  %v2913_v23 = vpop.f32.mrb[2].mxu0 }
 0x1be   : > { %v3941_v22 = vpop.f32.mrb[3].mxu0  ;;  %v3952_v52 = vpop.f32.mrb[1].mxu1  ;;  %v3125_v41 = vsel %vm3121_vm3, %v4798_v27, -inf }
 0x1bf   : > { %3126 = vmax.xlane.f32.xlu0 %v3125_v41  ;;  %v2980_v5 = vpop.f32.mrb[2].mxu1 }
 0x1c0   : > { %v3953_v39 = vpop.f32.mrb[3].mxu1 }
 0x1ce   : > { %1696 = vrot.lane.b32.xlu1 %v4088_v62, %s4116_s22 }
 0x1d5   : > { %1682 = vrot.lane.b32.xlu0 %v4813_v26, %s4114_s20 }
 0x1db   : > { %v4817_v46 = vpop.f32.mrb[4].mxu0 }
 0x1dc   : > { %v3964_v7 = vpop.f32.mrb[5].mxu0  ;;  %v3128_v31 = vsel %vm3121_vm3, %v4817_v46, -inf }
 0x1dd   : > { %v3047_v61 = vpop.f32.mrb[6].mxu0  ;;  %v4819_v2 = vpop.f32.mrb[4].mxu1 }
 0x1de   : > { %v3965_v13 = vpop.f32.mrb[7].mxu0  ;;  %v3976_v38 = vpop.f32.mrb[5].mxu1  ;;  %v3131_v3 = vsel %vm3121_vm3, %v4819_v2, -inf }
 0x1df   : > { %v3114_v30 = vpop.f32.mrb[6].mxu1 }
 0x1e0   : > { %v3977_v37 = vpop.f32.mrb[7].mxu1 }
 0x1f2   : > { %3132 = vmax.xlane.f32.xlu1 %v3131_v3 }
 0x1f4   : > { %3129 = vmax.xlane.f32.xlu0 %v3128_v31 }
 0x203   : > { %1668 = vrot.lane.b32.xlu1 %v4826_v58, %s4115_s21 }
 0x207   : > { %1684 = vrot.lane.b32.xlu1 %v4826_v58, %s4114_s20 }
 0x20a   : > { %1698 = vrot.lane.b32.xlu0 %v4813_v26, %s4116_s22 }
 0x20b   : > { %1700 = vrot.lane.b32.xlu1 %v4826_v58, %s4116_s22 }
 0x20e   : > { %1670 = vrot.lane.b32.xlu0 %v4835_v11, %s4115_s21 }
 0x20f   : > { %1672 = vrot.lane.b32.xlu1 %v4840_v1, %s4115_s21 }
 0x212   : > { %1686 = vrot.lane.b32.xlu0 %v4835_v11, %s4114_s20 }
 0x213   : > { %1688 = vrot.lane.b32.xlu1 %v4840_v1, %s4114_s20 }
 0x216   : > { %1702 = vrot.lane.b32.xlu0 %v4835_v11, %s4116_s22 }
 0x217   : > { %1704 = vrot.lane.b32.xlu1 %v4840_v1, %s4116_s22 }
 0x21a   : > { %1674 = vrot.lane.b32.xlu0 %v4853_v44, %s4115_s21 }
 0x21e   : > { %1690 = vrot.lane.b32.xlu0 %v4853_v44, %s4114_s20 }
 0x222   : > { %1706 = vrot.lane.b32.xlu0 %v4853_v44, %s4116_s22 }
 0x24a   : > { %v3124_v16 = vpop.xlane.xlu1 %3123 }
 0x24b   : > { %v4870_v21 = vmax.f32 %v4865_v24, %v3124_v16 }
 0x24c   : > { %v3127_v17 = vpop.xlane.xlu0 %3126 }
 0x24d   : > { %v3138_v48 = vsub.f32 %v4865_v24, %v4870_v21  ;;  %3487 = vst.msk [vmem:[#allocation2] sm:$0xff] %vm281_vm2, %v4870_v21  ;;  %v4877_v18 = vmax.f32 %v4867_v45, %v3127_v17  ;;  %3152 = vperm.xlu1 %4062, %v4870_v21  }
 0x24e   : > { %v1697_v8 = vpop.permute.xlu1 %1696 }
 0x24f   : > { %3488 = vst.msk [vmem:[#allocation2 + $0x8] sm:$0xff] %vm281_vm2, %v4877_v18  ;;  %v1740_v34 = vpack.i.b16 %v1697_v8, %v1681_v10  ;;  %v1742_v43 = vshrl.u32 %v1697_v8, 16  ;;  %3157 = vperm.xlu0 %4063, %v4877_v18   ;;  %v4923_v8 = vld [vmem:[#allocation2 + $0x18] sm:$0xff] }
 0x250   : > { %v1683_v47 = vpop.permute.xlu0 %1682 }
 0x251   : > { %v1743_v51 = vpack.i.b16 %v1742_v43, %v1741_v63  ;;  %v1955_v35 = vrot.slane %v1740_v34, %v4278_v29  ;;  %v4925_v34 = vld [vmem:[#allocation2 + $0x10] sm:$0xff] }
 0x253   : > { %v1956_v36 = vcombine.low %v1947_v54, %v1955_v35  ;;  %v1957_v55 = vcombine.high %v1947_v54, %v1955_v35  ;;  %v1989_v49 = vrot.slane %v1743_v51, %v4278_v29  ;;  %v1747_v54 = vshrl.u32 %v4813_v26, 16 }
 0x254   : > { %v1748_v51 = vshrl.u32 %v4863_v33, 16 }
 0x255   : > { %v1964_v56 = vrot.slane %v1956_v36, %v4289_v32  ;;  %v1971_v14 = vrot.slane %v1957_v55, %v4289_v32  ;;  %v1990_v19 = vcombine.low %v1981_v57, %v1989_v49  ;;  %v1991_v23 = vcombine.high %v1981_v57, %v1989_v49 }
 0x256   : > { %v1759_v55 = vshrl.u32 %v4826_v58, 16 }
 0x257   : > { %v1998_v20 = vrot.slane %v1990_v19, %v4289_v32  ;;  %v2005_v28 = vrot.slane %v1991_v23, %v4289_v32  ;;  %v2448_v60 = vcombine.low %v1964_v56, %v1971_v14  ;;  %v3832_v22 = vcombine.high %v1964_v56, %v1971_v14 }
 0x258   : > { %v1746_v56 = vpack.i.b16 %v4863_v33, %v4813_v26  ;;  %v1749_v23 = vpack.i.b16 %v1748_v51, %v1747_v54 }
 0x259   : > { %v2455_v52 = vrot.slane %v2448_v60, %v4278_v29  ;;  %v2463_v41 = vrot.slane %v3832_v22, %v4278_v29  ;;  %v2473_v5 = vcombine.low %v1998_v20, %v2005_v28  ;;  %v3833_v39 = vcombine.high %v1998_v20, %v2005_v28 }
 0x25a   : > { %v1753_v28 = vshrl.u32 %v1683_v47, 16  ;;  %v2015_v26 = vrot.slane %v1746_v56, %v4278_v29 }
 0x25b   : > { %v2464_v62 = vcombine.low %v2455_v52, %v2463_v41  ;;  %v2480_v7 = vrot.slane %v2473_v5, %v4278_v29  ;;  %v2488_v61 = vrot.slane %v3833_v39, %v4278_v29 }
 0x25d   : > { %v2489_v13 = vcombine.low %v2480_v7, %v2488_v61  ;;  %v4898_v38 = vrot.slane %v2464_v62, %v4289_v32  ;;  %v2049_v62 = vrot.slane %v1749_v23, %v4278_v29  ;;  %v1771_v7 = vshrl.u32 %v4835_v11, 16 }
 0x25f   : > { %v4901_v30 = vrot.slane %v2489_v13, %v4289_v32  ;;  %v4905_v37 = vcombine.high %v4898_v38, %v4118_v12  ;;  %v2775_v31 = vshrl.u32 %v4898_v38, 16  ;;  %v1783_v13 = vshrl.u32 %v4840_v1, 16 }
 0x261   : > { %v2774_v3 = vpack.i.b16 %v4901_v30, %v4898_v38  ;;  %v2776_v9 = vshrl.u32 %v4901_v30, 16  ;;  %v4913_v10 = vcombine.high %v4901_v30, %v4118_v12  ;;  %v2781_v16 = vshrl.u32 %v4905_v37, 16 }
 0x263   : > { %v4915_v0 = vpack.i.b16 %v2776_v9, %v2775_v31  ;;  %v2780_v25 = vpack.i.b16 %v4913_v10, %v4905_v37  ;;  %v2782_v17 = vshrl.u32 %v4913_v10, 16  ;;  %v1795_v31 = vshrl.u32 %v4853_v44, 16 }
 0x265   : > { %v4921_v50 = vpack.i.b16 %v2782_v17, %v2781_v16 }
 0x27f   : > { %v3133_v63 = vpop.xlane.xlu1 %3132 }
 0x280   : > { %v4928_v43 = vmax.f32 %v4923_v8, %v3133_v63 }
 0x281   : > { %v3130_v35 = vpop.xlane.xlu0 %3129 }
 0x282   : > { %3490 = vst.msk [vmem:[#allocation2 + $0x18] sm:$0xff] %vm281_vm2, %v4928_v43  ;;  %v4937_v36 = vmax.f32 %v4925_v34, %v3130_v35 }
 0x283   : > { %v1669_v49 = vpop.permute.xlu1 %1668 }
 0x284   : > { %v3140_v14 = vsub.f32 %v4925_v34, %v4937_v36  ;;  %3489 = vst.msk [vmem:[#allocation2 + $0x10] sm:$0xff] %vm281_vm2, %v4937_v36  ;;  %3162 = vperm.xlu1 %4062, %v4937_v36   ;;  %v1760_v19 = vshrl.u32 %v1669_v49, 16  ;;  %v1758_v52 = vpack.i.b16 %v1669_v49, %v4826_v58 }
 0x285   : > { %v1699_v20 = vpop.permute.xlu0 %1698 }
 0x286   : > { %v1752_v60 = vpack.i.b16 %v1699_v20, %v1683_v47  ;;  %v1754_v22 = vshrl.u32 %v1699_v20, 16  ;;  %v1761_v41 = vpack.i.b16 %v1760_v19, %v1759_v55  ;;  %v2083_v47 = vrot.slane %v1758_v52, %v4278_v29 }
 0x287   : > { %v1685_v5 = vpop.permute.xlu1 %1684  ;;  %v3146_v42 = vmul.f32 1.442695, %v3140_v14 }
 0x288   : > { %v1755_v33 = vpack.i.b16 %v1754_v22, %v1753_v28  ;;  %v2023_v39 = vrot.slane %v1752_v60, %v4278_v29  ;;  %3167 = vperm.xlu1 %4062, %v4928_v43   ;;  %v2117_v63 = vrot.slane %v1761_v41, %v4278_v29  ;;  %v1765_v51 = vshrl.u32 %v1685_v5, 16 }
 0x289   : > { %v1671_v61 = vpop.permute.xlu0 %1670 }
 0x28a   : > { %v2024_v9 = vcombine.low %v2015_v26, %v2023_v39  ;;  %v2025_v58 = vcombine.high %v2015_v26, %v2023_v39  ;;  %v2057_v16 = vrot.slane %v1755_v33, %v4278_v29  ;;  %v1770_v17 = vpack.i.b16 %v1671_v61, %v4835_v11 }
 0x28b   : > { %v1772_v54 = vshrl.u32 %v1671_v61, 16  ;;  %v1701_v35 = vpop.permute.xlu1 %1700 }
 0x28c   : > { %v2032_v55 = vrot.slane %v2024_v9, %v4289_v32  ;;  %v2039_v49 = vrot.slane %v2025_v58, %v4289_v32  ;;  %v2058_v56 = vcombine.low %v2049_v62, %v2057_v16  ;;  %v2059_v19 = vcombine.high %v2049_v62, %v2057_v16 }
 0x28d   : > { %v1773_v23 = vpack.i.b16 %v1772_v54, %v1771_v7  ;;  %v2151_v20 = vrot.slane %v1770_v17, %v4278_v29  ;;  %v1687_v28 = vpop.permute.xlu0 %1686  ;;  %v1764_v60 = vpack.i.b16 %v1701_v35, %v1685_v5  ;;  %v1766_v22 = vshrl.u32 %v1701_v35, 16 }
 0x28e   : > { %v2066_v11 = vrot.slane %v2058_v56, %v4289_v32  ;;  %v2073_v52 = vrot.slane %v2059_v19, %v4289_v32  ;;  %v2498_v41 = vcombine.low %v2032_v55, %v2039_v49  ;;  %v3834_v26 = vcombine.high %v2032_v55, %v2039_v49 }
 0x28f   : > { %v4965_v33 = vrot.slane %v1773_v23, %v4278_v29  ;;  %v1777_v39 = vshrl.u32 %v1687_v28, 16  ;;  %v1767_v61 = vpack.i.b16 %v1766_v22, %v1765_v51  ;;  %v2091_v9 = vrot.slane %v1764_v60, %v4278_v29  ;;  %v1673_v16 = vpop.permute.xlu1 %1672 }
 0x290   : > { %v2505_v62 = vrot.slane %v2498_v41, %v4278_v29  ;;  %v2513_v7 = vrot.slane %v3834_v26, %v4278_v29  ;;  %v2523_v58 = vcombine.low %v2066_v11, %v2073_v52  ;;  %v3835_v5 = vcombine.high %v2066_v11, %v2073_v52 }
 0x291   : > { %v2092_v17 = vcombine.low %v2083_v47, %v2091_v9  ;;  %v2093_v54 = vcombine.high %v2083_v47, %v2091_v9  ;;  %v2125_v35 = vrot.slane %v1767_v61, %v4278_v29  ;;  %v1703_v56 = vpop.permute.xlu0 %1702  ;;  %v1782_v55 = vpack.i.b16 %v1673_v16, %v4840_v1 }
 0x292   : > { %v2514_v49 = vcombine.low %v2505_v62, %v2513_v7  ;;  %v2530_v19 = vrot.slane %v2523_v58, %v4278_v29  ;;  %v2538_v51 = vrot.slane %v3835_v5, %v4278_v29  ;;  %v1776_v23 = vpack.i.b16 %v1703_v56, %v1687_v28 }
 0x293   : > { %v2100_v60 = vrot.slane %v2092_v17, %v4289_v32  ;;  %v2107_v22 = vrot.slane %v2093_v54, %v4289_v32  ;;  %v2126_v41 = vcombine.low %v2117_v63, %v2125_v35  ;;  %v2127_v11 = vcombine.high %v2117_v63, %v2125_v35 }
 0x294   : > { %v2539_v52 = vcombine.low %v2530_v19, %v2538_v51  ;;  %v4977_v47 = vrot.slane %v2514_v49, %v4289_v32  ;;  %v1778_v26 = vshrl.u32 %v1703_v56, 16  ;;  %v2159_v61 = vrot.slane %v1776_v23, %v4278_v29  ;;  %v1689_v51 = vpop.permute.xlu1 %1688 }
 0x295   : > { %v2134_v9 = vrot.slane %v2126_v41, %v4289_v32  ;;  %v2141_v62 = vrot.slane %v2127_v11, %v4289_v32  ;;  %v2548_v7 = vcombine.low %v2100_v60, %v2107_v22  ;;  %v3836_v58 = vcombine.high %v2100_v60, %v2107_v22  ;;  %v1675_v28 = vpop.permute.xlu0 %1674 }
 0x296   : > { %v4983_v5 = vrot.slane %v2539_v52, %v4289_v32  ;;  %v2787_v17 = vshrl.u32 %v4977_v47, 16  ;;  %v1779_v63 = vpack.i.b16 %v1778_v26, %v1777_v39  ;;  %v2160_v54 = vcombine.low %v2151_v20, %v2159_v61 }
 0x297   : > { %v2555_v35 = vrot.slane %v2548_v7, %v4278_v29  ;;  %v2563_v56 = vrot.slane %v3836_v58, %v4278_v29  ;;  %v2573_v49 = vcombine.low %v2134_v9, %v2141_v62  ;;  %v3837_v19 = vcombine.high %v2134_v9, %v2141_v62 }
 0x298   : > { %v2786_v23 = vpack.i.b16 %v4983_v5, %v4977_v47  ;;  %v2788_v60 = vshrl.u32 %v4983_v5, 16  ;;  %v2161_v22 = vcombine.high %v2151_v20, %v2159_v61  ;;  %v2168_v41 = vrot.slane %v2160_v54, %v4289_v32 }
 0x299   : > { %v2564_v11 = vcombine.low %v2555_v35, %v2563_v56  ;;  %v2580_v52 = vrot.slane %v2573_v49, %v4278_v29  ;;  %v2588_v39 = vrot.slane %v3837_v19, %v4278_v29  ;;  %v2193_v26 = vrot.slane %v1779_v63, %v4278_v29  ;;  %v1691_v7 = vpop.permute.xlu0 %1690  ;;  %v1705_v49 = vpop.permute.xlu1 %1704 }
 0x29a   : > { %v3865_v9 = vcombine.low %v2774_v3, %v2786_v23  ;;  %v2789_v62 = vpack.i.b16 %v2788_v60, %v2787_v17  ;;  %v2175_v58 = vrot.slane %v2161_v22, %v4289_v32  ;;  %v1784_v40 = vshrl.u32 %v1673_v16, 16 }
 0x29b   : > { %v2589_v57 = vcombine.low %v2580_v52, %v2588_v39  ;;  %v2194_v20 = vcombine.low %v4965_v33, %v2193_v26  ;;  %v2195_v61 = vcombine.high %v4965_v33, %v2193_v26  ;;  %v2219_v54 = vrot.slane %v1782_v55, %v4278_v29 }
 0x29c   : > { %3981 = vmatpush3.bf16.msra.mxu0 %v3865_v9  ;;  %v3870_v35 = vcombine.low %v4915_v0, %v2789_v62  ;;  %v2598_v63 = vcombine.low %v2168_v41, %v2175_v58  ;;  %v3838_v56 = vcombine.high %v2168_v41, %v2175_v58  ;;  %v1785_v38 = vpack.i.b16 %v1784_v40, %v1783_v13 }
 0x29d   : > { %v2202_v30 = vrot.slane %v2194_v20, %v4289_v32  ;;  %v2209_v3 = vrot.slane %v2195_v61, %v4289_v32  ;;  %v1794_v16 = vpack.i.b16 %v1675_v28, %v4853_v44  ;;  %v1796_v17 = vshrl.u32 %v1675_v28, 16  ;;  %3982 = vmatprep.subr.bf16.mxu0 %v4117_v6  ;;  %v1707_v60 = vpop.permute.xlu0 %1706 }
 0x29e   : > { %3993 = vmatpush3.bf16.msra.mxu1 %v3870_v35  ;;  %v2605_v33 = vrot.slane %v2598_v63, %v4278_v29  ;;  %v2613_v0 = vrot.slane %v3838_v56, %v4278_v29  ;;  %v2253_v55 = vrot.slane %v1785_v38, %v4278_v29  ;;  %v1789_v19 = vshrl.u32 %v1689_v51, 16 }
 0x29f   : > { %v2623_v1 = vcombine.low %v2202_v30, %v2209_v3  ;;  %v3839_v40 = vcombine.high %v2202_v30, %v2209_v3  ;;  %v1797_v13 = vpack.i.b16 %v1796_v17, %v1795_v31  ;;  %v2287_v23 = vrot.slane %v1794_v16, %v4278_v29  ;;  %3994 = vmatprep.subr.bf16.mxu1 %v4117_v6 }
 0x2a0   : > { %v2614_v28 = vcombine.low %v2605_v33, %v2613_v0  ;;  %v1801_v22 = vshrl.u32 %v1691_v7, 16  ;;  %v1788_v41 = vpack.i.b16 %v1705_v49, %v1689_v51  ;;  %v1790_v52 = vshrl.u32 %v1705_v49, 16 }
 0x2a1   : > { %v2630_v39 = vrot.slane %v2623_v1, %v4278_v29  ;;  %v2638_v26 = vrot.slane %v3839_v40, %v4278_v29  ;;  %v2321_v9 = vrot.slane %v1797_v13, %v4278_v29  ;;  %v1800_v62 = vpack.i.b16 %v1707_v60, %v1691_v7 }
 0x2a2   : > { %v1791_v58 = vpack.i.b16 %v1790_v52, %v1789_v19  ;;  %v2227_v44 = vrot.slane %v1788_v41, %v4278_v29  ;;  %v1802_v31 = vshrl.u32 %v1707_v60, 16  ;;  %v5021_v20 = vrot.slane %v2564_v11, %v4289_v32 }
 0x2a3   : > { %v2639_v61 = vcombine.low %v2630_v39, %v2638_v26  ;;  %v2295_v35 = vrot.slane %v1800_v62, %v4278_v29  ;;  %v5025_v51 = vrot.slane %v2589_v57, %v4289_v32  ;;  %v5028_v63 = vrot.slane %v2614_v28, %v4289_v32 }
 0x2a4   : > { %v2228_v56 = vcombine.low %v2219_v54, %v2227_v44  ;;  %v2229_v38 = vcombine.high %v2219_v54, %v2227_v44  ;;  %v2261_v7 = vrot.slane %v1791_v58, %v4278_v29  ;;  %v1803_v30 = vpack.i.b16 %v1802_v31, %v1801_v22 }
 0x2a5   : > { %v2296_v3 = vcombine.low %v2287_v23, %v2295_v35  ;;  %v2297_v16 = vcombine.high %v2287_v23, %v2295_v35  ;;  %v5032_v17 = vrot.slane %v2639_v61, %v4289_v32  ;;  %v2798_v11 = vpack.i.b16 %v5025_v51, %v5021_v20 }
 0x2a6   : > { %v2236_v49 = vrot.slane %v2228_v56, %v4289_v32  ;;  %v2243_v57 = vrot.slane %v2229_v38, %v4289_v32  ;;  %v2262_v33 = vcombine.low %v2253_v55, %v2261_v7  ;;  %v2263_v0 = vcombine.high %v2253_v55, %v2261_v7 }
 0x2a7   : > { %v2304_v19 = vrot.slane %v2296_v3, %v4289_v32  ;;  %v2311_v54 = vrot.slane %v2297_v16, %v4289_v32  ;;  %v2329_v1 = vrot.slane %v1803_v30, %v4278_v29  ;;  %v2810_v40 = vpack.i.b16 %v5032_v17, %v5028_v63 }
 0x2a8   : > { %v2270_v13 = vrot.slane %v2262_v33, %v4289_v32  ;;  %v2277_v23 = vrot.slane %v2263_v0, %v4289_v32  ;;  %v2648_v60 = vcombine.low %v2236_v49, %v2243_v57  ;;  %v3840_v28 = vcombine.high %v2236_v49, %v2243_v57 }
 0x2a9   : > { %v2330_v22 = vcombine.low %v2321_v9, %v2329_v1  ;;  %v2331_v41 = vcombine.high %v2321_v9, %v2329_v1  ;;  %v2698_v52 = vcombine.low %v2304_v19, %v2311_v54  ;;  %v3842_v39 = vcombine.high %v2304_v19, %v2311_v54 }
 0x2aa   : > { %v2655_v55 = vrot.slane %v2648_v60, %v4278_v29  ;;  %v2663_v26 = vrot.slane %v3840_v28, %v4278_v29  ;;  %v2673_v62 = vcombine.low %v2270_v13, %v2277_v23  ;;  %v3841_v58 = vcombine.high %v2270_v13, %v2277_v23 }
 0x2ab   : > { %v2338_v44 = vrot.slane %v2330_v22, %v4289_v32  ;;  %v2345_v31 = vrot.slane %v2331_v41, %v4289_v32  ;;  %v2705_v61 = vrot.slane %v2698_v52, %v4278_v29  ;;  %v2713_v35 = vrot.slane %v3842_v39, %v4278_v29 }
 0x2ac   : > { %v2664_v56 = vcombine.low %v2655_v55, %v2663_v26  ;;  %v2680_v38 = vrot.slane %v2673_v62, %v4278_v29  ;;  %v2688_v9 = vrot.slane %v3841_v58, %v4278_v29  ;;  %v3866_v7 = vcombine.low %v2798_v11, %v2810_v40 }
 0x2ad   : > { %v2714_v30 = vcombine.low %v2705_v61, %v2713_v35  ;;  %v2723_v3 = vcombine.low %v2338_v44, %v2345_v31  ;;  %v3843_v16 = vcombine.high %v2338_v44, %v2345_v31  ;;  %v2799_v49 = vshrl.u32 %v5021_v20, 16 }
 0x2ae   : > { %v2689_v57 = vcombine.low %v2680_v38, %v2688_v9  ;;  %3983 = vmatpush3.bf16.msra.mxu0 %v3866_v7  ;;  %v2800_v33 = vshrl.u32 %v5025_v51, 16  ;;  %v2811_v0 = vshrl.u32 %v5028_v63, 16  ;;  %v2812_v19 = vshrl.u32 %v5032_v17, 16 }
 0x2af   : > { %v2730_v54 = vrot.slane %v2723_v3, %v4278_v29  ;;  %v2738_v1 = vrot.slane %v3843_v16, %v4278_v29  ;;  %3984 = vmatprep.subr.bf16.mxu0 %v4117_v6  ;;  %v2671_v11 = vrot.slane %v2664_v56, %v4289_v32  ;;  %v2721_v40 = vrot.slane %v2714_v30, %v4289_v32 }
 0x2b0   : > { %v2801_v13 = vpack.i.b16 %v2800_v33, %v2799_v49  ;;  %v2813_v23 = vpack.i.b16 %v2812_v19, %v2811_v0  ;;  %v2696_v60 = vrot.slane %v2689_v57, %v4289_v32  ;;  %v2522_v28 = vcombine.high %v4977_v47, %v4118_v12 }
 0x2b1   : > { %v2739_v22 = vcombine.low %v2730_v54, %v2738_v1  ;;  %v2823_v41 = vshrl.u32 %v2671_v11, 16  ;;  %v2547_v52 = vcombine.high %v4983_v5, %v4118_v12  ;;  %v2835_v62 = vshrl.u32 %v2721_v40, 16 }
 0x2b2   : > { %v3871_v39 = vcombine.low %v2801_v13, %v2813_v23  ;;  %v2822_v55 = vpack.i.b16 %v2696_v60, %v2671_v11  ;;  %v2824_v26 = vshrl.u32 %v2696_v60, 16  ;;  %v2793_v31 = vshrl.u32 %v2522_v28, 16 }
 0x2b3   : > { %v2746_v58 = vrot.slane %v2739_v22, %v4289_v32  ;;  %v2792_v44 = vpack.i.b16 %v2547_v52, %v2522_v28  ;;  %v2794_v61 = vshrl.u32 %v2547_v52, 16  ;;  %v2622_v0 = vcombine.high %v5028_v63, %v4118_v12 }
 0x2b4   : > { %3995 = vmatpush3.bf16.msra.mxu1 %v3871_v39  ;;  %v2825_v35 = vpack.i.b16 %v2824_v26, %v2823_v41  ;;  %v2647_v19 = vcombine.high %v5032_v17, %v4118_v12  ;;  %v2722_v41 = vcombine.high %v2721_v40, %v4118_v12 }
 0x2b5   : > { %v2834_v56 = vpack.i.b16 %v2746_v58, %v2721_v40  ;;  %3996 = vmatprep.subr.bf16.mxu1 %v4117_v6  ;;  %v2836_v47 = vshrl.u32 %v2746_v58, 16  ;;  %v3875_v38 = vcombine.low %v2780_v25, %v2792_v44  ;;  %v2795_v5 = vpack.i.b16 %v2794_v61, %v2793_v31 }
 0x2b6   : > { %v2572_v25 = vcombine.high %v5021_v20, %v4118_v12  ;;  %v2817_v23 = vshrl.u32 %v2622_v0, 16  ;;  %v2818_v28 = vshrl.u32 %v2647_v19, 16  ;;  %v2672_v20 = vcombine.high %v2671_v11, %v4118_v12 }
 0x2b7   : > { %v3867_v9 = vcombine.low %v2822_v55, %v2834_v56  ;;  %v2837_v7 = vpack.i.b16 %v2836_v47, %v2835_v62  ;;  %v3880_v30 = vcombine.low %v4921_v50, %v2795_v5  ;;  %v2597_v50 = vcombine.high %v5025_v51, %v4118_v12 }
 0x2b8   : > { %v2805_v54 = vshrl.u32 %v2572_v25, 16  ;;  %v2697_v51 = vcombine.high %v2696_v60, %v4118_v12  ;;  %v2747_v63 = vcombine.high %v2746_v58, %v4118_v12  ;;  %v2816_v55 = vpack.i.b16 %v2647_v19, %v2622_v0 }
 0x2b9   : > { %3985 = vmatpush3.bf16.msra.mxu0 %v3867_v9  ;;  %v3872_v3 = vcombine.low %v2825_v35, %v2837_v7  ;;  %v2806_v1 = vshrl.u32 %v2597_v50, 16  ;;  %v2804_v39 = vpack.i.b16 %v2597_v50, %v2572_v25  ;;  %v3142_v11 = vmul.f32 1.442695, %v3138_v48 }
 0x2ba   : > { %4002 = vmatprep.subr.bf16.mxu0 %v4117_v6  ;;  %v2819_v12 = vpack.i.b16 %v2818_v28, %v2817_v23  ;;  %v2829_v60 = vshrl.u32 %v2672_v20, 16  ;;  %v2830_v26 = vshrl.u32 %v2697_v51, 16  ;;  %v2842_v62 = vshrl.u32 %v2747_v63, 16  ;;  %v3185_v23 = vld [vmem:[#allocation3 + $0x18] sm:$0xff] }
 0x2bb   : > { %3997 = vmatpush3.bf16.msra.mxu1 %v3872_v3  ;;  %v2807_v40 = vpack.i.b16 %v2806_v1, %v2805_v54  ;;  %v3876_v24 = vcombine.low %v2804_v39, %v2816_v55  ;;  %v2828_v21 = vpack.i.b16 %v2697_v51, %v2672_v20  ;;  %v2840_v48 = vpack.i.b16 %v2747_v63, %v2722_v41  ;;  %v3184_v1 = vld [vmem:[#allocation3 + $0x10] sm:$0xff]  ;;  %v3211_v63 = vld [vmem:[#allocation4] sm:$0xff] }
 0x2bc   : > { %4014 = vmatprep.subr.bf16.mxu1 %v4117_v6  ;;  %v5168_v31 = vsub.f32 %v4923_v8, %v4928_v43 }
 0x2bd   : > { %v3881_v15 = vcombine.low %v2807_v40, %v2819_v12  ;;  %v3877_v44 = vcombine.low %v2828_v21, %v2840_v48 }
 0x2be   : > { %v3148_v61 = vmul.f32 1.442695, %v5168_v31  ;;  %v3213_v31 = vld [vmem:[#allocation4 + $0x10] sm:$0xff] }
 0x2cc   : > { %v3153_v16 = vpop.permute.xlu1 %3152 }
 0x2cd   : > { %v3170_v49 = vsub.f32 %v4794_v59, %v3153_v16 }
 0x2ce   : > { %v3158_v57 = vpop.permute.xlu0 %3157 }
 0x2cf   : > { %v3174_v33 = vmul.f32 1.442695, %v3170_v49  ;;  %v3171_v37 = vsub.f32 %v4798_v27, %v3158_v57  ;;  %v3182_v57 = vld [vmem:[#allocation3] sm:$0xff] }
 0x2d1   : > { %4064 = vpow2.f32 %v3174_v33  ;;  %v3176_v10 = vmul.f32 1.442695, %v3171_v37  ;;  %v3183_v33 = vld [vmem:[#allocation3 + $0x8] sm:$0xff] }
 0x2d3   : > { %4066 = vpow2.f32 %v3176_v10 }
 0x2d4   : > { %4068 = vpow2.f32 %v3142_v11 }
 0x2d5   : > { %4070 = vpow2.f32 %v3146_v42 }
 0x2d6   : > { %4072 = vpow2.f32 %v3148_v61 }
 0x2db   : > { %v4065_v59 = vpop.eup %4064 }
 0x2dc   : > { %v3190_v27 = vsel %vm3121_vm3, %v4065_v59, 0.0  ;;  %v3239_v13 = vpack.c.bf16 %v4065_v59, %v4065_v59 }
 0x2dd   : > { %v4067_v22 = vpop.eup %4066  ;;  %3191 = vadd.xlane.f32.xlu0 %v3190_v27 }
 0x2de   : > { %3987 = vmatmul.mubr.msk.bf16.vlgmr.msra.gmra.mrb[8].mxu0 %vm3121_vm3, %v3239_v13  ;;  %v3193_v17 = vsel %vm3121_vm3, %v4067_v22, 0.0  ;;  %v3240_v52 = vpack.c.bf16 %v4067_v22, %v4067_v22  ;;  %v4069_v34 = vpop.eup %4068 }
 0x2df   : > { %4003 = vmatpush3.bf16.msra.mxu0 %v4802_v4  ;;  %3194 = vadd.xlane.f32.xlu1 %v3193_v17  ;;  %v2841_v4 = vshrl.u32 %v2722_v41, 16  ;;  %v4071_v36 = vpop.eup %4070  ;;  %v3186_v37 = vmul.f32 %v4069_v34, %v3182_v57 }
 0x2e0   : > { %3999 = vmatmul.mubr.msk.bf16.vlgmr.msra.gmra.mrb[8].mxu1 %vm3121_vm3, %v3240_v52  ;;  %4004 = vmatprep.subr.bf16.mxu0 %v4117_v6  ;;  %v4073_v14 = vpop.eup %4072  ;;  %v3188_v27 = vmul.f32 %v4071_v36, %v3184_v1  ;;  %v3212_v52 = vld [vmem:[#allocation4 + $0x8] sm:$0xff] }
 0x2e1   : > { %4015 = vmatpush3.bf16.msra.mxu1 %v3879_v53  ;;  %4010 = vmatprep.mubr.msk.bf16.mxu0 %vm4119_vm1, %v4117_v6  ;;  %v2831_v53 = vpack.i.b16 %v2830_v26, %v2829_v60  ;;  %v2843_v58 = vpack.i.b16 %v2842_v62, %v2841_v4  ;;  %v3189_v22 = vmul.f32 %v4073_v14, %v3185_v23 }
 0x2e2   : > { %4016 = vmatprep.subr.bf16.mxu1 %v4117_v6  ;;  %4022 = vmatprep.mubr.msk.bf16.mxu1 %vm4119_vm1, %v4117_v6 }
 0x2e3   : > { %4005 = vmatpush3.bf16.msra.mxu0 %v3875_v38  ;;  %v3882_v35 = vcombine.low %v2831_v53, %v2843_v58 }
 0x2e4   : > { %4006 = vmatprep.subr.bf16.mxu0 %v4117_v6 }
 0x2e5   : > { %4017 = vmatpush3.bf16.msra.mxu1 %v3880_v30 }
 0x2e6   : > { %4018 = vmatprep.subr.bf16.mxu1 %v4117_v6 }
 0x2e7   : > { %4007 = vmatpush3.bf16.msra.mxu0 %v3876_v24 }
 0x2e8   : > { %4008 = vmatprep.subr.bf16.mxu0 %v4117_v6 }
 0x2e9   : > { %4019 = vmatpush3.bf16.msra.mxu1 %v3881_v15 }
 0x2ea   : > { %4020 = vmatprep.subr.bf16.mxu1 %v4117_v6 }
 0x2eb   : > { %4009 = vmatpush3.bf16.msra.mxu0 %v3877_v44 }
 0x2ed   : > { %4021 = vmatpush3.bf16.msra.mxu1 %v3882_v35  ;;  %v3214_v35 = vld [vmem:[#allocation4 + $0x18] sm:$0xff] }
 0x2f0   : > { %3217 = vperm.xlu1 %4062, %v4069_v34  }
 0x2f4   : > { %3227 = vperm.xlu1 %4062, %v4071_v36  }
 0x2f8   : > { %3232 = vperm.xlu1 %4062, %v4073_v14  }
 0x303   : > { %v3163_v56 = vpop.permute.xlu1 %3162 }
 0x304   : > { %v3172_v47 = vsub.f32 %v4817_v46, %v3163_v56  ;;  %v5169_v46 = vsub.f32 %v4867_v45, %v4877_v18 }
 0x306   : > { %v3178_v38 = vmul.f32 1.442695, %v3172_v47 }
 0x307   : > { %v3168_v8 = vpop.permute.xlu1 %3167 }
 0x308   : > { %4074 = vpow2.f32 %v3178_v38  ;;  %v3173_v43 = vsub.f32 %v4819_v2, %v3168_v8  ;;  %v3144_v2 = vmul.f32 1.442695, %v5169_v46 }
 0x30a   : > { %v3180_v5 = vmul.f32 1.442695, %v3173_v43 }
 0x30c   : > { %4076 = vpow2.f32 %v3180_v5 }
 0x30d   : > { %4078 = vpow2.f32 %v3144_v2 }
 0x312   : > { %v4075_v6 = vpop.eup %4074 }
 0x313   : > { %v3196_v9 = vsel %vm3121_vm3, %v4075_v6, 0.0  ;;  %v3241_v7 = vpack.c.bf16 %v4075_v6, %v4075_v6 }
 0x314   : > { %3197 = vadd.xlane.f32.xlu0 %v3196_v9 }
 0x315   : > { %4011 = vmatmul.mubr.msk.bf16.vlgmr.msra.gmra.mrb[12].mxu0 %vm3121_vm3, %v3241_v7 }
 0x316   : > { %v4077_v30 = vpop.eup %4076 }
 0x317   : > { %v3199_v3 = vsel %vm3121_vm3, %v4077_v30, 0.0  ;;  %v3242_v16 = vpack.c.bf16 %v4077_v30, %v4077_v30  ;;  %v4079_v49 = vpop.eup %4078 }
 0x318   : > { %3200 = vadd.xlane.f32.xlu0 %v3199_v3  ;;  %v3187_v50 = vmul.f32 %v4079_v49, %v3183_v33 }
 0x319   : > { %4023 = vmatmul.mubr.msk.bf16.vlgmr.msra.gmra.mrb[12].mxu1 %vm3121_vm3, %v3242_v16 }
 0x32e   : > { %3222 = vperm.xlu0 %4063, %v4079_v49  }
 0x36a   : > { %v3192_v10 = vpop.xlane.xlu0 %3191 }
 0x36b   : > { %v3202_v25 = vadd.f32 %v3192_v10, %v3186_v37 }
 0x36c   : > { %v3195_v0 = vpop.xlane.xlu1 %3194 }
 0x36d   : > { %3207 = vst.msk [vmem:[#allocation3] sm:$0xff] %vm281_vm2, %v3202_v25  ;;  %v3203_v19 = vadd.f32 %v3195_v0, %v3187_v50 }
 0x36f   : > { %3208 = vst.msk [vmem:[#allocation3 + $0x8] sm:$0xff] %vm281_vm2, %v3203_v19 }
 0x370   : > { %v3218_v17 = vpop.permute.xlu1 %3217 }
 0x371   : > { %v3235_v11 = vmul.f32 %v3218_v17, %v3211_v63 }
 0x374   : > { %v3498_v59 = vld [vmem:[#allocation3] sm:$0xff]  ;;  %v3228_v44 = vpop.permute.xlu1 %3227 }
 0x375   : > { %4080 = vrcp.f32 %v3498_v59  ;;  %v3237_v61 = vmul.f32 %v3228_v44, %v3213_v31 }
 0x376   : > { %v3499_v54 = vld [vmem:[#allocation3 + $0x8] sm:$0xff] }
 0x377   : > { %4082 = vrcp.f32 %v3499_v54 }
 0x378   : > { %v3233_v34 = vpop.permute.xlu1 %3232 }
 0x379   : > { %v3238_v38 = vmul.f32 %v3233_v34, %v3214_v35 }
 0x37f   : > { %v4081_v45 = vpop.eup %4080 }
 0x380   : > { %3508 = vperm.xlu0 %4063, %v4081_v45  }
 0x381   : > { %v4083_v18 = vpop.eup %4082 }
 0x382   : > { %3513 = vperm.xlu1 %4062, %v4083_v18  }
 0x3a1   : > { %v3198_v13 = vpop.xlane.xlu0 %3197 }
 0x3a2   : > { %v3204_v28 = vadd.f32 %v3198_v13, %v3188_v27 }
 0x3a4   : > { %3209 = vst.msk [vmem:[#allocation3 + $0x10] sm:$0xff] %vm281_vm2, %v3204_v28 }
 0x3a5   : > { %v3201_v20 = vpop.xlane.xlu0 %3200 }
 0x3a6   : > { %v3205_v51 = vadd.f32 %v3201_v20, %v3189_v22 }
 0x3a8   : > { %3210 = vst.msk [vmem:[#allocation3 + $0x18] sm:$0xff] %vm281_vm2, %v3205_v51 }
 0x3ab   : > { %v3500_v41 = vld [vmem:[#allocation3 + $0x10] sm:$0xff] }
 0x3ac   : > { %4084 = vrcp.f32 %v3500_v41 }
 0x3ad   : > { %v3223_v39 = vpop.permute.xlu0 %3222 }
 0x3ae   : > { %v3236_v12 = vmul.f32 %v3223_v39, %v3212_v52 }
 0x3af   : > { %v3501_v55 = vld [vmem:[#allocation3 + $0x18] sm:$0xff] }
 0x3b0   : > { %4086 = vrcp.f32 %v3501_v55 }
 0x3b1   : > { %v3296_v40 = vpop.f32.mrb[8].mxu0 }
 0x3b2   : > { %v3479_v60 = vadd.f32 %v3296_v40, %v3235_v11  ;;  %v3988_v26 = vpop.f32.mrb[9].mxu0 }
 0x3b3   : > { %v3299_v4 = vpop.f32.mrb[10].mxu0  ;;  %v3355_v62 = vpop.f32.mrb[8].mxu1 }
 0x3b4   : > { %3483 = vst.msk [vmem:[#allocation4] sm:$0xff] %vm290_vm0, %v3479_v60  ;;  %v3480_v24 = vadd.f32 %v3355_v62, %v3236_v12  ;;  %v3989_v21 = vpop.f32.mrb[11].mxu0  ;;  %v4000_v48 = vpop.f32.mrb[9].mxu1 }
 0x3b5   : > { %v3358_v42 = vpop.f32.mrb[10].mxu1 }
 0x3b6   : > { %v4085_v15 = vpop.eup %4084  ;;  %3484 = vst.msk [vmem:[#allocation4 + $0x8] sm:$0xff] %vm290_vm0, %v3480_v24  ;;  %v4001_v53 = vpop.f32.mrb[11].mxu1 }
 0x3b7   : > { %3518 = vperm.xlu0 %4063, %v4085_v15  }
 0x3ba   : > { %v4087_v58 = vpop.eup %4086 }
 0x3bb   : > { %3523 = vperm.xlu1 %4062, %v4087_v58   ;;  %v3494_v49 = vld [vmem:[#allocation4] sm:$0xff] }
 0x3bd   : > { %v3495_v33 = vld [vmem:[#allocation4 + $0x8] sm:$0xff] }
 0x3e8   : > { %v3414_v36 = vpop.f32.mrb[12].mxu0 }
 0x3e9   : > { %v3481_v14 = vadd.f32 %v3414_v36, %v3237_v61  ;;  %v4012_v56 = vpop.f32.mrb[13].mxu0 }
 0x3ea   : > { %v3417_v47 = vpop.f32.mrb[14].mxu0 }
 0x3eb   : > { %3485 = vst.msk [vmem:[#allocation4 + $0x10] sm:$0xff] %vm290_vm0, %v3481_v14  ;;  %v4013_v8 = vpop.f32.mrb[15].mxu0 }
 0x3ec   : > { %v3473_v43 = vpop.f32.mrb[12].mxu1 }
 0x3ed   : > { %v3482_v5 = vadd.f32 %v3473_v43, %v3238_v38  ;;  %v4024_v6 = vpop.f32.mrb[13].mxu1 }
 0x3ee   : > { %v3476_v9 = vpop.f32.mrb[14].mxu1 }
 0x3ef   : > { %3486 = vst.msk [vmem:[#allocation4 + $0x18] sm:$0xff] %vm290_vm0, %v3482_v5  ;;  %v4025_v7 = vpop.f32.mrb[15].mxu1 }
 0x3f2   : > { %v3496_v16 = vld [vmem:[#allocation4 + $0x10] sm:$0xff] }
 0x3f6   : > { %v3497_v37 = vld [vmem:[#allocation4 + $0x18] sm:$0xff] }
 0x3ff   : > { %v3509_v30 = vpop.permute.xlu0 %3508 }
 0x400   : > { %v3526_v57 = vmul.f32 %v3509_v30, %v3494_v49 }
 0x401   : > { %v3514_v3 = vpop.permute.xlu1 %3513 }
 0x402   : > { %v3527_v25 = vmul.f32 %v3514_v3, %v3495_v33 }
 0x436   : > { %v3519_v46 = vpop.permute.xlu0 %3518 }
 0x437   : > { %v3528_v2 = vmul.f32 %v3519_v46, %v3496_v16 }
 0x439   : > { %v3530_v50 = vcombine.low %v3526_v57, %v3528_v2  ;;  %v3531_v0 = vcombine.high %v3526_v57, %v3528_v2 }
 0x43a   : > { %v3524_v10 = vpop.permute.xlu1 %3523 }
 0x43b   : > { %v3529_v19 = vmul.f32 %v3524_v10, %v3497_v37  ;;  %v3538_v45 = vrot.slane %v3530_v50, %v4278_v29  ;;  %v3545_v18 = vrot.slane %v3531_v0, %v4278_v29 }
 0x43d   : > { %v3546_v59 = vcombine.low %v3527_v25, %v3529_v19  ;;  %v3547_v54 = vcombine.high %v3527_v25, %v3529_v19 }
 0x43f   : > { %v3554_v1 = vrot.slane %v3546_v59, %v4278_v29  ;;  %v3561_v27 = vrot.slane %v3547_v54, %v4278_v29 }
 0x441   : > { %v3562_v13 = vcombine.low %v3538_v45, %v3554_v1  ;;  %v3563_v23 = vcombine.high %v3538_v45, %v3554_v1  ;;  %v3578_v28 = vcombine.low %v3545_v18, %v3561_v27  ;;  %v3579_v22 = vcombine.high %v3545_v18, %v3561_v27 }
 0x443   : > { %v3570_v20 = vrot.slane %v3562_v13, %v4289_v32  ;;  %v3577_v51 = vrot.slane %v3563_v23, %v4289_v32  ;;  %v3586_v41 = vrot.slane %v3578_v28, %v4289_v32  ;;  %v3593_v63 = vrot.slane %v3579_v22, %v4289_v32 }
 0x445   : > { %v3598_v17 = vcombine.low %v3570_v20, %v3577_v51  ;;  %v3884_v52 = vcombine.high %v3570_v20, %v3577_v51  ;;  %v3614_v39 = vcombine.low %v3586_v41, %v3593_v63  ;;  %v3885_v55 = vcombine.high %v3586_v41, %v3593_v63 }
 0x447   : > { %v3605_v11 = vrot.slane %v3598_v17, %v4278_v29  ;;  %v3613_v40 = vrot.slane %v3884_v52, %v4278_v29  ;;  %v3621_v12 = vrot.slane %v3614_v39, %v4278_v29  ;;  %v3629_v60 = vrot.slane %v3885_v55, %v4278_v29 }
 0x449   : > { %v3631_v26 = vcombine.high %v3605_v11, %v3613_v40  ;;  %v3647_v4 = vcombine.high %v3621_v12, %v3629_v60  ;;  %v3630_v62 = vcombine.low %v3605_v11, %v3613_v40  ;;  %v3646_v24 = vcombine.low %v3621_v12, %v3629_v60 }
 0x44b   : > { %v3645_v21 = vrot.slane %v3631_v26, %v4289_v32  ;;  %v3661_v48 = vrot.slane %v3647_v4, %v4289_v32  ;;  %v3638_v42 = vrot.slane %v3630_v62, %v4289_v32  ;;  %v3654_v15 = vrot.slane %v3646_v24, %v4289_v32 }
 0x44d   : > { %v3664_v53 = vcombine.low %v3645_v21, %v3661_v48  ;;  %v3663_v58 = vcombine.high %v3638_v42, %v3654_v15  ;;  %v3662_v44 = vcombine.low %v3638_v42, %v3654_v15  ;;  %v3665_v29 = vcombine.high %v3645_v21, %v3661_v48 }
 0x44f   : > { %3671 = vrot.lane.b32.xlu1 %v3664_v53, %s4123_s30  ;;  %3667 = vrot.lane.b32.xlu0 %v3663_v58, %s4124_s4 }
 0x453   : > { %3675 = vrot.lane.b32.xlu0 %v3665_v29, %s4125_s5 }
 0x4c1   : > { %v3668_v31 = vpop.permute.xlu0 %3667  ;;  %v3672_v61 = vpop.permute.xlu1 %3671 }
 0x4c2   : > { %v3678_v35 = vsel %vm290_vm0, %v3662_v44, %v3668_v31 }
 0x4c3   : > { %v3680_v36 = vsel %vm3679_vm4, %v3678_v35, %v3672_v61 }
 0x4c5   : > { %v3676_v34 = vpop.permute.xlu0 %3675 }
 0x4c6   : > { %v3682_v32 = vsel %vm3681_vm5, %v3680_v36, %v3676_v34 }
 0x4c7   : > { %v3683_v14 = vpack.c.bf16 %v3682_v32, %v3682_v32 }
 0x4c9   : > { %3685 = vst.msk [vmem:[%s275_s8] sm:$0xf] %vm3684_vm6, %v3683_v14 }
 0x4ca PF: > { %s13_s14 = sadd.s32 1, %s4112_s14   ;;  %s5170_s12 = smov %s4108_s13 }
 0x4cb   : > { %p10_p5 = scmp.ge.s32.totalorder %s13_s14, 4   ;;  %s5171_s13 = smov %s5173_s15 }
 0x4cd   :  { %12 = sbr.rel (!%p10_p5) target bundleno = 2 (0x2), region = 76 }

</bundles_post_ra>
